<compile_context>
chip_gen: v5e
topology: v5e:2x2
jax: 0.10.0
libtpu: 0.0.40
codegen_flags: <defaults>
</compile_context>

<pallas_src>
import jax
import jax.numpy as jnp
from jax.experimental import pallas as pl
from jax.experimental.pallas import tpu as pltpu


IN_DIM = 60
H1, H2, H3 = 256, 512, 768
OUT_DIM = 6000
TN = 2048                                        # layer-3 output-feature tile
OUT_PADDED = ((OUT_DIM + TN - 1) // TN) * TN     # 6000 -> 6144
N_TILES = OUT_PADDED // TN                       # 3 grid steps


def _decoder_kernel(x_ref, w0_ref, b0_ref, w1_ref, b1_ref, w2_ref, b2_ref,
                    w3_ref, b3_ref, alpha_ref, o_ref):
    """Fused decoder.  Grid iterates over layer-3 output tiles only.

    x:(B,60) f32   w0:(60,256) w1:(256,512) w2:(512,768) bf16 (VMEM-resident)
    w3_ref:(768,TN) bf16 contiguous tile of the tile-major (3,768,TN) weight
    b*_ref:(1,N) f32   alpha_ref:(3,) f32 in SMEM   o_ref:(B,TN) f32
    """
    f32 = jnp.float32
    bf16 = jnp.bfloat16

    # Layers 0..2: tiny (B=2), recomputed every step so there is no cross-step
    # state (lets the grid axis be "parallel"); cost is hidden under the DMA.
    # bf16 x bf16 MXU dots with f32 accumulation; bias + PReLU in f32.
    h = x_ref[...].astype(bf16)
    h = jnp.dot(h, w0_ref[...], preferred_element_type=f32) + b0_ref[...]
    h = jnp.where(h > 0, h, alpha_ref[0] * h).astype(bf16)          # PReLU 0

    h = jnp.dot(h, w1_ref[...], preferred_element_type=f32) + b1_ref[...]
    h = jnp.where(h > 0, h, alpha_ref[1] * h).astype(bf16)          # PReLU 1

    h = jnp.dot(h, w2_ref[...], preferred_element_type=f32) + b2_ref[...]
    h = jnp.where(h > 0, h, alpha_ref[2] * h).astype(bf16)          # PReLU 2

    # Layer 3: stream one contiguous bf16 weight tile per step, feed it to the
    # MXU directly (no f32 upcast), accumulate in f32.
    y = jnp.dot(h, w3_ref[...], preferred_element_type=f32) + b3_ref[...]
    o_ref[...] = y


def decoder_forward(x, params, *, tn=TN):
    """x:(B,60) f32 -> (B,6000) f32, matching Decoder.forward."""
    B, K = x.shape
    assert K == IN_DIM
    w0, w1, w2, w3 = params["w0"], params["w1"], params["w2"], params["w3"]
    b0, b1, b2, b3 = params["b0"], params["b1"], params["b2"], params["b3"]
    alphas = params["alphas"]

    n_tiles, h3, tn_w = w3.shape                 # tile-major, pre-packed at init
    assert h3 == H3 and tn_w == tn and n_tiles * tn == OUT_PADDED

    def resident(shape):                         # full block, fetched once
        return pl.BlockSpec(shape, lambda j, _n=len(shape): (0,) * _n)

    out = pl.pallas_call(
        _decoder_kernel,
        out_shape=jax.ShapeDtypeStruct((B, OUT_PADDED), jnp.float32),
        grid_spec=pltpu.PrefetchScalarGridSpec(
            num_scalar_prefetch=0,
            grid=(n_tiles,),
            in_specs=[
                resident((B, IN_DIM)),                       # x
                resident(w0.shape), resident(b0.shape),      # layer 0
                resident(w1.shape), resident(b1.shape),      # layer 1
                resident(w2.shape), resident(b2.shape),      # layer 2
                # contiguous (H3, tn) weight tile j; leading dim squeezed
                pl.BlockSpec((None, H3, tn), lambda j: (j, 0, 0)),
                pl.BlockSpec((1, tn), lambda j: (0, j)),     # layer-3 bias tile
                pl.BlockSpec(memory_space=pltpu.MemorySpace.SMEM),  # PReLU alphas
            ],
            out_specs=pl.BlockSpec((B, tn), lambda j: (0, j)),
        ),
        compiler_params=pltpu.CompilerParams(
            # No cross-step state (layers 0..2 recomputed per step), so the
            # streaming axis can be split across v7x's two TensorCores.
            dimension_semantics=("parallel",),
        ),
    )(x, w0, b0, w1, b1, w2, b2, w3, b3, alphas)

    return out[:, :OUT_DIM]


# ----------------------------------------------------------------------------
# Deterministic parameter construction (mirrors nn.Linear / nn.PReLU init).
# Weights bf16 (halves HBM traffic), biases f32.  Layer-3 weight padded to
# OUT_PADDED and repacked to tile-major (N_TILES, H3, TN) once, at init.
# ----------------------------------------------------------------------------
def init_decoder_params(key, weight_dtype=jnp.bfloat16):
    dims = [(IN_DIM, H1), (H1, H2), (H2, H3), (H3, OUT_DIM)]
    params = {}
    for i, (fan_in, fan_out) in enumerate(dims):
        key, kw, kb = jax.random.split(key, 3)
        bound = 1.0 / (fan_in ** 0.5)
        # stored (in, out): transpose of PyTorch's (out, in), so y = x @ W + b
        w = jax.random.uniform(kw, (fan_in, fan_out), jnp.float32, -bound, bound)
        b = jax.random.uniform(kb, (fan_out,), jnp.float32, -bound, bound)
        if i == 3:
            w = jnp.pad(w, ((0, 0), (0, OUT_PADDED - OUT_DIM)))
            # tile-major: tile j is w3_padded[:, j*TN:(j+1)*TN], stored contiguously
            w = w.reshape(H3, N_TILES, TN).transpose(1, 0, 2)
            b = jnp.pad(b, ((0, OUT_PADDED - OUT_DIM),))
        params[f"w{i}"] = w.astype(weight_dtype)
        params[f"b{i}"] = b.reshape(1, -1).astype(jnp.float32)
    # nn.PReLU() default: one shared parameter per module, init 0.25 (3 modules)
    params["alphas"] = jnp.full((3,), 0.25, jnp.float32)
    return params


def decoder_reference(x, params):
    """Pure-JAX reference using the identical bf16 weights and the same
    bf16-activation rounding path as the kernel."""
    bf16, f32 = jnp.bfloat16, jnp.float32
    h = x.astype(bf16)
    for i in range(3):
        h = jnp.dot(h, params[f"w{i}"], preferred_element_type=f32) + params[f"b{i}"]
        a = params["alphas"][i]
        h = jnp.where(h > 0, h, a * h).astype(bf16)
    w3 = jnp.transpose(params["w3"], (1, 0, 2)).reshape(H3, OUT_PADDED)
    y = jnp.dot(h, w3, preferred_element_type=f32) + params["b3"]
    return y[:, :OUT_DIM]


if __name__ == "__main__":
    key = jax.random.PRNGKey(0)
    key, kx = jax.random.split(key)

    B = 2
    x = jax.random.normal(kx, (B, IN_DIM), jnp.float32)
    params = init_decoder_params(key)

    fwd = jax.jit(decoder_forward)
    out = jax.block_until_ready(fwd(x, params))

    ref = decoder_reference(x, params)
    assert out.shape == (B, OUT_DIM), out.shape
    # Both paths use identical bf16 weights and bf16 hidden activations with
    # f32 accumulation; tolerance covers MXU-vs-XLA accumulation order only.
    assert jnp.allclose(out, ref, atol=4e-3, rtol=4e-3), float(
        jnp.max(jnp.abs(out - ref)))

    print("KERNEL_OK")
</pallas_src>

<mosaic_0001>
module attributes {stable_mosaic.version = 11 : i64} {
  func.func @_decoder_kernel(%arg0: i32, %arg1: memref<2x60xf32, #tpu.memory_space<vmem>>, %arg2: memref<60x256xbf16, #tpu.memory_space<vmem>>, %arg3: memref<1x256xf32, #tpu.memory_space<vmem>>, %arg4: memref<256x512xbf16, #tpu.memory_space<vmem>>, %arg5: memref<1x512xf32, #tpu.memory_space<vmem>>, %arg6: memref<512x768xbf16, #tpu.memory_space<vmem>>, %arg7: memref<1x768xf32, #tpu.memory_space<vmem>>, %arg8: memref<1x768x2048xbf16, #tpu.memory_space<vmem>>, %arg9: memref<1x2048xf32, #tpu.memory_space<vmem>>, %arg10: memref<3xf32, #tpu.memory_space<smem>>, %arg11: memref<2x2048xf32, #tpu.memory_space<vmem>>) attributes {dimension_semantics = [#tpu.dimension_semantics<parallel>], iteration_bounds = array<i64: 3>, scalar_prefetch = 0 : i64, scratch_operands = 0 : i64, tpu.core_type = #tpu.core_type<tc>, window_params = [{pipeline_mode = #tpu.pipeline_mode<synchronous>, transform_indices = @transform_0, window_bounds = array<i64: 2, 60>}, {pipeline_mode = #tpu.pipeline_mode<synchronous>, transform_indices = @transform_1, window_bounds = array<i64: 60, 256>}, {pipeline_mode = #tpu.pipeline_mode<synchronous>, transform_indices = @transform_2, window_bounds = array<i64: 1, 256>}, {pipeline_mode = #tpu.pipeline_mode<synchronous>, transform_indices = @transform_3, window_bounds = array<i64: 256, 512>}, {pipeline_mode = #tpu.pipeline_mode<synchronous>, transform_indices = @transform_4, window_bounds = array<i64: 1, 512>}, {pipeline_mode = #tpu.pipeline_mode<synchronous>, transform_indices = @transform_5, window_bounds = array<i64: 512, 768>}, {pipeline_mode = #tpu.pipeline_mode<synchronous>, transform_indices = @transform_6, window_bounds = array<i64: 1, 768>}, {transform_indices = @transform_7, window_bounds = array<i64: 1, 768, 2048>}, {transform_indices = @transform_8, window_bounds = array<i64: 1, 2048>}, {transform_indices = @transform_9, window_bounds = array<i64: 3>}, {transform_indices = @transform_10, window_bounds = array<i64: 2, 2048>}]} {
    %c0 = arith.constant 0 : index
    %c0_0 = arith.constant 0 : index
    %0 = vector.load %arg1[%c0, %c0_0] : memref<2x60xf32, #tpu.memory_space<vmem>>, vector<2x60xf32>
    %1 = arith.truncf %0 : vector<2x60xf32> to vector<2x60xbf16>
    %c0_1 = arith.constant 0 : index
    %c0_2 = arith.constant 0 : index
    %2 = vector.load %arg2[%c0_1, %c0_2] : memref<60x256xbf16, #tpu.memory_space<vmem>>, vector<60x256xbf16>
    %cst = arith.constant dense<0.000000e+00> : vector<2x256xf32>
    %3 = tpu.matmul %1, %2, %cst {dimension_numbers = #tpu.dot_dimension_numbers<[1], [0], [0], [1], [0, 0, 1, 1], [], []>} : vector<2x60xbf16>, vector<60x256xbf16>, vector<2x256xf32> -> vector<2x256xf32>
    %c0_3 = arith.constant 0 : index
    %c0_4 = arith.constant 0 : index
    %4 = vector.load %arg3[%c0_3, %c0_4] : memref<1x256xf32, #tpu.memory_space<vmem>>, vector<1x256xf32>
    %5 = vector.broadcast %4 : vector<1x256xf32> to vector<2x256xf32>
    %6 = arith.addf %3, %5 : vector<2x256xf32>
    %cst_5 = arith.constant 0.000000e+00 : f32
    %7 = vector.broadcast %cst_5 : f32 to vector<2x256xf32>
    %8 = arith.cmpf ogt, %6, %7 : vector<2x256xf32>
    %c0_6 = arith.constant 0 : index
    %9 = memref.load %arg10[%c0_6] : memref<3xf32, #tpu.memory_space<smem>>
    %10 = vector.broadcast %9 : f32 to vector<2x256xf32>
    %11 = arith.mulf %10, %6 : vector<2x256xf32>
    %12 = arith.select %8, %6, %11 : vector<2x256xi1>, vector<2x256xf32>
    %13 = arith.truncf %12 : vector<2x256xf32> to vector<2x256xbf16>
    %c0_7 = arith.constant 0 : index
    %c0_8 = arith.constant 0 : index
    %14 = vector.load %arg4[%c0_7, %c0_8] : memref<256x512xbf16, #tpu.memory_space<vmem>>, vector<256x512xbf16>
    %cst_9 = arith.constant dense<0.000000e+00> : vector<2x512xf32>
    %15 = tpu.matmul %13, %14, %cst_9 {dimension_numbers = #tpu.dot_dimension_numbers<[1], [0], [0], [1], [0, 0, 1, 1], [], []>} : vector<2x256xbf16>, vector<256x512xbf16>, vector<2x512xf32> -> vector<2x512xf32>
    %c0_10 = arith.constant 0 : index
    %c0_11 = arith.constant 0 : index
    %16 = vector.load %arg5[%c0_10, %c0_11] : memref<1x512xf32, #tpu.memory_space<vmem>>, vector<1x512xf32>
    %17 = vector.broadcast %16 : vector<1x512xf32> to vector<2x512xf32>
    %18 = arith.addf %15, %17 : vector<2x512xf32>
    %cst_12 = arith.constant 0.000000e+00 : f32
    %19 = vector.broadcast %cst_12 : f32 to vector<2x512xf32>
    %20 = arith.cmpf ogt, %18, %19 : vector<2x512xf32>
    %c1 = arith.constant 1 : index
    %21 = memref.load %arg10[%c1] : memref<3xf32, #tpu.memory_space<smem>>
    %22 = vector.broadcast %21 : f32 to vector<2x512xf32>
    %23 = arith.mulf %22, %18 : vector<2x512xf32>
    %24 = arith.select %20, %18, %23 : vector<2x512xi1>, vector<2x512xf32>
    %25 = arith.truncf %24 : vector<2x512xf32> to vector<2x512xbf16>
    %c0_13 = arith.constant 0 : index
    %c0_14 = arith.constant 0 : index
    %26 = vector.load %arg6[%c0_13, %c0_14] : memref<512x768xbf16, #tpu.memory_space<vmem>>, vector<512x768xbf16>
    %cst_15 = arith.constant dense<0.000000e+00> : vector<2x768xf32>
    %27 = tpu.matmul %25, %26, %cst_15 {dimension_numbers = #tpu.dot_dimension_numbers<[1], [0], [0], [1], [0, 0, 1, 1], [], []>} : vector<2x512xbf16>, vector<512x768xbf16>, vector<2x768xf32> -> vector<2x768xf32>
    %c0_16 = arith.constant 0 : index
    %c0_17 = arith.constant 0 : index
    %28 = vector.load %arg7[%c0_16, %c0_17] : memref<1x768xf32, #tpu.memory_space<vmem>>, vector<1x768xf32>
    %29 = vector.broadcast %28 : vector<1x768xf32> to vector<2x768xf32>
    %30 = arith.addf %27, %29 : vector<2x768xf32>
    %cst_18 = arith.constant 0.000000e+00 : f32
    %31 = vector.broadcast %cst_18 : f32 to vector<2x768xf32>
    %32 = arith.cmpf ogt, %30, %31 : vector<2x768xf32>
    %c2 = arith.constant 2 : index
    %33 = memref.load %arg10[%c2] : memref<3xf32, #tpu.memory_space<smem>>
    %34 = vector.broadcast %33 : f32 to vector<2x768xf32>
    %35 = arith.mulf %34, %30 : vector<2x768xf32>
    %36 = arith.select %32, %30, %35 : vector<2x768xi1>, vector<2x768xf32>
    %37 = arith.truncf %36 : vector<2x768xf32> to vector<2x768xbf16>
    %c0_19 = arith.constant 0 : index
    %c0_20 = arith.constant 0 : index
    %c0_21 = arith.constant 0 : index
    %38 = vector.load %arg8[%c0_19, %c0_20, %c0_21] : memref<1x768x2048xbf16, #tpu.memory_space<vmem>>, vector<1x768x2048xbf16>
    %39 = vector.shape_cast %38 : vector<1x768x2048xbf16> to vector<768x2048xbf16>
    %cst_22 = arith.constant dense<0.000000e+00> : vector<2x2048xf32>
    %40 = tpu.matmul %37, %39, %cst_22 {dimension_numbers = #tpu.dot_dimension_numbers<[1], [0], [0], [1], [0, 0, 1, 1], [], []>} : vector<2x768xbf16>, vector<768x2048xbf16>, vector<2x2048xf32> -> vector<2x2048xf32>
    %c0_23 = arith.constant 0 : index
    %c0_24 = arith.constant 0 : index
    %41 = vector.load %arg9[%c0_23, %c0_24] : memref<1x2048xf32, #tpu.memory_space<vmem>>, vector<1x2048xf32>
    %42 = vector.broadcast %41 : vector<1x2048xf32> to vector<2x2048xf32>
    %43 = arith.addf %40, %42 : vector<2x2048xf32>
    %c0_25 = arith.constant 0 : index
    %c0_26 = arith.constant 0 : index
    %44 = vector.load %arg11[%c0_25, %c0_26] : memref<2x2048xf32, #tpu.memory_space<vmem>>, vector<2x2048xf32>
    tpu.vector_store %arg11[%c0_25, %c0_26], %43 {strides = array<i32>} : memref<2x2048xf32, #tpu.memory_space<vmem>>, vector<2x2048xf32>,
    return
  }
  func.func @transform_0(%arg0: i32) -> (i32, i32) {
    %c0_i32 = arith.constant 0 : i32
    %c0_i32_0 = arith.constant 0 : i32
    %c0_i32_1 = arith.constant 0 : i32
    return %c0_i32, %c0_i32_0 : i32, i32
  }
  func.func @transform_1(%arg0: i32) -> (i32, i32) {
    %c0_i32 = arith.constant 0 : i32
    %c0_i32_0 = arith.constant 0 : i32
    %c0_i32_1 = arith.constant 0 : i32
    return %c0_i32, %c0_i32_0 : i32, i32
  }
  func.func @transform_2(%arg0: i32) -> (i32, i32) {
    %c0_i32 = arith.constant 0 : i32
    %c0_i32_0 = arith.constant 0 : i32
    %c0_i32_1 = arith.constant 0 : i32
    return %c0_i32, %c0_i32_0 : i32, i32
  }
  func.func @transform_3(%arg0: i32) -> (i32, i32) {
    %c0_i32 = arith.constant 0 : i32
    %c0_i32_0 = arith.constant 0 : i32
    %c0_i32_1 = arith.constant 0 : i32
    return %c0_i32, %c0_i32_0 : i32, i32
  }
  func.func @transform_4(%arg0: i32) -> (i32, i32) {
    %c0_i32 = arith.constant 0 : i32
    %c0_i32_0 = arith.constant 0 : i32
    %c0_i32_1 = arith.constant 0 : i32
    return %c0_i32, %c0_i32_0 : i32, i32
  }
  func.func @transform_5(%arg0: i32) -> (i32, i32) {
    %c0_i32 = arith.constant 0 : i32
    %c0_i32_0 = arith.constant 0 : i32
    %c0_i32_1 = arith.constant 0 : i32
    return %c0_i32, %c0_i32_0 : i32, i32
  }
  func.func @transform_6(%arg0: i32) -> (i32, i32) {
    %c0_i32 = arith.constant 0 : i32
    %c0_i32_0 = arith.constant 0 : i32
    %c0_i32_1 = arith.constant 0 : i32
    return %c0_i32, %c0_i32_0 : i32, i32
  }
  func.func @transform_7(%arg0: i32) -> (i32, i32, i32) {
    %c0_i32 = arith.constant 0 : i32
    %c0_i32_0 = arith.constant 0 : i32
    %c0_i32_1 = arith.constant 0 : i32
    return %arg0, %c0_i32, %c0_i32_0 : i32, i32, i32
  }
  func.func @transform_8(%arg0: i32) -> (i32, i32) {
    %c0_i32 = arith.constant 0 : i32
    %c0_i32_0 = arith.constant 0 : i32
    return %c0_i32, %arg0 : i32, i32
  }
  func.func @transform_9(%arg0: i32) -> i32 {
    %c0_i32 = arith.constant 0 : i32
    %c0_i32_0 = arith.constant 0 : i32
    return %c0_i32 : i32
  }
  func.func @transform_10(%arg0: i32) -> (i32, i32) {
    %c0_i32 = arith.constant 0 : i32
    %c0_i32_0 = arith.constant 0 : i32
    return %c0_i32, %arg0 : i32, i32
  }
}

</mosaic_0001>

<bundles_post_ra>
// kernel: decoder_forward.1
= control target key start
LH: loop header
LB: loop body
LE: loop exit
PB: predicated region body
PF: predicated region fallthrough
CT: control target
= control target key end

     0   :  { %s16709_s0 = inlined_call_operand.hbm [shape: f32[2,60], index: 0, kind: input, shape index: {}]   ;;  %s16710_s1 = inlined_call_operand.hbm [shape: bf16[60,256], index: 1, kind: input, shape index: {}]   ;;  %s16711_s2 = inlined_call_operand.hbm [shape: f32[1,256], index: 2, kind: input, shape index: {}]   ;;  %s16712_s3 = inlined_call_operand.hbm [shape: bf16[256,512], index: 3, kind: input, shape index: {}]   ;;  %s16713_s4 = inlined_call_operand.hbm [shape: f32[1,512], index: 4, kind: input, shape index: {}]   ;;  %s16714_s5 = inlined_call_operand.hbm [shape: bf16[512,768], index: 5, kind: input, shape index: {}]   ;;  %s16715_s6 = inlined_call_operand.hbm [shape: f32[1,768], index: 6, kind: input, shape index: {}]   ;;  %s16716_s7 = inlined_call_operand.hbm [shape: bf16[3,768,2048], index: 7, kind: input, shape index: {}]   ;;  %s16717_s8 = inlined_call_operand.hbm [shape: f32[1,6144], index: 8, kind: input, shape index: {}]   ;;  %s16718_s9 = inlined_call_operand.hbm [shape: f32[3], index: 9, kind: input, shape index: {}]   ;;  %s16719_s10 = inlined_call_operand.vmem [shape: f32[2,6144], index: 10, kind: output, shape index: {}]  }
   0x1   :  { %16723 = sst [smem:[#allocation26_spill]] %s16710_s1 }
   0x2   :  { %16724 = sst [smem:[#allocation27_spill]] %s16712_s3 }
   0x3   :  { %16725 = sst [smem:[#allocation28_spill]] %s16714_s5 }
   0x4   :  { %16726 = sst [smem:[#allocation29_spill]] %s16716_s7 }
   0x5   :  { %15 = vsyncpa [#allocation3], 0 }
   0x6   :  { %16 = vsyncpa [#allocation6], 0 }
   0x7   :  { %17 = vsyncpa [#allocation9], 0 }
   0x8   :  { %18 = vsyncpa [#allocation12], 0 }
   0x9   :  { %19 = vsyncpa [#allocation15], 0 }
   0xa   :  { %21 = vsyncpa [#allocation15 + $0x1], 0 }
   0xb   :  { %22 = vsyncpa [#allocation4], 0  ;;  %s14519_s13 = smov 0   ;;  %s14521_s14 = smov 0  }
   0xc   :  { %s14523_s15 = smov 0   ;;  %s14525_s16 = smov 0  }
   0xd LB: > { %s16727_s1 = sld [smem:[#allocation26_spill]]  ;;  %s14543_s20 = sadd.s32 4294967295, %s14446_s16   ;;  %s14446_s16 = sphi %s14525_s16, %s16739_s16   ;;  %s14442_s15 = sphi %s14523_s15, %s16743_s15   ;;  %s14438_s14 = sphi %s14521_s14, %s16742_s14   ;;  %s14434_s13 = sphi %s14519_s13, %s16741_s13  }
   0xe   : > { %p8777_p0 = scmp.ge.s32.totalorder %s14446_s16, 1  ;;  %p196_p1 = scmp.eq.s32.totalorder %s14543_s20, 0 }
   0xf   : > { %p279_p2 = scmp.lt.s32.totalorder %s14446_s16, 4  ;;  %s14448_s22 = smov [#allocation5]  }
  0x10   : > { %s304_s23 = sshll.u32 %s14448_s22, 4  ;;  %s16729_s3 = sld [smem:[#allocation27_spill]]  ;;  %s305_s23 = int_to_ptr.vmem [resolvable:$true] %s304_s23 }
  0x11   : > { %p14548_p3 = pnand %p8777_p0, %p279_p2  ;;  %s14449_s28 = smov [#allocation8]  }
  0x12   : > { %s330_s29 = sshll.u32 %s14449_s28, 4  ;;  %s14450_s30 = smov 128   ;;  %s331_s29 = int_to_ptr.vmem [resolvable:$true] %s330_s29 }
  0x13   : > { %s302_s19 = sshll.u32 %s16727_s1, 4  ;;  %p14007_p4 = pneg %p14548_p3  ;;  %s303_s19 = int_to_ptr.hbm [resolvable:$true] %s302_s19 }
  0x14   : > { %s14451_s11 = smov 8   ;;  %s14452_s12 = smov 256  }
  0x15   : > { %p14559_p5 = pnand %p14007_p4, %p196_p1  ;;  %s14453_s17 = smov 16  }
  0x16   : > { %s328_s26 = sshll.u32 %s16729_s3, 4  ;;  %s16731_s5 = sld [smem:[#allocation28_spill]]  ;;  %s329_s26 = int_to_ptr.hbm [resolvable:$true] %s328_s26 }
  0x17   : > { %14013 = dma.hbm_to_vmem [thread:$0]  (!%p14559_p5), %s303_s19, 1024, %s305_s23, [#allocation6], %s14450_s30, %s14450_s30, %s14451_s11  }
  0x18   : > { %14019 = dma.hbm_to_vmem [thread:$0]  (!%p14559_p5), %s329_s26, 8192, %s331_s29, [#allocation9], %s14452_s12, %s14452_s12, %s14453_s17  }
  0x19   : > { %s14454_s25 = smov [#allocation11]   ;;  %s14455_s23 = smov 384  }
  0x1a   : > { %s356_s19 = sshll.u32 %s14454_s25, 4  ;;  %s14456_s28 = smov 24   ;;  %s357_s19 = int_to_ptr.vmem [resolvable:$true] %s356_s19 }
  0x1b   : > { %s14573_s26 = sadd.s32 1, %s14446_s16   ;;  %s182_s30 = sadd.s32 1, %s14442_s15 }
  0x1c   : > { %s354_s24 = sshll.u32 %s16731_s5, 4  ;;  %16732 = sst [smem:[#allocation24_spill]] %s14573_s26  ;;  %s355_s24 = int_to_ptr.hbm [resolvable:$true] %s354_s24 }
  0x1d   : > { %14025 = dma.hbm_to_vmem [thread:$0]  (!%p14559_p5), %s355_s24, 24576, %s357_s19, [#allocation12], %s14455_s23, %s14455_s23, %s14456_s28  }
  0x1e   : > { %s179_s29 = ssub.s32 %s14446_s16, %s14573_s26  ;;  %p189_p7 = scmp.ne.s32.totalorder %s14442_s15, %s14438_s14 }
  0x1f   : > { %p180_p6 = scmp.eq.s32.totalorder %s179_s29, 0  ;;  %p190_p8 = scmp.eq.s32.totalorder %s14446_s16, 0 }
  0x20   : > { %p195_p9 = scmp.ne.s32.totalorder %s14438_s14, %s14434_s13  ;;  %p14047_p12 = scmp.lt.s32.totalorder %s14446_s16, 3 }
  0x21   : > { %s14584_s11 = scalar_select %p180_p6, %s14442_s15, %s182_s30  }
  0x22   : > { %p191_p10 = por %p190_p8, %p189_p7  ;;  %p14588_p11 = por %p196_p1, %p195_p9 }
  0x23   : > { %16733 = sst [smem:[#allocation25_spill]] %s14584_s11  ;;  %s392_s17 = sand.u32 1, %s14446_s16  }
  0x24   : > { %s16720_s18 = sand.u32 1, %s14442_s15   ;;  %p14597_p13 = pnand %p14047_p12, %p191_p10 }
  0x25   : > { %s13968_s22 = smul.u32 6144, %s16720_s18  ;;  %s16736_s7 = sld [smem:[#allocation29_spill]] }
  0x26   : > { %s13969_s13 = smul.u32 6144, %s14446_s16  ;;  %s14605_s1 = scalar_lea.sflag [#allocation15], %s392_s17 }
  0x27   : > { %s396_s28 = scalar_lea.vmem [#allocation14], %s13968_s22  ;;  %p14201_p2 = pneg %p14597_p13 }
  0x28   : > { %s404_s29 = sshll.u32 %s396_s28, 4  ;;  %s405_s29 = int_to_ptr.vmem [resolvable:$true] %s404_s29 }
  0x2b   : > { %s401_s23 = scalar_lea.hbm %s16736_s7, %s13969_s13  ;;  %s14204_s22 = scalar_lea.hbm %s16736_s7, 18432 }
  0x2c   : > { %s402_s30 = sshll.u32 %s401_s23, 4  ;;  %s403_s30 = int_to_ptr.hbm [resolvable:$true] %s402_s30 }
  0x2d   : > { %s14197_s3 = sshra.s32 %s403_s30, 4  ;;  %s14198_s3 = int_to_ptr.hbm [resolvable:$true] %s14197_s3 }
  0x2e   : > { %s14199_s18 = scalar_lea.hbm %s14198_s3, 6144  ;;  %p14205_p7 = scmp.lt.s32.totalorder %s14198_s3, %s16736_s7 }
  0x2f   : > { %p14200_p0 = scmp.ne.s32.totalorder %s14198_s3, %s14199_s18  ;;  %p14206_p8 = scmp.lt.s32.totalorder %s14204_s22, %s14199_s18 }
  0x31   : > { %p14202_p4 = pnand %p14201_p2, %p14200_p0  ;;  %p14207_p9 = por %p14206_p8, %p14205_p7 }
  0x33   : > { %p14203_p6 = pneg %p14202_p4 }
  0x35   : > { %p14208_p10 = pnand %p14207_p9, %p14203_p6 }
  0x37   : > { %14211 = shalt.err (!%p14208_p10)
}
  0x38   : > { %s14457_s17 = smov 1024   ;;  %s14458_s23 = smov 64  }
  0x39   : > { %14035 = dma.hbm_to_vmem [thread:$0]  (!%p14597_p13), %s403_s30, 98304, %s405_s29, %s14605_s1, %s14457_s17, %s14457_s17, %s14458_s23  }
  0x3a   : > { %s291_s5 = sshll.u32 %s16709_s0, 4  ;;  %s14459_s25 = smov [#allocation2]   ;;  %s292_s5 = int_to_ptr.hbm [resolvable:$true] %s291_s5 }
  0x3b   : > { %s293_s13 = sshll.u32 %s14459_s25, 4  ;;  %s317_s22 = sshll.u32 %s16711_s2, 4  ;;  %s294_s13 = int_to_ptr.vmem [resolvable:$true] %s293_s13  ;;  %s318_s22 = int_to_ptr.hbm [resolvable:$true] %s317_s22 }
  0x3c   : > { %14010 = dma.hbm_to_vmem [thread:$0]  (!%p14559_p5), %s292_s5, 32, %s294_s13, [#allocation3]  }
  0x3d   : > { %s14460_s19 = smov [#allocation7]   ;;  %s343_s11 = sshll.u32 %s16713_s4, 4  ;;  %s344_s11 = int_to_ptr.hbm [resolvable:$true] %s343_s11 }
  0x3e   : > { %s319_s7 = sshll.u32 %s14460_s19, 4  ;;  %s369_s23 = sshll.u32 %s16715_s6, 4  ;;  %s320_s7 = int_to_ptr.vmem [resolvable:$true] %s319_s7  ;;  %s370_s23 = int_to_ptr.hbm [resolvable:$true] %s369_s23 }
  0x3f   : > { %14016 = dma.hbm_to_vmem [thread:$0]  (!%p14559_p5), %s318_s22, 32, %s320_s7, [#allocation6]  }
  0x40   : > { %s14461_s28 = smov [#allocation10]   ;;  %s14462_s26 = smov [#allocation13]  }
  0x41   : > { %s345_s5 = sshll.u32 %s14461_s28, 4  ;;  %s371_s25 = sshll.u32 %s14462_s26, 4  ;;  %s346_s5 = int_to_ptr.vmem [resolvable:$true] %s345_s5  ;;  %s372_s25 = int_to_ptr.vmem [resolvable:$true] %s371_s25 }
  0x42   : > { %14022 = dma.hbm_to_vmem [thread:$0]  (!%p14559_p5), %s344_s11, 64, %s346_s5, [#allocation9]  }
  0x43   : > { %s381_s18 = sshll.u32 %s16718_s9, 4  ;;  %s16737_s7 = sand.u32 1, %s14442_s15   ;;  %s382_s18 = int_to_ptr.hbm [resolvable:$true] %s381_s18 }
  0x44   : > { %14028 = dma.hbm_to_vmem [thread:$0]  (!%p14559_p5), %s370_s23, 96, %s372_s25, [#allocation12]  }
  0x45   : > { %s8788_s22 = sshll.u32 %s16737_s7, 4  ;;  %s14463_s19 = smov [#allocation17]  }
  0x46   : > { %14031 = dma.hbm_to_smem (!%p14559_p5), %s382_s18, 16, %s14463_s19, [#allocation4]  }
  0x47   : > { %s8789_s29 = sshll.u32 %s14446_s16, 4  ;;  %s418_s28 = scalar_lea.vmem [#allocation16], %s8788_s22 }
  0x48   : > { %s422_s11 = scalar_lea.hbm %s16717_s8, %s8789_s29  ;;  %s426_s5 = sshll.u32 %s418_s28, 4  ;;  %s427_s5 = int_to_ptr.vmem [resolvable:$true] %s426_s5 }
  0x49   : > { %s424_s26 = sshll.u32 %s422_s11, 4  ;;  %s14369_s16 = scalar_lea.hbm %s16717_s8, 48  ;;  %s425_s26 = int_to_ptr.hbm [resolvable:$true] %s424_s26 }
  0x4a   : > { %s14362_s13 = sshra.s32 %s425_s26, 4  ;;  %s14363_s13 = int_to_ptr.hbm [resolvable:$true] %s14362_s13 }
  0x4b   : > { %s14364_s3 = scalar_lea.hbm %s14363_s13, 16  ;;  %p14370_p5 = scmp.lt.s32.totalorder %s14363_s13, %s16717_s8 }
  0x4c   : > { %p14365_p12 = scmp.ne.s32.totalorder %s14363_s13, %s14364_s3  ;;  %p14371_p6 = scmp.lt.s32.totalorder %s14369_s16, %s14364_s3 }
  0x4e   : > { %p14367_p0 = pnand %p14365_p12, %p14201_p2  ;;  %p14372_p7 = por %p14371_p6, %p14370_p5 }
  0x50   : > { %p14368_p4 = pneg %p14367_p0 }
  0x52   : > { %p14373_p8 = pnand %p14372_p7, %p14368_p4 }
  0x54   : > { %14376 = shalt.err (!%p14373_p8)
}
  0x55   : > { %14038 = dma.hbm_to_vmem [thread:$0]  (!%p14597_p13), %s425_s26, 256, %s427_s5, %s14605_s1  }
  0x56   : > { %435 = sbr.rel (%p14548_p3) target bundleno = 1498 (0x5da), region = 60 }
  0x5b   : > { %14409 = dma.done.wait (%p196_p1), [#allocation3], 32  }
  0x5c   : > { %14411 = vsyncadd (%p196_p1), [#allocation3], 4294967264 }
  0x5d   : > { %14413 = dma.done.wait (%p196_p1), [#allocation6], 1056  }
  0x5e   : > { %14415 = vsyncadd (%p196_p1), [#allocation6], 4294966240 }
  0x5f   : > { %14417 = dma.done.wait (%p196_p1), [#allocation9], 8256  }
  0x60   : > { %14419 = vsyncadd (%p196_p1), [#allocation9], 4294959040 }
  0x61   : > { %14421 = dma.done.wait (%p196_p1), [#allocation12], 24672  }
  0x62   : > { %14423 = vsyncadd (%p196_p1), [#allocation12], 4294942624  ;;  %s472_s1 = sand.u32 1, %s14543_s20   ;;  %s474_s21 = sand.u32 1, %s14438_s14  }
  0x63   : > { %s13970_s24 = smul.u32 6144, %s474_s21  ;;  %s473_s7 = scalar_lea.sflag [#allocation15], %s472_s1 }
  0x65   : > { %s14684_s22 = scalar_lea.vmem [#allocation14], %s13970_s24 }
  0x66   : > { %14425 = dma.done.wait (%p14588_p11), %s473_s7, 98560  }
  0x67   : > { %14427 = vsyncadd (%p14588_p11), %s473_s7, 4294868736  ;;  %s8798_s19 = sshll.u32 %s474_s21, 4 }
  0x68   : > { %s14690_s29 = scalar_lea.vmem [#allocation16], %s8798_s19 }
  0x69   : > { %14429 = dma.done.wait (%p196_p1), [#allocation4], 16  }
  0x6a   : > { %14431 = vsyncadd (%p196_p1), [#allocation4], 4294967280 }
  0x6b   : > { %497 = sfence }
  0x6c   : > { %v8828_v0 = vld [vmem:[#allocation5 + $0x30] sm:$0xf]  ;;  %v12943_v1 = vld [vmem:[#allocation5 + $0x34] sm:$0x30]  ;;  %vm601_vm0 = vcmask 1045504   ;;  %vm597_vm1 = vcmask 490496  }
  0x6d   : > { %v8829_v2 = vor.u32 %v12943_v1, %v8828_v0  ;;  %v12942_v3 = vld [vmem:[#allocation5 + $0x34] sm:$0xf]  ;;  %v8830_v4 = vld [vmem:[#allocation5 + $0x38] sm:$0x30]  ;;  %v8820_v5 = vld [vmem:[#allocation5 + $0x20] sm:$0xf] }
  0x6e   : > { %v8833_v6 = vor.u32 %v12942_v3, %v8830_v4  ;;  %v12941_v7 = vld [vmem:[#allocation5 + $0x24] sm:$0xf0]  ;;  %v12940_v8 = vld [vmem:[#allocation5 + $0x24] sm:$0xf]  ;;  %v8822_v9 = vld [vmem:[#allocation5 + $0x28] sm:$0xf0] }
  0x6f   : > { %v603_v10 = vsel %vm601_vm0, %v8829_v2, 0  ;;  %v8821_v12 = vor.u32 %v12941_v7, %v8820_v5  ;;  %v8825_v13 = vor.u32 %v12940_v8, %v8822_v9  ;;  %v8812_v14 = vld [vmem:[#allocation5 + $0x10] sm:$0xf]  ;;  %v12939_v15 = vld [vmem:[#allocation5 + $0x14] sm:$0xf0]  ;;  %s636_s12 = sld [smem:[#allocation17]] }
  0x70   : > { %612 = vmatpush.bf16.msra.mxu0 %v603_v10  ;;  %v606_v11 = vsel %vm601_vm0, %v8833_v6, 0  ;;  %v12938_v16 = vld [vmem:[#allocation5 + $0x14] sm:$0xf]  ;;  %v8814_v17 = vld [vmem:[#allocation5 + $0x18] sm:$0xf0]  ;;  %v8813_v23 = vor.u32 %v12939_v15, %v8812_v14  ;;  %s9092_s30 = sld [smem:[#allocation17 + $0x1]] }
  0x71   : > { %625 = vmatpush.bf16.msra.mxu1 %v606_v11  ;;  %v8950_v18 = vld [vmem:[#allocation8 + $0xe0] sm:$0xf]  ;;  %v12974_v20 = vld [vmem:[#allocation8 + $0xec] sm:$0xf0]  ;;  %v12937_v24 = vld [vmem:[#allocation5 + $0x4] sm:$0xf0]  ;;  %v8817_v29 = vor.u32 %v12938_v16, %v8814_v17 }
  0x72   : > { %v8804_v19 = vld [vmem:[#allocation5] sm:$0xf]  ;;  %v13006_v22 = vld [vmem:[#allocation8 + $0x1ec] sm:$0xf0]  ;;  %v12936_v25 = vld [vmem:[#allocation5 + $0x4] sm:$0xf]  ;;  %v8951_v27 = vor.u32 %v12974_v20, %v8950_v18 }
  0x73   : > { %v9078_v21 = vld [vmem:[#allocation8 + $0x1e0] sm:$0xf]  ;;  %v8806_v26 = vld [vmem:[#allocation5 + $0x8] sm:$0xf0]  ;;  %v12972_v30 = vld [vmem:[#allocation8 + $0xe4] sm:$0xf]  ;;  %v8805_v41 = vor.u32 %v12937_v24, %v8804_v19 }
  0x74   : > { %613 = vmatpush.bf16.msra.mxu0 %v8821_v12  ;;  %v9079_v28 = vor.u32 %v13006_v22, %v9078_v21  ;;  %v8934_v31 = vld [vmem:[#allocation8 + $0xc0] sm:$0xf]  ;;  %v12970_v32 = vld [vmem:[#allocation8 + $0xcc] sm:$0xf0]  ;;  %1038 = vmatpush.bf16.msra.mxu2 %v8951_v27  ;;  %v8952_v33 = vld [vmem:[#allocation8 + $0xf0] sm:$0xf0]  ;;  %v8809_v45 = vor.u32 %v12936_v25, %v8806_v26 }
  0x75   : > { %626 = vmatpush.bf16.msra.mxu1 %v8825_v13  ;;  %v8935_v34 = vor.u32 %v12970_v32, %v8934_v31  ;;  %v9062_v35 = vld [vmem:[#allocation8 + $0x1c0] sm:$0xf]  ;;  %v13002_v36 = vld [vmem:[#allocation8 + $0x1cc] sm:$0xf0]  ;;  %v543_v37 = vld [vmem:[#allocation2] sm:$0x3]  ;;  %v8955_v46 = vor.u32 %v12972_v30, %v8952_v33 }
  0x76   : > { %1051 = vmatpush.bf16.msra.mxu3 %v9079_v28  ;;  %v13004_v38 = vld [vmem:[#allocation8 + $0x1e4] sm:$0xf]  ;;  %v9080_v39 = vld [vmem:[#allocation8 + $0x1f0] sm:$0xf0]  ;;  %v9063_v40 = vor.u32 %v13002_v36, %v9062_v35  ;;  %v8918_v42 = vld [vmem:[#allocation8 + $0xa0] sm:$0xf]  ;;  %v544_v53 = vpack.c.bf16 %v543_v37, %v543_v37 }
  0x77   : > { %v12966_v43 = vld [vmem:[#allocation8 + $0xac] sm:$0xf0]  ;;  %v9046_v44 = vld [vmem:[#allocation8 + $0x1a0] sm:$0xf]  ;;  %v9083_v48 = vor.u32 %v13004_v38, %v9080_v39  ;;  %v12968_v49 = vld [vmem:[#allocation8 + $0xc4] sm:$0xf] }
  0x78   : > { %614 = vmatpush.bf16.msra.mxu0 %v8813_v23  ;;  %v12998_v47 = vld [vmem:[#allocation8 + $0x1ac] sm:$0xf0]  ;;  %1039 = vmatpush.bf16.msra.mxu2 %v8935_v34  ;;  %v8936_v50 = vld [vmem:[#allocation8 + $0xd0] sm:$0xf0]  ;;  %v13000_v51 = vld [vmem:[#allocation8 + $0x1c4] sm:$0xf]  ;;  %v8919_v52 = vor.u32 %v12966_v43, %v8918_v42 }
  0x79   : > { %627 = vmatpush.bf16.msra.mxu1 %v8817_v29  ;;  %v9064_v54 = vld [vmem:[#allocation8 + $0x1d0] sm:$0xf0]  ;;  %v9047_v55 = vor.u32 %v12998_v47, %v9046_v44  ;;  %v8902_v56 = vld [vmem:[#allocation8 + $0x80] sm:$0xf]  ;;  %v12962_v57 = vld [vmem:[#allocation8 + $0x8c] sm:$0xf0]  ;;  %v8939_v60 = vor.u32 %v12968_v49, %v8936_v50 }
  0x7a   : > { %1052 = vmatpush.bf16.msra.mxu3 %v9063_v40  ;;  %v9030_v58 = vld [vmem:[#allocation8 + $0x180] sm:$0xf]  ;;  %v12994_v59 = vld [vmem:[#allocation8 + $0x18c] sm:$0xf0]  ;;  %v9067_v61 = vor.u32 %v13000_v51, %v9064_v54  ;;  %v12964_v62 = vld [vmem:[#allocation8 + $0xa4] sm:$0xf]  ;;  %v8903_v1 = vor.u32 %v12962_v57, %v8902_v56 }
  0x7b   : > { %v8920_v63 = vld [vmem:[#allocation8 + $0xb0] sm:$0xf0]  ;;  %v12996_v0 = vld [vmem:[#allocation8 + $0x1a4] sm:$0xf]  ;;  %v9031_v3 = vor.u32 %v12994_v59, %v9030_v58  ;;  %v8886_v4 = vld [vmem:[#allocation8 + $0x60] sm:$0xf] }
  0x7c   : > { %615 = vmatpush.bf16.msra.mxu0 %v8805_v41  ;;  %1040 = vmatpush.bf16.msra.mxu2 %v8919_v52  ;;  %v9048_v2 = vld [vmem:[#allocation8 + $0x1b0] sm:$0xf0]  ;;  %v12958_v5 = vld [vmem:[#allocation8 + $0x6c] sm:$0xf0]  ;;  %v9014_v6 = vld [vmem:[#allocation8 + $0x160] sm:$0xf]  ;;  %v8923_v8 = vor.u32 %v12964_v62, %v8920_v63 }
  0x7d   : > { %628 = vmatpush.bf16.msra.mxu1 %v8809_v45  ;;  %v12990_v7 = vld [vmem:[#allocation8 + $0x16c] sm:$0xf0]  ;;  %v9051_v9 = vor.u32 %v12996_v0, %v9048_v2  ;;  %v12960_v10 = vld [vmem:[#allocation8 + $0x84] sm:$0xf]  ;;  %v8904_v11 = vld [vmem:[#allocation8 + $0x90] sm:$0xf0]  ;;  %v8887_v13 = vor.u32 %v12958_v5, %v8886_v4 }
  0x7e   : > { %1053 = vmatpush.bf16.msra.mxu3 %v9047_v55  ;;  %v12992_v12 = vld [vmem:[#allocation8 + $0x184] sm:$0xf]  ;;  %v9032_v14 = vld [vmem:[#allocation8 + $0x190] sm:$0xf0]  ;;  %v9015_v15 = vor.u32 %v12990_v7, %v9014_v6  ;;  %v8870_v16 = vld [vmem:[#allocation8 + $0x40] sm:$0xf]  ;;  %v8907_v20 = vor.u32 %v12960_v10, %v8904_v11 }
  0x7f   : > { %8834 = vmatmul.msk.bf16.vlgmr.msra.gmra.mxu0 %vm597_vm1, %v544_v53  ;;  %v12954_v17 = vld [vmem:[#allocation8 + $0x4c] sm:$0xf0]  ;;  %v8998_v18 = vld [vmem:[#allocation8 + $0x140] sm:$0xf]  ;;  %v9035_v21 = vor.u32 %v12992_v12, %v9032_v14  ;;  %v12956_v22 = vld [vmem:[#allocation8 + $0x64] sm:$0xf] }
  0x80   : > { %1064 = vmatpush.bf16.msrb.mxu0 %v8955_v46  ;;  %8835 = vmatmul.msk.bf16.vlgmr.msra.gmra.mxu1 %vm597_vm1, %v544_v53  ;;  %v12986_v19 = vld [vmem:[#allocation8 + $0x14c] sm:$0xf0]  ;;  %v8888_v23 = vld [vmem:[#allocation8 + $0x70] sm:$0xf0]  ;;  %v12988_v24 = vld [vmem:[#allocation8 + $0x164] sm:$0xf]  ;;  %v8871_v25 = vor.u32 %v12954_v17, %v8870_v16 }
  0x81   : > { %1077 = vmatpush.bf16.msrb.mxu1 %v9083_v48  ;;  %1041 = vmatpush.bf16.msra.mxu2 %v8903_v1  ;;  %v9016_v26 = vld [vmem:[#allocation8 + $0x170] sm:$0xf0]  ;;  %v8999_v27 = vor.u32 %v12986_v19, %v8998_v18  ;;  %v8854_v28 = vld [vmem:[#allocation8 + $0x20] sm:$0xf]  ;;  %v12950_v29 = vld [vmem:[#allocation8 + $0x2c] sm:$0xf0]  ;;  %v8891_v32 = vor.u32 %v12956_v22, %v8888_v23 }
  0x82   : > { %1054 = vmatpush.bf16.msra.mxu3 %v9031_v3  ;;  %v8982_v30 = vld [vmem:[#allocation8 + $0x120] sm:$0xf]  ;;  %v12982_v31 = vld [vmem:[#allocation8 + $0x12c] sm:$0xf0]  ;;  %v12952_v33 = vld [vmem:[#allocation8 + $0x44] sm:$0xf]  ;;  %v9019_v34 = vor.u32 %v12988_v24, %v9016_v26  ;;  %v8855_v38 = vor.u32 %v12950_v29, %v8854_v28 }
  0x83   : > { %v8872_v35 = vld [vmem:[#allocation8 + $0x50] sm:$0xf0]  ;;  %v12984_v36 = vld [vmem:[#allocation8 + $0x144] sm:$0xf]  ;;  %v8983_v39 = vor.u32 %v12982_v31, %v8982_v30  ;;  %v8838_v40 = vld [vmem:[#allocation8] sm:$0xf] }
  0x84   : > { %1065 = vmatpush.bf16.msrb.mxu0 %v8939_v60  ;;  %v9000_v37 = vld [vmem:[#allocation8 + $0x150] sm:$0xf0]  ;;  %v12946_v41 = vld [vmem:[#allocation8 + $0xc] sm:$0xf0]  ;;  %v8966_v42 = vld [vmem:[#allocation8 + $0x100] sm:$0xf]  ;;  %v8875_v46 = vor.u32 %v12952_v33, %v8872_v35 }
  0x85   : > { %1078 = vmatpush.bf16.msrb.mxu1 %v9067_v61  ;;  %1042 = vmatpush.bf16.msra.mxu2 %v8887_v13  ;;  %v12978_v43 = vld [vmem:[#allocation8 + $0x10c] sm:$0xf0]  ;;  %v8958_v44 = vld [vmem:[#allocation8 + $0xe8] sm:$0xf]  ;;  %v12975_v45 = vld [vmem:[#allocation8 + $0xf4] sm:$0xf0]  ;;  %v9003_v49 = vor.u32 %v12984_v36, %v9000_v37  ;;  %v8839_v52 = vor.u32 %v12946_v41, %v8838_v40 }
  0x86   : > { %1055 = vmatpush.bf16.msra.mxu3 %v9015_v15  ;;  %v9086_v47 = vld [vmem:[#allocation8 + $0x1e8] sm:$0xf]  ;;  %v13007_v48 = vld [vmem:[#allocation8 + $0x1f4] sm:$0xf0]  ;;  %v12948_v50 = vld [vmem:[#allocation8 + $0x24] sm:$0xf]  ;;  %v8967_v55 = vor.u32 %v12978_v43, %v8966_v42  ;;  %v8959_v56 = vor.u32 %v12975_v45, %v8958_v44 }
  0x87   : > { %v8856_v51 = vld [vmem:[#allocation8 + $0x30] sm:$0xf0]  ;;  %v12980_v53 = vld [vmem:[#allocation8 + $0x124] sm:$0xf]  ;;  %v9087_v57 = vor.u32 %v13007_v48, %v9086_v47  ;;  %v8942_v58 = vld [vmem:[#allocation8 + $0xc8] sm:$0xf] }
  0x88   : > { %1066 = vmatpush.bf16.msrb.mxu0 %v8923_v8  ;;  %v8984_v54 = vld [vmem:[#allocation8 + $0x130] sm:$0xf0]  ;;  %v12971_v59 = vld [vmem:[#allocation8 + $0xd4] sm:$0xf0]  ;;  %v8859_v60 = vor.u32 %v12948_v50, %v8856_v51  ;;  %v9070_v61 = vld [vmem:[#allocation8 + $0x1c8] sm:$0xf] }
  0x89   : > { %1079 = vmatpush.bf16.msrb.mxu1 %v9051_v9  ;;  %1043 = vmatpush.bf16.msra.mxu2 %v8871_v25  ;;  %v13003_v62 = vld [vmem:[#allocation8 + $0x1d4] sm:$0xf0]  ;;  %v8987_v63 = vor.u32 %v12980_v53, %v8984_v54  ;;  %v12944_v0 = vld [vmem:[#allocation8 + $0x4] sm:$0xf]  ;;  %v8840_v1 = vld [vmem:[#allocation8 + $0x10] sm:$0xf0]  ;;  %v8943_v6 = vor.u32 %v12971_v59, %v8942_v58 }
  0x8a   : > { %1056 = vmatpush.bf16.msra.mxu3 %v8999_v27  ;;  %v12976_v2 = vld [vmem:[#allocation8 + $0x104] sm:$0xf]  ;;  %v8968_v3 = vld [vmem:[#allocation8 + $0x110] sm:$0xf0]  ;;  %v12973_v4 = vld [vmem:[#allocation8 + $0xec] sm:$0xf]  ;;  %v9071_v9 = vor.u32 %v13003_v62, %v9070_v61  ;;  %v8843_v10 = vor.u32 %v12944_v0, %v8840_v1 }
  0x8b   : > { %v8960_v5 = vld [vmem:[#allocation8 + $0xf8] sm:$0xf0]  ;;  %v13005_v7 = vld [vmem:[#allocation8 + $0x1ec] sm:$0xf]  ;;  %v8971_v11 = vor.u32 %v12976_v2, %v8968_v3  ;;  %v9054_v22 = vld [vmem:[#allocation8 + $0x1a8] sm:$0xf] }
  0x8c   : > { %1067 = vmatpush.bf16.msrb.mxu0 %v8907_v20  ;;  %v9088_v8 = vld [vmem:[#allocation8 + $0x1f8] sm:$0xf0]  ;;  %v8963_v12 = vor.u32 %v12973_v4, %v8960_v5  ;;  %v12969_v14 = vld [vmem:[#allocation8 + $0xcc] sm:$0xf]  ;;  %v8926_v20 = vld [vmem:[#allocation8 + $0xa8] sm:$0xf] }
  0x8d   : > { %1080 = vmatpush.bf16.msrb.mxu1 %v9035_v21  ;;  %1044 = vmatpush.bf16.msra.mxu2 %v8855_v38  ;;  %v9091_v13 = vor.u32 %v13005_v7, %v9088_v8  ;;  %v8944_v15 = vld [vmem:[#allocation8 + $0xd8] sm:$0xf0]  ;;  %v13001_v16 = vld [vmem:[#allocation8 + $0x1cc] sm:$0xf]  ;;  %v12967_v21 = vld [vmem:[#allocation8 + $0xb4] sm:$0xf0] }
  0x8e   : > { %1057 = vmatpush.bf16.msra.mxu3 %v8983_v39  ;;  %v9072_v17 = vld [vmem:[#allocation8 + $0x1d8] sm:$0xf0]  ;;  %v8947_v18 = vor.u32 %v12969_v14, %v8944_v15  ;;  %v8927_v23 = vor.u32 %v12967_v21, %v8926_v20  ;;  %v12999_v24 = vld [vmem:[#allocation8 + $0x1b4] sm:$0xf0]  ;;  %v12965_v25 = vld [vmem:[#allocation8 + $0xac] sm:$0xf] }
  0x8f   : > { %v9075_v19 = vor.u32 %v13001_v16, %v9072_v17  ;;  %v9055_v26 = vor.u32 %v12999_v24, %v9054_v22  ;;  %v8928_v27 = vld [vmem:[#allocation8 + $0xb8] sm:$0xf0]  ;;  %v12997_v28 = vld [vmem:[#allocation8 + $0x1ac] sm:$0xf]  ;;  %v12963_v33 = vld [vmem:[#allocation8 + $0x94] sm:$0xf0] }
  0x90   : > { %1068 = vmatpush.bf16.msrb.mxu0 %v8891_v32  ;;  %v9056_v29 = vld [vmem:[#allocation8 + $0x1b8] sm:$0xf0]  ;;  %v8931_v30 = vor.u32 %v12965_v25, %v8928_v27  ;;  %v8910_v32 = vld [vmem:[#allocation8 + $0x88] sm:$0xf]  ;;  %v12995_v36 = vld [vmem:[#allocation8 + $0x194] sm:$0xf0] }
  0x91   : > { %1081 = vmatpush.bf16.msrb.mxu1 %v9019_v34  ;;  %1045 = vmatpush.bf16.msra.mxu2 %v8839_v52  ;;  %v9059_v31 = vor.u32 %v12997_v28, %v9056_v29  ;;  %v9038_v34 = vld [vmem:[#allocation8 + $0x188] sm:$0xf]  ;;  %v8911_v35 = vor.u32 %v12963_v33, %v8910_v32  ;;  %v12961_v37 = vld [vmem:[#allocation8 + $0x8c] sm:$0xf]  ;;  %v8912_v38 = vld [vmem:[#allocation8 + $0x98] sm:$0xf0]  ;;  %v637_v32 = vstv %s636_s12 }
  0x92   : > { %1058 = vmatpush.bf16.msra.mxu3 %v8967_v55  ;;  %v9039_v39 = vor.u32 %v12995_v36, %v9038_v34  ;;  %v8915_v40 = vor.u32 %v12961_v37, %v8912_v38  ;;  %v12993_v41 = vld [vmem:[#allocation8 + $0x18c] sm:$0xf]  ;;  %v9040_v42 = vld [vmem:[#allocation8 + $0x198] sm:$0xf0]  ;;  %v8894_v44 = vld [vmem:[#allocation8 + $0x68] sm:$0xf] }
  0x93   : > { %v9043_v43 = vor.u32 %v12993_v41, %v9040_v42  ;;  %v12959_v45 = vld [vmem:[#allocation8 + $0x74] sm:$0xf0]  ;;  %v8896_v50 = vld [vmem:[#allocation8 + $0x78] sm:$0xf0]  ;;  %v12989_v53 = vld [vmem:[#allocation8 + $0x16c] sm:$0xf] }
  0x94   : > { %1069 = vmatpush.bf16.msrb.mxu0 %v8875_v46  ;;  %v9022_v46 = vld [vmem:[#allocation8 + $0x168] sm:$0xf]  ;;  %v8895_v47 = vor.u32 %v12959_v45, %v8894_v44  ;;  %v12991_v48 = vld [vmem:[#allocation8 + $0x174] sm:$0xf0]  ;;  %v9024_v54 = vld [vmem:[#allocation8 + $0x178] sm:$0xf0] }
  0x95   : > { %1082 = vmatpush.bf16.msrb.mxu1 %v9003_v49  ;;  %1090 = vmatpush.bf16.msrb.mxu2 %v8959_v56  ;;  %v12957_v49 = vld [vmem:[#allocation8 + $0x6c] sm:$0xf]  ;;  %v9023_v51 = vor.u32 %v12991_v48, %v9022_v46  ;;  %v8878_v55 = vld [vmem:[#allocation8 + $0x48] sm:$0xf]  ;;  %v9027_v56 = vor.u32 %v12989_v53, %v9024_v54  ;;  %v12987_v59 = vld [vmem:[#allocation8 + $0x154] sm:$0xf0] }
  0x96   : > { %1103 = vmatpush.bf16.msrb.mxu3 %v9087_v57  ;;  %v8899_v52 = vor.u32 %v12957_v49, %v8896_v50  ;;  %v12955_v57 = vld [vmem:[#allocation8 + $0x54] sm:$0xf0]  ;;  %v9006_v58 = vld [vmem:[#allocation8 + $0x148] sm:$0xf]  ;;  %v12953_v62 = vld [vmem:[#allocation8 + $0x4c] sm:$0xf] }
  0x97   : > { %v9007_v61 = vor.u32 %v12987_v59, %v9006_v58  ;;  %v12985_v0 = vld [vmem:[#allocation8 + $0x14c] sm:$0xf]  ;;  %v9008_v2 = vld [vmem:[#allocation8 + $0x158] sm:$0xf0]  ;;  %v8862_v3 = vld [vmem:[#allocation8 + $0x28] sm:$0xf] }
  0x98   : > { %1070 = vmatpush.bf16.msrb.mxu0 %v8859_v60  ;;  %v8879_v60 = vor.u32 %v12955_v57, %v8878_v55  ;;  %v12951_v4 = vld [vmem:[#allocation8 + $0x34] sm:$0xf0]  ;;  %v9011_v5 = vor.u32 %v12985_v0, %v9008_v2  ;;  %v12949_v8 = vld [vmem:[#allocation8 + $0x2c] sm:$0xf]  ;;  %v8846_v14 = vld [vmem:[#allocation8 + $0x8] sm:$0xf] }
  0x99   : > { %1083 = vmatpush.bf16.msrb.mxu1 %v8987_v63  ;;  %1091 = vmatpush.bf16.msrb.mxu2 %v8943_v6  ;;  %v8880_v63 = vld [vmem:[#allocation8 + $0x58] sm:$0xf0]  ;;  %v8990_v6 = vld [vmem:[#allocation8 + $0x128] sm:$0xf]  ;;  %v12983_v7 = vld [vmem:[#allocation8 + $0x134] sm:$0xf0] }
  0x9a   : > { %1104 = vmatpush.bf16.msrb.mxu3 %v9071_v9  ;;  %v8883_v1 = vor.u32 %v12953_v62, %v8880_v63  ;;  %v8863_v9 = vor.u32 %v12951_v4, %v8862_v3  ;;  %v12947_v15 = vld [vmem:[#allocation8 + $0x14] sm:$0xf0]  ;;  %v12945_v20 = vld [vmem:[#allocation8 + $0xc] sm:$0xf]  ;;  %v8848_v21 = vld [vmem:[#allocation8 + $0x18] sm:$0xf0] }
  0x9b   : > { %v12977_v22 = vld [vmem:[#allocation8 + $0x10c] sm:$0xf]  ;;  %v8847_v24 = vor.u32 %v12947_v15, %v8846_v14  ;;  %v553_v28 = vld [vmem:[#allocation7] sm:$0x3]  ;;  %v9263_v38 = vld [vmem:[#allocation11 + $0x150] sm:$0xf] }
  0x9c   : > { %1071 = vmatpush.bf16.msrb.mxu0 %v8843_v10  ;;  %v8864_v10 = vld [vmem:[#allocation8 + $0x38] sm:$0xf0]  ;;  %v555_v29 = vperm.slane %v553_v28, 0  ;;  %v13101_v37 = vld [vmem:[#allocation11 + $0x2e4] sm:$0xf0]  ;;  %s14794_s17 = sld [smem:[#allocation17 + $0x2]] }
  0x9d   : > { %1084 = vmatpush.bf16.msrb.mxu1 %v8971_v11  ;;  %1092 = vmatpush.bf16.msrb.mxu2 %v8927_v23  ;;  %v12981_v11 = vld [vmem:[#allocation8 + $0x12c] sm:$0xf]  ;;  %v8867_v16 = vor.u32 %v12949_v8, %v8864_v10  ;;  %v8976_v23 = vld [vmem:[#allocation8 + $0x118] sm:$0xf0]  ;;  %v9839_v41 = vld [vmem:[#allocation11 + $0x5d0] sm:$0xf] }
  0x9e   : > { %1105 = vmatpush.bf16.msrb.mxu3 %v9055_v26  ;;  %v8851_v26 = vor.u32 %v12945_v20, %v8848_v21  ;;  %v8979_v27 = vor.u32 %v12977_v22, %v8976_v23  ;;  %v13197_v42 = vld [vmem:[#allocation11 + $0x5e4] sm:$0xf0]  ;;  %v9647_v44 = vld [vmem:[#allocation11 + $0x450] sm:$0xf]  ;;  %v9431_v50 = vld [vmem:[#allocation11 + $0x2a0] sm:$0xf] }
  0x9f   : > { %v13149_v45 = vld [vmem:[#allocation11 + $0x464] sm:$0xf0]  ;;  %v9239_v54 = vld [vmem:[#allocation11 + $0x120] sm:$0xf]  ;;  %v13047_v55 = vld [vmem:[#allocation11 + $0x134] sm:$0xf0] }
  0xa0   : > { %1116 = vmatpush.bf16.msra.mxu0 %v8963_v12  ;;  %v8992_v12 = vld [vmem:[#allocation8 + $0x138] sm:$0xf0]  ;;  %v9815_v57 = vld [vmem:[#allocation11 + $0x5a0] sm:$0xf]  ;;  %v9648_v58 = vor.u32 %v13149_v45, %v9647_v44  ;;  %v13089_v2 = vld [vmem:[#allocation11 + $0x284] sm:$0xf0]  ;;  %v9240_v3 = vor.u32 %v13047_v55, %v9239_v54 }
  0xa1   : > { %1129 = vmatpush.bf16.msra.mxu1 %v9091_v13  ;;  %1093 = vmatpush.bf16.msrb.mxu2 %v8911_v35  ;;  %v8991_v13 = vor.u32 %v12983_v7, %v8990_v6  ;;  %v8995_v17 = vor.u32 %v12981_v11, %v8992_v12  ;;  %v9455_v35 = vld [vmem:[#allocation11 + $0x2d0] sm:$0xf]  ;;  %v13143_v62 = vld [vmem:[#allocation11 + $0x434] sm:$0xf0]  ;;  %v13137_v11 = vld [vmem:[#allocation11 + $0x404] sm:$0xf0] }
  0xa2   : > { %1106 = vmatpush.bf16.msrb.mxu3 %v9039_v39  ;;  %v13053_v39 = vld [vmem:[#allocation11 + $0x164] sm:$0xf0]  ;;  %v9456_v49 = vor.u32 %v13101_v37, %v9455_v35  ;;  %v9215_v4 = vld [vmem:[#allocation11 + $0xf0] sm:$0xf]  ;;  %v13083_v14 = vld [vmem:[#allocation11 + $0x254] sm:$0xf0] }
  0xa3   : > { %v9791_v7 = vld [vmem:[#allocation11 + $0x570] sm:$0xf]  ;;  %v13179_v21 = vld [vmem:[#allocation11 + $0x554] sm:$0xf0]  ;;  %v9575_v22 = vld [vmem:[#allocation11 + $0x3c0] sm:$0xf] }
  0xa4   : > { %1117 = vmatpush.bf16.msra.mxu0 %v8947_v18  ;;  %v8974_v18 = vld [vmem:[#allocation8 + $0x108] sm:$0xf]  ;;  %v9599_v10 = vld [vmem:[#allocation11 + $0x3f0] sm:$0xf]  ;;  %v13131_v23 = vld [vmem:[#allocation11 + $0x3d4] sm:$0xf0] }
  0xa5   : > { %1130 = vmatpush.bf16.msra.mxu1 %v9075_v19  ;;  %1094 = vmatpush.bf16.msrb.mxu2 %v8895_v47  ;;  %v12979_v19 = vld [vmem:[#allocation8 + $0x114] sm:$0xf0]  ;;  %v9600_v20 = vor.u32 %v13137_v11, %v9599_v10  ;;  %v13125_v35 = vld [vmem:[#allocation11 + $0x3a4] sm:$0xf0]  ;;  %v9335_v37 = vld [vmem:[#allocation11 + $0x1e0] sm:$0xf] }
  0xa6   : > { %1107 = vmatpush.bf16.msrb.mxu3 %v9023_v51  ;;  %v8975_v25 = vor.u32 %v12979_v19, %v8974_v18  ;;  %v13095_v51 = vld [vmem:[#allocation11 + $0x2b4] sm:$0xf0]  ;;  %v9767_v19 = vld [vmem:[#allocation11 + $0x540] sm:$0xf]  ;;  %v9119_v54 = vld [vmem:[#allocation11 + $0x30] sm:$0xf] }
  0xa7   : > { %v9432_v0 = vor.u32 %v13095_v51, %v9431_v50  ;;  %v13167_v45 = vld [vmem:[#allocation11 + $0x4f4] sm:$0xf0]  ;;  %v9311_v50 = vld [vmem:[#allocation11 + $0x1b0] sm:$0xf]  ;;  %v13065_v51 = vld [vmem:[#allocation11 + $0x1c4] sm:$0xf0] }
  0xa8   : > { %1118 = vmatpush.bf16.msra.mxu0 %v8931_v30  ;;  %v556_v30 = vperm.slane %v553_v28, 1  ;;  %v9167_v28 = vld [vmem:[#allocation11 + $0x90] sm:$0xf]  ;;  %v13017_v55 = vld [vmem:[#allocation11 + $0x44] sm:$0xf0]  ;;  %vm8584_vm14 = vcmask 1041408  }
  0xa9   : > { %1131 = vmatpush.bf16.msra.mxu1 %v9059_v31  ;;  %1095 = vmatpush.bf16.msrb.mxu2 %v8879_v60  ;;  %v13191_v60 = vld [vmem:[#allocation11 + $0x5b4] sm:$0xf0]  ;;  %s8800_s11 = sshll.u32 %s14543_s20, 4  ;;  %vm8586_vm15 = vcmask 1045508   ;;  %vm8588_vm0 = vcmask 1043456  }
  0xaa   : > { %1108 = vmatpush.bf16.msrb.mxu3 %v9007_v61  ;;  %v9623_v61 = vld [vmem:[#allocation11 + $0x420] sm:$0xf]  ;;  %v9816_v6 = vor.u32 %v13191_v60, %v9815_v57  ;;  %v9695_v57 = vld [vmem:[#allocation11 + $0x4b0] sm:$0xf]  ;;  %v13113_v60 = vld [vmem:[#allocation11 + $0x344] sm:$0xf0] }
  0xab   : > { %v9624_v8 = vor.u32 %v13143_v62, %v9623_v61  ;;  %v9312_v61 = vor.u32 %v13065_v51, %v9311_v50  ;;  %v13059_v62 = vld [vmem:[#allocation11 + $0x194] sm:$0xf0]  ;;  %v9169_v50 = vld [vmem:[#allocation11 + $0xa8] sm:$0xf0]  ;;  %v13146_v51 = vld [vmem:[#allocation11 + $0x454] sm:$0xf] }
  0xac   : > { %1119 = vmatpush.bf16.msra.mxu0 %v8915_v40  ;;  %p15642_p1 = scmp.lt.s32.totalorder %s8800_s11, 47 }
  0xad   : > { %1132 = vmatpush.bf16.msra.mxu1 %v9043_v43  ;;  %1096 = vmatpush.bf16.msrb.mxu2 %v8863_v9  ;;  %v13185_v9 = vld [vmem:[#allocation11 + $0x584] sm:$0xf0] }
  0xae   : > { %1109 = vmatpush.bf16.msrb.mxu3 %v8991_v13  ;;  %v9383_v13 = vld [vmem:[#allocation11 + $0x240] sm:$0xf]  ;;  %v9792_v18 = vor.u32 %v13185_v9, %v9791_v7  ;;  %v9265_v7 = vld [vmem:[#allocation11 + $0x168] sm:$0xf0]  ;;  %v13155_v9 = vld [vmem:[#allocation11 + $0x494] sm:$0xf0] }
  0xaf   : > { %s16745_s11 = smov (!%p15642_p1, %s8800_s11), 47 }
  0xb0   : > { %1120 = vmatpush.bf16.msra.mxu0 %v8899_v52  ;;  %v9264_v52 = vor.u32 %v13053_v39, %v9263_v38  ;;  %v13071_v38 = vld [vmem:[#allocation11 + $0x1f4] sm:$0xf0]  ;;  %s8801_s20 = sshll.u32 %s16745_s11, 1 }
  0xb1   : > { %1133 = vmatpush.bf16.msra.mxu1 %v9027_v56  ;;  %1097 = vmatpush.bf16.msrb.mxu2 %v8847_v24  ;;  %v9840_v56 = vor.u32 %v13197_v42, %v9839_v41  ;;  %v9384_v24 = vor.u32 %v13083_v14, %v9383_v13  ;;  %v13023_v41 = vld [vmem:[#allocation11 + $0x74] sm:$0xf0]  ;;  %v9841_v13 = vld [vmem:[#allocation11 + $0x5e8] sm:$0xf0]  ;;  %s15694_s13 = scalar_lea.vmem %s16719_s10, %s8801_s20 }
  0xb2   : > { %1110 = vmatpush.bf16.msrb.mxu3 %v8975_v25  ;;  %v9359_v25 = vld [vmem:[#allocation11 + $0x210] sm:$0xf] }
  0xb4   : > { %1121 = vmatpush.bf16.msra.mxu0 %v8883_v1  ;;  %v9407_v1 = vld [vmem:[#allocation11 + $0x270] sm:$0xf] }
  0xb5   : > { %1134 = vmatpush.bf16.msra.mxu1 %v9011_v5  ;;  %v13041_v5 = vld [vmem:[#allocation11 + $0x104] sm:$0xf0]  ;;  %v9408_v12 = vor.u32 %v13089_v2, %v9407_v1  ;;  %v9095_v1 = vld [vmem:[#allocation11] sm:$0xf]  ;;  %v13011_v2 = vld [vmem:[#allocation11 + $0x14] sm:$0xf0] }
  0xb6   : > { %v9216_v15 = vor.u32 %v13041_v5, %v9215_v4  ;;  %v9457_v5 = vld [vmem:[#allocation11 + $0x2e8] sm:$0xf0]  ;;  %v9096_v11 = vor.u32 %v13011_v2, %v9095_v1  ;;  %v13056_v2 = vld [vmem:[#allocation11 + $0x184] sm:$0xf] }
  0xb8   : > { %1122 = vmatpush.bf16.msra.mxu0 %v8867_v16  ;;  %v9191_v16 = vld [vmem:[#allocation11 + $0xc0] sm:$0xf] }
  0xb9   : > { %1135 = vmatpush.bf16.msra.mxu1 %v8995_v17  ;;  %v13035_v17 = vld [vmem:[#allocation11 + $0xd4] sm:$0xf0] }
  0xbc   : > { %1123 = vmatpush.bf16.msra.mxu0 %v8851_v26  ;;  %v13077_v26 = vld [vmem:[#allocation11 + $0x224] sm:$0xf0] }
  0xbd   : > { %1136 = vmatpush.bf16.msra.mxu1 %v8979_v27  ;;  %v9192_v27 = vor.u32 %v13035_v17, %v9191_v16  ;;  %v9433_v17 = vld [vmem:[#allocation11 + $0x2b8] sm:$0xf0] }
  0xfc   : > { %v617_v31 = vpop.f32.mrf.mxu0 }
  0xfd   : > { %v618_v33 = vadd.f32 %v617_v31, %v555_v29  ;;  %v630_v34 = vpop.f32.mrf.mxu1  ;;  %v13029_v29 = vld [vmem:[#allocation11 + $0xa4] sm:$0xf0]  ;;  %v9743_v31 = vld [vmem:[#allocation11 + $0x510] sm:$0xf] }
  0xfe   : > { %v631_v36 = vadd.f32 %v630_v34, %v556_v30  ;;  %v9768_v30 = vor.u32 %v13179_v21, %v9767_v19  ;;  %v9551_v34 = vld [vmem:[#allocation11 + $0x390] sm:$0xf]  ;;  %v9168_v39 = vor.u32 %v13029_v29, %v9167_v28  ;;  %v9241_v19 = vld [vmem:[#allocation11 + $0x138] sm:$0xf0]  ;;  %v13080_v29 = vld [vmem:[#allocation11 + $0x244] sm:$0xf] }
  0xff   : > { %vm634_vm2 = vcmp.gt.f32.partialorder %v618_v33, 0.0  ;;  %v638_v40 = vmul.f32 %v637_v32, %v618_v33  ;;  %v9552_v44 = vor.u32 %v13125_v35, %v9551_v34 }
 0x100   : > { %vm635_vm3 = vcmp.gt.f32.partialorder %v631_v36, 0.0  ;;  %v639_v43 = vmul.f32 %v637_v32, %v631_v36  ;;  %v9576_v32 = vor.u32 %v13131_v23, %v9575_v22  ;;  %v13086_v23 = vld [vmem:[#allocation11 + $0x274] sm:$0xf] }
 0x101   : > { %v640_v46 = vsel %vm634_vm2, %v618_v33, %v638_v40  ;;  %v13173_v33 = vld [vmem:[#allocation11 + $0x524] sm:$0xf0]  ;;  %v9143_v40 = vld [vmem:[#allocation11 + $0x60] sm:$0xf] }
 0x102   : > { %v14698_v47 = vpack.c.bf16 %v640_v46, %v640_v46  ;;  %v641_v48 = vsel %vm635_vm3, %v631_v36, %v639_v43  ;;  %v9360_v36 = vor.u32 %v13077_v26, %v9359_v25  ;;  %v9744_v42 = vor.u32 %v13173_v33, %v9743_v31  ;;  %v9719_v43 = vld [vmem:[#allocation11 + $0x4e0] sm:$0xf]  ;;  %v9409_v25 = vld [vmem:[#allocation11 + $0x288] sm:$0xf0]  ;;  %v13038_v26 = vld [vmem:[#allocation11 + $0xf4] sm:$0xf] }
 0x103   : > { %v14700_v53 = vpack.c.bf16 %v641_v48, %v641_v48  ;;  %v9527_v46 = vld [vmem:[#allocation11 + $0x360] sm:$0xf]  ;;  %v13119_v48 = vld [vmem:[#allocation11 + $0x374] sm:$0xf0]  ;;  %v9412_v28 = vor.u32 %v13086_v23, %v9409_v25  ;;  %v9385_v31 = vld [vmem:[#allocation11 + $0x258] sm:$0xf0] }
 0x104   : > { %v619_v59 = vpop.f32.mrf.mxu0  ;;  %1046 = vmatmul.bf16.vlgmr.msra.gmra.mxu2 %v14698_v47  ;;  %1072 = vmatmul.bf16.vlgmr.msrb.gmra.mxu0 %v14698_v47  ;;  %v9193_v33 = vld [vmem:[#allocation11 + $0xd8] sm:$0xf0]  ;;  %v9388_v34 = vor.u32 %v13080_v29, %v9385_v31  ;;  %v13164_v23 = vld [vmem:[#allocation11 + $0x4e4] sm:$0xf]  ;;  %v13158_v29 = vld [vmem:[#allocation11 + $0x4b4] sm:$0xf] }
 0x105   : > { %v632_v63 = vpop.f32.mrf.mxu1  ;;  %1059 = vmatmul.bf16.vlgmr.msra.gmra.mxu3 %v14700_v53  ;;  %1085 = vmatmul.bf16.vlgmr.msrb.gmra.mxu1 %v14700_v53  ;;  %v9503_v59 = vld [vmem:[#allocation11 + $0x330] sm:$0xf] }
 0x106   : > { %2339 = vmatpush.bf16.msra.mxu3 %v9456_v49  ;;  %2326 = vmatpush.bf16.msra.mxu2 %v9264_v52  ;;  %v9336_v49 = vor.u32 %v13071_v38, %v9335_v37  ;;  %v9144_v52 = vor.u32 %v13023_v41, %v9143_v40  ;;  %v9120_v63 = vor.u32 %v13017_v55, %v9119_v54  ;;  %v9361_v37 = vld [vmem:[#allocation11 + $0x228] sm:$0xf0]  ;;  %v9337_v40 = vld [vmem:[#allocation11 + $0x1f8] sm:$0xf0]  ;;  %v13188_v41 = vld [vmem:[#allocation11 + $0x5a4] sm:$0xf] }
 0x107   : > { %2365 = vmatpush.bf16.msrb.mxu1 %v9840_v56  ;;  %2352 = vmatpush.bf16.msrb.mxu0 %v9648_v58  ;;  %v9720_v56 = vor.u32 %v13167_v45, %v9719_v43  ;;  %v13161_v58 = vld [vmem:[#allocation11 + $0x4c4] sm:$0xf0]  ;;  %v9504_v4 = vor.u32 %v13113_v60, %v9503_v59  ;;  %v9817_v43 = vld [vmem:[#allocation11 + $0x5b8] sm:$0xf0]  ;;  %v13107_v45 = vld [vmem:[#allocation11 + $0x314] sm:$0xf0] }
 0x108   : > { %v9649_v54 = vld [vmem:[#allocation11 + $0x468] sm:$0xf0] }
 0x109   : > { %v9652_v55 = vor.u32 %v13146_v51, %v9649_v54  ;;  %v9793_v59 = vld [vmem:[#allocation11 + $0x588] sm:$0xf0]  ;;  %v9463_v54 = vld [vmem:[#allocation11 + $0x2d8] sm:$0xf] }
 0x10a   : > { %2340 = vmatpush.bf16.msra.mxu3 %v9432_v0  ;;  %2327 = vmatpush.bf16.msra.mxu2 %v9240_v3  ;;  %v13098_v0 = vld [vmem:[#allocation11 + $0x2d4] sm:$0xf]  ;;  %v9696_v3 = vor.u32 %v13161_v58, %v9695_v57  ;;  %v9313_v57 = vld [vmem:[#allocation11 + $0x1c8] sm:$0xf0] }
 0x10b   : > { %2366 = vmatpush.bf16.msrb.mxu1 %v9816_v6  ;;  %2353 = vmatpush.bf16.msrb.mxu0 %v9624_v8  ;;  %v13050_v6 = vld [vmem:[#allocation11 + $0x154] sm:$0xf]  ;;  %v9671_v8 = vld [vmem:[#allocation11 + $0x480] sm:$0xf]  ;;  %v9460_v14 = vor.u32 %v13098_v0, %v9457_v5  ;;  %v9625_v0 = vld [vmem:[#allocation11 + $0x438] sm:$0xf0] }
 0x10c   : > { %v9268_v16 = vor.u32 %v13050_v6, %v9265_v7  ;;  %v9769_v6 = vld [vmem:[#allocation11 + $0x558] sm:$0xf0] }
 0x10e   : > { %2341 = vmatpush.bf16.msra.mxu3 %v9408_v12  ;;  %2328 = vmatpush.bf16.msra.mxu2 %v9216_v15  ;;  %v13194_v12 = vld [vmem:[#allocation11 + $0x5d4] sm:$0xf]  ;;  %v13092_v15 = vld [vmem:[#allocation11 + $0x2a4] sm:$0xf] }
 0x10f   : > { %2367 = vmatpush.bf16.msrb.mxu1 %v9792_v18  ;;  %2354 = vmatpush.bf16.msrb.mxu0 %v9600_v20  ;;  %v13044_v18 = vld [vmem:[#allocation11 + $0x124] sm:$0xf]  ;;  %v9672_v20 = vor.u32 %v13155_v9, %v9671_v8  ;;  %v9844_v21 = vor.u32 %v13194_v12, %v9841_v13  ;;  %v9436_v22 = vor.u32 %v13092_v15, %v9433_v17  ;;  %v13014_v8 = vld [vmem:[#allocation11 + $0x34] sm:$0xf]  ;;  %v9121_v9 = vld [vmem:[#allocation11 + $0x48] sm:$0xf0] }
 0x110   : > { %v9601_v12 = vld [vmem:[#allocation11 + $0x408] sm:$0xf0]  ;;  %v13008_v17 = vld [vmem:[#allocation11 + $0x4] sm:$0xf] }
 0x111   : > { %v9745_v15 = vld [vmem:[#allocation11 + $0x528] sm:$0xf0] }
 0x112   : > { %2342 = vmatpush.bf16.msra.mxu3 %v9384_v24  ;;  %2329 = vmatpush.bf16.msra.mxu2 %v9192_v27  ;;  %v9244_v24 = vor.u32 %v13044_v18, %v9241_v19  ;;  %v9217_v27 = vld [vmem:[#allocation11 + $0x108] sm:$0xf0]  ;;  %v9097_v18 = vld [vmem:[#allocation11 + $0x18] sm:$0xf0]  ;;  %v13128_v19 = vld [vmem:[#allocation11 + $0x3c4] sm:$0xf] }
 0x113   : > { %2368 = vmatpush.bf16.msrb.mxu1 %v9768_v30  ;;  %2355 = vmatpush.bf16.msrb.mxu0 %v9576_v32  ;;  %v9220_v30 = vor.u32 %v13038_v26, %v9217_v27  ;;  %v13032_v32 = vld [vmem:[#allocation11 + $0xc4] sm:$0xf]  ;;  %v13122_v26 = vld [vmem:[#allocation11 + $0x394] sm:$0xf]  ;;  %v9553_v27 = vld [vmem:[#allocation11 + $0x3a8] sm:$0xf0] }
 0x114   : > { %1098 = vmatmul.bf16.vlgmr.msrb.gmra.mxu2 %v14698_v47  ;;  %1124 = vmatmul.bf16.vlgmr.msra.gmra.mxu0 %v14698_v47  ;;  %v9528_v47 = vor.u32 %v13119_v48, %v9527_v46  ;;  %v9196_v35 = vor.u32 %v13032_v32, %v9193_v33  ;;  %v9820_v46 = vor.u32 %v13188_v41, %v9817_v43  ;;  %v13116_v32 = vld [vmem:[#allocation11 + $0x364] sm:$0xf]  ;;  %v9529_v33 = vld [vmem:[#allocation11 + $0x378] sm:$0xf0] }
 0x115   : > { %1111 = vmatmul.bf16.vlgmr.msrb.gmra.mxu3 %v14700_v53  ;;  %1137 = vmatmul.bf16.vlgmr.msra.gmra.mxu1 %v14700_v53  ;;  %v9287_v53 = vld [vmem:[#allocation11 + $0x180] sm:$0xf]  ;;  %v13104_v43 = vld [vmem:[#allocation11 + $0x304] sm:$0xf] }
 0x116   : > { %2343 = vmatpush.bf16.msra.mxu3 %v9360_v36  ;;  %2330 = vmatpush.bf16.msra.mxu2 %v9168_v39  ;;  %v9288_v10 = vor.u32 %v13059_v62, %v9287_v53  ;;  %v13074_v36 = vld [vmem:[#allocation11 + $0x214] sm:$0xf]  ;;  %v13068_v39 = vld [vmem:[#allocation11 + $0x1e4] sm:$0xf]  ;;  %v9145_v53 = vld [vmem:[#allocation11 + $0x78] sm:$0xf0] }
 0x117   : > { %2369 = vmatpush.bf16.msrb.mxu1 %v9744_v42  ;;  %2356 = vmatpush.bf16.msrb.mxu0 %v9552_v44  ;;  %v9364_v38 = vor.u32 %v13074_v36, %v9361_v37  ;;  %v9340_v42 = vor.u32 %v13068_v39, %v9337_v40  ;;  %v9479_v44 = vld [vmem:[#allocation11 + $0x300] sm:$0xf]  ;;  %v13140_v62 = vld [vmem:[#allocation11 + $0x424] sm:$0xf]  ;;  %v9673_v36 = vld [vmem:[#allocation11 + $0x498] sm:$0xf0] }
 0x118   : > { %v9480_v48 = vor.u32 %v13107_v45, %v9479_v44  ;;  %v9628_v1 = vor.u32 %v13140_v62, %v9625_v0  ;;  %v9505_v39 = vld [vmem:[#allocation11 + $0x348] sm:$0xf0]  ;;  %v14710_v40 = vld [vmem:[#allocation10] sm:$0xf]  ;;  %v9439_v62 = vld [vmem:[#allocation11 + $0x2a8] sm:$0xf] }
 0x119   : > { %v9481_v44 = vld [vmem:[#allocation11 + $0x318] sm:$0xf0] }
 0x11a   : > { %2344 = vmatpush.bf16.msra.mxu3 %v9336_v49  ;;  %2331 = vmatpush.bf16.msra.mxu2 %v9144_v52  ;;  %v13026_v49 = vld [vmem:[#allocation11 + $0x94] sm:$0xf]  ;;  %v9484_v45 = vor.u32 %v13104_v43, %v9481_v44 }
 0x11b   : > { %2370 = vmatpush.bf16.msrb.mxu1 %v9720_v56  ;;  %2357 = vmatpush.bf16.msrb.mxu0 %v9528_v47  ;;  %v9172_v52 = vor.u32 %v13026_v49, %v9169_v50  ;;  %v13062_v56 = vld [vmem:[#allocation11 + $0x1b4] sm:$0xf]  ;;  %v14713_v50 = vstv %s9092_s30 }
 0x11c   : > { %v13182_v47 = vld [vmem:[#allocation11 + $0x574] sm:$0xf]  ;;  %v9316_v58 = vor.u32 %v13062_v56, %v9313_v57 }
 0x11d   : > { %v9796_v60 = vor.u32 %v13182_v47, %v9793_v59 }
 0x11e   : > { %2345 = vmatpush.bf16.msra.mxu3 %v9312_v61  ;;  %2332 = vmatpush.bf16.msra.mxu2 %v9120_v63  ;;  %v13020_v61 = vld [vmem:[#allocation11 + $0x64] sm:$0xf] }
 0x11f   : > { %2371 = vmatpush.bf16.msrb.mxu1 %v9696_v3  ;;  %2358 = vmatpush.bf16.msrb.mxu0 %v9504_v4  ;;  %v9148_v63 = vor.u32 %v13020_v61, %v9145_v53  ;;  %v9289_v3 = vld [vmem:[#allocation11 + $0x198] sm:$0xf0]  ;;  %v13176_v4 = vld [vmem:[#allocation11 + $0x544] sm:$0xf] }
 0x120   : > { %v9292_v5 = vor.u32 %v13056_v2, %v9289_v3  ;;  %v9772_v7 = vor.u32 %v13176_v4, %v9769_v6  ;;  %v9271_v2 = vld [vmem:[#allocation11 + $0x158] sm:$0xf]  ;;  %v13054_v3 = vld [vmem:[#allocation11 + $0x16c] sm:$0xf0] }
 0x121   : > { %v9415_v6 = vld [vmem:[#allocation11 + $0x278] sm:$0xf] }
 0x122   : > { %2346 = vmatpush.bf16.msra.mxu3 %v9288_v10  ;;  %2333 = vmatpush.bf16.msra.mxu2 %v9096_v11  ;;  %v13134_v10 = vld [vmem:[#allocation11 + $0x3f4] sm:$0xf]  ;;  %v9124_v11 = vor.u32 %v13014_v8, %v9121_v9  ;;  %v713_v9 = vperm.slane %v14710_v40, 3 }
 0x123   : > { %2372 = vmatpush.bf16.msrb.mxu1 %v9672_v20  ;;  %2359 = vmatpush.bf16.msrb.mxu0 %v9480_v48  ;;  %v9604_v13 = vor.u32 %v13134_v10, %v9601_v12  ;;  %v9100_v20 = vor.u32 %v13008_v17, %v9097_v18  ;;  %v9272_v10 = vor.u32 %v13054_v3, %v9271_v2  ;;  %v9391_v18 = vld [vmem:[#allocation11 + $0x248] sm:$0xf] }
 0x124   : > { %v9151_v3 = vld [vmem:[#allocation11 + $0x68] sm:$0xf] }
 0x126   : > { %2391 = vmatpush.bf16.msrb.mxu3 %v9460_v14  ;;  %2378 = vmatpush.bf16.msrb.mxu2 %v9268_v16  ;;  %v13170_v14 = vld [vmem:[#allocation11 + $0x514] sm:$0xf] }
 0x127   : > { %2417 = vmatpush.bf16.msra.mxu1 %v9844_v21  ;;  %2404 = vmatpush.bf16.msra.mxu0 %v9652_v55  ;;  %v9748_v16 = vor.u32 %v13170_v14, %v9745_v15  ;;  %v9577_v21 = vld [vmem:[#allocation11 + $0x3d8] sm:$0xf0]  ;;  %v13102_v55 = vld [vmem:[#allocation11 + $0x2ec] sm:$0xf0]  ;;  %v13048_v14 = vld [vmem:[#allocation11 + $0x13c] sm:$0xf0] }
 0x12a   : > { %2392 = vmatpush.bf16.msrb.mxu3 %v9436_v22  ;;  %2379 = vmatpush.bf16.msrb.mxu2 %v9244_v24  ;;  %v9580_v22 = vor.u32 %v13128_v19, %v9577_v21  ;;  %v9721_v24 = vld [vmem:[#allocation11 + $0x4f8] sm:$0xf0]  ;;  %v13084_v19 = vld [vmem:[#allocation11 + $0x25c] sm:$0xf0] }
 0x12b   : > { %2418 = vmatpush.bf16.msra.mxu1 %v9820_v46  ;;  %2405 = vmatpush.bf16.msra.mxu0 %v9628_v1  ;;  %v9724_v25 = vor.u32 %v13164_v23, %v9721_v24  ;;  %v9223_v23 = vld [vmem:[#allocation11 + $0xf8] sm:$0xf]  ;;  %v13042_v24 = vld [vmem:[#allocation11 + $0x10c] sm:$0xf0] }
 0x12e   : > { %2393 = vmatpush.bf16.msrb.mxu3 %v9412_v28  ;;  %2380 = vmatpush.bf16.msrb.mxu2 %v9220_v30  ;;  %v9556_v28 = vor.u32 %v13122_v26, %v9553_v27  ;;  %v9697_v30 = vld [vmem:[#allocation11 + $0x4c8] sm:$0xf0]  ;;  %v712_v26 = vperm.slane %v14710_v40, 2  ;;  %v9392_v27 = vor.u32 %v13084_v19, %v9391_v18  ;;  %v13099_v18 = vld [vmem:[#allocation11 + $0x2dc] sm:$0xf] }
 0x12f   : > { %2419 = vmatpush.bf16.msra.mxu1 %v9796_v60  ;;  %2406 = vmatpush.bf16.msra.mxu0 %v9604_v13  ;;  %v9700_v31 = vor.u32 %v13158_v29, %v9697_v30  ;;  %v9464_v60 = vor.u32 %v13102_v55, %v9463_v54  ;;  %v9247_v13 = vld [vmem:[#allocation11 + $0x128] sm:$0xf]  ;;  %v13078_v29 = vld [vmem:[#allocation11 + $0x22c] sm:$0xf0]  ;;  %v9847_v30 = vld [vmem:[#allocation11 + $0x5d8] sm:$0xf] }
 0x130   : > { %v9175_v54 = vld [vmem:[#allocation11 + $0x98] sm:$0xf]  ;;  %v13030_v55 = vld [vmem:[#allocation11 + $0xac] sm:$0xf0]  ;;  %v9465_v19 = vld [vmem:[#allocation11 + $0x2f0] sm:$0xf0] }
 0x132   : > { %2394 = vmatpush.bf16.msrb.mxu3 %v9388_v34  ;;  %2381 = vmatpush.bf16.msrb.mxu2 %v9196_v35  ;;  %v9532_v34 = vor.u32 %v13116_v32, %v9529_v33  ;;  %v13152_v35 = vld [vmem:[#allocation11 + $0x484] sm:$0xf]  ;;  %v9224_v33 = vor.u32 %v13042_v24, %v9223_v23  ;;  %v13138_v23 = vld [vmem:[#allocation11 + $0x40c] sm:$0xf0] }
 0x133   : > { %2420 = vmatpush.bf16.msra.mxu1 %v9772_v7  ;;  %2407 = vmatpush.bf16.msra.mxu0 %v9580_v22  ;;  %v9676_v37 = vor.u32 %v13152_v35, %v9673_v36  ;;  %v13090_v7 = vld [vmem:[#allocation11 + $0x28c] sm:$0xf0]  ;;  %v9248_v22 = vor.u32 %v13048_v14, %v9247_v13  ;;  %v9199_v35 = vld [vmem:[#allocation11 + $0xc8] sm:$0xf]  ;;  %v13036_v36 = vld [vmem:[#allocation11 + $0xdc] sm:$0xf0] }
 0x134   : > { %v13060_v13 = vld [vmem:[#allocation11 + $0x19c] sm:$0xf0]  ;;  %v9775_v14 = vld [vmem:[#allocation11 + $0x548] sm:$0xf] }
 0x136   : > { %2395 = vmatpush.bf16.msrb.mxu3 %v9364_v38  ;;  %2382 = vmatpush.bf16.msrb.mxu2 %v9172_v52  ;;  %v13110_v38 = vld [vmem:[#allocation11 + $0x334] sm:$0xf]  ;;  %v710_v52 = vperm.slane %v14710_v40, 0 }
 0x137   : > { %2421 = vmatpush.bf16.msra.mxu1 %v9748_v16  ;;  %2408 = vmatpush.bf16.msra.mxu0 %v9556_v28  ;;  %v9508_v41 = vor.u32 %v13110_v38, %v9505_v39  ;;  %v9416_v16 = vor.u32 %v13090_v7, %v9415_v6  ;;  %v9367_v28 = vld [vmem:[#allocation11 + $0x218] sm:$0xf]  ;;  %v13024_v6 = vld [vmem:[#allocation11 + $0x7c] sm:$0xf0]  ;;  %v9631_v7 = vld [vmem:[#allocation11 + $0x428] sm:$0xf] }
 0x13a   : > { %2396 = vmatpush.bf16.msrb.mxu3 %v9340_v42  ;;  %2383 = vmatpush.bf16.msrb.mxu2 %v9148_v63  ;;  %v711_v42 = vperm.slane %v14710_v40, 1  ;;  %v13096_v63 = vld [vmem:[#allocation11 + $0x2bc] sm:$0xf0]  ;;  %v9343_v40 = vld [vmem:[#allocation11 + $0x1e8] sm:$0xf] }
 0x13b   : > { %2422 = vmatpush.bf16.msra.mxu1 %v9724_v25  ;;  %2409 = vmatpush.bf16.msra.mxu0 %v9532_v34 }
 0x13e   : > { %2397 = vmatpush.bf16.msrb.mxu3 %v9316_v58  ;;  %2384 = vmatpush.bf16.msrb.mxu2 %v9124_v11 }
 0x13f   : > { %2423 = vmatpush.bf16.msra.mxu1 %v9700_v31  ;;  %2410 = vmatpush.bf16.msra.mxu0 %v9508_v41  ;;  %v13198_v31 = vld [vmem:[#allocation11 + $0x5ec] sm:$0xf0]  ;;  %v9368_v41 = vor.u32 %v13078_v29, %v9367_v28 }
 0x140   : > { %v13174_v28 = vld [vmem:[#allocation11 + $0x52c] sm:$0xf0] }
 0x142   : > { %2398 = vmatpush.bf16.msrb.mxu3 %v9292_v5  ;;  %2385 = vmatpush.bf16.msrb.mxu2 %v9100_v20  ;;  %v9440_v5 = vor.u32 %v13096_v63, %v9439_v62  ;;  %v9799_v62 = vld [vmem:[#allocation11 + $0x578] sm:$0xf]  ;;  %v13186_v63 = vld [vmem:[#allocation11 + $0x58c] sm:$0xf0] }
 0x143   : > { %2424 = vmatpush.bf16.msra.mxu1 %v9676_v37  ;;  %2411 = vmatpush.bf16.msra.mxu0 %v9484_v45  ;;  %v13072_v45 = vld [vmem:[#allocation11 + $0x1fc] sm:$0xf0] }
 0x181   : > { %v1073_v46 = vpop.f32.mrf.mxu0 }
 0x182   : > { %v1074_v48 = vadd.f32 %v1073_v46, %v711_v42  ;;  %v1086_v49 = vpop.f32.mrf.mxu1  ;;  %v9848_v42 = vor.u32 %v13198_v31, %v9847_v30  ;;  %v9823_v46 = vld [vmem:[#allocation11 + $0x5a8] sm:$0xf]  ;;  %v13093_v31 = vld [vmem:[#allocation11 + $0x2ac] sm:$0xf] }
 0x184   : > { %v1087_v51 = vadd.f32 %v1086_v49, %v1074_v48  ;;  %v13192_v48 = vld [vmem:[#allocation11 + $0x5bc] sm:$0xf0] }
 0x186   : > { %vm1143_vm4 = vcmp.gt.f32.partialorder %v1087_v51, 0.0  ;;  %v1149_v56 = vmul.f32 %v14713_v50, %v1087_v51 }
 0x187   : > { %v1047_v57 = vpop.f32.mrf.mxu2 }
 0x188   : > { %v1153_v47 = vsel %vm1143_vm4, %v1087_v51, %v1149_v56  ;;  %v1048_v58 = vadd.f32 %v1047_v57, %v710_v52  ;;  %v1060_v59 = vpop.f32.mrf.mxu3  ;;  %v9200_v52 = vor.u32 %v13036_v36, %v9199_v35  ;;  %v9655_v56 = vld [vmem:[#allocation11 + $0x458] sm:$0xf]  ;;  %v13150_v57 = vld [vmem:[#allocation11 + $0x46c] sm:$0xf0]  ;;  %v9583_v35 = vld [vmem:[#allocation11 + $0x3c8] sm:$0xf] }
 0x189   : > { %v14717_v61 = vpack.c.bf16 %v1153_v47, %v1153_v47  ;;  %v1075_v53 = vpop.f32.mrf.mxu0  ;;  %v9656_v2 = vor.u32 %v13150_v57, %v9655_v56  ;;  %v13132_v36 = vld [vmem:[#allocation11 + $0x3dc] sm:$0xf0]  ;;  %v9249_v56 = vld [vmem:[#allocation11 + $0x140] sm:$0xf0] }
 0x18a   : > { %v1061_v0 = vadd.f32 %v1060_v59, %v1048_v58  ;;  %v1088_v1 = vpop.f32.mrf.mxu1  ;;  %v9344_v58 = vor.u32 %v13072_v45, %v9343_v40  ;;  %v9824_v59 = vor.u32 %v13192_v48, %v9823_v46  ;;  %v13066_v53 = vld [vmem:[#allocation11 + $0x1cc] sm:$0xf0]  ;;  %v13168_v40 = vld [vmem:[#allocation11 + $0x4fc] sm:$0xf0]  ;;  %v9584_v45 = vor.u32 %v13132_v36, %v9583_v35  ;;  %v13087_v46 = vld [vmem:[#allocation11 + $0x27c] sm:$0xf] }
 0x18b   : > { %2347 = vmatmul.bf16.vlgmr.msra.gmra.mxu3 %v14717_v61  ;;  %v9176_v1 = vor.u32 %v13030_v55, %v9175_v54  ;;  %v9417_v48 = vld [vmem:[#allocation11 + $0x290] sm:$0xf0]  ;;  %v13045_v55 = vld [vmem:[#allocation11 + $0x12c] sm:$0xf]  ;;  %v13063_v35 = vld [vmem:[#allocation11 + $0x1bc] sm:$0xf] }
 0x18c   : > { %vm1142_vm5 = vcmp.gt.f32.partialorder %v1061_v0, 0.0  ;;  %v1148_v4 = vmul.f32 %v14713_v50, %v1061_v0  ;;  %2443 = vmatpush.bf16.msra.mxu3 %v9464_v60  ;;  %v9319_v60 = vld [vmem:[#allocation11 + $0x1b8] sm:$0xf]  ;;  %v9420_v57 = vor.u32 %v13087_v46, %v9417_v48  ;;  %v9633_v46 = vld [vmem:[#allocation11 + $0x440] sm:$0xf0] }
 0x18e   : > { %v1152_v8 = vsel %vm1142_vm5, %v1061_v0, %v1148_v4 }
 0x18f   : > { %v14722_v11 = vpack.c.bf16 %v1152_v8, %v1152_v8  ;;  %v1049_v12 = vpop.f32.mrf.mxu2  ;;  %v13144_v8 = vld [vmem:[#allocation11 + $0x43c] sm:$0xf0] }
 0x190   : > { %v1062_v15 = vpop.f32.mrf.mxu3  ;;  %2444 = vmatpush.bf16.msra.mxu3 %v9440_v5  ;;  %v9295_v12 = vld [vmem:[#allocation11 + $0x188] sm:$0xf] }
 0x191   : > { %v1125_v17 = vpop.f32.mrf.mxu0  ;;  %2334 = vmatmul.bf16.vlgmr.msra.gmra.mxu2 %v14722_v11  ;;  %v13180_v15 = vld [vmem:[#allocation11 + $0x55c] sm:$0xf0]  ;;  %v9296_v24 = vor.u32 %v13060_v13, %v9295_v12  ;;  %v9849_v12 = vld [vmem:[#allocation11 + $0x5f0] sm:$0xf0] }
 0x192   : > { %v1126_v20 = vadd.f32 %v1125_v17, %v713_v9  ;;  %v1138_v21 = vpop.f32.mrf.mxu1  ;;  %2430 = vmatpush.bf16.msra.mxu2 %v9272_v10  ;;  %v9320_v9 = vor.u32 %v13066_v53, %v9319_v60  ;;  %v9800_v10 = vor.u32 %v13186_v63, %v9799_v62  ;;  %v9632_v17 = vor.u32 %v13144_v8, %v9631_v7  ;;  %v13081_v60 = vld [vmem:[#allocation11 + $0x24c] sm:$0xf]  ;;  %v9393_v53 = vld [vmem:[#allocation11 + $0x260] sm:$0xf0]  ;;  %v9535_v63 = vld [vmem:[#allocation11 + $0x368] sm:$0xf] }
 0x193   : > { %v9252_v62 = vor.u32 %v13045_v55, %v9249_v56  ;;  %v13156_v7 = vld [vmem:[#allocation11 + $0x49c] sm:$0xf0]  ;;  %v13075_v8 = vld [vmem:[#allocation11 + $0x21c] sm:$0xf]  ;;  %v9777_v55 = vld [vmem:[#allocation11 + $0x560] sm:$0xf0] }
 0x194   : > { %v1139_v25 = vadd.f32 %v1138_v21, %v1126_v20  ;;  %2445 = vmatpush.bf16.msra.mxu3 %v9416_v16  ;;  %v9152_v16 = vor.u32 %v13024_v6, %v9151_v3  ;;  %v9127_v20 = vld [vmem:[#allocation11 + $0x38] sm:$0xf]  ;;  %v13018_v21 = vld [vmem:[#allocation11 + $0x4c] sm:$0xf0]  ;;  %v9225_v3 = vld [vmem:[#allocation11 + $0x110] sm:$0xf0] }
 0x195   : > { %v9128_v29 = vor.u32 %v13018_v21, %v9127_v20  ;;  %v9679_v6 = vld [vmem:[#allocation11 + $0x488] sm:$0xf]  ;;  %v13069_v21 = vld [vmem:[#allocation11 + $0x1ec] sm:$0xf] }
 0x196   : > { %vm1145_vm6 = vcmp.gt.f32.partialorder %v1139_v25, 0.0  ;;  %v1151_v32 = vmul.f32 %v14713_v50, %v1139_v25  ;;  %2431 = vmatpush.bf16.msra.mxu2 %v9248_v22  ;;  %v9607_v22 = vld [vmem:[#allocation11 + $0x3f8] sm:$0xf] }
 0x197   : > { %v1099_v34 = vpop.f32.mrf.mxu2  ;;  %v9608_v30 = vor.u32 %v13138_v23, %v9607_v22  ;;  %v9345_v23 = vld [vmem:[#allocation11 + $0x200] sm:$0xf0] }
 0x198   : > { %v1155_v37 = vsel %vm1145_vm6, %v1139_v25, %v1151_v32  ;;  %v1100_v38 = vadd.f32 %v1099_v34, %v712_v26  ;;  %v1112_v39 = vpop.f32.mrf.mxu3  ;;  %2446 = vmatpush.bf16.msra.mxu3 %v9392_v27  ;;  %v9776_v25 = vor.u32 %v13180_v15, %v9775_v14  ;;  %v9468_v26 = vor.u32 %v13099_v18, %v9465_v19  ;;  %v9751_v27 = vld [vmem:[#allocation11 + $0x518] sm:$0xf]  ;;  %v9441_v32 = vld [vmem:[#allocation11 + $0x2c0] sm:$0xf0]  ;;  %v13012_v34 = vld [vmem:[#allocation11 + $0x1c] sm:$0xf0] }
 0x199   : > { %v14727_v43 = vpack.c.bf16 %v1155_v37, %v1155_v37  ;;  %v1127_v44 = vpop.f32.mrf.mxu0  ;;  %v9752_v37 = vor.u32 %v13174_v28, %v9751_v27  ;;  %v9511_v14 = vld [vmem:[#allocation11 + $0x338] sm:$0xf]  ;;  %v13114_v15 = vld [vmem:[#allocation11 + $0x34c] sm:$0xf0]  ;;  %v9201_v18 = vld [vmem:[#allocation11 + $0xe0] sm:$0xf0] }
 0x19a   : > { %v1113_v49 = vadd.f32 %v1112_v39, %v1100_v38  ;;  %v1140_v51 = vpop.f32.mrf.mxu1  ;;  %2432 = vmatpush.bf16.msra.mxu2 %v9224_v33  ;;  %v9103_v33 = vld [vmem:[#allocation11 + $0x8] sm:$0xf]  ;;  %v13051_v38 = vld [vmem:[#allocation11 + $0x15c] sm:$0xf]  ;;  %v9273_v39 = vld [vmem:[#allocation11 + $0x170] sm:$0xf0]  ;;  %v9512_v22 = vor.u32 %v13114_v15, %v9511_v14 }
 0x19b   : > { %2373 = vmatmul.bf16.vlgmr.msrb.gmra.mxu1 %v14727_v43  ;;  %2399 = vmatmul.bf16.vlgmr.msrb.gmra.mxu3 %v14717_v61  ;;  %v9104_v44 = vor.u32 %v13012_v34, %v9103_v33  ;;  %v9559_v51 = vld [vmem:[#allocation11 + $0x398] sm:$0xf]  ;;  %v9487_v27 = vld [vmem:[#allocation11 + $0x308] sm:$0xf]  ;;  %v13108_v28 = vld [vmem:[#allocation11 + $0x31c] sm:$0xf0]  ;;  %v9348_v33 = vor.u32 %v13069_v21, %v9345_v23 }
 0x19c   : > { %vm1144_vm7 = vcmp.gt.f32.partialorder %v1113_v49, 0.0  ;;  %v1150_v47 = vmul.f32 %v14713_v50, %v1113_v49  ;;  %2447 = vmatpush.bf16.msra.mxu3 %v9368_v41  ;;  %2469 = vmatpush.bf16.msrb.mxu1 %v9848_v42  ;;  %v9444_v41 = vor.u32 %v13093_v31, %v9441_v32  ;;  %v9727_v42 = vld [vmem:[#allocation11 + $0x4e8] sm:$0xf]  ;;  %v13147_v31 = vld [vmem:[#allocation11 + $0x45c] sm:$0xf]  ;;  %v9488_v36 = vor.u32 %v13108_v28, %v9487_v27 }
 0x19d   : > { %v9728_v54 = vor.u32 %v13168_v40, %v9727_v42  ;;  %v9657_v32 = vld [vmem:[#allocation11 + $0x470] sm:$0xf0]  ;;  %v13021_v40 = vld [vmem:[#allocation11 + $0x6c] sm:$0xf]  ;;  %v9279_v14 = vld [vmem:[#allocation11 + $0x160] sm:$0xf] }
 0x19e   : > { %v1154_v0 = vsel %vm1144_vm7, %v1113_v49, %v1150_v47  ;;  %2433 = vmatpush.bf16.msra.mxu2 %v9200_v52  ;;  %v9276_v49 = vor.u32 %v13051_v38, %v9273_v39  ;;  %v13126_v52 = vld [vmem:[#allocation11 + $0x3ac] sm:$0xf0]  ;;  %v9703_v47 = vld [vmem:[#allocation11 + $0x4b8] sm:$0xf]  ;;  %v13183_v38 = vld [vmem:[#allocation11 + $0x57c] sm:$0xf]  ;;  %v9660_v42 = vor.u32 %v13147_v31, %v9657_v32 }
 0x19f   : > { %v14732_v4 = vpack.c.bf16 %v1154_v0, %v1154_v0  ;;  %v1101_v5 = vpop.f32.mrf.mxu2  ;;  %v13120_v0 = vld [vmem:[#allocation11 + $0x37c] sm:$0xf0]  ;;  %v9801_v39 = vld [vmem:[#allocation11 + $0x590] sm:$0xf0]  ;;  %v13055_v15 = vld [vmem:[#allocation11 + $0x174] sm:$0xf0] }
 0x1a0   : > { %v1114_v50 = vpop.f32.mrf.mxu3  ;;  %2448 = vmatpush.bf16.msra.mxu3 %v9344_v58  ;;  %2470 = vmatpush.bf16.msrb.mxu1 %v9824_v59  ;;  %v13162_v58 = vld [vmem:[#allocation11 + $0x4cc] sm:$0xf0]  ;;  %v9560_v59 = vor.u32 %v13126_v52, %v9559_v51  ;;  %v9396_v5 = vor.u32 %v13081_v60, %v9393_v53  ;;  %v13057_v51 = vld [vmem:[#allocation11 + $0x18c] sm:$0xf]  ;;  %v9297_v52 = vld [vmem:[#allocation11 + $0x1a0] sm:$0xf0]  ;;  %v9280_v23 = vor.u32 %v13055_v15, %v9279_v14 }
 0x1a1   : > { %2360 = vmatmul.bf16.vlgmr.msrb.gmra.mxu0 %v14732_v4  ;;  %2386 = vmatmul.bf16.vlgmr.msrb.gmra.mxu2 %v14722_v11  ;;  %v9536_v50 = vor.u32 %v13120_v0, %v9535_v63  ;;  %v9129_v60 = vld [vmem:[#allocation11 + $0x50] sm:$0xf0]  ;;  %v13135_v53 = vld [vmem:[#allocation11 + $0x3fc] sm:$0xf]  ;;  %v9300_v63 = vor.u32 %v13057_v51, %v9297_v52  ;;  %v9423_v21 = vld [vmem:[#allocation11 + $0x280] sm:$0xf] }
 0x1a2   : > { %2434 = vmatpush.bf16.msra.mxu2 %v9176_v1  ;;  %2456 = vmatpush.bf16.msrb.mxu0 %v9656_v2  ;;  %v9704_v1 = vor.u32 %v13162_v58, %v9703_v47  ;;  %v13039_v2 = vld [vmem:[#allocation11 + $0xfc] sm:$0xf]  ;;  %v9471_v47 = vld [vmem:[#allocation11 + $0x2e0] sm:$0xf]  ;;  %v13103_v58 = vld [vmem:[#allocation11 + $0x2f4] sm:$0xf0] }
 0x1a3   : > { %v9228_v13 = vor.u32 %v13039_v2, %v9225_v3  ;;  %v13171_v2 = vld [vmem:[#allocation11 + $0x51c] sm:$0xf]  ;;  %v9753_v3 = vld [vmem:[#allocation11 + $0x530] sm:$0xf0]  ;;  %v9255_v27 = vld [vmem:[#allocation11 + $0x130] sm:$0xf] }
 0x1a4   : > { %2449 = vmatpush.bf16.msra.mxu3 %v9320_v9  ;;  %2471 = vmatpush.bf16.msrb.mxu1 %v9800_v10  ;;  %v9369_v9 = vld [vmem:[#allocation11 + $0x230] sm:$0xf0]  ;;  %v13195_v10 = vld [vmem:[#allocation11 + $0x5dc] sm:$0xf]  ;;  %v13049_v28 = vld [vmem:[#allocation11 + $0x144] sm:$0xf0] }
 0x1a5   : > { %v9372_v19 = vor.u32 %v13075_v8, %v9369_v9  ;;  %v9852_v20 = vor.u32 %v13195_v10, %v9849_v12  ;;  %v13097_v8 = vld [vmem:[#allocation11 + $0x2c4] sm:$0xf0]  ;;  %v9105_v9 = vld [vmem:[#allocation11 + $0x20] sm:$0xf0]  ;;  %v13129_v10 = vld [vmem:[#allocation11 + $0x3cc] sm:$0xf] }
 0x1a6   : > { %2435 = vmatpush.bf16.msra.mxu2 %v9152_v16  ;;  %2457 = vmatpush.bf16.msrb.mxu0 %v9632_v17  ;;  %v9680_v16 = vor.u32 %v13156_v7, %v9679_v6  ;;  %v13033_v17 = vld [vmem:[#allocation11 + $0xcc] sm:$0xf]  ;;  %v9447_v7 = vld [vmem:[#allocation11 + $0x2b0] sm:$0xf]  ;;  %v9585_v12 = vld [vmem:[#allocation11 + $0x3e0] sm:$0xf0] }
 0x1a7   : > { %v9705_v31 = vld [vmem:[#allocation11 + $0x4d0] sm:$0xf0]  ;;  %v13199_v51 = vld [vmem:[#allocation11 + $0x5f4] sm:$0xf0] }
 0x1a8   : > { %2450 = vmatpush.bf16.msra.mxu3 %v9296_v24  ;;  %2472 = vmatpush.bf16.msrb.mxu1 %v9776_v25  ;;  %v13189_v24 = vld [vmem:[#allocation11 + $0x5ac] sm:$0xf]  ;;  %v9825_v25 = vld [vmem:[#allocation11 + $0x5c0] sm:$0xf0] }
 0x1a9   : > { %v9828_v34 = vor.u32 %v13189_v24, %v9825_v25  ;;  %v13123_v24 = vld [vmem:[#allocation11 + $0x39c] sm:$0xf]  ;;  %v9561_v25 = vld [vmem:[#allocation11 + $0x3b0] sm:$0xf0] }
 0x1aa   : > { %2436 = vmatpush.bf16.msra.mxu2 %v9128_v29  ;;  %2458 = vmatpush.bf16.msrb.mxu0 %v9608_v30  ;;  %v13027_v29 = vld [vmem:[#allocation11 + $0x9c] sm:$0xf]  ;;  %v9177_v30 = vld [vmem:[#allocation11 + $0xb0] sm:$0xf0]  ;;  %v9564_v32 = vor.u32 %v13123_v24, %v9561_v25  ;;  %v13061_v25 = vld [vmem:[#allocation11 + $0x1a4] sm:$0xf0] }
 0x1ab   : > { %2425 = vmatmul.bf16.vlgmr.msra.gmra.mxu1 %v14727_v43  ;;  %2451 = vmatmul.bf16.vlgmr.msra.gmra.mxu3 %v14717_v61 }
 0x1ac   : > { %2495 = vmatpush.bf16.msrb.mxu3 %v9468_v26  ;;  %2473 = vmatpush.bf16.msrb.mxu1 %v9752_v37  ;;  %v9204_v26 = vor.u32 %v13033_v17, %v9201_v18  ;;  %v9321_v37 = vld [vmem:[#allocation11 + $0x1d0] sm:$0xf0]  ;;  %v13165_v17 = vld [vmem:[#allocation11 + $0x4ec] sm:$0xf]  ;;  %v9729_v18 = vld [vmem:[#allocation11 + $0x500] sm:$0xf0] }
 0x1ad   : > { %v9324_v48 = vor.u32 %v13063_v35, %v9321_v37  ;;  %v9256_v35 = vor.u32 %v13049_v28, %v9255_v27  ;;  %v9537_v37 = vld [vmem:[#allocation11 + $0x380] sm:$0xf0]  ;;  %v13181_v27 = vld [vmem:[#allocation11 + $0x564] sm:$0xf0] }
 0x1ae   : > { %2437 = vmatpush.bf16.msra.mxu2 %v9104_v44  ;;  %2459 = vmatpush.bf16.msrb.mxu0 %v9584_v45  ;;  %v9153_v44 = vld [vmem:[#allocation11 + $0x80] sm:$0xf0]  ;;  %v13141_v45 = vld [vmem:[#allocation11 + $0x42c] sm:$0xf] }
 0x1af   : > { %v9156_v56 = vor.u32 %v13021_v40, %v9153_v44  ;;  %v13153_v40 = vld [vmem:[#allocation11 + $0x48c] sm:$0xf]  ;;  %v9681_v44 = vld [vmem:[#allocation11 + $0x4a0] sm:$0xf0] }
 0x1b0   : > { %2496 = vmatpush.bf16.msrb.mxu3 %v9444_v41  ;;  %2474 = vmatpush.bf16.msrb.mxu1 %v9728_v54  ;;  %v9180_v41 = vor.u32 %v13027_v29, %v9177_v30  ;;  %v13177_v54 = vld [vmem:[#allocation11 + $0x54c] sm:$0xf]  ;;  %v13159_v30 = vld [vmem:[#allocation11 + $0x4bc] sm:$0xf] }
 0x1b1   : > { %2412 = vmatmul.bf16.vlgmr.msra.gmra.mxu0 %v14732_v4  ;;  %2438 = vmatmul.bf16.vlgmr.msra.gmra.mxu2 %v14722_v11  ;;  %v9780_v0 = vor.u32 %v13177_v54, %v9777_v55  ;;  %v13111_v54 = vld [vmem:[#allocation11 + $0x33c] sm:$0xf]  ;;  %v9513_v55 = vld [vmem:[#allocation11 + $0x350] sm:$0xf0] }
 0x1b2   : > { %2482 = vmatpush.bf16.msrb.mxu2 %v9276_v49  ;;  %2460 = vmatpush.bf16.msrb.mxu0 %v9560_v59  ;;  %v9804_v49 = vor.u32 %v13183_v38, %v9801_v39  ;;  %v13015_v59 = vld [vmem:[#allocation11 + $0x3c] sm:$0xf]  ;;  %v9708_v38 = vor.u32 %v13159_v30, %v9705_v31  ;;  %v9231_v39 = vld [vmem:[#allocation11 + $0x100] sm:$0xf]  ;;  %v13100_v30 = vld [vmem:[#allocation11 + $0x2e4] sm:$0xf] }
 0x1b3   : > { %v9473_v31 = vld [vmem:[#allocation11 + $0x2f8] sm:$0xf0] }
 0x1b4   : > { %2497 = vmatpush.bf16.msrb.mxu3 %v9420_v57  ;;  %2475 = vmatpush.bf16.msrb.mxu1 %v9704_v1  ;;  %v9636_v57 = vor.u32 %v13141_v45, %v9633_v46  ;;  %v9472_v1 = vor.u32 %v13103_v58, %v9471_v47  ;;  %v9375_v45 = vld [vmem:[#allocation11 + $0x220] sm:$0xf]  ;;  %v13037_v47 = vld [vmem:[#allocation11 + $0xe4] sm:$0xf0] }
 0x1b6   : > { %2483 = vmatpush.bf16.msrb.mxu2 %v9252_v62  ;;  %2461 = vmatpush.bf16.msrb.mxu0 %v9536_v50  ;;  %v9609_v62 = vld [vmem:[#allocation11 + $0x410] sm:$0xf0]  ;;  %v13009_v50 = vld [vmem:[#allocation11 + $0xc] sm:$0xf] }
 0x1b7   : > { %v9612_v6 = vor.u32 %v13135_v53, %v9609_v62  ;;  %v9516_v53 = vor.u32 %v13111_v54, %v9513_v55  ;;  %v13073_v62 = vld [vmem:[#allocation11 + $0x204] sm:$0xf0]  ;;  %v9281_v54 = vld [vmem:[#allocation11 + $0x178] sm:$0xf0] }
 0x1b8   : > { %2498 = vmatpush.bf16.msrb.mxu3 %v9396_v5  ;;  %2476 = vmatpush.bf16.msrb.mxu1 %v9680_v16  ;;  %v9132_v5 = vor.u32 %v13015_v59, %v9129_v60  ;;  %v9448_v16 = vor.u32 %v13097_v8, %v9447_v7  ;;  %v9351_v60 = vld [vmem:[#allocation11 + $0x1f0] sm:$0xf]  ;;  %v9663_v7 = vld [vmem:[#allocation11 + $0x460] sm:$0xf]  ;;  %v13151_v8 = vld [vmem:[#allocation11 + $0x474] sm:$0xf0] }
 0x1b9   : > { %v9664_v15 = vor.u32 %v13151_v8, %v9663_v7  ;;  %v9711_v7 = vld [vmem:[#allocation11 + $0x4c0] sm:$0xf]  ;;  %v13163_v8 = vld [vmem:[#allocation11 + $0x4d4] sm:$0xf0] }
 0x1ba   : > { %2484 = vmatpush.bf16.msrb.mxu2 %v9228_v13  ;;  %2462 = vmatpush.bf16.msrb.mxu0 %v9512_v22  ;;  %v9756_v13 = vor.u32 %v13171_v2, %v9753_v3  ;;  %v13091_v22 = vld [vmem:[#allocation11 + $0x294] sm:$0xf0]  ;;  %v13105_v2 = vld [vmem:[#allocation11 + $0x30c] sm:$0xf]  ;;  %v9489_v3 = vld [vmem:[#allocation11 + $0x320] sm:$0xf0] }
 0x1bb   : > { %2477 = vmatmul.bf16.vlgmr.msrb.gmra.mxu1 %v14727_v43  ;;  %v9424_v29 = vor.u32 %v13091_v22, %v9423_v21  ;;  %v13145_v21 = vld [vmem:[#allocation11 + $0x444] sm:$0xf0] }
 0x1bc   : > { %2499 = vmatpush.bf16.msrb.mxu3 %v9372_v19  ;;  %2521 = vmatpush.bf16.msra.mxu1 %v9852_v20  ;;  %v9108_v19 = vor.u32 %v13009_v50, %v9105_v9  ;;  %v9588_v20 = vor.u32 %v13129_v10, %v9585_v12  ;;  %v9352_v50 = vor.u32 %v13073_v62, %v9351_v60  ;;  %v9327_v12 = vld [vmem:[#allocation11 + $0x1c0] sm:$0xf]  ;;  %v13088_v60 = vld [vmem:[#allocation11 + $0x284] sm:$0xf]  ;;  %v9425_v62 = vld [vmem:[#allocation11 + $0x298] sm:$0xf0] }
 0x1bd   : > { %v9492_v10 = vor.u32 %v13105_v2, %v9489_v3  ;;  %v9257_v2 = vld [vmem:[#allocation11 + $0x148] sm:$0xf0] }
 0x1be   : > { %2485 = vmatpush.bf16.msrb.mxu2 %v9204_v26  ;;  %2463 = vmatpush.bf16.msrb.mxu0 %v9488_v36  ;;  %v9732_v26 = vor.u32 %v13165_v17, %v9729_v18  ;;  %v13117_v36 = vld [vmem:[#allocation11 + $0x36c] sm:$0xf]  ;;  %v13187_v17 = vld [vmem:[#allocation11 + $0x594] sm:$0xf0]  ;;  %v9159_v18 = vld [vmem:[#allocation11 + $0x70] sm:$0xf] }
 0x1bf   : > { %v9540_v46 = vor.u32 %v13117_v36, %v9537_v37 }
 0x1c0   : > { %2500 = vmatpush.bf16.msrb.mxu3 %v9348_v33  ;;  %2522 = vmatpush.bf16.msra.mxu1 %v9828_v34  ;;  %v9399_v33 = vld [vmem:[#allocation11 + $0x250] sm:$0xf]  ;;  %v13085_v34 = vld [vmem:[#allocation11 + $0x264] sm:$0xf0] }
 0x1c1   : > { %2464 = vmatmul.bf16.vlgmr.msrb.gmra.mxu0 %v14732_v4 }
 0x1c2   : > { %2486 = vmatpush.bf16.msrb.mxu2 %v9180_v41  ;;  %2508 = vmatpush.bf16.msra.mxu0 %v9660_v42  ;;  %v13043_v41 = vld [vmem:[#allocation11 + $0x114] sm:$0xf0]  ;;  %v9400_v42 = vor.u32 %v13085_v34, %v9399_v33  ;;  %v9615_v34 = vld [vmem:[#allocation11 + $0x400] sm:$0xf] }
 0x1c3   : > { %v9232_v52 = vor.u32 %v13043_v41, %v9231_v39  ;;  %v13019_v33 = vld [vmem:[#allocation11 + $0x54] sm:$0xf0]  ;;  %v9759_v39 = vld [vmem:[#allocation11 + $0x520] sm:$0xf] }
 0x1c4   : > { %2501 = vmatpush.bf16.msrb.mxu3 %v9324_v48  ;;  %2523 = vmatpush.bf16.msra.mxu1 %v9804_v49  ;;  %v13079_v48 = vld [vmem:[#allocation11 + $0x234] sm:$0xf0]  ;;  %v9855_v49 = vld [vmem:[#allocation11 + $0x5e0] sm:$0xf] }
 0x1c5   : > { %v9376_v58 = vor.u32 %v13079_v48, %v9375_v45  ;;  %v9856_v59 = vor.u32 %v13199_v51, %v9855_v49  ;;  %v13175_v41 = vld [vmem:[#allocation11 + $0x534] sm:$0xf0]  ;;  %v9449_v45 = vld [vmem:[#allocation11 + $0x2c8] sm:$0xf0]  ;;  %v13013_v48 = vld [vmem:[#allocation11 + $0x24] sm:$0xf0] }
 0x1c6   : > { %2487 = vmatpush.bf16.msrb.mxu2 %v9156_v56  ;;  %2509 = vmatpush.bf16.msra.mxu0 %v9636_v57  ;;  %v9684_v56 = vor.u32 %v13153_v40, %v9681_v44  ;;  %v9207_v57 = vld [vmem:[#allocation11 + $0xd0] sm:$0xf]  ;;  %v13094_v44 = vld [vmem:[#allocation11 + $0x2b4] sm:$0xf]  ;;  %v13133_v51 = vld [vmem:[#allocation11 + $0x3e4] sm:$0xf0]  ;;  %v9760_v55 = vor.u32 %v13175_v41, %v9759_v39 }
 0x1c7   : > { %v9591_v49 = vld [vmem:[#allocation11 + $0x3d0] sm:$0xf]  ;;  %v13109_v41 = vld [vmem:[#allocation11 + $0x324] sm:$0xf0] }
 0x1c8   : > { %2502 = vmatpush.bf16.msrb.mxu3 %v9300_v63  ;;  %2524 = vmatpush.bf16.msra.mxu1 %v9780_v0  ;;  %v9831_v63 = vld [vmem:[#allocation11 + $0x5b0] sm:$0xf]  ;;  %v13193_v0 = vld [vmem:[#allocation11 + $0x5c4] sm:$0xf0] }
 0x1c9   : > { %v9832_v9 = vor.u32 %v13193_v0, %v9831_v63  ;;  %v9567_v63 = vld [vmem:[#allocation11 + $0x3a0] sm:$0xf]  ;;  %v13127_v0 = vld [vmem:[#allocation11 + $0x3b4] sm:$0xf0]  ;;  %v9495_v39 = vld [vmem:[#allocation11 + $0x310] sm:$0xf] }
 0x1ca   : > { %2488 = vmatpush.bf16.msrb.mxu2 %v9132_v5  ;;  %2510 = vmatpush.bf16.msra.mxu0 %v9612_v6  ;;  %v9183_v5 = vld [vmem:[#allocation11 + $0xa0] sm:$0xf]  ;;  %v13031_v6 = vld [vmem:[#allocation11 + $0xb4] sm:$0xf0] }
 0x1cb   : > { %2503 = vmatmul.bf16.vlgmr.msrb.gmra.mxu3 %v14717_v61  ;;  %v9184_v14 = vor.u32 %v13031_v6, %v9183_v5  ;;  %v9428_v5 = vor.u32 %v13088_v60, %v9425_v62  ;;  %v9568_v6 = vor.u32 %v13127_v0, %v9567_v63  ;;  %v9641_v60 = vld [vmem:[#allocation11 + $0x448] sm:$0xf0]  ;;  %v13058_v62 = vld [vmem:[#allocation11 + $0x194] sm:$0xf] }
 0x1cc   : > { %2547 = vmatpush.bf16.msra.mxu3 %v9472_v1  ;;  %2525 = vmatpush.bf16.msra.mxu1 %v9756_v13  ;;  %v9208_v1 = vor.u32 %v13037_v47, %v9207_v57  ;;  %v13067_v13 = vld [vmem:[#allocation11 + $0x1d4] sm:$0xf0]  ;;  %v9592_v47 = vor.u32 %v13133_v51, %v9591_v49  ;;  %v9496_v49 = vor.u32 %v13109_v41, %v9495_v39  ;;  %v13416_v39 = vld [vmem:[%s14684_s22 + $0x6bc] sm:$0xf0] }
 0x1cd   : > { %v9328_v22 = vor.u32 %v13067_v13, %v9327_v12  ;;  %v9543_v12 = vld [vmem:[#allocation11 + $0x370] sm:$0xf]  ;;  %v13121_v13 = vld [vmem:[#allocation11 + $0x384] sm:$0xf0] }
 0x1ce   : > { %2489 = vmatpush.bf16.msrb.mxu2 %v9108_v19  ;;  %2511 = vmatpush.bf16.msra.mxu0 %v9588_v20  ;;  %v13025_v19 = vld [vmem:[#allocation11 + $0x84] sm:$0xf0]  ;;  %v9639_v20 = vld [vmem:[#allocation11 + $0x430] sm:$0xf] }
 0x1cf   : > { %v9160_v28 = vor.u32 %v13025_v19, %v9159_v18  ;;  %v9544_v19 = vor.u32 %v13121_v13, %v9543_v12 }
 0x1d0   : > { %2548 = vmatpush.bf16.msra.mxu3 %v9448_v16  ;;  %2526 = vmatpush.bf16.msra.mxu1 %v9732_v26  ;;  %v9807_v16 = vld [vmem:[#allocation11 + $0x580] sm:$0xf]  ;;  %v9783_v26 = vld [vmem:[#allocation11 + $0x550] sm:$0xf] }
 0x1d1   : > { %2490 = vmatmul.bf16.vlgmr.msrb.gmra.mxu2 %v14722_v11  ;;  %v9808_v24 = vor.u32 %v13187_v17, %v9807_v16  ;;  %v9784_v37 = vor.u32 %v13181_v27, %v9783_v26  ;;  %v9712_v16 = vor.u32 %v13163_v8, %v9711_v7  ;;  %v9687_v17 = vld [vmem:[#allocation11 + $0x490] sm:$0xf]  ;;  %v9519_v26 = vld [vmem:[#allocation11 + $0x340] sm:$0xf]  ;;  %v13115_v27 = vld [vmem:[#allocation11 + $0x354] sm:$0xf0] }
 0x1d2   : > { %2534 = vmatpush.bf16.msra.mxu2 %v9280_v23  ;;  %2512 = vmatpush.bf16.msra.mxu0 %v9564_v32  ;;  %v9303_v23 = vld [vmem:[#allocation11 + $0x190] sm:$0xf]  ;;  %v9135_v32 = vld [vmem:[#allocation11 + $0x40] sm:$0xf]  ;;  %v9137_v7 = vld [vmem:[#allocation11 + $0x58] sm:$0xf0] }
 0x1d3   : > { %v9304_v36 = vor.u32 %v13061_v25, %v9303_v23  ;;  %v9857_v25 = vld [vmem:[#allocation11 + $0x5f8] sm:$0xf0]  ;;  %v13136_v8 = vld [vmem:[#allocation11 + $0x404] sm:$0xf] }
 0x1d4   : > { %2549 = vmatpush.bf16.msra.mxu3 %v9424_v29  ;;  %2527 = vmatpush.bf16.msra.mxu1 %v9708_v38  ;;  %v9640_v29 = vor.u32 %v13145_v21, %v9639_v20  ;;  %v9476_v38 = vor.u32 %v13100_v30, %v9473_v31  ;;  %v13157_v20 = vld [vmem:[#allocation11 + $0x4a4] sm:$0xf0]  ;;  %v13076_v21 = vld [vmem:[#allocation11 + $0x224] sm:$0xf] }
 0x1d5   : > { %v9688_v30 = vor.u32 %v13157_v20, %v9687_v17  ;;  %v13130_v20 = vld [vmem:[#allocation11 + $0x3d4] sm:$0xf] }
 0x1d6   : > { %2535 = vmatpush.bf16.msra.mxu2 %v9256_v35  ;;  %2513 = vmatpush.bf16.msra.mxu0 %v9540_v46  ;;  %v13139_v35 = vld [vmem:[#allocation11 + $0x414] sm:$0xf0]  ;;  %v9111_v46 = vld [vmem:[#allocation11 + $0x10] sm:$0xf] }
 0x1d7   : > { %v9616_v40 = vor.u32 %v13139_v35, %v9615_v34  ;;  %v9112_v57 = vor.u32 %v13013_v48, %v9111_v46  ;;  %v9353_v34 = vld [vmem:[#allocation11 + $0x208] sm:$0xf0]  ;;  %v9520_v35 = vor.u32 %v13115_v27, %v9519_v26  ;;  %v13432_v26 = vld [vmem:[%s14684_s22 + $0x73c] sm:$0xf0] }
 0x1d8   : > { %2550 = vmatpush.bf16.msra.mxu3 %v9400_v42  ;;  %2528 = vmatpush.bf16.msra.mxu1 %v9684_v56  ;;  %v9136_v42 = vor.u32 %v13019_v33, %v9135_v32  ;;  %v9452_v56 = vor.u32 %v13094_v44, %v9449_v45  ;;  %v13070_v33 = vld [vmem:[#allocation11 + $0x1f4] sm:$0xf]  ;;  %v13148_v44 = vld [vmem:[#allocation11 + $0x464] sm:$0xf]  ;;  %v9665_v45 = vld [vmem:[#allocation11 + $0x478] sm:$0xf0] }
 0x1d9   : > { %v9356_v46 = vor.u32 %v13070_v33, %v9353_v34  ;;  %v9569_v34 = vld [vmem:[#allocation11 + $0x3b8] sm:$0xf0] }
 0x1da   : > { %2536 = vmatpush.bf16.msra.mxu2 %v9232_v52  ;;  %2514 = vmatpush.bf16.msra.mxu0 %v9516_v53  ;;  %v13052_v52 = vld [vmem:[#allocation11 + $0x164] sm:$0xf] }
 0x1db   : > { %2529 = vmatmul.bf16.vlgmr.msra.gmra.mxu1 %v14727_v43  ;;  %v9284_v53 = vor.u32 %v13052_v52, %v9281_v54  ;;  %v13064_v52 = vld [vmem:[#allocation11 + $0x1c4] sm:$0xf]  ;;  %v9329_v54 = vld [vmem:[#allocation11 + $0x1d8] sm:$0xf0] }
 0x1dc   : > { %2551 = vmatpush.bf16.msra.mxu3 %v9376_v58  ;;  %2573 = vmatpush.bf16.msrb.mxu1 %v9856_v59  ;;  %v9735_v58 = vld [vmem:[#allocation11 + $0x4f0] sm:$0xf]  ;;  %v13169_v59 = vld [vmem:[#allocation11 + $0x504] sm:$0xf0] }
 0x1dd   : > { %v9736_v3 = vor.u32 %v13169_v59, %v9735_v58  ;;  %v9161_v58 = vld [vmem:[#allocation11 + $0x88] sm:$0xf0]  ;;  %v13142_v59 = vld [vmem:[#allocation11 + $0x434] sm:$0xf] }
 0x1de   : > { %2537 = vmatpush.bf16.msra.mxu2 %v9208_v1  ;;  %2515 = vmatpush.bf16.msra.mxu0 %v9492_v10  ;;  %v13046_v1 = vld [vmem:[#allocation11 + $0x134] sm:$0xf]  ;;  %v9401_v10 = vld [vmem:[#allocation11 + $0x268] sm:$0xf0] }
 0x1e0   : > { %2552 = vmatpush.bf16.msra.mxu3 %v9352_v50  ;;  %2574 = vmatpush.bf16.msrb.mxu1 %v9832_v9  ;;  %v13082_v50 = vld [vmem:[#allocation11 + $0x254] sm:$0xf]  ;;  %v9260_v9 = vor.u32 %v13046_v1, %v9257_v2  ;;  %v9305_v1 = vld [vmem:[#allocation11 + $0x1a8] sm:$0xf0] }
 0x1e1   : > { %2516 = vmatmul.bf16.vlgmr.msra.gmra.mxu0 %v14732_v4  ;;  %v9404_v18 = vor.u32 %v13082_v50, %v9401_v10  ;;  %v13178_v2 = vld [vmem:[#allocation11 + $0x554] sm:$0xf]  ;;  %v9617_v50 = vld [vmem:[#allocation11 + $0x418] sm:$0xf0]  ;;  %v13448_v10 = vld [vmem:[%s14684_s22 + $0x7bc] sm:$0xf0]  ;;  %v9308_v12 = vor.u32 %v13058_v62, %v9305_v1 }
 0x1e2   : > { %2538 = vmatpush.bf16.msra.mxu2 %v9184_v14  ;;  %2560 = vmatpush.bf16.msrb.mxu0 %v9664_v15  ;;  %v13040_v14 = vld [vmem:[#allocation11 + $0x104] sm:$0xf]  ;;  %v9233_v15 = vld [vmem:[#allocation11 + $0x118] sm:$0xf0]  ;;  %v9620_v17 = vor.u32 %v13136_v8, %v9617_v50  ;;  %v9497_v8 = vld [vmem:[#allocation11 + $0x328] sm:$0xf0] }
 0x1e3   : > { %v9236_v23 = vor.u32 %v13040_v14, %v9233_v15  ;;  %v13172_v15 = vld [vmem:[#allocation11 + $0x524] sm:$0xf] }
 0x1e4   : > { %2553 = vmatpush.bf16.msra.mxu3 %v9328_v22  ;;  %2575 = vmatpush.bf16.msrb.mxu1 %v9808_v24  ;;  %v9377_v22 = vld [vmem:[#allocation11 + $0x238] sm:$0xf0]  ;;  %v13196_v24 = vld [vmem:[#allocation11 + $0x5e4] sm:$0xf] }
 0x1e5   : > { %v9380_v31 = vor.u32 %v13076_v21, %v9377_v22  ;;  %v9860_v32 = vor.u32 %v13196_v24, %v9857_v25  ;;  %v9593_v22 = vld [vmem:[#allocation11 + $0x3e8] sm:$0xf0]  ;;  %v13320_v24 = vld [vmem:[%s14684_s22 + $0x3bc] sm:$0xf0] }
 0x1e6   : > { %2539 = vmatpush.bf16.msra.mxu2 %v9160_v28  ;;  %2561 = vmatpush.bf16.msrb.mxu0 %v9640_v29  ;;  %v13034_v28 = vld [vmem:[#allocation11 + $0xd4] sm:$0xf]  ;;  %v9209_v29 = vld [vmem:[#allocation11 + $0xe8] sm:$0xf0]  ;;  %v10760_v25 = vld [vmem:[%s14684_s22 + $0x700] sm:$0xf] }
 0x1e7   : > { %v13272_v62 = vld [vmem:[%s14684_s22 + $0x23c] sm:$0xf0] }
 0x1e8   : > { %2554 = vmatpush.bf16.msra.mxu3 %v9304_v36  ;;  %2576 = vmatpush.bf16.msrb.mxu1 %v9784_v37  ;;  %v9212_v36 = vor.u32 %v13034_v28, %v9209_v29  ;;  %v13190_v37 = vld [vmem:[#allocation11 + $0x5b4] sm:$0xf]  ;;  %v9596_v29 = vor.u32 %v13130_v20, %v9593_v22  ;;  %v11848_v1 = vld [vmem:[%s14684_s22 + $0xf80] sm:$0xf]  ;;  %v14782_v20 = vld [vmem:[#allocation13] sm:$0x3f] }
 0x1ea   : > { %2540 = vmatpush.bf16.msra.mxu2 %v9136_v42  ;;  %2562 = vmatpush.bf16.msrb.mxu0 %v9616_v40  ;;  %v13028_v42 = vld [vmem:[#allocation11 + $0xa4] sm:$0xf]  ;;  %v9185_v40 = vld [vmem:[#allocation11 + $0xb8] sm:$0xf0] }
 0x1eb   : > { %2555 = vmatmul.bf16.vlgmr.msra.gmra.mxu3 %v14717_v61  ;;  %v9188_v51 = vor.u32 %v13028_v42, %v9185_v40  ;;  %v13160_v40 = vld [vmem:[#allocation11 + $0x4c4] sm:$0xf] }
 0x1ec   : > { %2599 = vmatpush.bf16.msrb.mxu3 %v9476_v38  ;;  %2577 = vmatpush.bf16.msrb.mxu1 %v9760_v55  ;;  %v9833_v38 = vld [vmem:[#allocation11 + $0x5c8] sm:$0xf0]  ;;  %v13184_v55 = vld [vmem:[#allocation11 + $0x584] sm:$0xf] }
 0x1ed   : > { %v9836_v48 = vor.u32 %v13190_v37, %v9833_v38  ;;  %v10761_v37 = vor.u32 %v13432_v26, %v10760_v25  ;;  %v10696_v38 = vld [vmem:[%s14684_s22 + $0x680] sm:$0xf] }
 0x1ee   : > { %2541 = vmatpush.bf16.msra.mxu2 %v9112_v57  ;;  %2563 = vmatpush.bf16.msrb.mxu0 %v9592_v47  ;;  %v9809_v57 = vld [vmem:[#allocation11 + $0x598] sm:$0xf0]  ;;  %v13022_v47 = vld [vmem:[#allocation11 + $0x74] sm:$0xf]  ;;  %v9992_v25 = vld [vmem:[%s14684_s22 + $0x100] sm:$0xf] }
 0x1ef   : > { %v9812_v63 = vor.u32 %v13184_v55, %v9809_v57  ;;  %v9164_v0 = vor.u32 %v13022_v47, %v9161_v58  ;;  %v9689_v47 = vld [vmem:[#allocation11 + $0x4a8] sm:$0xf0]  ;;  %v13112_v58 = vld [vmem:[#allocation11 + $0x344] sm:$0xf] }
 0x1f0   : > { %2600 = vmatpush.bf16.msrb.mxu3 %v9452_v56  ;;  %2578 = vmatpush.bf16.msrb.mxu1 %v9736_v3  ;;  %v9668_v56 = vor.u32 %v13148_v44, %v9665_v45  ;;  %v9785_v3 = vld [vmem:[#allocation11 + $0x568] sm:$0xf0]  ;;  %v9713_v44 = vld [vmem:[#allocation11 + $0x4d8] sm:$0xf0]  ;;  %v13118_v45 = vld [vmem:[#allocation11 + $0x374] sm:$0xf] }
 0x1f1   : > { %2542 = vmatmul.bf16.vlgmr.msra.gmra.mxu2 %v14722_v11  ;;  %v9788_v13 = vor.u32 %v13178_v2, %v9785_v3  ;;  %v9716_v55 = vor.u32 %v13160_v40, %v9713_v44  ;;  %v13704_v2 = vld [vmem:[%s14684_s22 + $0xfbc] sm:$0xf0] }
 0x1f2   : > { %2586 = vmatpush.bf16.msrb.mxu2 %v9284_v53  ;;  %2564 = vmatpush.bf16.msrb.mxu0 %v9568_v6  ;;  %v9332_v53 = vor.u32 %v13064_v52, %v9329_v54  ;;  %v13016_v6 = vld [vmem:[#allocation11 + $0x44] sm:$0xf] }
 0x1f3   : > { %v9140_v14 = vor.u32 %v13016_v6, %v9137_v7  ;;  %v10632_v52 = vld [vmem:[%s14684_s22 + $0x600] sm:$0xf]  ;;  %v13106_v7 = vld [vmem:[#allocation11 + $0x314] sm:$0xf] }
 0x1f4   : > { %2601 = vmatpush.bf16.msrb.mxu3 %v9428_v5  ;;  %2579 = vmatpush.bf16.msrb.mxu1 %v9712_v16  ;;  %v9644_v5 = vor.u32 %v13142_v59, %v9641_v60  ;;  %v9761_v16 = vld [vmem:[#allocation11 + $0x538] sm:$0xf0]  ;;  %v13400_v54 = vld [vmem:[%s14684_s22 + $0x63c] sm:$0xf0] }
 0x1f5   : > { %v9764_v27 = vor.u32 %v13172_v15, %v9761_v16  ;;  %v9521_v59 = vld [vmem:[#allocation11 + $0x358] sm:$0xf0]  ;;  %v13576_v15 = vld [vmem:[%s14684_s22 + $0xbbc] sm:$0xf0] }
 0x1f6   : > { %2587 = vmatpush.bf16.msrb.mxu2 %v9260_v9  ;;  %2565 = vmatpush.bf16.msrb.mxu0 %v9544_v19  ;;  %v10824_v9 = vld [vmem:[%s14684_s22 + $0x780] sm:$0xf]  ;;  %v9113_v19 = vld [vmem:[#allocation11 + $0x28] sm:$0xf0]  ;;  %v9524_v6 = vor.u32 %v13112_v58, %v9521_v59 }
 0x1f7   : > { %v10825_v21 = vor.u32 %v13448_v10, %v10824_v9  ;;  %v11336_v9 = vld [vmem:[%s14684_s22 + $0xb80] sm:$0xf] }
 0x1f8   : > { %2602 = vmatpush.bf16.msrb.mxu3 %v9404_v18  ;;  %2580 = vmatpush.bf16.msrb.mxu1 %v9688_v30  ;;  %v13010_v18 = vld [vmem:[#allocation11 + $0x14] sm:$0xf]  ;;  %v10056_v10 = vld [vmem:[%s14684_s22 + $0x180] sm:$0xf] }
 0x1f9   : > { %v9116_v28 = vor.u32 %v13010_v18, %v9113_v19  ;;  %v13166_v30 = vld [vmem:[#allocation11 + $0x4f4] sm:$0xf]  ;;  %v10504_v16 = vld [vmem:[%s14684_s22 + $0x500] sm:$0xf] }
 0x1fa   : > { %2588 = vmatpush.bf16.msrb.mxu2 %v9236_v23  ;;  %2566 = vmatpush.bf16.msrb.mxu0 %v9520_v35  ;;  %v10312_v23 = vld [vmem:[%s14684_s22 + $0x380] sm:$0xf] }
 0x1fb   : > { %2581 = vmatmul.bf16.vlgmr.msrb.gmra.mxu1 %v14727_v43  ;;  %v10313_v33 = vor.u32 %v13320_v24, %v10312_v23  ;;  %v10248_v35 = vld [vmem:[%s14684_s22 + $0x300] sm:$0xf]  ;;  %v11337_v23 = vor.u32 %v13576_v15, %v11336_v9 }
 0x1fc   : > { %2603 = vmatpush.bf16.msrb.mxu3 %v9380_v31  ;;  %2625 = vmatpush.bf16.msra.mxu1 %v9860_v32  ;;  %v9737_v31 = vld [vmem:[#allocation11 + $0x508] sm:$0xf0]  ;;  %v13124_v32 = vld [vmem:[#allocation11 + $0x3a4] sm:$0xf] }
 0x1fd   : > { %v9740_v41 = vor.u32 %v13166_v30, %v9737_v31  ;;  %v9572_v42 = vor.u32 %v13124_v32, %v9569_v34  ;;  %v11784_v18 = vld [vmem:[%s14684_s22 + $0xf00] sm:$0xf] }
 0x1fe   : > { %2589 = vmatpush.bf16.msrb.mxu2 %v9212_v36  ;;  %2567 = vmatpush.bf16.msrb.mxu0 %v9496_v49  ;;  %v13304_v36 = vld [vmem:[%s14684_s22 + $0x33c] sm:$0xf0] }
 0x1ff   : > { %v13288_v49 = vld [vmem:[%s14684_s22 + $0x2bc] sm:$0xf0] }
 0x200   : > { %2604 = vmatpush.bf16.msrb.mxu3 %v9356_v46  ;;  %2626 = vmatpush.bf16.msra.mxu1 %v9836_v48  ;;  %v9545_v46 = vld [vmem:[#allocation11 + $0x388] sm:$0xf0]  ;;  %v10184_v48 = vld [vmem:[%s14684_s22 + $0x280] sm:$0xf] }
 0x201   : > { %2568 = vmatmul.bf16.vlgmr.msrb.gmra.mxu0 %v14732_v4  ;;  %v9548_v57 = vor.u32 %v13118_v45, %v9545_v46  ;;  %v10185_v60 = vor.u32 %v13288_v49, %v10184_v48  ;;  %v13688_v19 = vld [vmem:[%s14684_s22 + $0xf3c] sm:$0xf0] }
 0x202   : > { %2590 = vmatpush.bf16.msrb.mxu2 %v9188_v51  ;;  %2612 = vmatpush.bf16.msra.mxu0 %v9668_v56  ;;  %v10697_v51 = vor.u32 %v13416_v39, %v10696_v38  ;;  %v13154_v56 = vld [vmem:[#allocation11 + $0x494] sm:$0xf]  ;;  %v11272_v24 = vld [vmem:[%s14684_s22 + $0xb00] sm:$0xf]  ;;  %v11785_v30 = vor.u32 %v13688_v19, %v11784_v18  ;;  %v1355_v19 = vperm.slane %v14782_v20, 1 }
 0x203   : > { %v9692_v3 = vor.u32 %v13154_v56, %v9689_v47  ;;  %v13240_v26 = vld [vmem:[%s14684_s22 + $0x13c] sm:$0xf0] }
 0x204   : > { %2605 = vmatpush.bf16.msrb.mxu3 %v9332_v53  ;;  %2627 = vmatpush.bf16.msra.mxu1 %v9812_v63  ;;  %v10120_v53 = vld [vmem:[%s14684_s22 + $0x200] sm:$0xf] }
 0x205   : > { %v10568_v63 = vld [vmem:[%s14684_s22 + $0x580] sm:$0xf]  ;;  %v10121_v50 = vor.u32 %v13272_v62, %v10120_v53 }
 0x206   : > { %2591 = vmatpush.bf16.msrb.mxu2 %v9164_v0  ;;  %2613 = vmatpush.bf16.msra.mxu0 %v9644_v5  ;;  %v13384_v0 = vld [vmem:[%s14684_s22 + $0x5bc] sm:$0xf0] }
 0x207   : > { %v10440_v31 = vld [vmem:[%s14684_s22 + $0x480] sm:$0xf] }
 0x208   : > { %2606 = vmatpush.bf16.msrb.mxu3 %v9308_v12  ;;  %2628 = vmatpush.bf16.msra.mxu1 %v9788_v13  ;;  %v13256_v12 = vld [vmem:[%s14684_s22 + $0x1bc] sm:$0xf0]  ;;  %v10569_v13 = vor.u32 %v13384_v0, %v10568_v63 }
 0x209   : > { %v10057_v22 = vor.u32 %v13256_v12, %v10056_v10  ;;  %v13352_v32 = vld [vmem:[%s14684_s22 + $0x4bc] sm:$0xf0] }
 0x20a   : > { %2592 = vmatpush.bf16.msrb.mxu2 %v9140_v14  ;;  %2614 = vmatpush.bf16.msra.mxu0 %v9620_v17  ;;  %v11849_v14 = vor.u32 %v13704_v2, %v11848_v1  ;;  %v13368_v17 = vld [vmem:[%s14684_s22 + $0x53c] sm:$0xf0] }
 0x20b   : > { %2607 = vmatmul.bf16.vlgmr.msrb.gmra.mxu3 %v14717_v61  ;;  %v10249_v61 = vor.u32 %v13304_v36, %v10248_v35  ;;  %v11720_v34 = vld [vmem:[%s14684_s22 + $0xe80] sm:$0xf] }
 0x20c   : > { %7321 = vmatpush.bf16.msra.mxu3 %v10825_v21  ;;  %2629 = vmatpush.bf16.msra.mxu1 %v9764_v27  ;;  %v9500_v21 = vor.u32 %v13106_v7, %v9497_v8  ;;  %v10505_v27 = vor.u32 %v13368_v17, %v10504_v16  ;;  %v13672_v35 = vld [vmem:[%s14684_s22 + $0xebc] sm:$0xf0] }
 0x20d   : > { %v11208_v38 = vld [vmem:[%s14684_s22 + $0xa80] sm:$0xf]  ;;  %v11721_v45 = vor.u32 %v13672_v35, %v11720_v34 }
 0x20e   : > { %2593 = vmatpush.bf16.msrb.mxu2 %v9116_v28  ;;  %2615 = vmatpush.bf16.msra.mxu0 %v9596_v29  ;;  %v14772_v5 = vpop.f32.mrf.mxu3  ;;  %v13560_v29 = vld [vmem:[%s14684_s22 + $0xb3c] sm:$0xf0] }
 0x20f   : > { %v9928_v39 = vld [vmem:[%s14684_s22 + $0x80] sm:$0xf] }
 0x210   : > { %7322 = vmatpush.bf16.msra.mxu3 %v10761_v37  ;;  %2630 = vmatpush.bf16.msra.mxu1 %v9740_v41  ;;  %v9993_v37 = vor.u32 %v13240_v26, %v9992_v25  ;;  %v13224_v41 = vld [vmem:[%s14684_s22 + $0xbc] sm:$0xf0] }
 0x211   : > { %2594 = vmatmul.bf16.vlgmr.msrb.gmra.mxu2 %v14722_v11  ;;  %v10633_v11 = vor.u32 %v13400_v54, %v10632_v52  ;;  %v13544_v44 = vld [vmem:[%s14684_s22 + $0xabc] sm:$0xf0]  ;;  %v9929_v52 = vor.u32 %v13224_v41, %v9928_v39 }
 0x212   : > { %7308 = vmatpush.bf16.msra.mxu2 %v10313_v33  ;;  %2616 = vmatpush.bf16.msra.mxu0 %v9572_v42  ;;  %v1354_v33 = vperm.slane %v14782_v20, 0  ;;  %v10441_v42 = vor.u32 %v13352_v32, %v10440_v31  ;;  %v13336_v46 = vld [vmem:[%s14684_s22 + $0x43c] sm:$0xf0]  ;;  %v11209_v54 = vor.u32 %v13544_v44, %v11208_v38 }
 0x213   : > { %v11656_v49 = vld [vmem:[%s14684_s22 + $0xe00] sm:$0xf] }
 0x214   : > { %7323 = vmatpush.bf16.msra.mxu3 %v10697_v51  ;;  %2631 = vmatpush.bf16.msra.mxu1 %v9716_v55  ;;  %v2335_v28 = vpop.f32.mrf.mxu2  ;;  %v13656_v51 = vld [vmem:[%s14684_s22 + $0xe3c] sm:$0xf0] }
 0x215   : > { %v2336_v48 = vadd.f32 %v2335_v28, %v1354_v33  ;;  %v9864_v55 = vld [vmem:[%s14684_s22] sm:$0xf] }
 0x216   : > { %7309 = vmatpush.bf16.msra.mxu2 %v10249_v61  ;;  %2617 = vmatpush.bf16.msra.mxu0 %v9548_v57  ;;  %v2350_v36 = vpop.f32.mrf.mxu3  ;;  %v10376_v61 = vld [vmem:[%s14684_s22 + $0x400] sm:$0xf] }
 0x217   : > { %v13208_v56 = vld [vmem:[%s14684_s22 + $0x3c] sm:$0xf0]  ;;  %v10377_v57 = vor.u32 %v13336_v46, %v10376_v61 }
 0x218   : > { %7324 = vmatpush.bf16.msra.mxu3 %v10633_v11  ;;  %2632 = vmatpush.bf16.msra.mxu1 %v9692_v3  ;;  %v2374_v40 = vpop.f32.mrf.mxu1  ;;  %v11144_v58 = vld [vmem:[%s14684_s22 + $0xa00] sm:$0xf]  ;;  %v9865_v0 = vor.u32 %v13208_v56, %v9864_v55  ;;  %v14813_v3 = vstv %s14794_s17  ;;  %v13424_v55 = vld [vmem:[%s14684_s22 + $0x704] sm:$0xf] }
 0x219   : > { %v13528_v59 = vld [vmem:[%s14684_s22 + $0xa3c] sm:$0xf0]  ;;  %v10762_v56 = vld [vmem:[%s14684_s22 + $0x740] sm:$0xf0] }
 0x21a   : > { %7310 = vmatpush.bf16.msra.mxu2 %v10185_v60  ;;  %2618 = vmatpush.bf16.msra.mxu0 %v9524_v6  ;;  %v2349_v60 = vadd.f32 %v14772_v5, %v2336_v48  ;;  %v11592_v53 = vld [vmem:[%s14684_s22 + $0xd80] sm:$0xf]  ;;  %v11145_v2 = vor.u32 %v13528_v59, %v11144_v58  ;;  %v13312_v48 = vld [vmem:[%s14684_s22 + $0x384] sm:$0xf] }
 0x21b   : > { %2633 = vmatmul.bf16.vlgmr.msra.gmra.mxu1 %v14727_v43  ;;  %v11273_v43 = vor.u32 %v13560_v29, %v11272_v24  ;;  %v13640_v62 = vld [vmem:[%s14684_s22 + $0xdbc] sm:$0xf0] }
 0x21c   : > { %7325 = vmatpush.bf16.msra.mxu3 %v10569_v13  ;;  %7347 = vmatpush.bf16.msrb.mxu1 %v11849_v14  ;;  %v2337_v47 = vpop.f32.mrf.mxu2  ;;  %v11080_v7 = vld [vmem:[%s14684_s22 + $0x980] sm:$0xf]  ;;  %v11593_v5 = vor.u32 %v13640_v62, %v11592_v53 }
 0x21d   : > { %v13512_v8 = vld [vmem:[%s14684_s22 + $0x9bc] sm:$0xf0] }
 0x21e   : > { %7311 = vmatpush.bf16.msra.mxu2 %v10121_v50  ;;  %2619 = vmatpush.bf16.msra.mxu0 %v9500_v21  ;;  %v2361_v11 = vpop.f32.mrf.mxu0  ;;  %v2400_v63 = vpop.f32.mrf.mxu3  ;;  %v11528_v9 = vld [vmem:[%s14684_s22 + $0xd00] sm:$0xf]  ;;  %v11081_v13 = vor.u32 %v13512_v8, %v11080_v7 }
 0x21f   : > { %v2362_v1 = vadd.f32 %v2361_v11, %v2349_v60  ;;  %v13624_v10 = vld [vmem:[%s14684_s22 + $0xd3c] sm:$0xf0]  ;;  %v13296_v11 = vld [vmem:[%s14684_s22 + $0x304] sm:$0xf] }
 0x220   : > { %7326 = vmatpush.bf16.msra.mxu3 %v10505_v27  ;;  %7348 = vmatpush.bf16.msrb.mxu1 %v11785_v30  ;;  %v2376_v6 = vpop.f32.mrf.mxu1  ;;  %v11016_v15 = vld [vmem:[%s14684_s22 + $0x900] sm:$0xf]  ;;  %v11529_v17 = vor.u32 %v13624_v10, %v11528_v9 }
 0x221   : > { %2620 = vmatmul.bf16.vlgmr.msra.gmra.mxu0 %v14732_v4  ;;  %v11657_v4 = vor.u32 %v13656_v51, %v11656_v49  ;;  %v2375_v50 = vadd.f32 %v2374_v40, %v2362_v1  ;;  %v13496_v16 = vld [vmem:[%s14684_s22 + $0x93c] sm:$0xf0]  ;;  %v10314_v49 = vld [vmem:[%s14684_s22 + $0x3c0] sm:$0xf0] }
 0x222   : > { %7312 = vmatpush.bf16.msra.mxu2 %v10057_v22  ;;  %7334 = vmatpush.bf16.msrb.mxu0 %v11337_v23  ;;  %v11464_v21 = vld [vmem:[%s14684_s22 + $0xc80] sm:$0xf]  ;;  %v11017_v26 = vor.u32 %v13496_v16, %v11016_v15  ;;  %v10317_v60 = vor.u32 %v13312_v48, %v10314_v49  ;;  %v13408_v1 = vld [vmem:[%s14684_s22 + $0x684] sm:$0xf] }
 0x223   : > { %vm2638_vm8 = vcmp.gt.f32.partialorder %v2375_v50, 0.0  ;;  %v2646_v12 = vmul.f32 %v14813_v3, %v2375_v50  ;;  %v13608_v22 = vld [vmem:[%s14684_s22 + $0xcbc] sm:$0xf0] }
 0x224   : > { %7327 = vmatpush.bf16.msra.mxu3 %v10441_v42  ;;  %7349 = vmatpush.bf16.msrb.mxu1 %v11721_v45  ;;  %v2387_v14 = vpop.f32.mrf.mxu2  ;;  %v12360_v27 = vld [vmem:[%s14684_s22 + $0x1380] sm:$0xf]  ;;  %v11465_v32 = vor.u32 %v13608_v22, %v11464_v21  ;;  %v13392_v22 = vld [vmem:[%s14684_s22 + $0x604] sm:$0xf] }
 0x225   : > { %v2652_v18 = vsel %vm2638_vm8, %v2375_v50, %v2646_v12  ;;  %v13832_v28 = vld [vmem:[%s14684_s22 + $0x13bc] sm:$0xf0]  ;;  %v2388_v34 = vadd.f32 %v2387_v14, %v1355_v19  ;;  %v13280_v50 = vld [vmem:[%s14684_s22 + $0x284] sm:$0xf] }
 0x226   : > { %7313 = vmatpush.bf16.msra.mxu2 %v9993_v37  ;;  %7335 = vmatpush.bf16.msrb.mxu0 %v11273_v43  ;;  %v14825_v23 = vpack.c.bf16 %v2652_v18, %v2652_v18  ;;  %v2363_v24 = vpop.f32.mrf.mxu0  ;;  %v2402_v25 = vpop.f32.mrf.mxu3  ;;  %v10952_v30 = vld [vmem:[%s14684_s22 + $0x880] sm:$0xf]  ;;  %v12361_v33 = vor.u32 %v13832_v28, %v12360_v27  ;;  %v13440_v37 = vld [vmem:[%s14684_s22 + $0x784] sm:$0xf]  ;;  %v1356_v18 = vperm.slane %v14782_v20, 2 }
 0x227   : > { %v13480_v31 = vld [vmem:[%s14684_s22 + $0x8bc] sm:$0xf0]  ;;  %v10826_v43 = vld [vmem:[%s14684_s22 + $0x7c0] sm:$0xf0]  ;;  %v2401_v46 = vadd.f32 %v2400_v63, %v2388_v34 }
 0x228   : > { %7328 = vmatpush.bf16.msra.mxu3 %v10377_v57  ;;  %7350 = vmatpush.bf16.msrb.mxu1 %v11657_v4  ;;  %v2426_v29 = vpop.f32.mrf.mxu1  ;;  %v11400_v35 = vld [vmem:[%s14684_s22 + $0xc00] sm:$0xf]  ;;  %v10953_v38 = vor.u32 %v13480_v31, %v10952_v30  ;;  %v10829_v51 = vor.u32 %v13440_v37, %v10826_v43  ;;  %v10250_v63 = vld [vmem:[%s14684_s22 + $0x340] sm:$0xf0] }
 0x229   : > { %v13592_v36 = vld [vmem:[%s14684_s22 + $0xc3c] sm:$0xf0]  ;;  %v10634_v24 = vld [vmem:[%s14684_s22 + $0x640] sm:$0xf0] }
 0x22a   : > { %7314 = vmatpush.bf16.msra.mxu2 %v9929_v52  ;;  %7336 = vmatpush.bf16.msrb.mxu0 %v11209_v54  ;;  %v12296_v39 = vld [vmem:[%s14684_s22 + $0x1300] sm:$0xf]  ;;  %v11401_v45 = vor.u32 %v13592_v36, %v11400_v35  ;;  %v13264_v28 = vld [vmem:[%s14684_s22 + $0x204] sm:$0xf]  ;;  %v10637_v30 = vor.u32 %v13392_v22, %v10634_v24 }
 0x22b   : > { %v13816_v41 = vld [vmem:[%s14684_s22 + $0x133c] sm:$0xf0] }
 0x22c   : > { %7351 = vmatpush.bf16.msrb.mxu1 %v11593_v5  ;;  %v2389_v42 = vpop.f32.mrf.mxu2  ;;  %v10888_v40 = vld [vmem:[%s14684_s22 + $0x800] sm:$0xf]  ;;  %v12297_v61 = vor.u32 %v13816_v41, %v12296_v39  ;;  %v10253_v5 = vor.u32 %v13296_v11, %v10250_v63  ;;  %v10058_v39 = vld [vmem:[%s14684_s22 + $0x1c0] sm:$0xf0] }
 0x22d   : > { %v13464_v44 = vld [vmem:[%s14684_s22 + $0x83c] sm:$0xf0]  ;;  %v9930_v11 = vld [vmem:[%s14684_s22 + $0xc0] sm:$0xf0] }
 0x22e   : > { %7315 = vmatpush.bf16.msra.mxu2 %v9865_v0  ;;  %7337 = vmatpush.bf16.msrb.mxu0 %v11145_v2  ;;  %v2413_v52 = vpop.f32.mrf.mxu0  ;;  %v14842_v54 = vpop.f32.mrf.mxu3  ;;  %v10889_v47 = vor.u32 %v13464_v44, %v10888_v40  ;;  %v12232_v58 = vld [vmem:[%s14684_s22 + $0x1280] sm:$0xf]  ;;  %v10765_v0 = vor.u32 %v13424_v55, %v10762_v56  ;;  %v10698_v2 = vld [vmem:[%s14684_s22 + $0x6c0] sm:$0xf0] }
 0x22f   : > { %v2414_v57 = vadd.f32 %v2413_v52, %v2401_v46  ;;  %v13800_v59 = vld [vmem:[%s14684_s22 + $0x12bc] sm:$0xf0]  ;;  %v10701_v14 = vor.u32 %v13408_v1, %v10698_v2  ;;  %v13360_v40 = vld [vmem:[%s14684_s22 + $0x504] sm:$0xf] }
 0x230   : > { %7352 = vmatpush.bf16.msrb.mxu1 %v11529_v17  ;;  %v2428_v4 = vpop.f32.mrf.mxu1  ;;  %v12233_v53 = vor.u32 %v13800_v59, %v12232_v58  ;;  %v12168_v7 = vld [vmem:[%s14684_s22 + $0x1200] sm:$0xf]  ;;  %v10506_v44 = vld [vmem:[%s14684_s22 + $0x540] sm:$0xf0] }
 0x231   : > { %7316 = vmatmul.bf16.vlgmr.msra.gmra.mxu2 %v14825_v23  ;;  %v2427_v62 = vadd.f32 %v2426_v29, %v2414_v57  ;;  %v13784_v8 = vld [vmem:[%s14684_s22 + $0x123c] sm:$0xf0]  ;;  %v10122_v29 = vld [vmem:[%s14684_s22 + $0x240] sm:$0xf0] }
 0x232   : > { %7338 = vmatpush.bf16.msrb.mxu0 %v11081_v13  ;;  %7360 = vmatpush.bf16.msrb.mxu2 %v12361_v33  ;;  %v12169_v9 = vor.u32 %v13784_v8, %v12168_v7  ;;  %v10186_v13 = vld [vmem:[%s14684_s22 + $0x2c0] sm:$0xf0]  ;;  %v12104_v15 = vld [vmem:[%s14684_s22 + $0x1180] sm:$0xf]  ;;  %v10125_v36 = vor.u32 %v13264_v28, %v10122_v29 }
 0x233   : > { %vm2639_vm9 = vcmp.gt.f32.partialorder %v2427_v62, 0.0  ;;  %v2647_v6 = vmul.f32 %v14813_v3, %v2427_v62  ;;  %v13768_v16 = vld [vmem:[%s14684_s22 + $0x11bc] sm:$0xf0]  ;;  %v10189_v27 = vor.u32 %v13280_v50, %v10186_v13  ;;  %v10570_v33 = vld [vmem:[%s14684_s22 + $0x5c0] sm:$0xf0] }
 0x234   : > { %7353 = vmatpush.bf16.msrb.mxu1 %v11465_v32  ;;  %v2439_v12 = vpop.f32.mrf.mxu2  ;;  %v12105_v25 = vor.u32 %v13768_v16, %v12104_v15  ;;  %v13376_v32 = vld [vmem:[%s14684_s22 + $0x584] sm:$0xf]  ;;  %v12040_v34 = vld [vmem:[%s14684_s22 + $0x1100] sm:$0xf] }
 0x235   : > { %v2653_v10 = vsel %vm2639_vm9, %v2427_v62, %v2647_v6  ;;  %v2440_v31 = vadd.f32 %v2439_v12, %v1356_v18  ;;  %v13752_v35 = vld [vmem:[%s14684_s22 + $0x113c] sm:$0xf0]  ;;  %v10573_v41 = vor.u32 %v13376_v32, %v10570_v33  ;;  %v13232_v55 = vld [vmem:[%s14684_s22 + $0x104] sm:$0xf] }
 0x236   : > { %7339 = vmatpush.bf16.msrb.mxu0 %v11017_v26  ;;  %7361 = vmatpush.bf16.msrb.mxu2 %v12297_v61  ;;  %v14859_v17 = vpack.c.bf16 %v2653_v10, %v2653_v10  ;;  %v2415_v19 = vpop.f32.mrf.mxu0  ;;  %v2454_v21 = vpop.f32.mrf.mxu3  ;;  %v12041_v37 = vor.u32 %v13752_v35, %v12040_v34  ;;  %v11976_v61 = vld [vmem:[%s14684_s22 + $0x1080] sm:$0xf]  ;;  %v9994_v56 = vld [vmem:[%s14684_s22 + $0x140] sm:$0xf0] }
 0x237   : > { %v2453_v42 = vadd.f32 %v14842_v54, %v2440_v31  ;;  %v13736_v46 = vld [vmem:[%s14684_s22 + $0x10bc] sm:$0xf0]  ;;  %v10509_v54 = vor.u32 %v13360_v40, %v10506_v44  ;;  %v10442_v58 = vld [vmem:[%s14684_s22 + $0x4c0] sm:$0xf0] }
 0x238   : > { %7354 = vmatpush.bf16.msrb.mxu1 %v11401_v45  ;;  %v2478_v26 = vpop.f32.mrf.mxu1  ;;  %7329 = vmatmul.bf16.vlgmr.msra.gmra.mxu3 %v14859_v17  ;;  %v11977_v52 = vor.u32 %v13736_v46, %v11976_v61  ;;  %v11912_v59 = vld [vmem:[%s14684_s22 + $0x1000] sm:$0xf]  ;;  %v13216_v62 = vld [vmem:[%s14684_s22 + $0x84] sm:$0xf]  ;;  %v1357_v46 = vperm.slane %v14782_v20, 3 }
 0x239   : > { %v13720_v4 = vld [vmem:[%s14684_s22 + $0x103c] sm:$0xf0]  ;;  %v13328_v1 = vld [vmem:[%s14684_s22 + $0x404] sm:$0xf] }
 0x23a   : > { %7340 = vmatpush.bf16.msrb.mxu0 %v10953_v38  ;;  %7362 = vmatpush.bf16.msrb.mxu2 %v12233_v53  ;;  %v13248_v38 = vld [vmem:[%s14684_s22 + $0x184] sm:$0xf]  ;;  %v9997_v53 = vor.u32 %v13232_v55, %v9994_v56  ;;  %v11913_v63 = vor.u32 %v13720_v4, %v11912_v59  ;;  %v12872_v2 = vld [vmem:[%s14684_s22 + $0x1780] sm:$0xf] }
 0x23b   : > { %v13960_v6 = vld [vmem:[%s14684_s22 + $0x17bc] sm:$0xf0]  ;;  %v10378_v8 = vld [vmem:[%s14684_s22 + $0x440] sm:$0xf0] }
 0x23c   : > { %7399 = vmatpush.bf16.msra.mxu1 %v10829_v51  ;;  %v2441_v43 = vpop.f32.mrf.mxu2  ;;  %v10061_v51 = vor.u32 %v13248_v38, %v10058_v39  ;;  %v13568_v50 = vld [vmem:[%s14684_s22 + $0xb84] sm:$0xf]  ;;  %v12808_v15 = vld [vmem:[%s14684_s22 + $0x1700] sm:$0xf]  ;;  %v10381_v22 = vor.u32 %v13328_v1, %v10378_v8 }
 0x23d   : > { %v13944_v16 = vld [vmem:[%s14684_s22 + $0x173c] sm:$0xf0]  ;;  %v13552_v18 = vld [vmem:[%s14684_s22 + $0xb04] sm:$0xf] }
 0x23e   : > { %7341 = vmatpush.bf16.msrb.mxu0 %v10889_v47  ;;  %7363 = vmatpush.bf16.msrb.mxu2 %v12169_v9  ;;  %v2465_v45 = vpop.f32.mrf.mxu0  ;;  %v13344_v47 = vld [vmem:[%s14684_s22 + $0x484] sm:$0xf]  ;;  %v12809_v24 = vor.u32 %v13944_v16, %v12808_v15  ;;  %v12744_v31 = vld [vmem:[%s14684_s22 + $0x1680] sm:$0xf] }
 0x23f   : > { %v2466_v48 = vadd.f32 %v2465_v45, %v2453_v42  ;;  %v11338_v9 = vld [vmem:[%s14684_s22 + $0xbc0] sm:$0xf0]  ;;  %v13928_v32 = vld [vmem:[%s14684_s22 + $0x16bc] sm:$0xf0] }
 0x240   : > { %7400 = vmatpush.bf16.msra.mxu1 %v10765_v0  ;;  %v2480_v49 = vpop.f32.mrf.mxu1  ;;  %v10445_v0 = vor.u32 %v13344_v47, %v10442_v58  ;;  %v11341_v13 = vor.u32 %v13568_v50, %v11338_v9  ;;  %v13200_v19 = vld [vmem:[%s14684_s22 + $0x4] sm:$0xf]  ;;  %v12745_v35 = vor.u32 %v13928_v32, %v12744_v31  ;;  %v12680_v39 = vld [vmem:[%s14684_s22 + $0x1600] sm:$0xf] }
 0x241   : > { %v2479_v57 = vadd.f32 %v2478_v26, %v2466_v48  ;;  %v9866_v21 = vld [vmem:[%s14684_s22 + $0x40] sm:$0xf0]  ;;  %v12616_v55 = vld [vmem:[%s14684_s22 + $0x1580] sm:$0xf] }
 0x242   : > { %7386 = vmatpush.bf16.msra.mxu0 %v10317_v60  ;;  %7364 = vmatpush.bf16.msrb.mxu2 %v12105_v25  ;;  %v11274_v25 = vld [vmem:[%s14684_s22 + $0xb40] sm:$0xf0]  ;;  %v13896_v56 = vld [vmem:[%s14684_s22 + $0x15bc] sm:$0xf0] }
 0x243   : > { %vm2640_vm10 = vcmp.gt.f32.partialorder %v2479_v57, 0.0  ;;  %v2648_v60 = vmul.f32 %v14813_v3, %v2479_v57  ;;  %v13824_v26 = vld [vmem:[%s14684_s22 + $0x1384] sm:$0xf]  ;;  %v11277_v28 = vor.u32 %v13552_v18, %v11274_v25  ;;  %v13864_v15 = vld [vmem:[%s14684_s22 + $0x14bc] sm:$0xf0] }
 0x244   : > { %7401 = vmatpush.bf16.msra.mxu1 %v10701_v14  ;;  %v9933_v14 = vor.u32 %v13216_v62, %v9930_v11  ;;  %v13536_v33 = vld [vmem:[%s14684_s22 + $0xa84] sm:$0xf]  ;;  %v12552_v11 = vld [vmem:[%s14684_s22 + $0x1500] sm:$0xf] }
 0x245   : > { %v2654_v7 = vsel %vm2640_vm10, %v2479_v57, %v2648_v60  ;;  %v12298_v43 = vld [vmem:[%s14684_s22 + $0x1340] sm:$0xf0]  ;;  %v12424_v31 = vld [vmem:[%s14684_s22 + $0x1400] sm:$0xf] }
 0x246   : > { %7387 = vmatpush.bf16.msra.mxu0 %v10253_v5  ;;  %7365 = vmatpush.bf16.msrb.mxu2 %v12041_v37  ;;  %v12873_v5 = vor.u32 %v13960_v6, %v12872_v2  ;;  %v14893_v10 = vpack.c.bf16 %v2654_v7, %v2654_v7  ;;  %v2467_v12 = vpop.f32.mrf.mxu0  ;;  %v13808_v37 = vld [vmem:[%s14684_s22 + $0x1304] sm:$0xf]  ;;  %v13848_v32 = vld [vmem:[%s14684_s22 + $0x143c] sm:$0xf0] }
 0x247   : > { %v13520_v42 = vld [vmem:[%s14684_s22 + $0xa04] sm:$0xf]  ;;  %v12301_v44 = vor.u32 %v13808_v37, %v12298_v43 }
 0x248   : > { %7402 = vmatpush.bf16.msra.mxu1 %v10637_v30  ;;  %7373 = vmatpush.bf16.msrb.mxu3 %v12873_v5  ;;  %v9869_v30 = vor.u32 %v13200_v19, %v9866_v21  ;;  %v11146_v61 = vld [vmem:[%s14684_s22 + $0xa40] sm:$0xf0] }
 0x249   : > { %7342 = vmatmul.bf16.vlgmr.msrb.gmra.mxu0 %v14893_v10  ;;  %v13792_v48 = vld [vmem:[%s14684_s22 + $0x1284] sm:$0xf] }
 0x24a   : > { %7388 = vmatpush.bf16.msra.mxu0 %v10189_v27  ;;  %7366 = vmatpush.bf16.msrb.mxu2 %v11977_v52  ;;  %v12362_v27 = vld [vmem:[%s14684_s22 + $0x13c0] sm:$0xf0] }
 0x24b   : > { %v12365_v34 = vor.u32 %v13824_v26, %v12362_v27  ;;  %v12234_v49 = vld [vmem:[%s14684_s22 + $0x12c0] sm:$0xf0] }
 0x24c   : > { %7403 = vmatpush.bf16.msra.mxu1 %v10573_v41  ;;  %7374 = vmatpush.bf16.msrb.mxu3 %v12809_v24  ;;  %v13912_v41 = vld [vmem:[%s14684_s22 + $0x163c] sm:$0xf0]  ;;  %v13504_v57 = vld [vmem:[%s14684_s22 + $0x984] sm:$0xf]  ;;  %v12237_v59 = vor.u32 %v13792_v48, %v12234_v49 }
 0x24d   : > { %v12681_v45 = vor.u32 %v13912_v41, %v12680_v39  ;;  %v11082_v47 = vld [vmem:[%s14684_s22 + $0x9c0] sm:$0xf0] }
 0x24e   : > { %7389 = vmatpush.bf16.msra.mxu0 %v10125_v36  ;;  %7367 = vmatpush.bf16.msrb.mxu2 %v11913_v63  ;;  %v2504_v29 = vpop.f32.mrf.mxu3  ;;  %v11210_v36 = vld [vmem:[%s14684_s22 + $0xac0] sm:$0xf0]  ;;  %v11085_v62 = vor.u32 %v13504_v57, %v11082_v47  ;;  %v13880_v63 = vld [vmem:[%s14684_s22 + $0x153c] sm:$0xf0] }
 0x24f   : > { %v11213_v38 = vor.u32 %v13536_v33, %v11210_v36  ;;  %v13776_v60 = vld [vmem:[%s14684_s22 + $0x1204] sm:$0xf]  ;;  %v12553_v6 = vor.u32 %v13880_v63, %v12552_v11 }
 0x250   : > { %7404 = vmatpush.bf16.msra.mxu1 %v10509_v54  ;;  %7375 = vmatpush.bf16.msrb.mxu3 %v12745_v35  ;;  %v12617_v54 = vor.u32 %v13896_v56, %v12616_v55  ;;  %v11018_v7 = vld [vmem:[%s14684_s22 + $0x940] sm:$0xf0] }
 0x251   : > { %v13760_v5 = vld [vmem:[%s14684_s22 + $0x1184] sm:$0xf] }
 0x252   : > { %7390 = vmatpush.bf16.msra.mxu0 %v10061_v51  ;;  %7412 = vmatpush.bf16.msra.mxu2 %v11341_v13  ;;  %v11149_v51 = vor.u32 %v13520_v42, %v11146_v61  ;;  %v12106_v50 = vld [vmem:[%s14684_s22 + $0x11c0] sm:$0xf0] }
 0x253   : > { %v13472_v16 = vld [vmem:[%s14684_s22 + $0x884] sm:$0xf]  ;;  %v12109_v19 = vor.u32 %v13760_v5, %v12106_v50 }
 0x254   : > { %7405 = vmatpush.bf16.msra.mxu1 %v10445_v0  ;;  %v2491_v40 = vpop.f32.mrf.mxu2  ;;  %7376 = vmatpush.bf16.msrb.mxu3 %v12681_v45  ;;  %v13488_v0 = vld [vmem:[%s14684_s22 + $0x904] sm:$0xf] }
 0x255   : > { %v2492_v4 = vadd.f32 %v2491_v40, %v1357_v46  ;;  %v11021_v9 = vor.u32 %v13488_v0, %v11018_v7  ;;  %v13744_v25 = vld [vmem:[%s14684_s22 + $0x1104] sm:$0xf]  ;;  %v13561_v7 = vld [vmem:[%s14684_s22 + $0xb44] sm:$0xf0] }
 0x256   : > { %7391 = vmatpush.bf16.msra.mxu0 %v9997_v53  ;;  %7413 = vmatpush.bf16.msra.mxu2 %v11277_v28  ;;  %v2506_v52 = vpop.f32.mrf.mxu3  ;;  %v12170_v53 = vld [vmem:[%s14684_s22 + $0x1240] sm:$0xf0] }
 0x257   : > { %v12173_v2 = vor.u32 %v13776_v60, %v12170_v53  ;;  %v2505_v8 = vadd.f32 %v2504_v29, %v2492_v4  ;;  %v12042_v26 = vld [vmem:[%s14684_s22 + $0x1140] sm:$0xf0] }
 0x258   : > { %7406 = vmatpush.bf16.msra.mxu1 %v10381_v22  ;;  %v2530_v58 = vpop.f32.mrf.mxu1  ;;  %7377 = vmatpush.bf16.msrb.mxu3 %v12617_v54  ;;  %v10954_v22 = vld [vmem:[%s14684_s22 + $0x8c0] sm:$0xf0]  ;;  %v12045_v33 = vor.u32 %v13744_v25, %v12042_v26 }
 0x259   : > { %v10957_v27 = vor.u32 %v13472_v16, %v10954_v22  ;;  %v13952_v28 = vld [vmem:[%s14684_s22 + $0x1784] sm:$0xf]  ;;  %v11216_v16 = vld [vmem:[%s14684_s22 + $0xa88] sm:$0xf] }
 0x25a   : > { %7392 = vmatpush.bf16.msra.mxu0 %v9933_v14  ;;  %7414 = vmatpush.bf16.msra.mxu2 %v11213_v38  ;;  %v12488_v14 = vld [vmem:[%s14684_s22 + $0x1480] sm:$0xf]  ;;  %v12874_v29 = vld [vmem:[%s14684_s22 + $0x17c0] sm:$0xf0] }
 0x25b   : > { %v12489_v21 = vor.u32 %v13864_v15, %v12488_v14  ;;  %v13456_v35 = vld [vmem:[%s14684_s22 + $0x804] sm:$0xf]  ;;  %v12877_v43 = vor.u32 %v13952_v28, %v12874_v29 }
 0x25c   : > { %v2493_v1 = vpop.f32.mrf.mxu2  ;;  %7378 = vmatpush.bf16.msrb.mxu3 %v12553_v6  ;;  %v10890_v36 = vld [vmem:[%s14684_s22 + $0x840] sm:$0xf0]  ;;  %v11280_v6 = vld [vmem:[%s14684_s22 + $0xb08] sm:$0xf] }
 0x25d   : > { %v13728_v38 = vld [vmem:[%s14684_s22 + $0x1084] sm:$0xf]  ;;  %v10893_v42 = vor.u32 %v13456_v35, %v10890_v36 }
 0x25e   : > { %7393 = vmatpush.bf16.msra.mxu0 %v9869_v30  ;;  %7415 = vmatpush.bf16.msra.mxu2 %v11149_v51  ;;  %v2517_v12 = vpop.f32.mrf.mxu0  ;;  %v11978_v39 = vld [vmem:[%s14684_s22 + $0x10c0] sm:$0xf0] }
 0x25f   : > { %v2518_v13 = vadd.f32 %v2517_v12, %v2505_v8  ;;  %v13936_v41 = vld [vmem:[%s14684_s22 + $0x1704] sm:$0xf]  ;;  %v11981_v49 = vor.u32 %v13728_v38, %v11978_v39 }
 0x260   : > { %v2532_v18 = vpop.f32.mrf.mxu1  ;;  %7379 = vmatpush.bf16.msrb.mxu3 %v12489_v21  ;;  %v12810_v45 = vld [vmem:[%s14684_s22 + $0x1740] sm:$0xf0]  ;;  %v1358_v21 = vperm.slane %v14782_v20, 4 }
 0x261   : > { %7394 = vmatmul.bf16.vlgmr.msra.gmra.mxu0 %v14825_v23  ;;  %v2531_v24 = vadd.f32 %v2530_v58, %v2518_v13  ;;  %v13696_v61 = vld [vmem:[%s14684_s22 + $0xf84] sm:$0xf]  ;;  %v12813_v55 = vor.u32 %v13936_v41, %v12810_v45  ;;  %v11344_v58 = vld [vmem:[%s14684_s22 + $0xb88] sm:$0xf]  ;;  %v11281_v13 = vor.u32 %v13561_v7, %v11280_v6 }
 0x262   : > { %7438 = vmatpush.bf16.msrb.mxu0 %v12365_v34  ;;  %7416 = vmatpush.bf16.msra.mxu2 %v11085_v62  ;;  %v12425_v34 = vor.u32 %v13848_v32, %v12424_v31  ;;  %v11850_v46 = vld [vmem:[%s14684_s22 + $0xfc0] sm:$0xf0]  ;;  %v13545_v18 = vld [vmem:[%s14684_s22 + $0xac4] sm:$0xf0] }
 0x263   : > { %vm2641_vm11 = vcmp.gt.f32.partialorder %v2531_v24, 0.0  ;;  %v2649_v30 = vmul.f32 %v14813_v3, %v2531_v24  ;;  %v11853_v48 = vor.u32 %v13696_v61, %v11850_v46  ;;  %v13712_v51 = vld [vmem:[%s14684_s22 + $0x1004] sm:$0xf]  ;;  %v11152_v31 = vld [vmem:[%s14684_s22 + $0xa08] sm:$0xf] }
 0x264   : > { %7380 = vmatpush.bf16.msrb.mxu3 %v12425_v34  ;;  %v13680_v52 = vld [vmem:[%s14684_s22 + $0xf04] sm:$0xf]  ;;  %v13529_v32 = vld [vmem:[%s14684_s22 + $0xa44] sm:$0xf0] }
 0x265   : > { %v2655_v37 = vsel %vm2641_vm11, %v2531_v24, %v2649_v30  ;;  %v11914_v56 = vld [vmem:[%s14684_s22 + $0x1040] sm:$0xf0]  ;;  %v10960_v7 = vld [vmem:[%s14684_s22 + $0x888] sm:$0xf] }
 0x266   : > { %7439 = vmatpush.bf16.msrb.mxu0 %v12301_v44  ;;  %7417 = vmatpush.bf16.msra.mxu2 %v11021_v9  ;;  %v14946_v40 = vpack.c.bf16 %v2655_v37, %v2655_v37  ;;  %v2519_v44 = vpop.f32.mrf.mxu0  ;;  %v13920_v54 = vld [vmem:[%s14684_s22 + $0x1684] sm:$0xf]  ;;  %v11917_v53 = vor.u32 %v13712_v51, %v11914_v56  ;;  %v11153_v37 = vor.u32 %v13529_v32, %v11152_v31  ;;  %v11728_v31 = vld [vmem:[%s14684_s22 + $0xe88] sm:$0xf] }
 0x267   : > { %v11786_v57 = vld [vmem:[%s14684_s22 + $0xf40] sm:$0xf0]  ;;  %v13513_v44 = vld [vmem:[%s14684_s22 + $0x9c4] sm:$0xf0] }
 0x268   : > { %7355 = vmatmul.bf16.vlgmr.msrb.gmra.mxu1 %v14946_v40  ;;  %v12746_v47 = vld [vmem:[%s14684_s22 + $0x16c0] sm:$0xf0]  ;;  %7425 = vmatpush.bf16.msra.mxu3 %v11853_v48  ;;  %v11789_v4 = vor.u32 %v13680_v52, %v11786_v57  ;;  %v13673_v32 = vld [vmem:[%s14684_s22 + $0xec4] sm:$0xf0] }
 0x269   : > { %7451 = vmatpush.bf16.msrb.mxu1 %v12877_v43  ;;  %v13664_v62 = vld [vmem:[%s14684_s22 + $0xe84] sm:$0xf]  ;;  %v12749_v63 = vor.u32 %v13920_v54, %v12746_v47  ;;  %v11024_v47 = vld [vmem:[%s14684_s22 + $0x908] sm:$0xf] }
 0x26a   : > { %7440 = vmatpush.bf16.msrb.mxu0 %v12237_v59  ;;  %7418 = vmatpush.bf16.msra.mxu2 %v10957_v27  ;;  %v13577_v59 = vld [vmem:[%s14684_s22 + $0xbc4] sm:$0xf0]  ;;  %v11722_v11 = vld [vmem:[%s14684_s22 + $0xec0] sm:$0xf0]  ;;  %v11217_v27 = vor.u32 %v13545_v18, %v11216_v16 }
 0x26b   : > { %v11345_v0 = vor.u32 %v13577_v59, %v11344_v58  ;;  %v13904_v1 = vld [vmem:[%s14684_s22 + $0x1604] sm:$0xf]  ;;  %v11725_v8 = vor.u32 %v13664_v62, %v11722_v11  ;;  %v13497_v58 = vld [vmem:[%s14684_s22 + $0x944] sm:$0xf0] }
 0x26c   : > { %7426 = vmatpush.bf16.msra.mxu3 %v11789_v4  ;;  %v13648_v5 = vld [vmem:[%s14684_s22 + $0xe04] sm:$0xf]  ;;  %v11856_v62 = vld [vmem:[%s14684_s22 + $0xf88] sm:$0xf] }
 0x26d   : > { %7452 = vmatpush.bf16.msrb.mxu1 %v12813_v55  ;;  %v11658_v50 = vld [vmem:[%s14684_s22 + $0xe40] sm:$0xf0]  ;;  %v13705_v11 = vld [vmem:[%s14684_s22 + $0xfc4] sm:$0xf0] }
 0x26e   : > { %7441 = vmatpush.bf16.msrb.mxu0 %v12173_v2  ;;  %7419 = vmatpush.bf16.msra.mxu2 %v10893_v42  ;;  %v2556_v60 = vpop.f32.mrf.mxu3  ;;  %v12682_v2 = vld [vmem:[%s14684_s22 + $0x1640] sm:$0xf0]  ;;  %v11088_v42 = vld [vmem:[%s14684_s22 + $0x988] sm:$0xf] }
 0x26f   : > { %v12685_v12 = vor.u32 %v13904_v1, %v12682_v2  ;;  %v13888_v14 = vld [vmem:[%s14684_s22 + $0x1584] sm:$0xf]  ;;  %v11089_v51 = vor.u32 %v13513_v44, %v11088_v42  ;;  %v11025_v1 = vor.u32 %v13497_v58, %v11024_v47  ;;  %v11792_v16 = vld [vmem:[%s14684_s22 + $0xf08] sm:$0xf]  ;;  %v10194_v47 = vld [vmem:[%s14684_s22 + $0x2c8] sm:$0xf0] }
 0x270   : > { %v12618_v15 = vld [vmem:[%s14684_s22 + $0x15c0] sm:$0xf0]  ;;  %7427 = vmatpush.bf16.msra.mxu3 %v11725_v8  ;;  %v13481_v8 = vld [vmem:[%s14684_s22 + $0x8c4] sm:$0xf0] }
 0x271   : > { %7453 = vmatpush.bf16.msrb.mxu1 %v12749_v63  ;;  %v13632_v24 = vld [vmem:[%s14684_s22 + $0xd84] sm:$0xf]  ;;  %v12621_v26 = vor.u32 %v13888_v14, %v12618_v15  ;;  %v13305_v15 = vld [vmem:[%s14684_s22 + $0x344] sm:$0xf0] }
 0x272   : > { %7442 = vmatpush.bf16.msrb.mxu0 %v12109_v19  ;;  %v11661_v19 = vor.u32 %v13648_v5, %v11658_v50  ;;  %v11594_v25 = vld [vmem:[%s14684_s22 + $0xdc0] sm:$0xf0]  ;;  %v13689_v18 = vld [vmem:[%s14684_s22 + $0xf44] sm:$0xf0] }
 0x273   : > { %v13872_v28 = vld [vmem:[%s14684_s22 + $0x1504] sm:$0xf]  ;;  %v11664_v42 = vld [vmem:[%s14684_s22 + $0xe08] sm:$0xf] }
 0x274   : > { %v2543_v9 = vpop.f32.mrf.mxu2  ;;  %v12554_v30 = vld [vmem:[%s14684_s22 + $0x1540] sm:$0xf0]  ;;  %7428 = vmatpush.bf16.msra.mxu3 %v11661_v19  ;;  %v13657_v44 = vld [vmem:[%s14684_s22 + $0xe44] sm:$0xf0] }
 0x275   : > { %7454 = vmatpush.bf16.msrb.mxu1 %v12685_v12  ;;  %v2544_v34 = vadd.f32 %v2543_v9, %v1358_v21  ;;  %v12557_v36 = vor.u32 %v13872_v28, %v12554_v30  ;;  %v13856_v43 = vld [vmem:[%s14684_s22 + $0x1484] sm:$0xf]  ;;  %v11857_v9 = vor.u32 %v13705_v11, %v11856_v62  ;;  %v10256_v12 = vld [vmem:[%s14684_s22 + $0x308] sm:$0xf]  ;;  %v10961_v21 = vor.u32 %v13481_v8, %v10960_v7  ;;  %v13313_v28 = vld [vmem:[%s14684_s22 + $0x38c] sm:$0xf] }
 0x276   : > { %7443 = vmatpush.bf16.msrb.mxu0 %v12045_v33  ;;  %v2558_v22 = vpop.f32.mrf.mxu3  ;;  %v11597_v33 = vor.u32 %v13632_v24, %v11594_v25  ;;  %v13616_v38 = vld [vmem:[%s14684_s22 + $0xd04] sm:$0xf]  ;;  %v13465_v24 = vld [vmem:[%s14684_s22 + $0x844] sm:$0xf0]  ;;  %v10257_v25 = vor.u32 %v13305_v15, %v10256_v12 }
 0x277   : > { %v11530_v39 = vld [vmem:[%s14684_s22 + $0xd40] sm:$0xf0]  ;;  %v2557_v61 = vadd.f32 %v2556_v60, %v2544_v34  ;;  %v10320_v60 = vld [vmem:[%s14684_s22 + $0x388] sm:$0xf] }
 0x278   : > { %v2582_v29 = vpop.f32.mrf.mxu1  ;;  %7407 = vmatmul.bf16.vlgmr.msra.gmra.mxu1 %v14859_v17  ;;  %v12490_v41 = vld [vmem:[%s14684_s22 + $0x14c0] sm:$0xf0]  ;;  %7429 = vmatpush.bf16.msra.mxu3 %v11597_v33  ;;  %v11533_v45 = vor.u32 %v13616_v38, %v11530_v39  ;;  %v10896_v22 = vld [vmem:[%s14684_s22 + $0x808] sm:$0xf]  ;;  %v13297_v38 = vld [vmem:[%s14684_s22 + $0x30c] sm:$0xf] }
 0x279   : > { %7455 = vmatpush.bf16.msrb.mxu1 %v12621_v26  ;;  %v13840_v52 = vld [vmem:[%s14684_s22 + $0x1404] sm:$0xf]  ;;  %v11793_v26 = vor.u32 %v13689_v18, %v11792_v16  ;;  %v13289_v30 = vld [vmem:[%s14684_s22 + $0x2c4] sm:$0xf0]  ;;  %v10897_v34 = vor.u32 %v13465_v24, %v10896_v22  ;;  %v10258_v39 = vld [vmem:[%s14684_s22 + $0x348] sm:$0xf0] }
 0x27a   : > { %7444 = vmatpush.bf16.msrb.mxu0 %v11981_v49  ;;  %v12493_v49 = vor.u32 %v13856_v43, %v12490_v41  ;;  %v13600_v55 = vld [vmem:[%s14684_s22 + $0xc84] sm:$0xf]  ;;  %v10128_v43 = vld [vmem:[%s14684_s22 + $0x208] sm:$0xf]  ;;  %v13249_v16 = vld [vmem:[%s14684_s22 + $0x18c] sm:$0xf] }
 0x27b   : > { %v11466_v56 = vld [vmem:[%s14684_s22 + $0xcc0] sm:$0xf0]  ;;  %v13273_v41 = vld [vmem:[%s14684_s22 + $0x244] sm:$0xf0]  ;;  %v10066_v18 = vld [vmem:[%s14684_s22 + $0x1c8] sm:$0xf0] }
 0x27c   : > { %v2545_v35 = vpop.f32.mrf.mxu2  ;;  %v12426_v57 = vld [vmem:[%s14684_s22 + $0x1440] sm:$0xf0]  ;;  %7430 = vmatpush.bf16.msra.mxu3 %v11533_v45  ;;  %v11469_v59 = vor.u32 %v13600_v55, %v11466_v56  ;;  %v11600_v55 = vld [vmem:[%s14684_s22 + $0xd88] sm:$0xf] }
 0x27d   : > { %7456 = vmatpush.bf16.msrb.mxu1 %v12557_v36  ;;  %v13584_v2 = vld [vmem:[%s14684_s22 + $0xc04] sm:$0xf]  ;;  %v13641_v56 = vld [vmem:[%s14684_s22 + $0xdc4] sm:$0xf0] }
 0x27e   : > { %7445 = vmatpush.bf16.msrb.mxu0 %v11917_v53  ;;  %v2569_v46 = vpop.f32.mrf.mxu0  ;;  %v13321_v53 = vld [vmem:[%s14684_s22 + $0x3c4] sm:$0xf0]  ;;  %v11402_v6 = vld [vmem:[%s14684_s22 + $0xc40] sm:$0xf0] }
 0x27f   : > { %v2570_v48 = vadd.f32 %v2569_v46, %v2557_v61  ;;  %v10321_v50 = vor.u32 %v13321_v53, %v10320_v60  ;;  %v11405_v19 = vor.u32 %v13584_v2, %v11402_v6  ;;  %v10261_v61 = vor.u32 %v13297_v38, %v10258_v39  ;;  %v13241_v62 = vld [vmem:[%s14684_s22 + $0x144] sm:$0xf0]  ;;  %v13441_v39 = vld [vmem:[%s14684_s22 + $0x78c] sm:$0xf] }
 0x280   : > { %v2584_v54 = vpop.f32.mrf.mxu1  ;;  %7431 = vmatpush.bf16.msra.mxu3 %v11469_v59  ;;  %v1359_v46 = vperm.slane %v14782_v20, 5  ;;  %v11601_v59 = vor.u32 %v13641_v56, %v11600_v55  ;;  %v10000_v20 = vld [vmem:[%s14684_s22 + $0x108] sm:$0xf] }
 0x281   : > { %v2583_v4 = vadd.f32 %v2582_v29, %v2570_v48  ;;  %7457 = vmatpush.bf16.msrb.mxu1 %v12493_v49  ;;  %v10322_v29 = vld [vmem:[%s14684_s22 + $0x3c8] sm:$0xf0]  ;;  %v10129_v48 = vor.u32 %v13273_v41, %v10128_v43  ;;  %v11665_v49 = vor.u32 %v13657_v44, %v11664_v42  ;;  %v11536_v11 = vld [vmem:[%s14684_s22 + $0xd08] sm:$0xf]  ;;  %v10001_v6 = vor.u32 %v13241_v62, %v10000_v20 }
 0x282   : > { %7490 = vmatpush.bf16.msra.mxu0 %v11345_v0  ;;  %v12429_v0 = vor.u32 %v13840_v52, %v12426_v57  ;;  %v10325_v35 = vor.u32 %v13313_v28, %v10322_v29  ;;  %v13257_v52 = vld [vmem:[%s14684_s22 + $0x1c4] sm:$0xf0]  ;;  %v13281_v57 = vld [vmem:[%s14684_s22 + $0x28c] sm:$0xf] }
 0x283   : > { %vm2642_vm12 = vcmp.gt.f32.partialorder %v2583_v4, 0.0  ;;  %v2650_v63 = vmul.f32 %v14813_v3, %v2583_v4  ;;  %v10197_v53 = vor.u32 %v13281_v57, %v10194_v47  ;;  %v9936_v8 = vld [vmem:[%s14684_s22 + $0x88] sm:$0xf]  ;;  %v10834_v41 = vld [vmem:[%s14684_s22 + $0x7c8] sm:$0xf0] }
 0x284   : > { %7432 = vmatpush.bf16.msra.mxu3 %v11405_v19  ;;  %v11472_v12 = vld [vmem:[%s14684_s22 + $0xc88] sm:$0xf]  ;;  %v13425_v57 = vld [vmem:[%s14684_s22 + $0x70c] sm:$0xf] }
 0x285   : > { %v2656_v5 = vsel %vm2642_vm12, %v2583_v4, %v2650_v63  ;;  %7458 = vmatpush.bf16.msrb.mxu1 %v12429_v0  ;;  %v13625_v63 = vld [vmem:[%s14684_s22 + $0xd44] sm:$0xf0]  ;;  %v13265_v0 = vld [vmem:[%s14684_s22 + $0x20c] sm:$0xf] }
 0x286   : > { %7491 = vmatpush.bf16.msra.mxu0 %v11281_v13  ;;  %v15002_v13 = vpack.c.bf16 %v2656_v5, %v2656_v5  ;;  %v2571_v14 = vpop.f32.mrf.mxu0  ;;  %v11537_v7 = vor.u32 %v13625_v63, %v11536_v11  ;;  %v9872_v24 = vld [vmem:[%s14684_s22 + $0x8] sm:$0xf]  ;;  %v10770_v47 = vld [vmem:[%s14684_s22 + $0x748] sm:$0xf0] }
 0x287   : > { %v13609_v14 = vld [vmem:[%s14684_s22 + $0xcc4] sm:$0xf0]  ;;  %v10773_v11 = vor.u32 %v13425_v57, %v10770_v47 }
 0x288   : > { %7368 = vmatmul.bf16.vlgmr.msrb.gmra.mxu2 %v15002_v13  ;;  %7446 = vmatmul.bf16.vlgmr.msrb.gmra.mxu0 %v15002_v13  ;;  %v11473_v22 = vor.u32 %v13609_v14, %v11472_v12  ;;  %v13209_v28 = vld [vmem:[%s14684_s22 + $0x44] sm:$0xf0] }
 0x289   : > { %7464 = vmatpush.bf16.msrb.mxu2 %v10321_v50  ;;  %7503 = vmatpush.bf16.msra.mxu1 %v11857_v9  ;;  %v13225_v9 = vld [vmem:[%s14684_s22 + $0xc4] sm:$0xf0] }
 0x28a   : > { %7492 = vmatpush.bf16.msra.mxu0 %v11217_v27  ;;  %v10192_v27 = vld [vmem:[%s14684_s22 + $0x288] sm:$0xf] }
 0x28b   : > { %v10193_v36 = vor.u32 %v13289_v30, %v10192_v27  ;;  %v10069_v27 = vor.u32 %v13249_v16, %v10066_v18  ;;  %v11408_v29 = vld [vmem:[%s14684_s22 + $0xc08] sm:$0xf]  ;;  %v13809_v18 = vld [vmem:[%s14684_s22 + $0x130c] sm:$0xf] }
 0x28c   : > { %v13593_v30 = vld [vmem:[%s14684_s22 + $0xc44] sm:$0xf0] }
 0x28d   : > { %7465 = vmatpush.bf16.msrb.mxu2 %v10257_v25  ;;  %7504 = vmatpush.bf16.msra.mxu1 %v11793_v26  ;;  %v11409_v43 = vor.u32 %v13593_v30, %v11408_v29  ;;  %v13833_v38 = vld [vmem:[%s14684_s22 + $0x13c4] sm:$0xf0] }
 0x28e   : > { %7493 = vmatpush.bf16.msra.mxu0 %v11153_v37  ;;  %v2608_v33 = vpop.f32.mrf.mxu3  ;;  %v11729_v37 = vor.u32 %v13673_v32, %v11728_v31  ;;  %v13233_v31 = vld [vmem:[%s14684_s22 + $0x10c] sm:$0xf]  ;;  %v13433_v55 = vld [vmem:[%s14684_s22 + $0x744] sm:$0xf0] }
 0x28f   : > { %v10002_v32 = vld [vmem:[%s14684_s22 + $0x148] sm:$0xf0]  ;;  %v12304_v56 = vld [vmem:[%s14684_s22 + $0x1308] sm:$0xf] }
 0x290   : > { %v12240_v63 = vld [vmem:[%s14684_s22 + $0x1288] sm:$0xf] }
 0x291   : > { %7466 = vmatpush.bf16.msrb.mxu2 %v10193_v36  ;;  %7505 = vmatpush.bf16.msra.mxu1 %v11729_v37  ;;  %v12368_v36 = vld [vmem:[%s14684_s22 + $0x1388] sm:$0xf]  ;;  %v9873_v37 = vor.u32 %v13209_v28, %v9872_v24  ;;  %v10642_v24 = vld [vmem:[%s14684_s22 + $0x648] sm:$0xf0] }
 0x292   : > { %7494 = vmatpush.bf16.msra.mxu0 %v11089_v51  ;;  %v10064_v51 = vld [vmem:[%s14684_s22 + $0x188] sm:$0xf] }
 0x293   : > { %v10065_v58 = vor.u32 %v13257_v52, %v10064_v51  ;;  %v10837_v51 = vor.u32 %v13441_v39, %v10834_v41  ;;  %v10768_v52 = vld [vmem:[%s14684_s22 + $0x708] sm:$0xf] }
 0x294   : > { %v2595_v45 = vpop.f32.mrf.mxu2  ;;  %v10769_v20 = vor.u32 %v13433_v55, %v10768_v52  ;;  %v13401_v12 = vld [vmem:[%s14684_s22 + $0x644] sm:$0xf0]  ;;  %v15109_v52 = vld [vmem:[%s14690_s29] sm:$0xff] }
 0x295   : > { %7467 = vmatpush.bf16.msrb.mxu2 %v10129_v48  ;;  %7506 = vmatpush.bf16.msra.mxu1 %v11665_v49  ;;  %v2596_v4 = vadd.f32 %v2595_v45, %v1359_v46  ;;  %v13217_v46 = vld [vmem:[%s14684_s22 + $0x8c] sm:$0xf]  ;;  %v12369_v49 = vor.u32 %v13833_v38, %v12368_v36  ;;  %v12176_v16 = vld [vmem:[%s14684_s22 + $0x1208] sm:$0xf] }
 0x296   : > { %7495 = vmatpush.bf16.msra.mxu0 %v11025_v1  ;;  %v2610_v54 = vpop.f32.mrf.mxu3  ;;  %v10130_v1 = vld [vmem:[%s14684_s22 + $0x248] sm:$0xf0]  ;;  %v10576_v30 = vld [vmem:[%s14684_s22 + $0x588] sm:$0xf] }
 0x297   : > { %v2609_v5 = vadd.f32 %v2608_v33, %v2596_v4  ;;  %v10133_v50 = vor.u32 %v13265_v0, %v10130_v1  ;;  %v10832_v33 = vld [vmem:[%s14684_s22 + $0x788] sm:$0xf]  ;;  %v9938_v48 = vld [vmem:[%s14684_s22 + $0xc8] sm:$0xf0] }
 0x298   : > { %v2634_v60 = vpop.f32.mrf.mxu1  ;;  %7420 = vmatmul.bf16.vlgmr.msra.gmra.mxu2 %v14893_v10  ;;  %v13817_v54 = vld [vmem:[%s14684_s22 + $0x1344] sm:$0xf0]  ;;  %v9874_v4 = vld [vmem:[%s14684_s22 + $0x48] sm:$0xf0] }
 0x299   : > { %7468 = vmatpush.bf16.msrb.mxu2 %v10065_v58  ;;  %7507 = vmatpush.bf16.msra.mxu1 %v11601_v59  ;;  %v9941_v58 = vor.u32 %v13217_v46, %v9938_v48  ;;  %v13201_v59 = vld [vmem:[%s14684_s22 + $0xc] sm:$0xf]  ;;  %v12305_v62 = vor.u32 %v13817_v54, %v12304_v56  ;;  %v10512_v41 = vld [vmem:[%s14684_s22 + $0x508] sm:$0xf] }
 0x29a   : > { %7496 = vmatpush.bf16.msra.mxu0 %v10961_v21  ;;  %v9937_v21 = vor.u32 %v13225_v9, %v9936_v8  ;;  %v13825_v0 = vld [vmem:[%s14684_s22 + $0x138c] sm:$0xf]  ;;  %v9877_v8 = vor.u32 %v13201_v59, %v9874_v4  ;;  %v10640_v9 = vld [vmem:[%s14684_s22 + $0x608] sm:$0xf] }
 0x29b   : > { %v12370_v1 = vld [vmem:[%s14684_s22 + $0x13c8] sm:$0xf0]  ;;  %v10448_v47 = vld [vmem:[%s14684_s22 + $0x488] sm:$0xf] }
 0x29c   : > { %v2597_v2 = vpop.f32.mrf.mxu2  ;;  %v13793_v36 = vld [vmem:[%s14684_s22 + $0x128c] sm:$0xf]  ;;  %v11984_v59 = vld [vmem:[%s14684_s22 + $0x1088] sm:$0xf] }
 0x29d   : > { %7469 = vmatpush.bf16.msrb.mxu2 %v10001_v6  ;;  %7508 = vmatpush.bf16.msra.mxu1 %v11537_v7  ;;  %v13801_v2 = vld [vmem:[%s14684_s22 + $0x12c4] sm:$0xf0]  ;;  %v13409_v6 = vld [vmem:[%s14684_s22 + $0x68c] sm:$0xf] }
 0x29e   : > { %7497 = vmatpush.bf16.msra.mxu0 %v10897_v34  ;;  %v2621_v15 = vpop.f32.mrf.mxu0  ;;  %v10706_v7 = vld [vmem:[%s14684_s22 + $0x6c8] sm:$0xf0]  ;;  %v12241_v14 = vor.u32 %v13801_v2, %v12240_v63  ;;  %v13737_v4 = vld [vmem:[%s14684_s22 + $0x10c4] sm:$0xf0]  ;;  %v3436_v63 = vperm.slane %v15109_v52, 0 }
 0x29f   : > { %v2622_v19 = vadd.f32 %v2621_v15, %v2609_v5  ;;  %v10709_v15 = vor.u32 %v13409_v6, %v10706_v7  ;;  %v13361_v46 = vld [vmem:[%s14684_s22 + $0x50c] sm:$0xf]  ;;  %v13337_v2 = vld [vmem:[%s14684_s22 + $0x444] sm:$0xf0]  ;;  %v11985_v6 = vor.u32 %v13737_v4, %v11984_v59  ;;  %v11352_v59 = vld [vmem:[%s14684_s22 + $0xb90] sm:$0xf] }
 0x2a0   : > { %v2636_v26 = vpop.f32.mrf.mxu1  ;;  %v10514_v48 = vld [vmem:[%s14684_s22 + $0x548] sm:$0xf0] }
 0x2a1   : > { %7498 = vmatmul.bf16.vlgmr.msra.gmra.mxu0 %v14893_v10  ;;  %v2635_v25 = vadd.f32 %v2634_v60, %v2622_v19  ;;  %7470 = vmatpush.bf16.msrb.mxu2 %v9937_v21  ;;  %v10704_v60 = vld [vmem:[%s14684_s22 + $0x688] sm:$0xf]  ;;  %v12306_v19 = vld [vmem:[%s14684_s22 + $0x1348] sm:$0xf0]  ;;  %v10517_v54 = vor.u32 %v13361_v46, %v10514_v48 }
 0x2a2   : > { %7542 = vmatpush.bf16.msrb.mxu0 %v10325_v35  ;;  %v13449_v35 = vld [vmem:[%s14684_s22 + $0x7c4] sm:$0xf0]  ;;  %7509 = vmatpush.bf16.msra.mxu1 %v11473_v22  ;;  %v13393_v22 = vld [vmem:[%s14684_s22 + $0x60c] sm:$0xf]  ;;  %v12309_v26 = vor.u32 %v13809_v18, %v12306_v19 }
 0x2a3   : > { %vm2643_vm13 = vcmp.gt.f32.partialorder %v2635_v25, 0.0  ;;  %v2651_v34 = vmul.f32 %v14813_v3, %v2635_v25  ;;  %v10005_v3 = vor.u32 %v13233_v31, %v10002_v32  ;;  %v13785_v21 = vld [vmem:[%s14684_s22 + $0x1244] sm:$0xf0]  ;;  %v10645_v28 = vor.u32 %v13393_v22, %v10642_v24  ;;  %v13569_v19 = vld [vmem:[%s14684_s22 + $0xb8c] sm:$0xf] }
 0x2a4   : > { %v13385_v31 = vld [vmem:[%s14684_s22 + $0x5c4] sm:$0xf0]  ;;  %v11346_v24 = vld [vmem:[%s14684_s22 + $0xbc8] sm:$0xf0] }
 0x2a5   : > { %v2657_v42 = vsel %vm2643_vm13, %v2635_v25, %v2651_v34  ;;  %7471 = vmatpush.bf16.msrb.mxu2 %v9873_v37  ;;  %v10641_v25 = vor.u32 %v13401_v12, %v10640_v9  ;;  %v12112_v32 = vld [vmem:[%s14684_s22 + $0x1188] sm:$0xf]  ;;  %v13377_v34 = vld [vmem:[%s14684_s22 + $0x58c] sm:$0xf] }
 0x2a6   : > { %7543 = vmatpush.bf16.msrb.mxu0 %v10261_v61  ;;  %v15057_v44 = vpack.c.bf16 %v2657_v42, %v2657_v42  ;;  %v2623_v45 = vpop.f32.mrf.mxu0  ;;  %v10833_v61 = vor.u32 %v13449_v35, %v10832_v33  ;;  %7510 = vmatpush.bf16.msra.mxu1 %v11409_v43  ;;  %v13769_v33 = vld [vmem:[%s14684_s22 + $0x11c4] sm:$0xf0]  ;;  %v10578_v35 = vld [vmem:[%s14684_s22 + $0x5c8] sm:$0xf0]  ;;  %v10577_v43 = vor.u32 %v13385_v31, %v10576_v30 }
 0x2a7   : > { %v12242_v37 = vld [vmem:[%s14684_s22 + $0x12c8] sm:$0xf0]  ;;  %v12113_v38 = vor.u32 %v13769_v33, %v12112_v32  ;;  %v10581_v39 = vor.u32 %v13377_v34, %v10578_v35  ;;  %v13369_v42 = vld [vmem:[%s14684_s22 + $0x544] sm:$0xf0]  ;;  %v11349_v35 = vor.u32 %v13569_v19, %v11346_v24 }
 0x2a8   : > { %7381 = vmatmul.bf16.vlgmr.msrb.gmra.mxu3 %v15057_v44  ;;  %7459 = vmatmul.bf16.vlgmr.msrb.gmra.mxu1 %v15057_v44  ;;  %v12245_v45 = vor.u32 %v13793_v36, %v12242_v37  ;;  %v10513_v55 = vor.u32 %v13369_v42, %v10512_v41  ;;  %v10386_v12 = vld [vmem:[%s14684_s22 + $0x448] sm:$0xf0]  ;;  %v13961_v18 = vld [vmem:[%s14684_s22 + $0x17c4] sm:$0xf0] }
 0x2a9   : > { %7477 = vmatpush.bf16.msrb.mxu3 %v10833_v61  ;;  %7516 = vmatpush.bf16.msra.mxu2 %v12369_v49  ;;  %v13753_v61 = vld [vmem:[%s14684_s22 + $0x1144] sm:$0xf0]  ;;  %v13777_v49 = vld [vmem:[%s14684_s22 + $0x120c] sm:$0xf] }
 0x2aa   : > { %7544 = vmatpush.bf16.msrb.mxu0 %v10197_v53  ;;  %v13417_v53 = vld [vmem:[%s14684_s22 + $0x6c4] sm:$0xf0]  ;;  %7555 = vmatpush.bf16.msrb.mxu1 %v10837_v51  ;;  %v12178_v51 = vld [vmem:[%s14684_s22 + $0x1248] sm:$0xf0] }
 0x2ab   : > { %7472 = vmatmul.bf16.vlgmr.msrb.gmra.mxu2 %v14825_v23  ;;  %v10705_v5 = vor.u32 %v13417_v53, %v10704_v60  ;;  %v13345_v60 = vld [vmem:[%s14684_s22 + $0x48c] sm:$0xf]  ;;  %v12816_v37 = vld [vmem:[%s14684_s22 + $0x1708] sm:$0xf] }
 0x2ac   : > { %v10450_v53 = vld [vmem:[%s14684_s22 + $0x4c8] sm:$0xf0] }
 0x2ad   : > { %7478 = vmatpush.bf16.msrb.mxu3 %v10769_v20  ;;  %7517 = vmatpush.bf16.msra.mxu2 %v12305_v62  ;;  %v12181_v20 = vor.u32 %v13777_v49, %v12178_v51  ;;  %v13761_v62 = vld [vmem:[%s14684_s22 + $0x118c] sm:$0xf]  ;;  %v10453_v7 = vor.u32 %v13345_v60, %v10450_v53  ;;  %v12752_v51 = vld [vmem:[%s14684_s22 + $0x1688] sm:$0xf] }
 0x2ae   : > { %7545 = vmatpush.bf16.msrb.mxu0 %v10133_v50  ;;  %v12373_v50 = vor.u32 %v13825_v0, %v12370_v1  ;;  %7556 = vmatpush.bf16.msrb.mxu1 %v10773_v11  ;;  %v12114_v11 = vld [vmem:[%s14684_s22 + $0x11c8] sm:$0xf0]  ;;  %v10384_v1 = vld [vmem:[%s14684_s22 + $0x408] sm:$0xf] }
 0x2af   : > { %v12117_v9 = vor.u32 %v13761_v62, %v12114_v11  ;;  %v10385_v22 = vor.u32 %v13337_v2, %v10384_v1  ;;  %v13729_v33 = vld [vmem:[%s14684_s22 + $0x108c] sm:$0xf]  ;;  %v12688_v11 = vld [vmem:[%s14684_s22 + $0x1608] sm:$0xf] }
 0x2b0   : > { %v11986_v34 = vld [vmem:[%s14684_s22 + $0x10c8] sm:$0xf0] }
 0x2b1   : > { %7479 = vmatpush.bf16.msrb.mxu3 %v10705_v5  ;;  %7518 = vmatpush.bf16.msra.mxu2 %v12241_v14  ;;  %v13721_v5 = vld [vmem:[%s14684_s22 + $0x1044] sm:$0xf0]  ;;  %v13745_v14 = vld [vmem:[%s14684_s22 + $0x110c] sm:$0xf] }
 0x2b2   : > { %7546 = vmatpush.bf16.msrb.mxu0 %v10069_v27  ;;  %7557 = vmatpush.bf16.msrb.mxu1 %v10709_v15  ;;  %v12177_v27 = vor.u32 %v13785_v21, %v12176_v16  ;;  %v12050_v15 = vld [vmem:[%s14684_s22 + $0x1148] sm:$0xf0]  ;;  %v12880_v16 = vld [vmem:[%s14684_s22 + $0x1788] sm:$0xf] }
 0x2b3   : > { %v12053_v31 = vor.u32 %v13745_v14, %v12050_v15  ;;  %v12881_v32 = vor.u32 %v13961_v18, %v12880_v16  ;;  %v13937_v41 = vld [vmem:[%s14684_s22 + $0x170c] sm:$0xf]  ;;  %v12624_v16 = vld [vmem:[%s14684_s22 + $0x1588] sm:$0xf] }
 0x2b4   : > { %v15088_v29 = vpop.f32.mrf.mxu2  ;;  %v12818_v42 = vld [vmem:[%s14684_s22 + $0x1748] sm:$0xf0]  ;;  %v13897_v18 = vld [vmem:[%s14684_s22 + $0x15c4] sm:$0xf0] }
 0x2b5   : > { %7480 = vmatpush.bf16.msrb.mxu3 %v10641_v25  ;;  %7519 = vmatpush.bf16.msra.mxu2 %v12177_v27  ;;  %v7318_v21 = vadd.f32 %v15088_v29, %v3436_v63  ;;  %v13953_v25 = vld [vmem:[%s14684_s22 + $0x178c] sm:$0xf]  ;;  %v12821_v49 = vor.u32 %v13937_v41, %v12818_v42  ;;  %v13913_v63 = vld [vmem:[%s14684_s22 + $0x1644] sm:$0xf0] }
 0x2b6   : > { %7547 = vmatpush.bf16.msrb.mxu0 %v10005_v3  ;;  %7558 = vmatpush.bf16.msrb.mxu1 %v10645_v28  ;;  %v12048_v3 = vld [vmem:[%s14684_s22 + $0x1108] sm:$0xf]  ;;  %v11922_v46 = vld [vmem:[%s14684_s22 + $0x1048] sm:$0xf0] }
 0x2b7   : > { %v12049_v56 = vor.u32 %v13753_v61, %v12048_v3  ;;  %v11989_v3 = vor.u32 %v13729_v33, %v11986_v34  ;;  %v13713_v61 = vld [vmem:[%s14684_s22 + $0x100c] sm:$0xf] }
 0x2b8   : > { %7433 = vmatmul.bf16.vlgmr.msra.gmra.mxu3 %v14946_v40  ;;  %7511 = vmatmul.bf16.vlgmr.msra.gmra.mxu1 %v14946_v40  ;;  %v11925_v4 = vor.u32 %v13713_v61, %v11922_v46  ;;  %v13505_v19 = vld [vmem:[%s14684_s22 + $0x98c] sm:$0xf]  ;;  %v13865_v61 = vld [vmem:[%s14684_s22 + $0x14c4] sm:$0xf0] }
 0x2b9   : > { %7481 = vmatpush.bf16.msrb.mxu3 %v10577_v43  ;;  %7520 = vmatpush.bf16.msra.mxu2 %v12113_v38  ;;  %v13945_v43 = vld [vmem:[%s14684_s22 + $0x1744] sm:$0xf0]  ;;  %v13553_v38 = vld [vmem:[%s14684_s22 + $0xb0c] sm:$0xf] }
 0x2ba   : > { %7548 = vmatpush.bf16.msrb.mxu0 %v9941_v58  ;;  %7559 = vmatpush.bf16.msrb.mxu1 %v10581_v39  ;;  %v13353_v58 = vld [vmem:[%s14684_s22 + $0x4c4] sm:$0xf0]  ;;  %v11282_v39 = vld [vmem:[%s14684_s22 + $0xb48] sm:$0xf0] }
 0x2bb   : > { %v10449_v0 = vor.u32 %v13353_v58, %v10448_v47  ;;  %v7330_v30 = vpop.f32.mrf.mxu3  ;;  %v11285_v48 = vor.u32 %v13553_v38, %v11282_v39  ;;  %v12754_v47 = vld [vmem:[%s14684_s22 + $0x16c8] sm:$0xf0]  ;;  %v11160_v38 = vld [vmem:[%s14684_s22 + $0xa10] sm:$0xf] }
 0x2bc   : > { %v7319_v57 = vpop.f32.mrf.mxu2  ;;  %v7331_v29 = vadd.f32 %v7330_v30, %v7318_v21  ;;  %v13889_v24 = vld [vmem:[%s14684_s22 + $0x158c] sm:$0xf]  ;;  %v13530_v39 = vld [vmem:[%s14684_s22 + $0xa4c] sm:$0xf0] }
 0x2bd   : > { %7482 = vmatpush.bf16.msrb.mxu3 %v10513_v55  ;;  %7521 = vmatpush.bf16.msra.mxu2 %v12049_v56  ;;  %v13929_v55 = vld [vmem:[%s14684_s22 + $0x16c4] sm:$0xf0]  ;;  %v13537_v56 = vld [vmem:[%s14684_s22 + $0xa8c] sm:$0xf] }
 0x2be   : > { %7549 = vmatpush.bf16.msrb.mxu0 %v9877_v8  ;;  %7560 = vmatpush.bf16.msrb.mxu1 %v10517_v54  ;;  %v11920_v8 = vld [vmem:[%s14684_s22 + $0x1008] sm:$0xf]  ;;  %v11218_v54 = vld [vmem:[%s14684_s22 + $0xac8] sm:$0xf0]  ;;  %v12753_v60 = vor.u32 %v13929_v55, %v12752_v51 }
 0x2bf   : > { %v11921_v27 = vor.u32 %v13721_v5, %v11920_v8  ;;  %v13921_v57 = vld [vmem:[%s14684_s22 + $0x168c] sm:$0xf]  ;;  %v11221_v53 = vor.u32 %v13537_v56, %v11218_v54  ;;  %v11096_v56 = vld [vmem:[%s14684_s22 + $0x990] sm:$0xf] }
 0x2c0   : > { %v12757_v62 = vor.u32 %v13921_v57, %v12754_v47  ;;  %v12690_v8 = vld [vmem:[%s14684_s22 + $0x1648] sm:$0xf0]  ;;  %v13514_v54 = vld [vmem:[%s14684_s22 + $0x9cc] sm:$0xf0]  ;;  %v12432_v47 = vld [vmem:[%s14684_s22 + $0x1408] sm:$0xf] }
 0x2c1   : > { %7550 = vmatmul.bf16.vlgmr.msrb.gmra.mxu0 %v14825_v23  ;;  %7483 = vmatpush.bf16.msrb.mxu3 %v10449_v0  ;;  %v13521_v0 = vld [vmem:[%s14684_s22 + $0xa0c] sm:$0xf] }
 0x2c2   : > { %7594 = vmatpush.bf16.msra.mxu0 %v12373_v50  ;;  %v13329_v50 = vld [vmem:[%s14684_s22 + $0x40c] sm:$0xf]  ;;  %7522 = vmatpush.bf16.msra.mxu2 %v11985_v6 }
 0x2c3   : > { %7561 = vmatpush.bf16.msrb.mxu1 %v10453_v7  ;;  %v10389_v28 = vor.u32 %v13329_v50, %v10386_v12  ;;  %v7332_v58 = vpop.f32.mrf.mxu3  ;;  %v11154_v6 = vld [vmem:[%s14684_s22 + $0xa48] sm:$0xf0]  ;;  %v11288_v50 = vld [vmem:[%s14684_s22 + $0xb10] sm:$0xf]  ;;  %v12689_v12 = vor.u32 %v13913_v63, %v12688_v11 }
 0x2c4   : > { %v13905_v7 = vld [vmem:[%s14684_s22 + $0x160c] sm:$0xf]  ;;  %v11157_v14 = vor.u32 %v13521_v0, %v11154_v6  ;;  %v13849_v58 = vld [vmem:[%s14684_s22 + $0x1444] sm:$0xf0]  ;;  %v11032_v63 = vld [vmem:[%s14684_s22 + $0x910] sm:$0xf] }
 0x2c5   : > { %7484 = vmatpush.bf16.msrb.mxu3 %v10385_v22  ;;  %v12693_v15 = vor.u32 %v13905_v7, %v12690_v8  ;;  %v11090_v22 = vld [vmem:[%s14684_s22 + $0x9c8] sm:$0xf0]  ;;  %v13498_v0 = vld [vmem:[%s14684_s22 + $0x94c] sm:$0xf0]  ;;  %v12433_v8 = vor.u32 %v13849_v58, %v12432_v47 }
 0x2c6   : > { %7595 = vmatpush.bf16.msra.mxu0 %v12309_v26  ;;  %v12882_v26 = vld [vmem:[%s14684_s22 + $0x17c8] sm:$0xf0]  ;;  %7523 = vmatpush.bf16.msra.mxu2 %v11921_v27  ;;  %v7343_v2 = vpop.f32.mrf.mxu0  ;;  %v13546_v27 = vld [vmem:[%s14684_s22 + $0xacc] sm:$0xf0]  ;;  %v11093_v30 = vor.u32 %v13505_v19, %v11090_v22 }
 0x2c7   : > { %v12885_v36 = vor.u32 %v13953_v25, %v12882_v26  ;;  %7562 = vmatpush.bf16.msrb.mxu1 %v10389_v28  ;;  %v15163_v5 = vadd.f32 %v7343_v2, %v7331_v29  ;;  %v12626_v25 = vld [vmem:[%s14684_s22 + $0x15c8] sm:$0xf0]  ;;  %v11224_v26 = vld [vmem:[%s14684_s22 + $0xa90] sm:$0xf]  ;;  %v12625_v28 = vor.u32 %v13897_v18, %v12624_v16  ;;  %v12560_v29 = vld [vmem:[%s14684_s22 + $0x1508] sm:$0xf]  ;;  %v11033_v16 = vor.u32 %v13498_v0, %v11032_v63 }
 0x2c8   : > { %7485 = vmatmul.bf16.vlgmr.msrb.gmra.mxu3 %v14859_v17  ;;  %v13489_v33 = vld [vmem:[%s14684_s22 + $0x90c] sm:$0xf]  ;;  %v11225_v34 = vor.u32 %v13546_v27, %v11224_v26  ;;  %v10328_v7 = vld [vmem:[%s14684_s22 + $0x390] sm:$0xf] }
 0x2c9   : > { %7529 = vmatpush.bf16.msra.mxu3 %v12881_v32  ;;  %7524 = vmatmul.bf16.vlgmr.msra.gmra.mxu2 %v15002_v13  ;;  %v13881_v32 = vld [vmem:[%s14684_s22 + $0x1544] sm:$0xf0]  ;;  %v13473_v46 = vld [vmem:[%s14684_s22 + $0x88c] sm:$0xf]  ;;  %v10968_v19 = vld [vmem:[%s14684_s22 + $0x890] sm:$0xf] }
 0x2ca   : > { %7596 = vmatpush.bf16.msra.mxu0 %v12245_v45  ;;  %v12817_v45 = vor.u32 %v13945_v43, %v12816_v37  ;;  %7568 = vmatpush.bf16.msrb.mxu2 %v11349_v35  ;;  %v13873_v37 = vld [vmem:[%s14684_s22 + $0x150c] sm:$0xf]  ;;  %v12561_v41 = vor.u32 %v13881_v32, %v12560_v29  ;;  %v10264_v27 = vld [vmem:[%s14684_s22 + $0x310] sm:$0xf] }
 0x2cb   : > { %7607 = vmatpush.bf16.msra.mxu1 %v12885_v36  ;;  %v11026_v36 = vld [vmem:[%s14684_s22 + $0x948] sm:$0xf0]  ;;  %v10136_v47 = vld [vmem:[%s14684_s22 + $0x210] sm:$0xf] }
 0x2cc   : > { %7563 = vmatmul.bf16.vlgmr.msrb.gmra.mxu1 %v14859_v17  ;;  %v12562_v43 = vld [vmem:[%s14684_s22 + $0x1548] sm:$0xf0]  ;;  %v11029_v42 = vor.u32 %v13489_v33, %v11026_v36  ;;  %v10904_v33 = vld [vmem:[%s14684_s22 + $0x810] sm:$0xf] }
 0x2cd   : > { %7530 = vmatpush.bf16.msra.mxu3 %v12817_v45  ;;  %v12496_v45 = vld [vmem:[%s14684_s22 + $0x1488] sm:$0xf]  ;;  %v13857_v51 = vld [vmem:[%s14684_s22 + $0x148c] sm:$0xf] }
 0x2ce   : > { %7597 = vmatpush.bf16.msra.mxu0 %v12181_v20  ;;  %v13578_v20 = vld [vmem:[%s14684_s22 + $0xbcc] sm:$0xf0]  ;;  %7569 = vmatpush.bf16.msrb.mxu2 %v11285_v48  ;;  %v7345_v35 = vpop.f32.mrf.mxu0  ;;  %v11161_v48 = vor.u32 %v13530_v39, %v11160_v38  ;;  %v12498_v55 = vld [vmem:[%s14684_s22 + $0x14c8] sm:$0xf0]  ;;  %v12497_v57 = vor.u32 %v13865_v61, %v12496_v45  ;;  %v13314_v45 = vld [vmem:[%s14684_s22 + $0x394] sm:$0xf] }
 0x2cf   : > { %7608 = vmatpush.bf16.msra.mxu1 %v12821_v49  ;;  %v11353_v1 = vor.u32 %v13578_v20, %v11352_v59  ;;  %v10962_v49 = vld [vmem:[%s14684_s22 + $0x8c8] sm:$0xf0]  ;;  %v12501_v20 = vor.u32 %v13857_v51, %v12498_v55  ;;  %v10200_v39 = vld [vmem:[%s14684_s22 + $0x290] sm:$0xf]  ;;  %v10330_v61 = vld [vmem:[%s14684_s22 + $0x3d0] sm:$0xf0] }
 0x2d0   : > { %v10965_v59 = vor.u32 %v13473_v46, %v10962_v49  ;;  %v12434_v11 = vld [vmem:[%s14684_s22 + $0x1448] sm:$0xf0]  ;;  %v10333_v58 = vor.u32 %v13314_v45, %v10330_v61 }
 0x2d1   : > { %7531 = vmatpush.bf16.msra.mxu3 %v12753_v60  ;;  %v10898_v60 = vld [vmem:[%s14684_s22 + $0x848] sm:$0xf0] }
 0x2d2   : > { %7598 = vmatpush.bf16.msra.mxu0 %v12117_v9  ;;  %v13562_v9 = vld [vmem:[%s14684_s22 + $0xb4c] sm:$0xf0]  ;;  %7570 = vmatpush.bf16.msrb.mxu2 %v11221_v53  ;;  %v13841_v53 = vld [vmem:[%s14684_s22 + $0x140c] sm:$0xf] }
 0x2d3   : > { %7609 = vmatpush.bf16.msra.mxu1 %v12757_v62  ;;  %v11289_v21 = vor.u32 %v13562_v9, %v11288_v50  ;;  %v11097_v62 = vor.u32 %v13514_v54, %v11096_v56  ;;  %v13697_v2 = vld [vmem:[%s14684_s22 + $0xf8c] sm:$0xf]  ;;  %v13322_v50 = vld [vmem:[%s14684_s22 + $0x3cc] sm:$0xf0] }
 0x2d4   : > { %v11858_v6 = vld [vmem:[%s14684_s22 + $0xfc8] sm:$0xf0]  ;;  %v11864_v9 = vld [vmem:[%s14684_s22 + $0xf90] sm:$0xf]  ;;  %v10329_v22 = vor.u32 %v13322_v50, %v10328_v7 }
 0x2d5   : > { %7532 = vmatpush.bf16.msra.mxu3 %v12689_v12  ;;  %v13706_v12 = vld [vmem:[%s14684_s22 + $0xfcc] sm:$0xf0]  ;;  %v11861_v18 = vor.u32 %v13697_v2, %v11858_v6  ;;  %v11794_v26 = vld [vmem:[%s14684_s22 + $0xf48] sm:$0xf0] }
 0x2d6   : > { %7599 = vmatpush.bf16.msra.mxu0 %v12053_v31  ;;  %7571 = vmatpush.bf16.msrb.mxu2 %v11157_v14  ;;  %v12629_v31 = vor.u32 %v13889_v24, %v12626_v25  ;;  %v11865_v24 = vor.u32 %v13706_v12, %v11864_v9  ;;  %v13681_v25 = vld [vmem:[%s14684_s22 + $0xf0c] sm:$0xf]  ;;  %v10072_v2 = vld [vmem:[%s14684_s22 + $0x190] sm:$0xf]  ;;  %v13282_v9 = vld [vmem:[%s14684_s22 + $0x294] sm:$0xf] }
 0x2d7   : > { %7610 = vmatpush.bf16.msra.mxu1 %v12693_v15  ;;  %v12437_v15 = vor.u32 %v13841_v53, %v12434_v11  ;;  %v11797_v32 = vor.u32 %v13681_v25, %v11794_v26  ;;  %v11730_v38 = vld [vmem:[%s14684_s22 + $0xec8] sm:$0xf0]  ;;  %v10266_v53 = vld [vmem:[%s14684_s22 + $0x350] sm:$0xf0]  ;;  %v13258_v7 = vld [vmem:[%s14684_s22 + $0x1cc] sm:$0xf0] }
 0x2d8   : > { %v13649_v54 = vld [vmem:[%s14684_s22 + $0xe0c] sm:$0xf]  ;;  %v13642_v50 = vld [vmem:[%s14684_s22 + $0xdcc] sm:$0xf0]  ;;  %v10202_v12 = vld [vmem:[%s14684_s22 + $0x2d0] sm:$0xf0] }
 0x2d9   : > { %7533 = vmatpush.bf16.msra.mxu3 %v12625_v28  ;;  %v13306_v28 = vld [vmem:[%s14684_s22 + $0x34c] sm:$0xf0]  ;;  %v13633_v63 = vld [vmem:[%s14684_s22 + $0xd8c] sm:$0xf] }
 0x2da   : > { %7600 = vmatpush.bf16.msra.mxu0 %v11989_v3  ;;  %7572 = vmatpush.bf16.msrb.mxu2 %v11093_v30  ;;  %v12565_v3 = vor.u32 %v13873_v37, %v12562_v43  ;;  %v11800_v30 = vld [vmem:[%s14684_s22 + $0xf10] sm:$0xf]  ;;  %v10265_v35 = vor.u32 %v13306_v28, %v10264_v27  ;;  %v13665_v43 = vld [vmem:[%s14684_s22 + $0xe8c] sm:$0xf]  ;;  %v3437_v28 = vperm.slane %v15109_v52, 1 }
 0x2db   : > { %7611 = vmatpush.bf16.msra.mxu1 %v12629_v31  ;;  %v13690_v31 = vld [vmem:[%s14684_s22 + $0xf4c] sm:$0xf0]  ;;  %v11602_v0 = vld [vmem:[%s14684_s22 + $0xdc8] sm:$0xf0] }
 0x2dc   : > { %v11801_v36 = vor.u32 %v13690_v31, %v11800_v30  ;;  %v13242_v25 = vld [vmem:[%s14684_s22 + $0x14c] sm:$0xf0]  ;;  %v13266_v30 = vld [vmem:[%s14684_s22 + $0x214] sm:$0xf]  ;;  %v13585_v61 = vld [vmem:[%s14684_s22 + $0xc0c] sm:$0xf] }
 0x2dd   : > { %7534 = vmatpush.bf16.msra.mxu3 %v12561_v41  ;;  %v13290_v41 = vld [vmem:[%s14684_s22 + $0x2cc] sm:$0xf0]  ;;  %v10138_v31 = vld [vmem:[%s14684_s22 + $0x250] sm:$0xf0] }
 0x2de   : > { %7601 = vmatpush.bf16.msra.mxu0 %v11925_v4  ;;  %7573 = vmatpush.bf16.msrb.mxu2 %v11029_v42  ;;  %v13457_v4 = vld [vmem:[%s14684_s22 + $0x80c] sm:$0xf]  ;;  %v11736_v42 = vld [vmem:[%s14684_s22 + $0xe90] sm:$0xf]  ;;  %v10201_v51 = vor.u32 %v13290_v41, %v10200_v39  ;;  %v13250_v41 = vld [vmem:[%s14684_s22 + $0x194] sm:$0xf] }
 0x2df   : > { %7612 = vmatpush.bf16.msra.mxu1 %v12565_v3  ;;  %v10901_v14 = vor.u32 %v13457_v4, %v10898_v60  ;;  %v13674_v3 = vld [vmem:[%s14684_s22 + $0xecc] sm:$0xf0]  ;;  %v13298_v60 = vld [vmem:[%s14684_s22 + $0x314] sm:$0xf] }
 0x2e0   : > { %v11737_v55 = vor.u32 %v13674_v3, %v11736_v42  ;;  %v13658_v4 = vld [vmem:[%s14684_s22 + $0xe4c] sm:$0xf0]  ;;  %v10269_v6 = vor.u32 %v13298_v60, %v10266_v53  ;;  %v10074_v42 = vld [vmem:[%s14684_s22 + $0x1d0] sm:$0xf0] }
 0x2e1   : > { %7602 = vmatmul.bf16.vlgmr.msra.gmra.mxu0 %v15002_v13  ;;  %7535 = vmatpush.bf16.msra.mxu3 %v12497_v57  ;;  %v11666_v57 = vld [vmem:[%s14684_s22 + $0xe48] sm:$0xf0]  ;;  %v11544_v26 = vld [vmem:[%s14684_s22 + $0xd10] sm:$0xf] }
 0x2e2   : > { %7646 = vmatpush.bf16.msrb.mxu0 %v11353_v1  ;;  %v15200_v1 = vpop.f32.mrf.mxu0  ;;  %7574 = vmatpush.bf16.msrb.mxu2 %v10965_v59  ;;  %v13274_v59 = vld [vmem:[%s14684_s22 + $0x24c] sm:$0xf0] }
 0x2e3   : > { %7613 = vmatpush.bf16.msra.mxu1 %v12501_v20  ;;  %v11672_v20 = vld [vmem:[%s14684_s22 + $0xe10] sm:$0xf]  ;;  %v7396_v39 = vadd.f32 %v15200_v1, %v3437_v28 }
 0x2e4   : > { %v11673_v11 = vor.u32 %v13658_v4, %v11672_v20  ;;  %v13626_v27 = vld [vmem:[%s14684_s22 + $0xd4c] sm:$0xf0] }
 0x2e5   : > { %7536 = vmatpush.bf16.msra.mxu3 %v12433_v8  ;;  %v7356_v49 = vpop.f32.mrf.mxu1  ;;  %v11608_v8 = vld [vmem:[%s14684_s22 + $0xd90] sm:$0xf] }
 0x2e6   : > { %7647 = vmatpush.bf16.msrb.mxu0 %v11289_v21  ;;  %v13482_v21 = vld [vmem:[%s14684_s22 + $0x8cc] sm:$0xf0]  ;;  %7575 = vmatpush.bf16.msrb.mxu2 %v10901_v14  ;;  %v15230_v56 = vadd.f32 %v7356_v49, %v15163_v5  ;;  %v11669_v5 = vor.u32 %v13649_v54, %v11666_v57  ;;  %v11605_v14 = vor.u32 %v13633_v63, %v11602_v0 }
 0x2e7   : > { %7614 = vmatpush.bf16.msra.mxu1 %v12437_v15  ;;  %v10969_v29 = vor.u32 %v13482_v21, %v10968_v19  ;;  %v13617_v19 = vld [vmem:[%s14684_s22 + $0xd0c] sm:$0xf]  ;;  %v11480_v52 = vld [vmem:[%s14684_s22 + $0xc90] sm:$0xf]  ;;  %v10077_v57 = vor.u32 %v13250_v41, %v10074_v42 }
 0x2e8   : > { %7537 = vmatmul.bf16.vlgmr.msra.gmra.mxu3 %v15057_v44  ;;  %v11538_v21 = vld [vmem:[%s14684_s22 + $0xd48] sm:$0xf0]  ;;  %v11416_v54 = vld [vmem:[%s14684_s22 + $0xc10] sm:$0xf] }
 0x2e9   : > { %7581 = vmatpush.bf16.msrb.mxu3 %v11861_v18  ;;  %7576 = vmatmul.bf16.vlgmr.msrb.gmra.mxu2 %v14893_v10  ;;  %v11609_v18 = vor.u32 %v13642_v50, %v11608_v8  ;;  %v10840_v20 = vld [vmem:[%s14684_s22 + $0x790] sm:$0xf]  ;;  %v9946_v8 = vld [vmem:[%s14684_s22 + $0xd0] sm:$0xf0] }
 0x2ea   : > { %7648 = vmatpush.bf16.msrb.mxu0 %v11225_v34  ;;  %v13466_v34 = vld [vmem:[%s14684_s22 + $0x84c] sm:$0xf0]  ;;  %7620 = vmatpush.bf16.msra.mxu2 %v10329_v22  ;;  %v7397_v37 = vpop.f32.mrf.mxu0 }
 0x2eb   : > { %7659 = vmatpush.bf16.msrb.mxu1 %v11865_v24  ;;  %v10905_v46 = vor.u32 %v13466_v34, %v10904_v33  ;;  %v10008_v22 = vld [vmem:[%s14684_s22 + $0x110] sm:$0xf]  ;;  %v10205_v24 = vor.u32 %v13282_v9, %v10202_v12  ;;  %v11545_v33 = vor.u32 %v13626_v27, %v11544_v26  ;;  %v13601_v34 = vld [vmem:[%s14684_s22 + $0xc8c] sm:$0xf]  ;;  %v10141_v37 = vor.u32 %v13266_v30, %v10138_v31  ;;  %v9882_v26 = vld [vmem:[%s14684_s22 + $0x50] sm:$0xf0] }
 0x2ec   : > { %7615 = vmatmul.bf16.vlgmr.msra.gmra.mxu1 %v15057_v44  ;;  %v13450_v4 = vld [vmem:[%s14684_s22 + $0x7cc] sm:$0xf0] }
 0x2ed   : > { %7582 = vmatpush.bf16.msrb.mxu3 %v11797_v32  ;;  %v7358_v15 = vpop.f32.mrf.mxu1  ;;  %v10009_v32 = vor.u32 %v13242_v25, %v10008_v22  ;;  %v12376_v60 = vld [vmem:[%s14684_s22 + $0x1390] sm:$0xf]  ;;  %v13202_v25 = vld [vmem:[%s14684_s22 + $0x14] sm:$0xf] }
 0x2ee   : > { %7649 = vmatpush.bf16.msrb.mxu0 %v11161_v48  ;;  %v11733_v48 = vor.u32 %v13665_v43, %v11730_v38  ;;  %7621 = vmatpush.bf16.msra.mxu2 %v10265_v35  ;;  %v11474_v35 = vld [vmem:[%s14684_s22 + $0xcc8] sm:$0xf0]  ;;  %v13226_v43 = vld [vmem:[%s14684_s22 + $0xcc] sm:$0xf0] }
 0x2ef   : > { %7660 = vmatpush.bf16.msrb.mxu1 %v11801_v36  ;;  %v9944_v36 = vld [vmem:[%s14684_s22 + $0x90] sm:$0xf]  ;;  %v11477_v3 = vor.u32 %v13601_v34, %v11474_v35  ;;  %v10714_v34 = vld [vmem:[%s14684_s22 + $0x6d0] sm:$0xf0] }
 0x2f0   : > { %v13610_v38 = vld [vmem:[%s14684_s22 + $0xccc] sm:$0xf0]  ;;  %v13826_v35 = vld [vmem:[%s14684_s22 + $0x1394] sm:$0xf] }
 0x2f1   : > { %7583 = vmatpush.bf16.msrb.mxu3 %v11733_v48  ;;  %v9945_v48 = vor.u32 %v13226_v43, %v9944_v36  ;;  %v11481_v49 = vor.u32 %v13610_v38, %v11480_v52  ;;  %v10776_v12 = vld [vmem:[%s14684_s22 + $0x710] sm:$0xf]  ;;  %v12378_v36 = vld [vmem:[%s14684_s22 + $0x13d0] sm:$0xf0] }
 0x2f2   : > { %7650 = vmatpush.bf16.msrb.mxu0 %v11097_v62  ;;  %7622 = vmatpush.bf16.msra.mxu2 %v10201_v51  ;;  %v10137_v62 = vor.u32 %v13274_v59, %v10136_v47  ;;  %v9880_v51 = vld [vmem:[%s14684_s22 + $0x10] sm:$0xf]  ;;  %v10010_v59 = vld [vmem:[%s14684_s22 + $0x150] sm:$0xf0] }
 0x2f3   : > { %7661 = vmatpush.bf16.msrb.mxu1 %v11737_v55  ;;  %v13210_v55 = vld [vmem:[%s14684_s22 + $0x4c] sm:$0xf0] }
 0x2f4   : > { %v13594_v47 = vld [vmem:[%s14684_s22 + $0xc4c] sm:$0xf0]  ;;  %v9881_v63 = vor.u32 %v13210_v55, %v9880_v51  ;;  %v12314_v51 = vld [vmem:[%s14684_s22 + $0x1350] sm:$0xf0] }
 0x2f5   : > { %7584 = vmatpush.bf16.msrb.mxu3 %v11669_v5  ;;  %v7408_v45 = vpop.f32.mrf.mxu1  ;;  %v13834_v5 = vld [vmem:[%s14684_s22 + $0x13cc] sm:$0xf0]  ;;  %v11417_v0 = vor.u32 %v13594_v47, %v11416_v54 }
 0x2f6   : > { %7651 = vmatpush.bf16.msrb.mxu0 %v11033_v16  ;;  %7623 = vmatpush.bf16.msra.mxu2 %v10137_v62  ;;  %v10073_v16 = vor.u32 %v13258_v7, %v10072_v2  ;;  %v15269_v1 = vadd.f32 %v7408_v45, %v7396_v39  ;;  %v13442_v62 = vld [vmem:[%s14684_s22 + $0x794] sm:$0xf]  ;;  %v12377_v50 = vor.u32 %v13834_v5, %v12376_v60  ;;  %v12312_v15 = vld [vmem:[%s14684_s22 + $0x1310] sm:$0xf] }
 0x2f7   : > { %7662 = vmatpush.bf16.msrb.mxu1 %v11673_v11  ;;  %v10842_v11 = vld [vmem:[%s14684_s22 + $0x7d0] sm:$0xf0]  ;;  %v10712_v30 = vld [vmem:[%s14684_s22 + $0x690] sm:$0xf]  ;;  %v12381_v45 = vor.u32 %v13826_v35, %v12378_v36 }
 0x2f8   : > { %v13218_v7 = vld [vmem:[%s14684_s22 + $0x94] sm:$0xf]  ;;  %v10845_v9 = vor.u32 %v13442_v62, %v10842_v11  ;;  %v13418_v31 = vld [vmem:[%s14684_s22 + $0x6cc] sm:$0xf0] }
 0x2f9   : > { %7585 = vmatpush.bf16.msrb.mxu3 %v11605_v14  ;;  %v13434_v14 = vld [vmem:[%s14684_s22 + $0x74c] sm:$0xf0]  ;;  %v9949_v22 = vor.u32 %v13218_v7, %v9946_v8  ;;  %v10713_v43 = vor.u32 %v13418_v31, %v10712_v30  ;;  %v10586_v5 = vld [vmem:[%s14684_s22 + $0x5d0] sm:$0xf0] }
 0x2fa   : > { %7652 = vmatpush.bf16.msrb.mxu0 %v10969_v29  ;;  %v11541_v29 = vor.u32 %v13617_v19, %v11538_v21  ;;  %7624 = vmatpush.bf16.msra.mxu2 %v10073_v16  ;;  %v13426_v19 = vld [vmem:[%s14684_s22 + $0x714] sm:$0xf]  ;;  %v10648_v41 = vld [vmem:[%s14684_s22 + $0x610] sm:$0xf] }
 0x2fb   : > { %7663 = vmatpush.bf16.msrb.mxu1 %v11609_v18  ;;  %v13818_v18 = vld [vmem:[%s14684_s22 + $0x134c] sm:$0xf0]  ;;  %v10778_v21 = vld [vmem:[%s14684_s22 + $0x750] sm:$0xf0] }
 0x2fc   : > { %v12313_v27 = vor.u32 %v13818_v18, %v12312_v15  ;;  %v10781_v28 = vor.u32 %v13426_v19, %v10778_v21  ;;  %v13402_v42 = vld [vmem:[%s14684_s22 + $0x64c] sm:$0xf0]  ;;  %v13794_v11 = vld [vmem:[%s14684_s22 + $0x1294] sm:$0xf] }
 0x2fd   : > { %7586 = vmatpush.bf16.msrb.mxu3 %v11541_v29  ;;  %v7410_v16 = vpop.f32.mrf.mxu1  ;;  %v12248_v29 = vld [vmem:[%s14684_s22 + $0x1290] sm:$0xf]  ;;  %v10649_v55 = vor.u32 %v13402_v42, %v10648_v41  ;;  %v10522_v15 = vld [vmem:[%s14684_s22 + $0x550] sm:$0xf0] }
 0x2fe   : > { %7653 = vmatpush.bf16.msrb.mxu0 %v10905_v46  ;;  %v11410_v46 = vld [vmem:[%s14684_s22 + $0xc48] sm:$0xf0]  ;;  %7625 = vmatpush.bf16.msra.mxu2 %v10009_v32  ;;  %v13802_v32 = vld [vmem:[%s14684_s22 + $0x12cc] sm:$0xf0]  ;;  %v13778_v16 = vld [vmem:[%s14684_s22 + $0x1214] sm:$0xf] }
 0x2ff   : > { %7664 = vmatpush.bf16.msrb.mxu1 %v11545_v33  ;;  %v11413_v53 = vor.u32 %v13585_v61, %v11410_v46  ;;  %v13410_v33 = vld [vmem:[%s14684_s22 + $0x694] sm:$0xf]  ;;  %v12249_v38 = vor.u32 %v13802_v32, %v12248_v29  ;;  %v13786_v61 = vld [vmem:[%s14684_s22 + $0x124c] sm:$0xf0] }
 0x300   : > { %v10717_v39 = vor.u32 %v13410_v33, %v10714_v34  ;;  %v13394_v46 = vld [vmem:[%s14684_s22 + $0x614] sm:$0xf]  ;;  %v10584_v47 = vld [vmem:[%s14684_s22 + $0x590] sm:$0xf] }
 0x301   : > { %7654 = vmatmul.bf16.vlgmr.msrb.gmra.mxu0 %v14893_v10  ;;  %7587 = vmatpush.bf16.msrb.mxu3 %v11477_v3  ;;  %v12184_v3 = vld [vmem:[%s14684_s22 + $0x1210] sm:$0xf]  ;;  %v12186_v18 = vld [vmem:[%s14684_s22 + $0x1250] sm:$0xf0] }
 0x302   : > { %7698 = vmatpush.bf16.msra.mxu0 %v10333_v58  ;;  %v13234_v58 = vld [vmem:[%s14684_s22 + $0x114] sm:$0xf]  ;;  %7626 = vmatpush.bf16.msra.mxu2 %v9945_v48  ;;  %v12185_v54 = vor.u32 %v13786_v61, %v12184_v3  ;;  %v13770_v60 = vld [vmem:[%s14684_s22 + $0x11cc] sm:$0xf0] }
 0x303   : > { %7665 = vmatpush.bf16.msrb.mxu1 %v11481_v49  ;;  %v10013_v2 = vor.u32 %v13234_v58, %v10010_v59  ;;  %v10650_v48 = vld [vmem:[%s14684_s22 + $0x650] sm:$0xf0]  ;;  %v13386_v58 = vld [vmem:[%s14684_s22 + $0x5cc] sm:$0xf0] }
 0x304   : > { %v13810_v49 = vld [vmem:[%s14684_s22 + $0x1314] sm:$0xf]  ;;  %v12120_v59 = vld [vmem:[%s14684_s22 + $0x1190] sm:$0xf] }
 0x305   : > { %7588 = vmatpush.bf16.msrb.mxu3 %v11413_v53  ;;  %v15304_v52 = vpop.f32.mrf.mxu0  ;;  %v13378_v53 = vld [vmem:[%s14684_s22 + $0x594] sm:$0xf]  ;;  %v10520_v8 = vld [vmem:[%s14684_s22 + $0x510] sm:$0xf] }
 0x306   : > { %7699 = vmatpush.bf16.msra.mxu0 %v10269_v6  ;;  %v10841_v6 = vor.u32 %v13450_v4, %v10840_v20  ;;  %7627 = vmatpush.bf16.msra.mxu2 %v9881_v63  ;;  %v12317_v20 = vor.u32 %v13810_v49, %v12314_v51  ;;  %v12250_v63 = vld [vmem:[%s14684_s22 + $0x12d0] sm:$0xf0]  ;;  %v10589_v7 = vor.u32 %v13378_v53, %v10586_v5  ;;  %v13738_v30 = vld [vmem:[%s14684_s22 + $0x10cc] sm:$0xf0] }
 0x307   : > { %7666 = vmatpush.bf16.msrb.mxu1 %v11417_v0  ;;  %v10585_v0 = vor.u32 %v13386_v58, %v10584_v47  ;;  %v13346_v31 = vld [vmem:[%s14684_s22 + $0x494] sm:$0xf]  ;;  %v10392_v36 = vld [vmem:[%s14684_s22 + $0x410] sm:$0xf] }
 0x308   : > { %7589 = vmatmul.bf16.vlgmr.msrb.gmra.mxu3 %v14946_v40  ;;  %v10458_v29 = vld [vmem:[%s14684_s22 + $0x4d0] sm:$0xf0]  ;;  %v13722_v41 = vld [vmem:[%s14684_s22 + $0x104c] sm:$0xf0] }
 0x309   : > { %7633 = vmatpush.bf16.msra.mxu3 %v10841_v6  ;;  %7628 = vmatmul.bf16.vlgmr.msra.gmra.mxu2 %v14825_v23  ;;  %v12121_v6 = vor.u32 %v13770_v60, %v12120_v59  ;;  %v13762_v32 = vld [vmem:[%s14684_s22 + $0x1194] sm:$0xf]  ;;  %v13962_v49 = vld [vmem:[%s14684_s22 + $0x17cc] sm:$0xf0] }
 0x30a   : > { %7700 = vmatpush.bf16.msra.mxu0 %v10205_v24  ;;  %v10777_v24 = vor.u32 %v13434_v14, %v10776_v12  ;;  %7672 = vmatpush.bf16.msrb.mxu2 %v12377_v50  ;;  %v13370_v50 = vld [vmem:[%s14684_s22 + $0x54c] sm:$0xf0]  ;;  %v13362_v14 = vld [vmem:[%s14684_s22 + $0x514] sm:$0xf] }
 0x30b   : > { %7711 = vmatpush.bf16.msra.mxu1 %v10845_v9  ;;  %v7369_v4 = vpop.f32.mrf.mxu2  ;;  %v12056_v9 = vld [vmem:[%s14684_s22 + $0x1110] sm:$0xf]  ;;  %v10521_v19 = vor.u32 %v13370_v50, %v10520_v8  ;;  %v12122_v33 = vld [vmem:[%s14684_s22 + $0x11d0] sm:$0xf0] }
 0x30c   : > { %7667 = vmatmul.bf16.vlgmr.msrb.gmra.mxu1 %v14946_v40  ;;  %v15322_v62 = vadd.f32 %v7369_v4, %v15230_v56  ;;  %v12253_v56 = vor.u32 %v13794_v11, %v12250_v63  ;;  %v13754_v12 = vld [vmem:[%s14684_s22 + $0x114c] sm:$0xf0]  ;;  %v13330_v42 = vld [vmem:[%s14684_s22 + $0x414] sm:$0xf]  ;;  %v12125_v3 = vor.u32 %v13762_v32, %v12122_v33 }
 0x30d   : > { %7634 = vmatpush.bf16.msra.mxu3 %v10777_v24  ;;  %v12057_v21 = vor.u32 %v13754_v12, %v12056_v9  ;;  %v10456_v24 = vld [vmem:[%s14684_s22 + $0x490] sm:$0xf]  ;;  %v13746_v61 = vld [vmem:[%s14684_s22 + $0x1114] sm:$0xf] }
 0x30e   : > { %7701 = vmatpush.bf16.msra.mxu0 %v10141_v37  ;;  %v9885_v37 = vor.u32 %v13202_v25, %v9882_v26  ;;  %7673 = vmatpush.bf16.msrb.mxu2 %v12313_v27  ;;  %v13354_v25 = vld [vmem:[%s14684_s22 + $0x4cc] sm:$0xf0]  ;;  %v12189_v27 = vor.u32 %v13778_v16, %v12186_v18  ;;  %v13570_v51 = vld [vmem:[%s14684_s22 + $0xb94] sm:$0xf] }
 0x30f   : > { %7712 = vmatpush.bf16.msra.mxu1 %v10781_v28  ;;  %v11992_v26 = vld [vmem:[%s14684_s22 + $0x1090] sm:$0xf]  ;;  %v10457_v34 = vor.u32 %v13354_v25, %v10456_v24  ;;  %v12890_v47 = vld [vmem:[%s14684_s22 + $0x17d0] sm:$0xf0] }
 0x310   : > { %v13730_v53 = vld [vmem:[%s14684_s22 + $0x1094] sm:$0xf] }
 0x311   : > { %7635 = vmatpush.bf16.msra.mxu3 %v10713_v43  ;;  %v11993_v43 = vor.u32 %v13738_v30, %v11992_v26  ;;  %v11994_v5 = vld [vmem:[%s14684_s22 + $0x10d0] sm:$0xf0] }
 0x312   : > { %7702 = vmatpush.bf16.msra.mxu0 %v10077_v57  ;;  %7674 = vmatpush.bf16.msrb.mxu2 %v12249_v38  ;;  %v10653_v57 = vor.u32 %v13394_v46, %v10650_v48  ;;  %v10461_v38 = vor.u32 %v13346_v31, %v10458_v29  ;;  %v12058_v46 = vld [vmem:[%s14684_s22 + $0x1150] sm:$0xf0]  ;;  %v12888_v48 = vld [vmem:[%s14684_s22 + $0x1790] sm:$0xf] }
 0x313   : > { %7713 = vmatpush.bf16.msra.mxu1 %v10717_v39  ;;  %v7371_v28 = vpop.f32.mrf.mxu2  ;;  %v11928_v39 = vld [vmem:[%s14684_s22 + $0x1010] sm:$0xf]  ;;  %v12889_v4 = vor.u32 %v13962_v49, %v12888_v48  ;;  %v11290_v50 = vld [vmem:[%s14684_s22 + $0xb50] sm:$0xf0] }
 0x314   : > { %v11929_v58 = vor.u32 %v13722_v41, %v11928_v39  ;;  %v13938_v9 = vld [vmem:[%s14684_s22 + $0x1714] sm:$0xf]  ;;  %v13579_v28 = vld [vmem:[%s14684_s22 + $0xbd4] sm:$0xf0]  ;;  %v12632_v49 = vld [vmem:[%s14684_s22 + $0x1590] sm:$0xf] }
 0x315   : > { %7636 = vmatpush.bf16.msra.mxu3 %v10649_v55  ;;  %v11226_v24 = vld [vmem:[%s14684_s22 + $0xad0] sm:$0xf0] }
 0x316   : > { %7703 = vmatpush.bf16.msra.mxu0 %v10013_v2  ;;  %v7449_v2 = vpop.f32.mrf.mxu0  ;;  %7675 = vmatpush.bf16.msrb.mxu2 %v12185_v54  ;;  %v11354_v54 = vld [vmem:[%s14684_s22 + $0xbd0] sm:$0xf0] }
 0x317   : > { %7714 = vmatpush.bf16.msra.mxu1 %v10653_v57  ;;  %v13954_v57 = vld [vmem:[%s14684_s22 + $0x1794] sm:$0xf]  ;;  %v11357_v11 = vor.u32 %v13570_v51, %v11354_v54  ;;  %v12824_v2 = vld [vmem:[%s14684_s22 + $0x1710] sm:$0xf] }
 0x318   : > { %v12893_v63 = vor.u32 %v13954_v57, %v12890_v47  ;;  %v13922_v25 = vld [vmem:[%s14684_s22 + $0x1694] sm:$0xf]  ;;  %v13898_v51 = vld [vmem:[%s14684_s22 + $0x15cc] sm:$0xf0] }
 0x319   : > { %7637 = vmatpush.bf16.msra.mxu3 %v10585_v0  ;;  %v12762_v26 = vld [vmem:[%s14684_s22 + $0x16d0] sm:$0xf0] }
 0x31a   : > { %7704 = vmatpush.bf16.msra.mxu0 %v9949_v22  ;;  %7676 = vmatpush.bf16.msrb.mxu2 %v12121_v6  ;;  %v10525_v22 = vor.u32 %v13362_v14, %v10522_v15  ;;  %v13946_v6 = vld [vmem:[%s14684_s22 + $0x174c] sm:$0xf0]  ;;  %v13714_v14 = vld [vmem:[%s14684_s22 + $0x1014] sm:$0xf]  ;;  %v12765_v33 = vor.u32 %v13922_v25, %v12762_v26 }
 0x31b   : > { %7715 = vmatpush.bf16.msra.mxu1 %v10589_v7  ;;  %v7421_v60 = vpop.f32.mrf.mxu2  ;;  %v13554_v7 = vld [vmem:[%s14684_s22 + $0xb14] sm:$0xf]  ;;  %v12825_v12 = vor.u32 %v13946_v6, %v12824_v2  ;;  %v12568_v6 = vld [vmem:[%s14684_s22 + $0x1510] sm:$0xf] }
 0x31c   : > { %v15361_v0 = vadd.f32 %v7421_v60, %v15269_v1  ;;  %v11997_v1 = vor.u32 %v13730_v53, %v11994_v5  ;;  %v11930_v15 = vld [vmem:[%s14684_s22 + $0x1050] sm:$0xf0]  ;;  %v11293_v16 = vor.u32 %v13554_v7, %v11290_v50  ;;  %v13547_v60 = vld [vmem:[%s14684_s22 + $0xad4] sm:$0xf0]  ;;  %v12633_v53 = vor.u32 %v13898_v51, %v12632_v49  ;;  %v13882_v7 = vld [vmem:[%s14684_s22 + $0x154c] sm:$0xf0] }
 0x31d   : > { %7638 = vmatpush.bf16.msra.mxu3 %v10521_v19  ;;  %v12760_v19 = vld [vmem:[%s14684_s22 + $0x1690] sm:$0xf]  ;;  %v11933_v30 = vor.u32 %v13714_v14, %v11930_v15  ;;  %v11162_v39 = vld [vmem:[%s14684_s22 + $0xa50] sm:$0xf0]  ;;  %v13531_v14 = vld [vmem:[%s14684_s22 + $0xa54] sm:$0xf0]  ;;  %v12569_v15 = vor.u32 %v13882_v7, %v12568_v6 }
 0x31e   : > { %7705 = vmatpush.bf16.msra.mxu0 %v9885_v37  ;;  %v15342_v35 = vpop.f32.mrf.mxu0  ;;  %v13338_v37 = vld [vmem:[%s14684_s22 + $0x44c] sm:$0xf0]  ;;  %7677 = vmatpush.bf16.msrb.mxu2 %v12057_v21  ;;  %v13906_v41 = vld [vmem:[%s14684_s22 + $0x1614] sm:$0xf] }
 0x31f   : > { %7716 = vmatpush.bf16.msra.mxu1 %v10525_v22  ;;  %v10393_v55 = vor.u32 %v13338_v37, %v10392_v36  ;;  %v13930_v21 = vld [vmem:[%s14684_s22 + $0x16cc] sm:$0xf0]  ;;  %v13538_v22 = vld [vmem:[%s14684_s22 + $0xa94] sm:$0xf] }
 0x320   : > { %v12761_v31 = vor.u32 %v13930_v21, %v12760_v19  ;;  %v11229_v32 = vor.u32 %v13538_v22, %v11226_v24  ;;  %v12696_v36 = vld [vmem:[%s14684_s22 + $0x1610] sm:$0xf]  ;;  %v11098_v47 = vld [vmem:[%s14684_s22 + $0x9d0] sm:$0xf0] }
 0x321   : > { %7706 = vmatmul.bf16.vlgmr.msra.gmra.mxu0 %v14825_v23  ;;  %7639 = vmatpush.bf16.msra.mxu3 %v10457_v34  ;;  %v13914_v37 = vld [vmem:[%s14684_s22 + $0x164c] sm:$0xf0]  ;;  %v11034_v50 = vld [vmem:[%s14684_s22 + $0x950] sm:$0xf0] }
 0x322   : > { %7750 = vmatpush.bf16.msrb.mxu0 %v12381_v45  ;;  %v10394_v45 = vld [vmem:[%s14684_s22 + $0x450] sm:$0xf0]  ;;  %7678 = vmatpush.bf16.msrb.mxu2 %v11993_v43  ;;  %v12504_v19 = vld [vmem:[%s14684_s22 + $0x1490] sm:$0xf] }
 0x323   : > { %7717 = vmatpush.bf16.msra.mxu1 %v10461_v38  ;;  %v10397_v59 = vor.u32 %v13330_v42, %v10394_v45  ;;  %v7423_v29 = vpop.f32.mrf.mxu2  ;;  %v13522_v43 = vld [vmem:[%s14684_s22 + $0xa14] sm:$0xf]  ;;  %v13563_v45 = vld [vmem:[%s14684_s22 + $0xb54] sm:$0xf0]  ;;  %v13866_v21 = vld [vmem:[%s14684_s22 + $0x14cc] sm:$0xf0] }
 0x324   : > { %v12698_v42 = vld [vmem:[%s14684_s22 + $0x1650] sm:$0xf0]  ;;  %v12505_v29 = vor.u32 %v13866_v21, %v12504_v19  ;;  %v10912_v19 = vld [vmem:[%s14684_s22 + $0x818] sm:$0xf] }
 0x325   : > { %7640 = vmatpush.bf16.msra.mxu3 %v10393_v55  ;;  %v15382_v34 = vpop.f32.mrf.mxu1  ;;  %v12701_v48 = vor.u32 %v13906_v41, %v12698_v42  ;;  %v13506_v55 = vld [vmem:[%s14684_s22 + $0x994] sm:$0xf]  ;;  %v13467_v21 = vld [vmem:[%s14684_s22 + $0x854] sm:$0xf0] }
 0x326   : > { %7751 = vmatpush.bf16.msrb.mxu0 %v12317_v20  ;;  %v12061_v20 = vor.u32 %v13746_v61, %v12058_v46  ;;  %v7501_v8 = vpop.f32.mrf.mxu0  ;;  %7679 = vmatpush.bf16.msrb.mxu2 %v11929_v58  ;;  %v12697_v61 = vor.u32 %v13914_v37, %v12696_v36  ;;  %v11165_v46 = vor.u32 %v13522_v43, %v11162_v39  ;;  %v13890_v58 = vld [vmem:[%s14684_s22 + $0x1594] sm:$0xf] }
 0x327   : > { %7718 = vmatpush.bf16.msra.mxu1 %v10397_v59  ;;  %v12634_v59 = vld [vmem:[%s14684_s22 + $0x15d0] sm:$0xf0]  ;;  %v11101_v5 = vor.u32 %v13506_v55, %v11098_v47  ;;  %v10336_v55 = vld [vmem:[%s14684_s22 + $0x398] sm:$0xf] }
 0x328   : > { %7641 = vmatmul.bf16.vlgmr.msra.gmra.mxu3 %v14859_v17  ;;  %v13474_v22 = vld [vmem:[%s14684_s22 + $0x894] sm:$0xf]  ;;  %v11872_v47 = vld [vmem:[%s14684_s22 + $0xf98] sm:$0xf] }
 0x329   : > { %7685 = vmatpush.bf16.msrb.mxu3 %v12889_v4  ;;  %7680 = vmatmul.bf16.vlgmr.msrb.gmra.mxu2 %v15002_v13  ;;  %v11232_v4 = vld [vmem:[%s14684_s22 + $0xa98] sm:$0xf]  ;;  %v10970_v26 = vld [vmem:[%s14684_s22 + $0x8d0] sm:$0xf0] }
 0x32a   : > { %7752 = vmatpush.bf16.msrb.mxu0 %v12253_v56  ;;  %v12826_v56 = vld [vmem:[%s14684_s22 + $0x1750] sm:$0xf0]  ;;  %7724 = vmatpush.bf16.msra.mxu2 %v11357_v11  ;;  %v12637_v11 = vor.u32 %v13890_v58, %v12634_v59  ;;  %v11233_v8 = vor.u32 %v13547_v60, %v11232_v4  ;;  %v10973_v36 = vor.u32 %v13474_v22, %v10970_v26  ;;  %v13707_v58 = vld [vmem:[%s14684_s22 + $0xfd4] sm:$0xf0] }
 0x32b   : > { %7763 = vmatpush.bf16.msrb.mxu1 %v12893_v63  ;;  %v12829_v18 = vor.u32 %v13938_v9, %v12826_v56  ;;  %v7382_v57 = vpop.f32.mrf.mxu3  ;;  %v13874_v9 = vld [vmem:[%s14684_s22 + $0x1514] sm:$0xf]  ;;  %v11873_v7 = vor.u32 %v13707_v58, %v11872_v47 }
 0x32c   : > { %7719 = vmatmul.bf16.vlgmr.msra.gmra.mxu1 %v14859_v17  ;;  %v12570_v56 = vld [vmem:[%s14684_s22 + $0x1550] sm:$0xf0] }
 0x32d   : > { %7686 = vmatpush.bf16.msrb.mxu3 %v12825_v12  ;;  %v7462_v63 = vpop.f32.mrf.mxu1  ;;  %v11168_v12 = vld [vmem:[%s14684_s22 + $0xa18] sm:$0xf]  ;;  %v13458_v39 = vld [vmem:[%s14684_s22 + $0x814] sm:$0xf] }
 0x32e   : > { %7753 = vmatpush.bf16.msrb.mxu0 %v12189_v27  ;;  %v11360_v27 = vld [vmem:[%s14684_s22 + $0xb98] sm:$0xf]  ;;  %7725 = vmatpush.bf16.msra.mxu2 %v11293_v16  ;;  %v15404_v2 = vpop.f32.mrf.mxu2  ;;  %v11169_v24 = vor.u32 %v13531_v14, %v11168_v12  ;;  %v10906_v41 = vld [vmem:[%s14684_s22 + $0x850] sm:$0xf0] }
 0x32f   : > { %7764 = vmatpush.bf16.msrb.mxu1 %v12829_v18  ;;  %v11361_v38 = vor.u32 %v13579_v28, %v11360_v27  ;;  %v12573_v18 = vor.u32 %v13874_v9, %v12570_v56  ;;  %v13858_v27 = vld [vmem:[%s14684_s22 + $0x1494] sm:$0xf]  ;;  %v10909_v59 = vor.u32 %v13458_v39, %v10906_v41  ;;  %v13483_v63 = vld [vmem:[%s14684_s22 + $0x8d4] sm:$0xf0] }
 0x330   : > { %v12506_v28 = vld [vmem:[%s14684_s22 + $0x14d0] sm:$0xf0]  ;;  %v10272_v9 = vld [vmem:[%s14684_s22 + $0x318] sm:$0xf] }
 0x331   : > { %7687 = vmatpush.bf16.msrb.mxu3 %v12761_v31  ;;  %v13515_v31 = vld [vmem:[%s14684_s22 + $0x9d4] sm:$0xf0]  ;;  %v12509_v37 = vor.u32 %v13858_v27, %v12506_v28  ;;  %v13842_v42 = vld [vmem:[%s14684_s22 + $0x1414] sm:$0xf] }
 0x332   : > { %7754 = vmatpush.bf16.msrb.mxu0 %v12125_v3  ;;  %v11296_v3 = vld [vmem:[%s14684_s22 + $0xb18] sm:$0xf]  ;;  %7726 = vmatpush.bf16.msra.mxu2 %v11229_v32  ;;  %v12440_v32 = vld [vmem:[%s14684_s22 + $0x1410] sm:$0xf]  ;;  %v13698_v49 = vld [vmem:[%s14684_s22 + $0xf94] sm:$0xf] }
 0x333   : > { %7765 = vmatpush.bf16.msrb.mxu1 %v12765_v33  ;;  %v11297_v54 = vor.u32 %v13563_v45, %v11296_v3  ;;  %v7384_v25 = vpop.f32.mrf.mxu3  ;;  %v13850_v33 = vld [vmem:[%s14684_s22 + $0x144c] sm:$0xf0]  ;;  %v12442_v45 = vld [vmem:[%s14684_s22 + $0x1450] sm:$0xf0]  ;;  %v13307_v56 = vld [vmem:[%s14684_s22 + $0x354] sm:$0xf0] }
 0x334   : > { %v11866_v51 = vld [vmem:[%s14684_s22 + $0xfd0] sm:$0xf0]  ;;  %v12445_v4 = vor.u32 %v13842_v42, %v12442_v45  ;;  %v11808_v12 = vld [vmem:[%s14684_s22 + $0xf18] sm:$0xf] }
 0x335   : > { %7688 = vmatpush.bf16.msrb.mxu3 %v12697_v61  ;;  %v15426_v43 = vpop.f32.mrf.mxu1  ;;  %v11040_v61 = vld [vmem:[%s14684_s22 + $0x918] sm:$0xf]  ;;  %v13666_v25 = vld [vmem:[%s14684_s22 + $0xe94] sm:$0xf] }
 0x336   : > { %7755 = vmatpush.bf16.msrb.mxu0 %v12061_v20  ;;  %v15400_v20 = vadd.f32 %v7382_v57, %v15322_v62  ;;  %7727 = vmatpush.bf16.msra.mxu2 %v11165_v46  ;;  %v13490_v62 = vld [vmem:[%s14684_s22 + $0x914] sm:$0xf]  ;;  %v13499_v46 = vld [vmem:[%s14684_s22 + $0x954] sm:$0xf0] }
 0x337   : > { %7766 = vmatpush.bf16.msrb.mxu1 %v12701_v48  ;;  %v11037_v16 = vor.u32 %v13490_v62, %v11034_v50  ;;  %v13323_v57 = vld [vmem:[%s14684_s22 + $0x3d4] sm:$0xf0]  ;;  %v11041_v60 = vor.u32 %v13499_v46, %v11040_v61  ;;  %v11802_v50 = vld [vmem:[%s14684_s22 + $0xf50] sm:$0xf0] }
 0x338   : > { %v10337_v6 = vor.u32 %v13323_v57, %v10336_v55  ;;  %v13691_v14 = vld [vmem:[%s14684_s22 + $0xf54] sm:$0xf0]  ;;  %v11738_v26 = vld [vmem:[%s14684_s22 + $0xed0] sm:$0xf0]  ;;  %v10274_v55 = vld [vmem:[%s14684_s22 + $0x358] sm:$0xf0] }
 0x339   : > { %7689 = vmatpush.bf16.msrb.mxu3 %v12633_v53  ;;  %v11869_v53 = vor.u32 %v13698_v49, %v11866_v51  ;;  %v10208_v27 = vld [vmem:[%s14684_s22 + $0x298] sm:$0xf]  ;;  %v13650_v42 = vld [vmem:[%s14684_s22 + $0xe14] sm:$0xf]  ;;  %v13299_v51 = vld [vmem:[%s14684_s22 + $0x31c] sm:$0xf] }
 0x33a   : > { %7756 = vmatpush.bf16.msrb.mxu0 %v11997_v1  ;;  %7728 = vmatpush.bf16.msra.mxu2 %v11101_v5  ;;  %v13291_v28 = vld [vmem:[%s14684_s22 + $0x2d4] sm:$0xf0] }
 0x33b   : > { %7767 = vmatpush.bf16.msrb.mxu1 %v12637_v11  ;;  %v7434_v5 = vpop.f32.mrf.mxu3  ;;  %v10976_v11 = vld [vmem:[%s14684_s22 + $0x898] sm:$0xf]  ;;  %v10209_v39 = vor.u32 %v13291_v28, %v10208_v27 }
 0x33c   : > { %v7435_v62 = vadd.f32 %v7434_v5, %v15361_v0  ;;  %v10977_v0 = vor.u32 %v13483_v63, %v10976_v11  ;;  %v10144_v45 = vld [vmem:[%s14684_s22 + $0x218] sm:$0xf]  ;;  %v10277_v5 = vor.u32 %v13299_v51, %v10274_v55 }
 0x33d   : > { %7690 = vmatpush.bf16.msrb.mxu3 %v12569_v15  ;;  %v13275_v46 = vld [vmem:[%s14684_s22 + $0x254] sm:$0xf0] }
 0x33e   : > { %7757 = vmatpush.bf16.msrb.mxu0 %v11933_v30  ;;  %v15412_v1 = vpop.f32.mrf.mxu0  ;;  %v11104_v30 = vld [vmem:[%s14684_s22 + $0x998] sm:$0xf]  ;;  %7729 = vmatpush.bf16.msra.mxu2 %v11037_v16  ;;  %v7448_v15 = vadd.f32 %v15304_v52, %v7435_v62  ;;  %v7514_v16 = vpop.f32.mrf.mxu1  ;;  %v11809_v52 = vor.u32 %v13691_v14, %v11808_v12  ;;  %v10145_v58 = vor.u32 %v13275_v46, %v10144_v45  ;;  %v10210_v62 = vld [vmem:[%s14684_s22 + $0x2d8] sm:$0xf0]  ;;  %v13586_v45 = vld [vmem:[%s14684_s22 + $0xc14] sm:$0xf] }
 0x33f   : > { %7768 = vmatpush.bf16.msrb.mxu1 %v12573_v18  ;;  %v11105_v3 = vor.u32 %v13515_v31, %v11104_v30  ;;  %v11744_v30 = vld [vmem:[%s14684_s22 + $0xe98] sm:$0xf]  ;;  %v11546_v16 = vld [vmem:[%s14684_s22 + $0xd50] sm:$0xf0] }
 0x340   : > { %v7461_v22 = vadd.f32 %v15382_v34, %v7448_v15  ;;  %v13675_v31 = vld [vmem:[%s14684_s22 + $0xed4] sm:$0xf0]  ;;  %v10338_v34 = vld [vmem:[%s14684_s22 + $0x3d8] sm:$0xf0]  ;;  %v13618_v15 = vld [vmem:[%s14684_s22 + $0xd14] sm:$0xf] }
 0x341   : > { %7758 = vmatmul.bf16.vlgmr.msrb.gmra.mxu0 %v15002_v13  ;;  %7691 = vmatpush.bf16.msrb.mxu3 %v12505_v29  ;;  %v11745_v41 = vor.u32 %v13675_v31, %v11744_v30  ;;  %v13659_v49 = vld [vmem:[%s14684_s22 + $0xe54] sm:$0xf0]  ;;  %v11549_v28 = vor.u32 %v13618_v15, %v11546_v16  ;;  %v9954_v15 = vld [vmem:[%s14684_s22 + $0xd8] sm:$0xf0] }
 0x342   : > { %7802 = vmatpush.bf16.msra.mxu0 %v11361_v38  ;;  %v7475_v38 = vpop.f32.mrf.mxu2  ;;  %7730 = vmatpush.bf16.msra.mxu2 %v10973_v36  ;;  %v8572_v29 = vrot.slane %v7461_v22, 6  ;;  %v11741_v36 = vor.u32 %v13666_v25, %v11738_v26  ;;  %v13259_v11 = vld [vmem:[%s14684_s22 + $0x1d4] sm:$0xf0] }
 0x343   : > { %7769 = vmatpush.bf16.msrb.mxu1 %v12509_v37  ;;  %v7436_v37 = vpop.f32.mrf.mxu3  ;;  %v11616_v63 = vld [vmem:[%s14684_s22 + $0xd98] sm:$0xf] }
 0x344   : > { %v15466_v38 = vsel %vm8584_vm14, %v15400_v20, %v8572_v29  ;;  %v13627_v22 = vld [vmem:[%s14684_s22 + $0xd54] sm:$0xf0]  ;;  %v13602_v29 = vld [vmem:[%s14684_s22 + $0xc94] sm:$0xf] }
 0x345   : > { %v13611_v37 = vld [vmem:[%s14684_s22 + $0xcd4] sm:$0xf0] }
 0x346   : > { %7803 = vmatpush.bf16.msra.mxu0 %v11297_v54  ;;  %v7553_v48 = vpop.f32.mrf.mxu0  ;;  %v12441_v54 = vor.u32 %v13850_v33, %v12440_v32  ;;  %7731 = vmatpush.bf16.msra.mxu2 %v10909_v59  ;;  %v13315_v32 = vld [vmem:[%s14684_s22 + $0x39c] sm:$0xf]  ;;  %v10913_v33 = vor.u32 %v13467_v21, %v10912_v19  ;;  %v13243_v19 = vld [vmem:[%s14684_s22 + $0x154] sm:$0xf0] }
 0x347   : > { %7770 = vmatpush.bf16.msrb.mxu1 %v12445_v4  ;;  %v10341_v61 = vor.u32 %v13315_v32, %v10338_v34  ;;  %v11680_v48 = vld [vmem:[%s14684_s22 + $0xe18] sm:$0xf]  ;;  %v13634_v4 = vld [vmem:[%s14684_s22 + $0xd94] sm:$0xf] }
 0x348   : > { %7692 = vmatpush.bf16.msrb.mxu3 %v12441_v54  ;;  %v15477_v54 = vld [vmem:[%s14690_s29] sm:$0xff]  ;;  %v11681_v59 = vor.u32 %v13659_v49, %v11680_v48  ;;  %v11552_v21 = vld [vmem:[%s14684_s22 + $0xd18] sm:$0xf] }
 0x349   : > { %7732 = vmatmul.bf16.vlgmr.msra.gmra.mxu2 %v14893_v10  ;;  %v3438_v20 = vperm.slane %v15477_v54, 2  ;;  %v15480_v57 = vpop.f32.mrf.mxu1  ;;  %v11553_v31 = vor.u32 %v13627_v22, %v11552_v21  ;;  %v11482_v32 = vld [vmem:[%s14684_s22 + $0xcd0] sm:$0xf0]  ;;  %v9952_v34 = vld [vmem:[%s14684_s22 + $0x98] sm:$0xf] }
 0x34a   : > { %7804 = vmatpush.bf16.msra.mxu0 %v11233_v8  ;;  %v13682_v8 = vld [vmem:[%s14684_s22 + $0xf14] sm:$0xf]  ;;  %7776 = vmatpush.bf16.msrb.mxu2 %v10337_v6  ;;  %v13643_v6 = vld [vmem:[%s14684_s22 + $0xdd4] sm:$0xf0]  ;;  %v13427_v22 = vld [vmem:[%s14684_s22 + $0x71c] sm:$0xf] }
 0x34b   : > { %v11805_v18 = vor.u32 %v13682_v8, %v11802_v50  ;;  %7815 = vmatpush.bf16.msra.mxu1 %v11873_v7  ;;  %7693 = vmatmul.bf16.vlgmr.msrb.gmra.mxu3 %v15057_v44  ;;  %v13283_v7 = vld [vmem:[%s14684_s22 + $0x29c] sm:$0xf]  ;;  %v7474_v8 = vadd.f32 %v15404_v2, %v3438_v20  ;;  %v7486_v14 = vpop.f32.mrf.mxu3  ;;  %v9888_v51 = vld [vmem:[%s14684_s22 + $0x18] sm:$0xf] }
 0x34c   : > { %7737 = vmatpush.bf16.msra.mxu3 %v11869_v53  ;;  %7771 = vmatmul.bf16.vlgmr.msrb.gmra.mxu1 %v15057_v44  ;;  %v10080_v53 = vld [vmem:[%s14684_s22 + $0x198] sm:$0xf]  ;;  %v15492_v12 = vpop.f32.mrf.mxu2 }
 0x34d   : > { %v7487_v2 = vadd.f32 %v7486_v14, %v7474_v8  ;;  %v13211_v55 = vld [vmem:[%s14684_s22 + $0x54] sm:$0xf0]  ;;  %v13219_v14 = vld [vmem:[%s14684_s22 + $0x9c] sm:$0xf] }
 0x34e   : > { %7805 = vmatpush.bf16.msra.mxu0 %v11169_v24  ;;  %v10273_v24 = vor.u32 %v13307_v56, %v10272_v9  ;;  %v10081_v9 = vor.u32 %v13259_v11, %v10080_v53  ;;  %v11617_v56 = vor.u32 %v13643_v6, %v11616_v63  ;;  %v11424_v20 = vld [vmem:[%s14684_s22 + $0xc18] sm:$0xf]  ;;  %v9889_v8 = vor.u32 %v13211_v55, %v9888_v51  ;;  %v13395_v55 = vld [vmem:[%s14684_s22 + $0x61c] sm:$0xf] }
 0x34f   : > { %7816 = vmatpush.bf16.msra.mxu1 %v11809_v52  ;;  %v10146_v52 = vld [vmem:[%s14684_s22 + $0x258] sm:$0xf0]  ;;  %v7500_v25 = vadd.f32 %v15342_v35, %v7487_v2  ;;  %v11488_v35 = vld [vmem:[%s14684_s22 + $0xc98] sm:$0xf] }
 0x350   : > { %7738 = vmatpush.bf16.msra.mxu3 %v11805_v18  ;;  %7777 = vmatpush.bf16.msrb.mxu2 %v10273_v24  ;;  %v10213_v18 = vor.u32 %v13283_v7, %v10210_v62  ;;  %v13267_v24 = vld [vmem:[%s14684_s22 + $0x21c] sm:$0xf]  ;;  %v11489_v48 = vor.u32 %v13611_v37, %v11488_v35  ;;  %v13451_v53 = vld [vmem:[%s14684_s22 + $0x7d4] sm:$0xf0] }
 0x351   : > { %v7566_v27 = vpop.f32.mrf.mxu1  ;;  %v13835_v6 = vld [vmem:[%s14684_s22 + $0x13d4] sm:$0xf0]  ;;  %v13443_v7 = vld [vmem:[%s14684_s22 + $0x79c] sm:$0xf] }
 0x352   : > { %7806 = vmatpush.bf16.msra.mxu0 %v11105_v3  ;;  %v11674_v3 = vld [vmem:[%s14684_s22 + $0xe50] sm:$0xf0]  ;;  %v10850_v62 = vld [vmem:[%s14684_s22 + $0x7d8] sm:$0xf0]  ;;  %v13435_v2 = vld [vmem:[%s14684_s22 + $0x754] sm:$0xf0] }
 0x353   : > { %v11677_v47 = vor.u32 %v13650_v42, %v11674_v3  ;;  %7817 = vmatpush.bf16.msra.mxu1 %v11745_v41  ;;  %v13251_v41 = vld [vmem:[%s14684_s22 + $0x19c] sm:$0xf]  ;;  %v11485_v3 = vor.u32 %v13602_v29, %v11482_v32  ;;  %v13819_v21 = vld [vmem:[%s14684_s22 + $0x1354] sm:$0xf0] }
 0x354   : > { %7739 = vmatpush.bf16.msra.mxu3 %v11741_v36  ;;  %7778 = vmatpush.bf16.msrb.mxu2 %v10209_v39  ;;  %v13227_v36 = vld [vmem:[%s14684_s22 + $0xd4] sm:$0xf0]  ;;  %v15512_v39 = vadd.f32 %v15426_v43, %v7500_v25  ;;  %v10082_v42 = vld [vmem:[%s14684_s22 + $0x1d8] sm:$0xf0]  ;;  %v7527_v49 = vpop.f32.mrf.mxu2  ;;  %v7488_v43 = vpop.f32.mrf.mxu3 }
 0x355   : > { %v9953_v46 = vor.u32 %v13227_v36, %v9952_v34  ;;  %v13203_v27 = vld [vmem:[%s14684_s22 + $0x1c] sm:$0xf]  ;;  %v10720_v29 = vld [vmem:[%s14684_s22 + $0x698] sm:$0xf] }
 0x356   : > { %7807 = vmatpush.bf16.msra.mxu0 %v11041_v60  ;;  %v11610_v60 = vld [vmem:[%s14684_s22 + $0xdd0] sm:$0xf0]  ;;  %v13419_v32 = vld [vmem:[%s14684_s22 + $0x6d4] sm:$0xf0]  ;;  %v13411_v36 = vld [vmem:[%s14684_s22 + $0x69c] sm:$0xf] }
 0x357   : > { %v11613_v50 = vor.u32 %v13634_v4, %v11610_v60  ;;  %7818 = vmatpush.bf16.msra.mxu1 %v11681_v59  ;;  %v13235_v59 = vld [vmem:[%s14684_s22 + $0x11c] sm:$0xf]  ;;  %v10848_v60 = vld [vmem:[%s14684_s22 + $0x798] sm:$0xf] }
 0x358   : > { %7740 = vmatpush.bf16.msra.mxu3 %v11677_v47  ;;  %7779 = vmatpush.bf16.msrb.mxu2 %v10145_v58  ;;  %v10085_v47 = vor.u32 %v13251_v41, %v10082_v42  ;;  %v13595_v58 = vld [vmem:[%s14684_s22 + $0xc54] sm:$0xf0]  ;;  %v10018_v4 = vld [vmem:[%s14684_s22 + $0x158] sm:$0xf0] }
 0x359   : > { %v12256_v34 = vld [vmem:[%s14684_s22 + $0x1298] sm:$0xf]  ;;  %v10722_v35 = vld [vmem:[%s14684_s22 + $0x6d8] sm:$0xf0] }
 0x35a   : > { %7808 = vmatpush.bf16.msra.mxu0 %v10977_v0  ;;  %v10016_v0 = vld [vmem:[%s14684_s22 + $0x118] sm:$0xf]  ;;  %v13827_v37 = vld [vmem:[%s14684_s22 + $0x139c] sm:$0xf] }
 0x35b   : > { %7819 = vmatpush.bf16.msra.mxu1 %v11617_v56  ;;  %v10017_v30 = vor.u32 %v13243_v19, %v10016_v0  ;;  %v10849_v56 = vor.u32 %v13451_v53, %v10848_v60  ;;  %v10853_v0 = vor.u32 %v13443_v7, %v10850_v62  ;;  %v12320_v19 = vld [vmem:[%s14684_s22 + $0x1318] sm:$0xf]  ;;  %v12386_v41 = vld [vmem:[%s14684_s22 + $0x13d8] sm:$0xf0] }
 0x35c   : > { %7741 = vmatpush.bf16.msra.mxu3 %v11613_v50  ;;  %7780 = vmatpush.bf16.msrb.mxu2 %v10081_v9  ;;  %v11425_v50 = vor.u32 %v13595_v58, %v11424_v20  ;;  %v10021_v9 = vor.u32 %v13235_v59, %v10018_v4  ;;  %v12192_v49 = vld [vmem:[%s14684_s22 + $0x1218] sm:$0xf]  ;;  %v12389_v43 = vor.u32 %v13827_v37, %v12386_v41  ;;  %v10658_v20 = vld [vmem:[%s14684_s22 + $0x658] sm:$0xf0] }
 0x35d   : > { %v13787_v51 = vld [vmem:[%s14684_s22 + $0x1254] sm:$0xf0]  ;;  %v12322_v58 = vld [vmem:[%s14684_s22 + $0x1358] sm:$0xf0]  ;;  %v10661_v53 = vor.u32 %v13395_v55, %v10658_v20 }
 0x35e   : > { %7809 = vmatpush.bf16.msra.mxu0 %v10913_v33  ;;  %v15503_v26 = vpop.f32.mrf.mxu0  ;;  %v10149_v33 = vor.u32 %v13267_v24, %v10146_v52  ;;  %v10786_v24 = vld [vmem:[%s14684_s22 + $0x758] sm:$0xf0]  ;;  %v9957_v52 = vor.u32 %v13219_v14, %v9954_v15  ;;  %v12193_v60 = vor.u32 %v13787_v51, %v12192_v49  ;;  %v13771_v7 = vld [vmem:[%s14684_s22 + $0x11d4] sm:$0xf0] }
 0x35f   : > { %7820 = vmatpush.bf16.msra.mxu1 %v11553_v31  ;;  %v10789_v31 = vor.u32 %v13427_v22, %v10786_v24  ;;  %v13379_v62 = vld [vmem:[%s14684_s22 + $0x59c] sm:$0xf]  ;;  %v13755_v22 = vld [vmem:[%s14684_s22 + $0x1154] sm:$0xf0] }
 0x360   : > { %7742 = vmatpush.bf16.msra.mxu3 %v11549_v28  ;;  %7781 = vmatpush.bf16.msrb.mxu2 %v10017_v30  ;;  %v9890_v28 = vld [vmem:[%s14684_s22 + $0x58] sm:$0xf0]  ;;  %v12321_v30 = vor.u32 %v13819_v21, %v12320_v19  ;;  %v12064_v19 = vld [vmem:[%s14684_s22 + $0x1118] sm:$0xf] }
 0x361   : > { %7810 = vmatmul.bf16.vlgmr.msra.gmra.mxu0 %v14893_v10  ;;  %v9893_v42 = vor.u32 %v13203_v27, %v9890_v28  ;;  %v13363_v24 = vld [vmem:[%s14684_s22 + $0x51c] sm:$0xf]  ;;  %v13739_v37 = vld [vmem:[%s14684_s22 + $0x10d4] sm:$0xf0] }
 0x362   : > { %7854 = vmatpush.bf16.msrb.mxu0 %v10341_v61  ;;  %v11418_v61 = vld [vmem:[%s14684_s22 + $0xc50] sm:$0xf0]  ;;  %v12194_v27 = vld [vmem:[%s14684_s22 + $0x1258] sm:$0xf0]  ;;  %v11936_v20 = vld [vmem:[%s14684_s22 + $0x1018] sm:$0xf] }
 0x363   : > { %v11421_v63 = vor.u32 %v13586_v45, %v11418_v61  ;;  %7821 = vmatpush.bf16.msra.mxu1 %v11489_v48  ;;  %v10725_v61 = vor.u32 %v13411_v36, %v10722_v35  ;;  %v13403_v48 = vld [vmem:[%s14684_s22 + $0x654] sm:$0xf0]  ;;  %v13347_v41 = vld [vmem:[%s14684_s22 + $0x49c] sm:$0xf] }
 0x364   : > { %7743 = vmatpush.bf16.msra.mxu3 %v11485_v3  ;;  %7782 = vmatpush.bf16.msrb.mxu2 %v9953_v46  ;;  %v10721_v3 = vor.u32 %v13419_v32, %v10720_v29  ;;  %v10656_v46 = vld [vmem:[%s14684_s22 + $0x618] sm:$0xf]  ;;  %v12065_v29 = vor.u32 %v13755_v22, %v12064_v19  ;;  %v12002_v19 = vld [vmem:[%s14684_s22 + $0x10d8] sm:$0xf0] }
 0x365   : > { %v10657_v4 = vor.u32 %v13403_v48, %v10656_v46  ;;  %v12000_v36 = vld [vmem:[%s14684_s22 + $0x1098] sm:$0xf] }
 0x366   : > { %7855 = vmatpush.bf16.msrb.mxu0 %v10277_v5  ;;  %v12384_v5 = vld [vmem:[%s14684_s22 + $0x1398] sm:$0xf]  ;;  %v7605_v11 = vpop.f32.mrf.mxu0  ;;  %v12001_v49 = vor.u32 %v13739_v37, %v12000_v36 }
 0x367   : > { %v12385_v16 = vor.u32 %v13835_v6, %v12384_v5  ;;  %7822 = vmatpush.bf16.msra.mxu1 %v11425_v50  ;;  %v10592_v5 = vld [vmem:[%s14684_s22 + $0x598] sm:$0xf]  ;;  %v13795_v50 = vld [vmem:[%s14684_s22 + $0x129c] sm:$0xf] }
 0x368   : > { %7744 = vmatpush.bf16.msra.mxu3 %v11421_v63  ;;  %7783 = vmatpush.bf16.msrb.mxu2 %v9889_v8  ;;  %v13387_v11 = vld [vmem:[%s14684_s22 + $0x5d4] sm:$0xf0]  ;;  %v10594_v8 = vld [vmem:[%s14684_s22 + $0x5d8] sm:$0xf0] }
 0x369   : > { %v15559_v59 = vpop.f32.mrf.mxu1  ;;  %v12128_v63 = vld [vmem:[%s14684_s22 + $0x1198] sm:$0xf]  ;;  %v10597_v15 = vor.u32 %v13379_v62, %v10594_v8  ;;  %v11362_v8 = vld [vmem:[%s14684_s22 + $0xbd8] sm:$0xf0] }
 0x36a   : > { %7856 = vmatpush.bf16.msrb.mxu0 %v10213_v18  ;;  %v10784_v18 = vld [vmem:[%s14684_s22 + $0x718] sm:$0xf]  ;;  %7823 = vmatmul.bf16.vlgmr.msra.gmra.mxu1 %v14946_v40  ;;  %v12129_v14 = vor.u32 %v13771_v7, %v12128_v63 }
 0x36b   : > { %v10785_v25 = vor.u32 %v13435_v2, %v10784_v18  ;;  %7867 = vmatpush.bf16.msrb.mxu1 %v10853_v0  ;;  %7745 = vmatmul.bf16.vlgmr.msra.gmra.mxu3 %v14946_v40  ;;  %v10528_v18 = vld [vmem:[%s14684_s22 + $0x518] sm:$0xf] }
 0x36c   : > { %7789 = vmatpush.bf16.msrb.mxu3 %v10849_v56  ;;  %7828 = vmatpush.bf16.msra.mxu2 %v12385_v16  ;;  %v10593_v56 = vor.u32 %v13387_v11, %v10592_v5  ;;  %v15570_v16 = vpop.f32.mrf.mxu3  ;;  %v15572_v0 = vpop.f32.mrf.mxu2  ;;  %v13371_v2 = vld [vmem:[%s14684_s22 + $0x554] sm:$0xf0]  ;;  %v12066_v5 = vld [vmem:[%s14684_s22 + $0x1158] sm:$0xf0] }
 0x36d   : > { %7784 = vmatmul.bf16.vlgmr.msrb.gmra.mxu2 %v14825_v23  ;;  %v10400_v46 = vld [vmem:[%s14684_s22 + $0x418] sm:$0xf] }
 0x36e   : > { %7857 = vmatpush.bf16.msrb.mxu0 %v10149_v33  ;;  %v13803_v33 = vld [vmem:[%s14684_s22 + $0x12d4] sm:$0xf0] }
 0x36f   : > { %7868 = vmatpush.bf16.msrb.mxu1 %v10789_v31  ;;  %v12257_v45 = vor.u32 %v13803_v33, %v12256_v34  ;;  %v10529_v31 = vor.u32 %v13371_v2, %v10528_v18  ;;  %v10464_v34 = vld [vmem:[%s14684_s22 + $0x498] sm:$0xf]  ;;  %v13731_v2 = vld [vmem:[%s14684_s22 + $0x109c] sm:$0xf] }
 0x370   : > { %7790 = vmatpush.bf16.msrb.mxu3 %v10785_v25  ;;  %7829 = vmatpush.bf16.msra.mxu2 %v12321_v30  ;;  %v13779_v25 = vld [vmem:[%s14684_s22 + $0x121c] sm:$0xf]  ;;  %v13355_v33 = vld [vmem:[%s14684_s22 + $0x4d4] sm:$0xf0] }
 0x371   : > { %v7618_v28 = vpop.f32.mrf.mxu1  ;;  %v12197_v35 = vor.u32 %v13779_v25, %v12194_v27  ;;  %v13339_v48 = vld [vmem:[%s14684_s22 + $0x454] sm:$0xf0]  ;;  %v13555_v25 = vld [vmem:[%s14684_s22 + $0xb1c] sm:$0xf] }
 0x372   : > { %7858 = vmatpush.bf16.msrb.mxu0 %v10085_v47  ;;  %v13811_v47 = vld [vmem:[%s14684_s22 + $0x131c] sm:$0xf]  ;;  %v12896_v11 = vld [vmem:[%s14684_s22 + $0x1798] sm:$0xf]  ;;  %v10401_v62 = vor.u32 %v13339_v48, %v10400_v46  ;;  %v11368_v46 = vld [vmem:[%s14684_s22 + $0xba0] sm:$0xf] }
 0x373   : > { %7869 = vmatpush.bf16.msrb.mxu1 %v10725_v61  ;;  %v12325_v6 = vor.u32 %v13811_v47, %v12322_v58  ;;  %v10465_v61 = vor.u32 %v13355_v33, %v10464_v34  ;;  %v13723_v47 = vld [vmem:[%s14684_s22 + $0x1054] sm:$0xf0]  ;;  %v13331_v58 = vld [vmem:[%s14684_s22 + $0x41c] sm:$0xf]  ;;  %v13580_v48 = vld [vmem:[%s14684_s22 + $0xbdc] sm:$0xf0] }
 0x374   : > { %7791 = vmatpush.bf16.msrb.mxu3 %v10721_v3  ;;  %7830 = vmatpush.bf16.msra.mxu2 %v12257_v45  ;;  %v13763_v3 = vld [vmem:[%s14684_s22 + $0x119c] sm:$0xf]  ;;  %v7540_v51 = vpop.f32.mrf.mxu3  ;;  %v7579_v55 = vpop.f32.mrf.mxu2  ;;  %v13963_v63 = vld [vmem:[%s14684_s22 + $0x17d4] sm:$0xf0] }
 0x375   : > { %v12130_v45 = vld [vmem:[%s14684_s22 + $0x11d8] sm:$0xf0]  ;;  %v12897_v18 = vor.u32 %v13963_v63, %v12896_v11  ;;  %v12768_v37 = vld [vmem:[%s14684_s22 + $0x1698] sm:$0xf]  ;;  %v11304_v63 = vld [vmem:[%s14684_s22 + $0xb20] sm:$0xf] }
 0x376   : > { %7859 = vmatpush.bf16.msrb.mxu0 %v10021_v9  ;;  %v12258_v9 = vld [vmem:[%s14684_s22 + $0x12d8] sm:$0xf0] }
 0x377   : > { %7870 = vmatpush.bf16.msrb.mxu1 %v10661_v53  ;;  %v12261_v21 = vor.u32 %v13795_v50, %v12258_v9  ;;  %v13747_v53 = vld [vmem:[%s14684_s22 + $0x111c] sm:$0xf] }
 0x378   : > { %7792 = vmatpush.bf16.msrb.mxu3 %v10657_v4  ;;  %7831 = vmatpush.bf16.msra.mxu2 %v12193_v60  ;;  %v12133_v4 = vor.u32 %v13763_v3, %v12130_v45  ;;  %v10402_v60 = vld [vmem:[%s14684_s22 + $0x458] sm:$0xf0] }
 0x379   : > { %v13955_v50 = vld [vmem:[%s14684_s22 + $0x179c] sm:$0xf] }
 0x37a   : > { %7860 = vmatpush.bf16.msrb.mxu0 %v9957_v52  ;;  %v10530_v52 = vld [vmem:[%s14684_s22 + $0x558] sm:$0xf0] }
 0x37b   : > { %7871 = vmatpush.bf16.msrb.mxu1 %v10597_v15  ;;  %v10533_v32 = vor.u32 %v13363_v24, %v10530_v52  ;;  %v12898_v9 = vld [vmem:[%s14684_s22 + $0x17d8] sm:$0xf0]  ;;  %v12069_v15 = vor.u32 %v13747_v53, %v12066_v5  ;;  %v12832_v24 = vld [vmem:[%s14684_s22 + $0x1718] sm:$0xf] }
 0x37c   : > { %7793 = vmatpush.bf16.msrb.mxu3 %v10593_v56  ;;  %7832 = vmatpush.bf16.msra.mxu2 %v12129_v14  ;;  %v11937_v56 = vor.u32 %v13723_v47, %v11936_v20  ;;  %v10405_v14 = vor.u32 %v13331_v58, %v10402_v60  ;;  %v12901_v22 = vor.u32 %v13955_v50, %v12898_v9  ;;  %v13947_v52 = vld [vmem:[%s14684_s22 + $0x1754] sm:$0xf0]  ;;  %v11298_v27 = vld [vmem:[%s14684_s22 + $0xb58] sm:$0xf0] }
 0x37d   : > { %v13939_v28 = vld [vmem:[%s14684_s22 + $0x171c] sm:$0xf]  ;;  %v11301_v36 = vor.u32 %v13555_v25, %v11298_v27  ;;  %v12704_v47 = vld [vmem:[%s14684_s22 + $0x1618] sm:$0xf]  ;;  %v11369_v60 = vor.u32 %v13580_v48, %v11368_v46 }
 0x37e   : > { %7861 = vmatpush.bf16.msrb.mxu0 %v9893_v42  ;;  %v15582_v30 = vpop.f32.mrf.mxu0  ;;  %v10466_v42 = vld [vmem:[%s14684_s22 + $0x4d8] sm:$0xf0]  ;;  %v13915_v58 = vld [vmem:[%s14684_s22 + $0x1654] sm:$0xf0] }
 0x37f   : > { %7872 = vmatpush.bf16.msrb.mxu1 %v10533_v32  ;;  %v12833_v32 = vor.u32 %v13947_v52, %v12832_v24  ;;  %v13715_v34 = vld [vmem:[%s14684_s22 + $0x101c] sm:$0xf]  ;;  %v13548_v24 = vld [vmem:[%s14684_s22 + $0xadc] sm:$0xf0] }
 0x380   : > { %7794 = vmatpush.bf16.msrb.mxu3 %v10529_v31  ;;  %7833 = vmatpush.bf16.msra.mxu2 %v12065_v29  ;;  %v12834_v31 = vld [vmem:[%s14684_s22 + $0x1758] sm:$0xf0]  ;;  %v12005_v29 = vor.u32 %v13731_v2, %v12002_v19 }
 0x381   : > { %7862 = vmatmul.bf16.vlgmr.msrb.gmra.mxu0 %v14825_v23  ;;  %v11938_v33 = vld [vmem:[%s14684_s22 + $0x1058] sm:$0xf0] }
 0x382   : > { %7906 = vmatpush.bf16.msra.mxu0 %v12389_v43  ;;  %v10469_v43 = vor.u32 %v13347_v41, %v10466_v42  ;;  %v13931_v41 = vld [vmem:[%s14684_s22 + $0x16d4] sm:$0xf0]  ;;  %v13539_v42 = vld [vmem:[%s14684_s22 + $0xa9c] sm:$0xf] }
 0x383   : > { %v11234_v3 = vld [vmem:[%s14684_s22 + $0xad8] sm:$0xf0]  ;;  %v12769_v51 = vor.u32 %v13931_v41, %v12768_v37  ;;  %v11176_v41 = vld [vmem:[%s14684_s22 + $0xa20] sm:$0xf] }
 0x384   : > { %7795 = vmatpush.bf16.msrb.mxu3 %v10465_v61  ;;  %7834 = vmatpush.bf16.msra.mxu2 %v12001_v49  ;;  %v13923_v45 = vld [vmem:[%s14684_s22 + $0x169c] sm:$0xf]  ;;  %v3439_v49 = vperm.slane %v15477_v54, 3  ;;  %v11237_v55 = vor.u32 %v13539_v42, %v11234_v3  ;;  %v13532_v42 = vld [vmem:[%s14684_s22 + $0xa5c] sm:$0xf0] }
 0x385   : > { %7873 = vmatpush.bf16.msrb.mxu1 %v10469_v43  ;;  %v12770_v61 = vld [vmem:[%s14684_s22 + $0x16d8] sm:$0xf0]  ;;  %v11941_v43 = vor.u32 %v13715_v34, %v11938_v33 }
 0x386   : > { %7907 = vmatpush.bf16.msra.mxu0 %v12325_v6  ;;  %v13571_v6 = vld [vmem:[%s14684_s22 + $0xb9c] sm:$0xf]  ;;  %v7657_v7 = vpop.f32.mrf.mxu0  ;;  %v12773_v20 = vor.u32 %v13923_v45, %v12770_v61 }
 0x387   : > { %v11170_v53 = vld [vmem:[%s14684_s22 + $0xa58] sm:$0xf0]  ;;  %v7552_v7 = vadd.f32 %v15412_v1, %v3439_v49  ;;  %v12640_v1 = vld [vmem:[%s14684_s22 + $0x1598] sm:$0xf] }
 0x388   : > { %7796 = vmatpush.bf16.msrb.mxu3 %v10401_v62  ;;  %7835 = vmatpush.bf16.msra.mxu2 %v11937_v56  ;;  %v13907_v5 = vld [vmem:[%s14684_s22 + $0x161c] sm:$0xf]  ;;  %v13899_v56 = vld [vmem:[%s14684_s22 + $0x15d4] sm:$0xf0] }
 0x389   : > { %7874 = vmatpush.bf16.msrb.mxu1 %v10405_v14  ;;  %v12706_v11 = vld [vmem:[%s14684_s22 + $0x1658] sm:$0xf0]  ;;  %v15638_v62 = vpop.f32.mrf.mxu1  ;;  %v12641_v25 = vor.u32 %v13899_v56, %v12640_v1 }
 0x38a   : > { %7908 = vmatpush.bf16.msra.mxu0 %v12261_v21  ;;  %v11365_v21 = vor.u32 %v13571_v6, %v11362_v8  ;;  %v13564_v6 = vld [vmem:[%s14684_s22 + $0xb5c] sm:$0xf0]  ;;  %v12705_v8 = vor.u32 %v13915_v58, %v12704_v47  ;;  %v12709_v9 = vor.u32 %v13907_v5, %v12706_v11  ;;  %v13507_v14 = vld [vmem:[%s14684_s22 + $0x99c] sm:$0xf] }
 0x38b   : > { %7797 = vmatmul.bf16.vlgmr.msrb.gmra.mxu3 %v14859_v17  ;;  %7836 = vmatmul.bf16.vlgmr.msra.gmra.mxu2 %v15002_v13  ;;  %v11106_v2 = vld [vmem:[%s14684_s22 + $0x9d8] sm:$0xf0] }
 0x38c   : > { %7841 = vmatpush.bf16.msra.mxu3 %v12897_v18  ;;  %7880 = vmatpush.bf16.msrb.mxu2 %v11365_v21  ;;  %v11305_v18 = vor.u32 %v13564_v6, %v11304_v63  ;;  %v13891_v19 = vld [vmem:[%s14684_s22 + $0x159c] sm:$0xf]  ;;  %v11109_v27 = vor.u32 %v13507_v14, %v11106_v2  ;;  %v12448_v63 = vld [vmem:[%s14684_s22 + $0x1418] sm:$0xf]  ;;  %v11048_v2 = vld [vmem:[%s14684_s22 + $0x920] sm:$0xf] }
 0x38d   : > { %7919 = vmatpush.bf16.msra.mxu1 %v12901_v22  ;;  %v12642_v21 = vld [vmem:[%s14684_s22 + $0x15d8] sm:$0xf0]  ;;  %v11240_v22 = vld [vmem:[%s14684_s22 + $0xaa0] sm:$0xf]  ;;  %v13851_v6 = vld [vmem:[%s14684_s22 + $0x1454] sm:$0xf0] }
 0x38e   : > { %7909 = vmatpush.bf16.msra.mxu0 %v12197_v35  ;;  %v12837_v35 = vor.u32 %v13939_v28, %v12834_v31  ;;  %7875 = vmatmul.bf16.vlgmr.msrb.gmra.mxu1 %v14859_v17  ;;  %v12645_v28 = vor.u32 %v13891_v19, %v12642_v21  ;;  %v15665_v31 = vpop.f32.mrf.mxu2  ;;  %v13491_v34 = vld [vmem:[%s14684_s22 + $0x91c] sm:$0xf]  ;;  %v11241_v33 = vor.u32 %v13548_v24, %v11240_v22  ;;  %v13500_v19 = vld [vmem:[%s14684_s22 + $0x95c] sm:$0xf0] }
 0x38f   : > { %v13875_v37 = vld [vmem:[%s14684_s22 + $0x151c] sm:$0xf] }
 0x390   : > { %7842 = vmatpush.bf16.msra.mxu3 %v12833_v32  ;;  %7881 = vmatpush.bf16.msrb.mxu2 %v11301_v36  ;;  %v13883_v32 = vld [vmem:[%s14684_s22 + $0x1554] sm:$0xf0]  ;;  %v13859_v47 = vld [vmem:[%s14684_s22 + $0x149c] sm:$0xf] }
 0x391   : > { %7920 = vmatpush.bf16.msra.mxu1 %v12837_v35  ;;  %v11042_v35 = vld [vmem:[%s14684_s22 + $0x958] sm:$0xf0]  ;;  %v7670_v45 = vpop.f32.mrf.mxu1 }
 0x392   : > { %7910 = vmatpush.bf16.msra.mxu0 %v12133_v4  ;;  %v13523_v4 = vld [vmem:[%s14684_s22 + $0xa1c] sm:$0xf]  ;;  %v11045_v48 = vor.u32 %v13491_v34, %v11042_v35  ;;  %v13692_v45 = vld [vmem:[%s14684_s22 + $0xf5c] sm:$0xf0] }
 0x393   : > { %v11173_v50 = vor.u32 %v13523_v4, %v11170_v53  ;;  %v12514_v58 = vld [vmem:[%s14684_s22 + $0x14d8] sm:$0xf0]  ;;  %v13516_v53 = vld [vmem:[%s14684_s22 + $0x9dc] sm:$0xf0] }
 0x394   : > { %7843 = vmatpush.bf16.msra.mxu3 %v12769_v51  ;;  %7882 = vmatpush.bf16.msrb.mxu2 %v11237_v55  ;;  %v13475_v51 = vld [vmem:[%s14684_s22 + $0x89c] sm:$0xf] }
 0x395   : > { %7921 = vmatpush.bf16.msra.mxu1 %v12773_v20  ;;  %v10978_v20 = vld [vmem:[%s14684_s22 + $0x8d8] sm:$0xf0] }
 0x396   : > { %7911 = vmatpush.bf16.msra.mxu0 %v12069_v15  ;;  %v7565_v15 = vadd.f32 %v15480_v57, %v7552_v7  ;;  %v7526_v57 = vadd.f32 %v15492_v12, %v15512_v39  ;;  %v12578_v12 = vld [vmem:[%s14684_s22 + $0x1558] sm:$0xf0]  ;;  %v12517_v7 = vor.u32 %v13859_v47, %v12514_v58  ;;  %v13292_v47 = vld [vmem:[%s14684_s22 + $0x2dc] sm:$0xf0] }
 0x397   : > { %v12581_v49 = vor.u32 %v13875_v37, %v12578_v12  ;;  %v10914_v1 = vld [vmem:[%s14684_s22 + $0x858] sm:$0xf0]  ;;  %v11752_v58 = vld [vmem:[%s14684_s22 + $0xea0] sm:$0xf] }
 0x398   : > { %v7578_v52 = vadd.f32 %v15572_v0, %v7565_v15  ;;  %7844 = vmatpush.bf16.msra.mxu3 %v12705_v8  ;;  %7883 = vmatpush.bf16.msrb.mxu2 %v11173_v50  ;;  %v7590_v0 = vpop.f32.mrf.mxu3  ;;  %v7539_v39 = vadd.f32 %v15570_v16, %v7526_v57  ;;  %v12512_v16 = vld [vmem:[%s14684_s22 + $0x1498] sm:$0xf]  ;;  %v7631_v50 = vpop.f32.mrf.mxu2  ;;  %v13843_v56 = vld [vmem:[%s14684_s22 + $0x141c] sm:$0xf]  ;;  %v12449_v57 = vor.u32 %v13851_v6, %v12448_v63 }
 0x399   : > { %7922 = vmatpush.bf16.msra.mxu1 %v12709_v9  ;;  %v13459_v9 = vld [vmem:[%s14684_s22 + $0x81c] sm:$0xf]  ;;  %v10152_v50 = vld [vmem:[%s14684_s22 + $0x220] sm:$0xf] }
 0x39a   : > { %7912 = vmatpush.bf16.msra.mxu0 %v12005_v29  ;;  %v12576_v29 = vld [vmem:[%s14684_s22 + $0x1518] sm:$0xf]  ;;  %v7591_v36 = vadd.f32 %v7590_v0, %v7578_v52  ;;  %v8573_v4 = vrot.slane %v7539_v39, 4  ;;  %v13699_v22 = vld [vmem:[%s14684_s22 + $0xf9c] sm:$0xf] }
 0x39b   : > { %v12577_v46 = vor.u32 %v13883_v32, %v12576_v29  ;;  %v11874_v24 = vld [vmem:[%s14684_s22 + $0xfd8] sm:$0xf0]  ;;  %v10344_v52 = vld [vmem:[%s14684_s22 + $0x3a0] sm:$0xf]  ;;  %v11049_v32 = vor.u32 %v13500_v19, %v11048_v2  ;;  %v10282_v2 = vld [vmem:[%s14684_s22 + $0x360] sm:$0xf0] }
 0x39c   : > { %7845 = vmatpush.bf16.msra.mxu3 %v12641_v25  ;;  %v7604_v3 = vadd.f32 %v15503_v26, %v7591_v36  ;;  %7884 = vmatpush.bf16.msrb.mxu2 %v11109_v27  ;;  %v11177_v26 = vor.u32 %v13532_v42, %v11176_v41  ;;  %v13324_v27 = vld [vmem:[%s14684_s22 + $0x3dc] sm:$0xf0]  ;;  %v11877_v34 = vor.u32 %v13699_v22, %v11874_v24  ;;  %v13683_v12 = vld [vmem:[%s14684_s22 + $0xf1c] sm:$0xf]  ;;  %v3440_v19 = vperm.slane %v15477_v54, 4 }
 0x39d   : > { %7923 = vmatpush.bf16.msra.mxu1 %v12645_v28  ;;  %v11880_v28 = vld [vmem:[%s14684_s22 + $0xfa0] sm:$0xf]  ;;  %v10345_v35 = vor.u32 %v13324_v27, %v10344_v52  ;;  %v11810_v39 = vld [vmem:[%s14684_s22 + $0xf58] sm:$0xf0] }
 0x39e   : > { %7913 = vmatpush.bf16.msra.mxu0 %v11941_v43  ;;  %v15678_v61 = vpop.f32.mrf.mxu0  ;;  %v13867_v43 = vld [vmem:[%s14684_s22 + $0x14d4] sm:$0xf0]  ;;  %v7617_v55 = vadd.f32 %v15559_v59, %v7604_v3  ;;  %v10981_v59 = vor.u32 %v13475_v51, %v10978_v20  ;;  %v13708_v0 = vld [vmem:[%s14684_s22 + $0xfdc] sm:$0xf0] }
 0x39f   : > { %v12513_v11 = vor.u32 %v13867_v43, %v12512_v16  ;;  %v13484_v36 = vld [vmem:[%s14684_s22 + $0x8dc] sm:$0xf0]  ;;  %v11881_v37 = vor.u32 %v13708_v0, %v11880_v28 }
 0x3a0   : > { %v8574_v5 = vrot.slane %v7617_v55, 2  ;;  %7846 = vmatpush.bf16.msra.mxu3 %v12577_v46  ;;  %7885 = vmatpush.bf16.msrb.mxu2 %v11045_v48  ;;  %v7592_v8 = vpop.f32.mrf.mxu3  ;;  %v10280_v41 = vld [vmem:[%s14684_s22 + $0x320] sm:$0xf]  ;;  %v11813_v48 = vor.u32 %v13683_v12, %v11810_v39  ;;  %v13667_v55 = vld [vmem:[%s14684_s22 + $0xe9c] sm:$0xf] }
 0x3a1   : > { %7914 = vmatmul.bf16.vlgmr.msra.gmra.mxu0 %v15002_v13  ;;  %7924 = vmatpush.bf16.msra.mxu1 %v12581_v49  ;;  %v13308_v42 = vld [vmem:[%s14684_s22 + $0x35c] sm:$0xf0]  ;;  %v11682_v8 = vld [vmem:[%s14684_s22 + $0xe58] sm:$0xf0] }
 0x3a2   : > { %7958 = vmatpush.bf16.msrb.mxu0 %v11369_v60  ;;  %v11112_v60 = vld [vmem:[%s14684_s22 + $0x9a0] sm:$0xf]  ;;  %v8587_v14 = vsel %vm8586_vm15, %v8573_v4, %v8574_v5  ;;  %v10281_v43 = vor.u32 %v13308_v42, %v10280_v41  ;;  %v10346_v5 = vld [vmem:[%s14684_s22 + $0x3e0] sm:$0xf0]  ;;  %v13619_v39 = vld [vmem:[%s14684_s22 + $0xd1c] sm:$0xf] }
 0x3a3   : > { %v11113_v15 = vor.u32 %v13516_v53, %v11112_v60  ;;  %v8589_v21 = vsel %vm8588_vm0, %v15466_v38, %v8587_v14  ;;  %v10917_v38 = vor.u32 %v13459_v9, %v10914_v1  ;;  %v11816_v3 = vld [vmem:[%s14684_s22 + $0xf20] sm:$0xf]  ;;  %v3441_v60 = vperm.slane %v15477_v54, 5  ;;  %v13316_v53 = vld [vmem:[%s14684_s22 + $0x3a4] sm:$0xf] }
 0x3a4   : > { %8603 = vst [vmem:[%s15694_s13] sm:$0xff] %v8589_v21  ;;  %7847 = vmatpush.bf16.msra.mxu3 %v12513_v11  ;;  %7886 = vmatpush.bf16.msrb.mxu2 %v10981_v59  ;;  %v10920_v49 = vld [vmem:[%s14684_s22 + $0x820] sm:$0xf]  ;;  %v11817_v51 = vor.u32 %v13692_v45, %v11816_v3  ;;  %v10349_v9 = vor.u32 %v13316_v53, %v10346_v5  ;;  %v11554_v41 = vld [vmem:[%s14684_s22 + $0xd58] sm:$0xf0] }
 0x3a5   : > { %7925 = vmatpush.bf16.msra.mxu1 %v12517_v7  ;;  %v13468_v16 = vld [vmem:[%s14684_s22 + $0x85c] sm:$0xf0]  ;;  %v13651_v7 = vld [vmem:[%s14684_s22 + $0xe1c] sm:$0xf] }
 0x3a6   : > { %7959 = vmatpush.bf16.msrb.mxu0 %v11305_v18  ;;  %v12450_v18 = vld [vmem:[%s14684_s22 + $0x1458] sm:$0xf0]  ;;  %v7709_v25 = vpop.f32.mrf.mxu0  ;;  %v10216_v20 = vld [vmem:[%s14684_s22 + $0x2a0] sm:$0xf]  ;;  %v10921_v11 = vor.u32 %v13468_v16, %v10920_v49  ;;  %v11685_v22 = vor.u32 %v13651_v7, %v11682_v8  ;;  %v13268_v49 = vld [vmem:[%s14684_s22 + $0x224] sm:$0xf] }
 0x3a7   : > { %v12453_v29 = vor.u32 %v13843_v56, %v12450_v18  ;;  %v13676_v4 = vld [vmem:[%s14684_s22 + $0xedc] sm:$0xf0]  ;;  %v10217_v6 = vor.u32 %v13292_v47, %v10216_v20  ;;  %v13300_v18 = vld [vmem:[%s14684_s22 + $0x324] sm:$0xf] }
 0x3a8   : > { %7848 = vmatpush.bf16.msra.mxu3 %v12449_v57  ;;  %7887 = vmatpush.bf16.msrb.mxu2 %v10917_v38  ;;  %v11753_v59 = vor.u32 %v13676_v4, %v11752_v58  ;;  %v13276_v1 = vld [vmem:[%s14684_s22 + $0x25c] sm:$0xf0]  ;;  %v11618_v57 = vld [vmem:[%s14684_s22 + $0xdd8] sm:$0xf0]  ;;  %v10285_v28 = vor.u32 %v13300_v18, %v10282_v2  ;;  %v10154_v16 = vld [vmem:[%s14684_s22 + $0x260] sm:$0xf0] }
 0x3a9   : > { %7926 = vmatpush.bf16.msra.mxu1 %v12453_v29  ;;  %v11688_v56 = vld [vmem:[%s14684_s22 + $0xe20] sm:$0xf]  ;;  %v7720_v21 = vpop.f32.mrf.mxu1  ;;  %v10153_v52 = vor.u32 %v13276_v1, %v10152_v50  ;;  %v13284_v29 = vld [vmem:[%s14684_s22 + $0x2a4] sm:$0xf]  ;;  %v13603_v58 = vld [vmem:[%s14684_s22 + $0xc9c] sm:$0xf] }
 0x3aa   : > { %7960 = vmatpush.bf16.msrb.mxu0 %v11241_v33  ;;  %v10984_v33 = vld [vmem:[%s14684_s22 + $0x8a0] sm:$0xf]  ;;  %v11490_v4 = vld [vmem:[%s14684_s22 + $0xcd8] sm:$0xf0] }
 0x3ab   : > { %v10985_v46 = vor.u32 %v13484_v36, %v10984_v33  ;;  %7849 = vmatmul.bf16.vlgmr.msra.gmra.mxu3 %v15057_v44  ;;  %7888 = vmatmul.bf16.vlgmr.msrb.gmra.mxu2 %v14893_v10  ;;  %v13660_v14 = vld [vmem:[%s14684_s22 + $0xe5c] sm:$0xf0]  ;;  %v11493_v8 = vor.u32 %v13603_v58, %v11490_v4  ;;  %v13587_v50 = vld [vmem:[%s14684_s22 + $0xc1c] sm:$0xf]  ;;  %v13412_v4 = vld [vmem:[%s14684_s22 + $0x6a4] sm:$0xf] }
 0x3ac   : > { %7893 = vmatpush.bf16.msrb.mxu3 %v11877_v34  ;;  %7932 = vmatpush.bf16.msra.mxu2 %v10345_v35  ;;  %v11689_v25 = vor.u32 %v13660_v14, %v11688_v56  ;;  %v10088_v27 = vld [vmem:[%s14684_s22 + $0x1a0] sm:$0xf]  ;;  %v7630_v34 = vadd.f32 %v15665_v31, %v3440_v19  ;;  %v7681_v12 = vpop.f32.mrf.mxu2 }
 0x3ad   : > { %7971 = vmatpush.bf16.msrb.mxu1 %v11881_v37  ;;  %v13260_v54 = vld [vmem:[%s14684_s22 + $0x1dc] sm:$0xf0]  ;;  %v7642_v37 = vpop.f32.mrf.mxu3 }
 0x3ae   : > { %7961 = vmatpush.bf16.msrb.mxu0 %v11177_v26  ;;  %v11746_v26 = vld [vmem:[%s14684_s22 + $0xed8] sm:$0xf0]  ;;  %7927 = vmatmul.bf16.vlgmr.msra.gmra.mxu1 %v15057_v44  ;;  %v11624_v0 = vld [vmem:[%s14684_s22 + $0xda0] sm:$0xf]  ;;  %v10089_v36 = vor.u32 %v13260_v54, %v10088_v27  ;;  %v7643_v45 = vadd.f32 %v7642_v37, %v7630_v34 }
 0x3af   : > { %v11749_v63 = vor.u32 %v13667_v55, %v11746_v26  ;;  %v13644_v38 = vld [vmem:[%s14684_s22 + $0xddc] sm:$0xf0]  ;;  %v11557_v26 = vor.u32 %v13619_v39, %v11554_v41 }
 0x3b0   : > { %7894 = vmatpush.bf16.msrb.mxu3 %v11813_v48  ;;  %7933 = vmatpush.bf16.msra.mxu2 %v10281_v43  ;;  %v11625_v35 = vor.u32 %v13644_v38, %v11624_v0  ;;  %v10024_v42 = vld [vmem:[%s14684_s22 + $0x120] sm:$0xf]  ;;  %v7656_v43 = vadd.f32 %v15582_v30, %v7643_v45  ;;  %v10157_v30 = vor.u32 %v13268_v49, %v10154_v16  ;;  %v13444_v0 = vld [vmem:[%s14684_s22 + $0x7a4] sm:$0xf] }
 0x3b1   : > { %7972 = vmatpush.bf16.msrb.mxu1 %v11817_v51  ;;  %v13244_v31 = vld [vmem:[%s14684_s22 + $0x15c] sm:$0xf0]  ;;  %v7722_v51 = vpop.f32.mrf.mxu1  ;;  %v10858_v38 = vld [vmem:[%s14684_s22 + $0x7e0] sm:$0xf0] }
 0x3b2   : > { %7962 = vmatpush.bf16.msrb.mxu0 %v11113_v15  ;;  %v7708_v15 = vadd.f32 %v15678_v61, %v3441_v60  ;;  %v13635_v61 = vld [vmem:[%s14684_s22 + $0xd9c] sm:$0xf]  ;;  %v13628_v48 = vld [vmem:[%s14684_s22 + $0xd5c] sm:$0xf0]  ;;  %v10025_v20 = vor.u32 %v13244_v31, %v10024_v42  ;;  %v7669_v53 = vadd.f32 %v15638_v62, %v7656_v43  ;;  %v13428_v45 = vld [vmem:[%s14684_s22 + $0x724] sm:$0xf] }
 0x3b3   : > { %v11621_v33 = vor.u32 %v13635_v61, %v11618_v57  ;;  %v9960_v60 = vld [vmem:[%s14684_s22 + $0xa0] sm:$0xf]  ;;  %v10794_v31 = vld [vmem:[%s14684_s22 + $0x760] sm:$0xf0] }
 0x3b4   : > { %7895 = vmatpush.bf16.msrb.mxu3 %v11749_v63  ;;  %7934 = vmatpush.bf16.msra.mxu2 %v10217_v6  ;;  %v15744_v24 = vadd.f32 %v7720_v21, %v7708_v15  ;;  %v13228_v5 = vld [vmem:[%s14684_s22 + $0xdc] sm:$0xf0]  ;;  %v13252_v6 = vld [vmem:[%s14684_s22 + $0x1a4] sm:$0xf]  ;;  %v15776_v7 = vadd.f32 %v7681_v12, %v7669_v53  ;;  %v7683_v14 = vpop.f32.mrf.mxu2  ;;  %v10861_v12 = vor.u32 %v13444_v0, %v10858_v38 }
 0x3b5   : > { %7973 = vmatpush.bf16.msrb.mxu1 %v11753_v59  ;;  %v13612_v63 = vld [vmem:[%s14684_s22 + $0xcdc] sm:$0xf0]  ;;  %v10090_v59 = vld [vmem:[%s14684_s22 + $0x1e0] sm:$0xf0]  ;;  %v9961_v62 = vor.u32 %v13228_v5, %v9960_v60  ;;  %v7644_v56 = vpop.f32.mrf.mxu3  ;;  %v10797_v51 = vor.u32 %v13428_v45, %v10794_v31 }
 0x3b6   : > { %7963 = vmatpush.bf16.msrb.mxu0 %v11049_v32  ;;  %v10218_v32 = vld [vmem:[%s14684_s22 + $0x2e0] sm:$0xf0]  ;;  %v9896_v15 = vld [vmem:[%s14684_s22 + $0x20] sm:$0xf]  ;;  %v10093_v19 = vor.u32 %v13252_v6, %v10090_v59 }
 0x3b7   : > { %v10221_v3 = vor.u32 %v13284_v29, %v10218_v32  ;;  %v13212_v18 = vld [vmem:[%s14684_s22 + $0x5c] sm:$0xf0]  ;;  %v13204_v49 = vld [vmem:[%s14684_s22 + $0x24] sm:$0xf] }
 0x3b8   : > { %7896 = vmatpush.bf16.msrb.mxu3 %v11685_v22  ;;  %7935 = vmatpush.bf16.msra.mxu2 %v10153_v52  ;;  %v11432_v2 = vld [vmem:[%s14684_s22 + $0xc20] sm:$0xf]  ;;  %v13236_v22 = vld [vmem:[%s14684_s22 + $0x124] sm:$0xf]  ;;  %v9897_v29 = vor.u32 %v13212_v18, %v9896_v15 }
 0x3b9   : > { %7974 = vmatpush.bf16.msrb.mxu1 %v11689_v25  ;;  %v13596_v21 = vld [vmem:[%s14684_s22 + $0xc5c] sm:$0xf0]  ;;  %v10026_v52 = vld [vmem:[%s14684_s22 + $0x160] sm:$0xf0] }
 0x3ba   : > { %7964 = vmatpush.bf16.msrb.mxu0 %v10985_v46  ;;  %v11560_v46 = vld [vmem:[%s14684_s22 + $0xd20] sm:$0xf]  ;;  %v11433_v32 = vor.u32 %v13596_v21, %v11432_v2  ;;  %v10029_v34 = vor.u32 %v13236_v22, %v10026_v52  ;;  %v9898_v16 = vld [vmem:[%s14684_s22 + $0x60] sm:$0xf0] }
 0x3bb   : > { %v11561_v47 = vor.u32 %v13628_v48, %v11560_v46  ;;  %v10856_v25 = vld [vmem:[%s14684_s22 + $0x7a0] sm:$0xf]  ;;  %v10730_v60 = vld [vmem:[%s14684_s22 + $0x6e0] sm:$0xf0]  ;;  %v9901_v5 = vor.u32 %v13204_v49, %v9898_v16 }
 0x3bc   : > { %7897 = vmatpush.bf16.msrb.mxu3 %v11621_v33  ;;  %7936 = vmatpush.bf16.msra.mxu2 %v10089_v36  ;;  %v13452_v61 = vld [vmem:[%s14684_s22 + $0x7dc] sm:$0xf0]  ;;  %v13220_v36 = vld [vmem:[%s14684_s22 + $0xa4] sm:$0xf]  ;;  %v10733_v6 = vor.u32 %v13412_v4, %v10730_v60 }
 0x3bd   : > { %7975 = vmatpush.bf16.msrb.mxu1 %v11625_v35  ;;  %v12392_v57 = vld [vmem:[%s14684_s22 + $0x13a0] sm:$0xf]  ;;  %v10857_v33 = vor.u32 %v13452_v61, %v10856_v25  ;;  %v9962_v35 = vld [vmem:[%s14684_s22 + $0xe0] sm:$0xf0] }
 0x3be   : > { %7965 = vmatpush.bf16.msrb.mxu0 %v10921_v11  ;;  %v15765_v55 = vpop.f32.mrf.mxu0  ;;  %v11496_v11 = vld [vmem:[%s14684_s22 + $0xca0] sm:$0xf]  ;;  %v9965_v46 = vor.u32 %v13220_v36, %v9962_v35  ;;  %v13828_v53 = vld [vmem:[%s14684_s22 + $0x13a4] sm:$0xf] }
 0x3bf   : > { %v11497_v1 = vor.u32 %v13612_v63, %v11496_v11  ;;  %v13836_v54 = vld [vmem:[%s14684_s22 + $0x13dc] sm:$0xf0]  ;;  %v10666_v56 = vld [vmem:[%s14684_s22 + $0x660] sm:$0xf0] }
 0x3c0   : > { %7898 = vmatpush.bf16.msrb.mxu3 %v11557_v26  ;;  %7937 = vmatpush.bf16.msra.mxu2 %v10025_v20  ;;  %v12393_v37 = vor.u32 %v13836_v54, %v12392_v57  ;;  %v10792_v39 = vld [vmem:[%s14684_s22 + $0x720] sm:$0xf]  ;;  %v13812_v14 = vld [vmem:[%s14684_s22 + $0x1324] sm:$0xf] }
 0x3c1   : > { %7966 = vmatmul.bf16.vlgmr.msrb.gmra.mxu0 %v14893_v10  ;;  %7976 = vmatpush.bf16.msrb.mxu1 %v11561_v47  ;;  %v13436_v41 = vld [vmem:[%s14684_s22 + $0x75c] sm:$0xf0]  ;;  %v12330_v15 = vld [vmem:[%s14684_s22 + $0x1360] sm:$0xf0] }
 0x3c2   : > { %8010 = vmatpush.bf16.msra.mxu0 %v10349_v9  ;;  %v11426_v9 = vld [vmem:[%s14684_s22 + $0xc58] sm:$0xf0]  ;;  %v12328_v42 = vld [vmem:[%s14684_s22 + $0x1320] sm:$0xf]  ;;  %v10793_v48 = vor.u32 %v13436_v41, %v10792_v39  ;;  %v12333_v61 = vor.u32 %v13812_v14, %v12330_v15  ;;  %v13796_v54 = vld [vmem:[%s14684_s22 + $0x12a4] sm:$0xf] }
 0x3c3   : > { %v10728_v26 = vld [vmem:[%s14684_s22 + $0x6a0] sm:$0xf]  ;;  %v12266_v0 = vld [vmem:[%s14684_s22 + $0x12e0] sm:$0xf0] }
 0x3c4   : > { %7899 = vmatpush.bf16.msrb.mxu3 %v11493_v8  ;;  %7938 = vmatpush.bf16.msra.mxu2 %v9961_v62  ;;  %v13420_v20 = vld [vmem:[%s14684_s22 + $0x6dc] sm:$0xf0]  ;;  %v10538_v45 = vld [vmem:[%s14684_s22 + $0x560] sm:$0xf0] }
 0x3c5   : > { %7977 = vmatpush.bf16.msrb.mxu1 %v11497_v1  ;;  %v12264_v47 = vld [vmem:[%s14684_s22 + $0x12a0] sm:$0xf]  ;;  %v10729_v11 = vor.u32 %v13420_v20, %v10728_v26  ;;  %v13396_v1 = vld [vmem:[%s14684_s22 + $0x624] sm:$0xf] }
 0x3c6   : > { %8011 = vmatpush.bf16.msra.mxu0 %v10285_v28  ;;  %v7761_v27 = vpop.f32.mrf.mxu0  ;;  %v11429_v28 = vor.u32 %v13587_v50, %v11426_v9  ;;  %v13804_v58 = vld [vmem:[%s14684_s22 + $0x12dc] sm:$0xf0]  ;;  %v10669_v21 = vor.u32 %v13396_v1, %v10666_v56  ;;  %v13780_v31 = vld [vmem:[%s14684_s22 + $0x1224] sm:$0xf] }
 0x3c7   : > { %v12265_v63 = vor.u32 %v13804_v58, %v12264_v47  ;;  %v10664_v59 = vld [vmem:[%s14684_s22 + $0x620] sm:$0xf]  ;;  %v13380_v27 = vld [vmem:[%s14684_s22 + $0x5a4] sm:$0xf] }
 0x3c8   : > { %7900 = vmatpush.bf16.msrb.mxu3 %v11429_v28  ;;  %7939 = vmatpush.bf16.msra.mxu2 %v9897_v29  ;;  %v13404_v8 = vld [vmem:[%s14684_s22 + $0x65c] sm:$0xf0]  ;;  %v10602_v28 = vld [vmem:[%s14684_s22 + $0x5e0] sm:$0xf0] }
 0x3c9   : > { %7978 = vmatpush.bf16.msrb.mxu1 %v11433_v32  ;;  %v12200_v50 = vld [vmem:[%s14684_s22 + $0x1220] sm:$0xf]  ;;  %v15821_v18 = vpop.f32.mrf.mxu1  ;;  %v10665_v2 = vor.u32 %v13404_v8, %v10664_v59  ;;  %v10605_v32 = vor.u32 %v13380_v27, %v10602_v28  ;;  %v13348_v58 = vld [vmem:[%s14684_s22 + $0x4a4] sm:$0xf] }
 0x3ca   : > { %8012 = vmatpush.bf16.msra.mxu0 %v10221_v3  ;;  %v13820_v3 = vld [vmem:[%s14684_s22 + $0x135c] sm:$0xf0]  ;;  %v10474_v4 = vld [vmem:[%s14684_s22 + $0x4e0] sm:$0xf0] }
 0x3cb   : > { %v12329_v43 = vor.u32 %v13820_v3, %v12328_v42  ;;  %7901 = vmatmul.bf16.vlgmr.msrb.gmra.mxu3 %v14946_v40  ;;  %7940 = vmatmul.bf16.vlgmr.msra.gmra.mxu2 %v14825_v23  ;;  %v13788_v62 = vld [vmem:[%s14684_s22 + $0x125c] sm:$0xf0]  ;;  %v13364_v3 = vld [vmem:[%s14684_s22 + $0x524] sm:$0xf] }
 0x3cc   : > { %7945 = vmatpush.bf16.msra.mxu3 %v10857_v33  ;;  %7984 = vmatpush.bf16.msrb.mxu2 %v12393_v37  ;;  %v10600_v22 = vld [vmem:[%s14684_s22 + $0x5a0] sm:$0xf]  ;;  %v7733_v33 = vpop.f32.mrf.mxu2  ;;  %v10541_v16 = vor.u32 %v13364_v3, %v10538_v45  ;;  %v13764_v60 = vld [vmem:[%s14684_s22 + $0x11a4] sm:$0xf] }
 0x3cd   : > { %8023 = vmatpush.bf16.msra.mxu1 %v10861_v12  ;;  %v13388_v52 = vld [vmem:[%s14684_s22 + $0x5dc] sm:$0xf0]  ;;  %v12269_v12 = vor.u32 %v13796_v54, %v12266_v0  ;;  %v15839_v41 = vadd.f32 %v7733_v33, %v15744_v24  ;;  %v10410_v56 = vld [vmem:[%s14684_s22 + $0x460] sm:$0xf0] }
 0x3ce   : > { %8013 = vmatpush.bf16.msra.mxu0 %v10157_v30  ;;  %7979 = vmatmul.bf16.vlgmr.msrb.gmra.mxu1 %v14946_v40  ;;  %v12394_v30 = vld [vmem:[%s14684_s22 + $0x13e0] sm:$0xf0]  ;;  %v12136_v25 = vld [vmem:[%s14684_s22 + $0x11a0] sm:$0xf]  ;;  %v10601_v38 = vor.u32 %v13388_v52, %v10600_v22 }
 0x3cf   : > { %v12397_v9 = vor.u32 %v13828_v53, %v12394_v30  ;;  %v13772_v57 = vld [vmem:[%s14684_s22 + $0x11dc] sm:$0xf0]  ;;  %v12138_v53 = vld [vmem:[%s14684_s22 + $0x11e0] sm:$0xf0] }
 0x3d0   : > { %7946 = vmatpush.bf16.msra.mxu3 %v10793_v48  ;;  %7985 = vmatpush.bf16.msrb.mxu2 %v12329_v43  ;;  %v12137_v29 = vor.u32 %v13772_v57, %v12136_v25  ;;  %v10536_v36 = vld [vmem:[%s14684_s22 + $0x520] sm:$0xf]  ;;  %v12141_v1 = vor.u32 %v13764_v60, %v12138_v53  ;;  %v13748_v14 = vld [vmem:[%s14684_s22 + $0x1124] sm:$0xf] }
 0x3d1   : > { %8024 = vmatpush.bf16.msra.mxu1 %v10797_v51  ;;  %v13372_v35 = vld [vmem:[%s14684_s22 + $0x55c] sm:$0xf0]  ;;  %v7774_v48 = vpop.f32.mrf.mxu1  ;;  %v12074_v15 = vld [vmem:[%s14684_s22 + $0x1160] sm:$0xf0] }
 0x3d2   : > { %8014 = vmatpush.bf16.msra.mxu0 %v10093_v19  ;;  %v12201_v19 = vor.u32 %v13788_v62, %v12200_v50  ;;  %v12072_v37 = vld [vmem:[%s14684_s22 + $0x1120] sm:$0xf]  ;;  %v13332_v62 = vld [vmem:[%s14684_s22 + $0x424] sm:$0xf]  ;;  %v12077_v54 = vor.u32 %v13748_v14, %v12074_v15 }
 0x3d3   : > { %v13756_v42 = vld [vmem:[%s14684_s22 + $0x115c] sm:$0xf0]  ;;  %v11370_v25 = vld [vmem:[%s14684_s22 + $0xbe0] sm:$0xf0]  ;;  %v10413_v28 = vor.u32 %v13332_v62, %v10410_v56  ;;  %v13565_v62 = vld [vmem:[%s14684_s22 + $0xb64] sm:$0xf0] }
 0x3d4   : > { %7947 = vmatpush.bf16.msra.mxu3 %v10729_v11  ;;  %7986 = vmatpush.bf16.msrb.mxu2 %v12265_v63  ;;  %v12073_v24 = vor.u32 %v13756_v42, %v12072_v37  ;;  %v10472_v43 = vld [vmem:[%s14684_s22 + $0x4a0] sm:$0xf]  ;;  %v7735_v8 = vpop.f32.mrf.mxu2  ;;  %v12906_v57 = vld [vmem:[%s14684_s22 + $0x17e0] sm:$0xf0] }
 0x3d5   : > { %8025 = vmatpush.bf16.msra.mxu1 %v10733_v6  ;;  %v13356_v51 = vld [vmem:[%s14684_s22 + $0x4dc] sm:$0xf0]  ;;  %v10477_v6 = vor.u32 %v13348_v58, %v10474_v4  ;;  %v11306_v37 = vld [vmem:[%s14684_s22 + $0xb60] sm:$0xf0]  ;;  %v13581_v58 = vld [vmem:[%s14684_s22 + $0xbe4] sm:$0xf0] }
 0x3d6   : > { %8015 = vmatpush.bf16.msra.mxu0 %v10029_v34  ;;  %v7694_v34 = vpop.f32.mrf.mxu3  ;;  %v12008_v26 = vld [vmem:[%s14684_s22 + $0x10a0] sm:$0xf]  ;;  %v10473_v30 = vor.u32 %v13356_v51, %v10472_v43  ;;  %v12842_v42 = vld [vmem:[%s14684_s22 + $0x1760] sm:$0xf0] }
 0x3d7   : > { %v15836_v39 = vadd.f32 %v7694_v34, %v15776_v7  ;;  %v10537_v7 = vor.u32 %v13372_v35, %v10536_v36  ;;  %v13740_v47 = vld [vmem:[%s14684_s22 + $0x10dc] sm:$0xf0]  ;;  %v13556_v35 = vld [vmem:[%s14684_s22 + $0xb24] sm:$0xf] }
 0x3d8   : > { %7948 = vmatpush.bf16.msra.mxu3 %v10665_v2  ;;  %7987 = vmatpush.bf16.msrb.mxu2 %v12201_v19  ;;  %v13340_v11 = vld [vmem:[%s14684_s22 + $0x45c] sm:$0xf0]  ;;  %v12009_v63 = vor.u32 %v13740_v47, %v12008_v26  ;;  %v11309_v48 = vor.u32 %v13556_v35, %v11306_v37  ;;  %v13540_v43 = vld [vmem:[%s14684_s22 + $0xaa4] sm:$0xf]  ;;  %v11376_v47 = vld [vmem:[%s14684_s22 + $0xba8] sm:$0xf] }
 0x3d9   : > { %8026 = vmatpush.bf16.msra.mxu1 %v10669_v21  ;;  %v11944_v50 = vld [vmem:[%s14684_s22 + $0x1020] sm:$0xf]  ;;  %v13572_v21 = vld [vmem:[%s14684_s22 + $0xba4] sm:$0xf] }
 0x3da   : > { %8016 = vmatpush.bf16.msra.mxu0 %v9965_v46  ;;  %v12202_v46 = vld [vmem:[%s14684_s22 + $0x1260] sm:$0xf0]  ;;  %v12904_v2 = vld [vmem:[%s14684_s22 + $0x17a0] sm:$0xf] }
 0x3db   : > { %v12205_v20 = vor.u32 %v13780_v31, %v12202_v46  ;;  %v13964_v19 = vld [vmem:[%s14684_s22 + $0x17dc] sm:$0xf0]  ;;  %v13716_v31 = vld [vmem:[%s14684_s22 + $0x1024] sm:$0xf] }
 0x3dc   : > { %7949 = vmatpush.bf16.msra.mxu3 %v10601_v38  ;;  %7988 = vmatpush.bf16.msrb.mxu2 %v12137_v29  ;;  %v12905_v0 = vor.u32 %v13964_v19, %v12904_v2  ;;  %v13732_v38 = vld [vmem:[%s14684_s22 + $0x10a4] sm:$0xf]  ;;  %v12840_v33 = vld [vmem:[%s14684_s22 + $0x1720] sm:$0xf] }
 0x3dd   : > { %8027 = vmatpush.bf16.msra.mxu1 %v10605_v32  ;;  %v12010_v29 = vld [vmem:[%s14684_s22 + $0x10e0] sm:$0xf0]  ;;  %v11373_v32 = vor.u32 %v13572_v21, %v11370_v25  ;;  %v13948_v36 = vld [vmem:[%s14684_s22 + $0x175c] sm:$0xf0] }
 0x3de   : > { %8017 = vmatpush.bf16.msra.mxu0 %v9901_v5  ;;  %v15846_v49 = vpop.f32.mrf.mxu0  ;;  %v10408_v5 = vld [vmem:[%s14684_s22 + $0x420] sm:$0xf]  ;;  %v7696_v59 = vpop.f32.mrf.mxu3  ;;  %v12013_v3 = vor.u32 %v13732_v38, %v12010_v29  ;;  %v12841_v45 = vor.u32 %v13948_v36, %v12840_v33  ;;  %v11946_v46 = vld [vmem:[%s14684_s22 + $0x1060] sm:$0xf0] }
 0x3df   : > { %v10409_v52 = vor.u32 %v13340_v11, %v10408_v5  ;;  %v11242_v51 = vld [vmem:[%s14684_s22 + $0xae0] sm:$0xf0]  ;;  %v11949_v4 = vor.u32 %v13716_v31, %v11946_v46  ;;  %v12712_v5 = vld [vmem:[%s14684_s22 + $0x1620] sm:$0xf] }
 0x3e0   : > { %7950 = vmatpush.bf16.msra.mxu3 %v10537_v7  ;;  %7989 = vmatpush.bf16.msrb.mxu2 %v12073_v24  ;;  %v12776_v24 = vld [vmem:[%s14684_s22 + $0x16a0] sm:$0xf]  ;;  %v13924_v26 = vld [vmem:[%s14684_s22 + $0x16a4] sm:$0xf]  ;;  %v11245_v53 = vor.u32 %v13540_v43, %v11242_v51 }
 0x3e1   : > { %8018 = vmatmul.bf16.vlgmr.msra.gmra.mxu0 %v14825_v23  ;;  %8028 = vmatpush.bf16.msra.mxu1 %v10541_v16  ;;  %v13932_v16 = vld [vmem:[%s14684_s22 + $0x16dc] sm:$0xf0]  ;;  %v11178_v59 = vld [vmem:[%s14684_s22 + $0xa60] sm:$0xf0] }
 0x3e2   : > { %8062 = vmatpush.bf16.msrb.mxu0 %v12397_v9  ;;  %v13724_v9 = vld [vmem:[%s14684_s22 + $0x105c] sm:$0xf0]  ;;  %v12777_v60 = vor.u32 %v13932_v16, %v12776_v24  ;;  %v13908_v8 = vld [vmem:[%s14684_s22 + $0x1624] sm:$0xf] }
 0x3e3   : > { %v11945_v27 = vor.u32 %v13724_v9, %v11944_v50  ;;  %v13916_v11 = vld [vmem:[%s14684_s22 + $0x165c] sm:$0xf0]  ;;  %v12714_v50 = vld [vmem:[%s14684_s22 + $0x1660] sm:$0xf0]  ;;  %v11312_v9 = vld [vmem:[%s14684_s22 + $0xb28] sm:$0xf] }
 0x3e4   : > { %7951 = vmatpush.bf16.msra.mxu3 %v10473_v30  ;;  %7990 = vmatpush.bf16.msrb.mxu2 %v12009_v63  ;;  %v13524_v63 = vld [vmem:[%s14684_s22 + $0xa24] sm:$0xf]  ;;  %v12713_v56 = vor.u32 %v13916_v11, %v12712_v5  ;;  %v12717_v15 = vor.u32 %v13908_v8, %v12714_v50  ;;  %v12648_v2 = vld [vmem:[%s14684_s22 + $0x15a0] sm:$0xf] }
 0x3e5   : > { %8029 = vmatpush.bf16.msra.mxu1 %v10477_v6  ;;  %v11377_v6 = vor.u32 %v13581_v58, %v11376_v47  ;;  %v11181_v14 = vor.u32 %v13524_v63, %v11178_v59  ;;  %v13900_v19 = vld [vmem:[%s14684_s22 + $0x15dc] sm:$0xf0]  ;;  %v13508_v21 = vld [vmem:[%s14684_s22 + $0x9a4] sm:$0xf] }
 0x3e6   : > { %8063 = vmatpush.bf16.msrb.mxu0 %v12333_v61  ;;  %v7813_v22 = vpop.f32.mrf.mxu0  ;;  %v13956_v61 = vld [vmem:[%s14684_s22 + $0x17a4] sm:$0xf]  ;;  %v12520_v16 = vld [vmem:[%s14684_s22 + $0x14a0] sm:$0xf] }
 0x3e7   : > { %v12909_v34 = vor.u32 %v13956_v61, %v12906_v57  ;;  %v11313_v22 = vor.u32 %v13565_v62, %v11312_v9  ;;  %v13892_v25 = vld [vmem:[%s14684_s22 + $0x15a4] sm:$0xf]  ;;  %v11248_v57 = vld [vmem:[%s14684_s22 + $0xaa8] sm:$0xf]  ;;  %v13868_v43 = vld [vmem:[%s14684_s22 + $0x14dc] sm:$0xf0] }
 0x3e8   : > { %7952 = vmatpush.bf16.msra.mxu3 %v10409_v52  ;;  %7991 = vmatpush.bf16.msrb.mxu2 %v11945_v27  ;;  %v11114_v52 = vld [vmem:[%s14684_s22 + $0x9e0] sm:$0xf0]  ;;  %v13549_v27 = vld [vmem:[%s14684_s22 + $0xae4] sm:$0xf0]  ;;  %v12456_v5 = vld [vmem:[%s14684_s22 + $0x1420] sm:$0xf] }
 0x3e9   : > { %8030 = vmatpush.bf16.msra.mxu1 %v10413_v28  ;;  %v12650_v61 = vld [vmem:[%s14684_s22 + $0x15e0] sm:$0xf0]  ;;  %v12649_v28 = vor.u32 %v13900_v19, %v12648_v2  ;;  %v11249_v36 = vor.u32 %v13549_v27, %v11248_v57  ;;  %v13852_v11 = vld [vmem:[%s14684_s22 + $0x145c] sm:$0xf0]  ;;  %v13501_v2 = vld [vmem:[%s14684_s22 + $0x964] sm:$0xf0] }
 0x3ea   : > { %8064 = vmatpush.bf16.msrb.mxu0 %v12269_v12  ;;  %v13940_v12 = vld [vmem:[%s14684_s22 + $0x1724] sm:$0xf]  ;;  %v11888_v57 = vld [vmem:[%s14684_s22 + $0xfa8] sm:$0xf] }
 0x3eb   : > { %v12845_v7 = vor.u32 %v13940_v12, %v12842_v42  ;;  %7953 = vmatmul.bf16.vlgmr.msra.gmra.mxu3 %v14859_v17  ;;  %7992 = vmatmul.bf16.vlgmr.msrb.gmra.mxu2 %v15002_v13  ;;  %v13492_v33 = vld [vmem:[%s14684_s22 + $0x924] sm:$0xf] }
 0x3ec   : > { %7997 = vmatpush.bf16.msrb.mxu3 %v12905_v0  ;;  %8036 = vmatpush.bf16.msra.mxu2 %v11373_v32  ;;  %v12653_v0 = vor.u32 %v13892_v25, %v12650_v61  ;;  %v12584_v32 = vld [vmem:[%s14684_s22 + $0x1520] sm:$0xf]  ;;  %v11050_v37 = vld [vmem:[%s14684_s22 + $0x960] sm:$0xf0]  ;;  %v12457_v25 = vor.u32 %v13852_v11, %v12456_v5  ;;  %v13325_v61 = vld [vmem:[%s14684_s22 + $0x3e4] sm:$0xf0] }
 0x3ed   : > { %8075 = vmatpush.bf16.msrb.mxu1 %v12909_v34  ;;  %v13884_v34 = vld [vmem:[%s14684_s22 + $0x155c] sm:$0xf0]  ;;  %v13876_v12 = vld [vmem:[%s14684_s22 + $0x1524] sm:$0xf] }
 0x3ee   : > { %8065 = vmatpush.bf16.msrb.mxu0 %v12205_v20  ;;  %v12778_v20 = vld [vmem:[%s14684_s22 + $0x16e0] sm:$0xf0]  ;;  %8031 = vmatmul.bf16.vlgmr.msra.gmra.mxu1 %v14859_v17  ;;  %v7746_v38 = vpop.f32.mrf.mxu3 }
 0x3ef   : > { %v12781_v30 = vor.u32 %v13924_v26, %v12778_v20  ;;  %v7747_v35 = vadd.f32 %v7746_v38, %v15839_v41  ;;  %v12586_v42 = vld [vmem:[%s14684_s22 + $0x1560] sm:$0xf0]  ;;  %v11053_v41 = vor.u32 %v13492_v33, %v11050_v37  ;;  %v10992_v38 = vld [vmem:[%s14684_s22 + $0x8a8] sm:$0xf] }
 0x3f0   : > { %7998 = vmatpush.bf16.msrb.mxu3 %v12841_v45  ;;  %8037 = vmatpush.bf16.msra.mxu2 %v11309_v48  ;;  %v15910_v29 = vpop.f32.mrf.mxu2  ;;  %v13533_v45 = vld [vmem:[%s14684_s22 + $0xa64] sm:$0xf0]  ;;  %v12589_v24 = vor.u32 %v13876_v12, %v12586_v42  ;;  %v13476_v51 = vld [vmem:[%s14684_s22 + $0x8a4] sm:$0xf] }
 0x3f1   : > { %8076 = vmatpush.bf16.msrb.mxu1 %v12845_v7  ;;  %v7760_v31 = vadd.f32 %v15765_v55, %v7747_v35  ;;  %v12585_v7 = vor.u32 %v13884_v34, %v12584_v32  ;;  %v10986_v20 = vld [vmem:[%s14684_s22 + $0x8e0] sm:$0xf0]  ;;  %v13485_v32 = vld [vmem:[%s14684_s22 + $0x8e4] sm:$0xf0] }
 0x3f2   : > { %8066 = vmatpush.bf16.msrb.mxu0 %v12141_v1  ;;  %v15899_v1 = vpop.f32.mrf.mxu1  ;;  %v13860_v47 = vld [vmem:[%s14684_s22 + $0x14a4] sm:$0xf]  ;;  %v10288_v37 = vld [vmem:[%s14684_s22 + $0x328] sm:$0xf] }
 0x3f3   : > { %v7773_v26 = vadd.f32 %v15821_v18, %v7760_v31  ;;  %v12522_v58 = vld [vmem:[%s14684_s22 + $0x14e0] sm:$0xf0]  ;;  %v10989_v18 = vor.u32 %v13476_v51, %v10986_v20  ;;  %v13309_v12 = vld [vmem:[%s14684_s22 + $0x364] sm:$0xf0] }
 0x3f4   : > { %7999 = vmatpush.bf16.msrb.mxu3 %v12777_v60  ;;  %8038 = vmatpush.bf16.msra.mxu2 %v11245_v53  ;;  %v13517_v60 = vld [vmem:[%s14684_s22 + $0x9e4] sm:$0xf0]  ;;  %v12525_v63 = vor.u32 %v13860_v47, %v12522_v58  ;;  %v13460_v8 = vld [vmem:[%s14684_s22 + $0x824] sm:$0xf]  ;;  %v13317_v47 = vld [vmem:[%s14684_s22 + $0x3ac] sm:$0xf] }
 0x3f5   : > { %8077 = vmatpush.bf16.msrb.mxu1 %v12781_v30  ;;  %v8575_v53 = vrot.slane %v7773_v26, 6  ;;  %v12521_v30 = vor.u32 %v13868_v43, %v12520_v16  ;;  %v10922_v50 = vld [vmem:[%s14684_s22 + $0x860] sm:$0xf0]  ;;  %v11824_v42 = vld [vmem:[%s14684_s22 + $0xf28] sm:$0xf] }
 0x3f6   : > { %8067 = vmatpush.bf16.msrb.mxu0 %v12077_v54  ;;  %v11117_v54 = vor.u32 %v13508_v21, %v11114_v52  ;;  %v13844_v9 = vld [vmem:[%s14684_s22 + $0x1424] sm:$0xf]  ;;  %v10925_v27 = vor.u32 %v13460_v8, %v10922_v50  ;;  %v10224_v51 = vld [vmem:[%s14684_s22 + $0x2a8] sm:$0xf]  ;;  %v10354_v58 = vld [vmem:[%s14684_s22 + $0x3e8] sm:$0xf0] }
 0x3f7   : > { %v15940_v62 = vsel %vm8584_vm14, %v15836_v39, %v8575_v53  ;;  %v13700_v19 = vld [vmem:[%s14684_s22 + $0xfa4] sm:$0xf]  ;;  %v13709_v39 = vld [vmem:[%s14684_s22 + $0xfe4] sm:$0xf0]  ;;  %v13301_v50 = vld [vmem:[%s14684_s22 + $0x32c] sm:$0xf] }
 0x3f8   : > { %8000 = vmatpush.bf16.msrb.mxu3 %v12713_v56  ;;  %8039 = vmatpush.bf16.msra.mxu2 %v11181_v14  ;;  %v7787_v59 = vpop.f32.mrf.mxu2  ;;  %v12458_v14 = vld [vmem:[%s14684_s22 + $0x1460] sm:$0xf0]  ;;  %v11889_v33 = vor.u32 %v13709_v39, %v11888_v57  ;;  %v13293_v26 = vld [vmem:[%s14684_s22 + $0x2e4] sm:$0xf0] }
 0x3f9   : > { %8078 = vmatpush.bf16.msrb.mxu1 %v12717_v15  ;;  %v11056_v15 = vld [vmem:[%s14684_s22 + $0x928] sm:$0xf]  ;;  %v11882_v21 = vld [vmem:[%s14684_s22 + $0xfe0] sm:$0xf0]  ;;  %v10225_v53 = vor.u32 %v13293_v26, %v10224_v51 }
 0x3fa   : > { %8068 = vmatpush.bf16.msrb.mxu0 %v12013_v3  ;;  %v11184_v3 = vld [vmem:[%s14684_s22 + $0xa28] sm:$0xf]  ;;  %v7826_v46 = vpop.f32.mrf.mxu1  ;;  %v11818_v35 = vld [vmem:[%s14684_s22 + $0xf60] sm:$0xf0] }
 0x3fb   : > { %v11185_v55 = vor.u32 %v13533_v45, %v11184_v3  ;;  %v13693_v3 = vld [vmem:[%s14684_s22 + $0xf64] sm:$0xf0]  ;;  %v10993_v45 = vor.u32 %v13485_v32, %v10992_v38  ;;  %v13668_v16 = vld [vmem:[%s14684_s22 + $0xea4] sm:$0xf] }
 0x3fc   : > { %8001 = vmatpush.bf16.msrb.mxu3 %v12649_v28  ;;  %8040 = vmatpush.bf16.msra.mxu2 %v11117_v54  ;;  %v12461_v28 = vor.u32 %v13844_v9, %v12458_v14  ;;  %v11057_v54 = vor.u32 %v13501_v2, %v11056_v15  ;;  %v10928_v46 = vld [vmem:[%s14684_s22 + $0x828] sm:$0xf]  ;;  %v11754_v43 = vld [vmem:[%s14684_s22 + $0xee0] sm:$0xf0]  ;;  %v10290_v9 = vld [vmem:[%s14684_s22 + $0x368] sm:$0xf0] }
 0x3fd   : > { %8079 = vmatpush.bf16.msrb.mxu1 %v12653_v0  ;;  %v11885_v0 = vor.u32 %v13700_v19, %v11882_v21  ;;  %v13677_v20 = vld [vmem:[%s14684_s22 + $0xee4] sm:$0xf0]  ;;  %v13652_v5 = vld [vmem:[%s14684_s22 + $0xe24] sm:$0xf] }
 0x3fe   : > { %8069 = vmatpush.bf16.msrb.mxu0 %v11949_v4  ;;  %v15922_v48 = vpop.f32.mrf.mxu0  ;;  %v11120_v4 = vld [vmem:[%s14684_s22 + $0x9a8] sm:$0xf]  ;;  %v11690_v11 = vld [vmem:[%s14684_s22 + $0xe60] sm:$0xf0] }
 0x3ff   : > { %v11121_v56 = vor.u32 %v13517_v60, %v11120_v4  ;;  %v11757_v60 = vor.u32 %v13668_v16, %v11754_v43  ;;  %v11696_v59 = vld [vmem:[%s14684_s22 + $0xe28] sm:$0xf]  ;;  %v11693_v2 = vor.u32 %v13652_v5, %v11690_v11  ;;  %v10098_v5 = vld [vmem:[%s14684_s22 + $0x1e8] sm:$0xf0] }
 0x400   : > { %8002 = vmatpush.bf16.msrb.mxu3 %v12585_v7  ;;  %8041 = vmatpush.bf16.msra.mxu2 %v11053_v41  ;;  %v13469_v7 = vld [vmem:[%s14684_s22 + $0x864] sm:$0xf0]  ;;  %v10289_v41 = vor.u32 %v13309_v12, %v10288_v37  ;;  %v11562_v37 = vld [vmem:[%s14684_s22 + $0xd60] sm:$0xf0] }
 0x401   : > { %8070 = vmatmul.bf16.vlgmr.msrb.gmra.mxu0 %v15002_v13  ;;  %8080 = vmatpush.bf16.msrb.mxu1 %v12589_v24  ;;  %v11825_v24 = vor.u32 %v13693_v3, %v11824_v42  ;;  %v10929_v4 = vor.u32 %v13469_v7, %v10928_v46  ;;  %v13661_v8 = vld [vmem:[%s14684_s22 + $0xe64] sm:$0xf0]  ;;  %v13269_v46 = vld [vmem:[%s14684_s22 + $0x22c] sm:$0xf] }
 0x402   : > { %8114 = vmatpush.bf16.msra.mxu0 %v11377_v6  ;;  %v7748_v6 = vpop.f32.mrf.mxu3  ;;  %v11697_v21 = vor.u32 %v13661_v8, %v11696_v59  ;;  %v13261_v57 = vld [vmem:[%s14684_s22 + $0x1e4] sm:$0xf0]  ;;  %v10162_v7 = vld [vmem:[%s14684_s22 + $0x268] sm:$0xf0] }
 0x403   : > { %v13277_v6 = vld [vmem:[%s14684_s22 + $0x264] sm:$0xf0] }
 0x404   : > { %8003 = vmatpush.bf16.msrb.mxu3 %v12521_v30  ;;  %8042 = vmatpush.bf16.msra.mxu2 %v10989_v18  ;;  %v10160_v18 = vld [vmem:[%s14684_s22 + $0x228] sm:$0xf] }
 0x405   : > { %8081 = vmatpush.bf16.msrb.mxu1 %v12525_v63  ;;  %v10357_v63 = vor.u32 %v13317_v47, %v10354_v58  ;;  %v10161_v19 = vor.u32 %v13277_v6, %v10160_v18  ;;  %v11632_v39 = vld [vmem:[%s14684_s22 + $0xda8] sm:$0xf]  ;;  %v13588_v18 = vld [vmem:[%s14684_s22 + $0xc24] sm:$0xf] }
 0x406   : > { %8115 = vmatpush.bf16.msra.mxu0 %v11313_v22  ;;  %v10352_v22 = vld [vmem:[%s14684_s22 + $0x3a8] sm:$0xf]  ;;  %v7865_v52 = vpop.f32.mrf.mxu0 }
 0x407   : > { %v10353_v34 = vor.u32 %v13325_v61, %v10352_v22  ;;  %v13636_v22 = vld [vmem:[%s14684_s22 + $0xda4] sm:$0xf]  ;;  %v10293_v61 = vor.u32 %v13301_v50, %v10290_v9  ;;  %v10032_v12 = vld [vmem:[%s14684_s22 + $0x128] sm:$0xf] }
 0x408   : > { %8004 = vmatpush.bf16.msrb.mxu3 %v12457_v25  ;;  %8043 = vmatpush.bf16.msra.mxu2 %v10925_v27  ;;  %v11626_v52 = vld [vmem:[%s14684_s22 + $0xde0] sm:$0xf0]  ;;  %v10096_v25 = vld [vmem:[%s14684_s22 + $0x1a8] sm:$0xf] }
 0x409   : > { %8082 = vmatpush.bf16.msrb.mxu1 %v12461_v28  ;;  %v13645_v27 = vld [vmem:[%s14684_s22 + $0xde4] sm:$0xf0]  ;;  %v13285_v28 = vld [vmem:[%s14684_s22 + $0x2ac] sm:$0xf]  ;;  %v11629_v38 = vor.u32 %v13636_v22, %v11626_v52  ;;  %v10097_v32 = vor.u32 %v13261_v57, %v10096_v25 }
 0x40a   : > { %8116 = vmatpush.bf16.msra.mxu0 %v11249_v36  ;;  %v13684_v36 = vld [vmem:[%s14684_s22 + $0xf24] sm:$0xf]  ;;  %v13245_v3 = vld [vmem:[%s14684_s22 + $0x164] sm:$0xf0]  ;;  %v10034_v22 = vld [vmem:[%s14684_s22 + $0x168] sm:$0xf0] }
 0x40b   : > { %v11821_v31 = vor.u32 %v13684_v36, %v11818_v35  ;;  %8005 = vmatmul.bf16.vlgmr.msrb.gmra.mxu3 %v15057_v44  ;;  %8044 = vmatmul.bf16.vlgmr.msra.gmra.mxu2 %v14893_v10  ;;  %v15984_v15 = vpop.f32.mrf.mxu1  ;;  %v13620_v35 = vld [vmem:[%s14684_s22 + $0xd24] sm:$0xf]  ;;  %v10033_v51 = vor.u32 %v13245_v3, %v10032_v12  ;;  %v9968_v47 = vld [vmem:[%s14684_s22 + $0xa8] sm:$0xf] }
 0x40c   : > { %8049 = vmatpush.bf16.msra.mxu3 %v11885_v0  ;;  %8088 = vmatpush.bf16.msrb.mxu2 %v10353_v34  ;;  %v11633_v34 = vor.u32 %v13645_v27, %v11632_v39  ;;  %v11565_v43 = vor.u32 %v13620_v35, %v11562_v37  ;;  %v9904_v50 = vld [vmem:[%s14684_s22 + $0x28] sm:$0xf]  ;;  %v9970_v35 = vld [vmem:[%s14684_s22 + $0xe8] sm:$0xf0] }
 0x40d   : > { %8127 = vmatpush.bf16.msra.mxu1 %v11889_v33  ;;  %v13213_v9 = vld [vmem:[%s14684_s22 + $0x64] sm:$0xf0] }
 0x40e   : > { %8117 = vmatpush.bf16.msra.mxu0 %v11185_v55  ;;  %v11760_v55 = vld [vmem:[%s14684_s22 + $0xea8] sm:$0xf]  ;;  %8083 = vmatmul.bf16.vlgmr.msrb.gmra.mxu1 %v15057_v44  ;;  %v7798_v33 = vpop.f32.mrf.mxu3  ;;  %v15996_v36 = vpop.f32.mrf.mxu2 }
 0x40f   : > { %v11761_v30 = vor.u32 %v13677_v20, %v11760_v55  ;;  %v13604_v55 = vld [vmem:[%s14684_s22 + $0xca4] sm:$0xf]  ;;  %v10864_v52 = vld [vmem:[%s14684_s22 + $0x7a8] sm:$0xf] }
 0x410   : > { %8050 = vmatpush.bf16.msra.mxu3 %v11821_v31  ;;  %8089 = vmatpush.bf16.msrb.mxu2 %v10289_v41  ;;  %v13629_v31 = vld [vmem:[%s14684_s22 + $0xd64] sm:$0xf0]  ;;  %v11498_v20 = vld [vmem:[%s14684_s22 + $0xce0] sm:$0xf0] }
 0x411   : > { %8128 = vmatpush.bf16.msra.mxu1 %v11825_v24  ;;  %v11501_v11 = vor.u32 %v13604_v55, %v11498_v20  ;;  %v13453_v25 = vld [vmem:[%s14684_s22 + $0x7e4] sm:$0xf0] }
 0x412   : > { %8118 = vmatpush.bf16.msra.mxu0 %v11121_v56  ;;  %v15981_v56 = vld [vmem:[%s14690_s29] sm:$0xff]  ;;  %v13837_v27 = vld [vmem:[%s14684_s22 + $0x13e4] sm:$0xf0] }
 0x413   : > { %v3442_v14 = vperm.slane %v15981_v56, 6  ;;  %v7878_v24 = vpop.f32.mrf.mxu1  ;;  %v12336_v3 = vld [vmem:[%s14684_s22 + $0x1328] sm:$0xf] }
 0x414   : > { %8051 = vmatpush.bf16.msra.mxu3 %v11757_v60  ;;  %8090 = vmatpush.bf16.msrb.mxu2 %v10225_v53  ;;  %v11504_v60 = vld [vmem:[%s14684_s22 + $0xca8] sm:$0xf]  ;;  %v13205_v24 = vld [vmem:[%s14684_s22 + $0x2c] sm:$0xf] }
 0x415   : > { %8129 = vmatpush.bf16.msra.mxu1 %v11761_v30  ;;  %v7786_v0 = vadd.f32 %v15910_v29, %v3442_v14  ;;  %v13613_v53 = vld [vmem:[%s14684_s22 + $0xce4] sm:$0xf0]  ;;  %v13253_v30 = vld [vmem:[%s14684_s22 + $0x1ac] sm:$0xf] }
 0x416   : > { %8119 = vmatpush.bf16.msra.mxu0 %v11057_v54  ;;  %v10226_v54 = vld [vmem:[%s14684_s22 + $0x2e8] sm:$0xf0]  ;;  %v11505_v6 = vor.u32 %v13613_v53, %v11504_v60  ;;  %v7800_v59 = vpop.f32.mrf.mxu3  ;;  %v7839_v8 = vpop.f32.mrf.mxu2  ;;  %v11440_v14 = vld [vmem:[%s14684_s22 + $0xc28] sm:$0xf] }
 0x417   : > { %v10229_v42 = vor.u32 %v13285_v28, %v10226_v54  ;;  %v7799_v29 = vadd.f32 %v7798_v33, %v7786_v0  ;;  %v13445_v28 = vld [vmem:[%s14684_s22 + $0x7ac] sm:$0xf]  ;;  %v9905_v0 = vor.u32 %v13213_v9, %v9904_v50  ;;  %v10736_v55 = vld [vmem:[%s14684_s22 + $0x6a8] sm:$0xf] }
 0x418   : > { %8052 = vmatpush.bf16.msra.mxu3 %v11693_v2  ;;  %8091 = vmatpush.bf16.msrb.mxu2 %v10161_v19  ;;  %v10101_v2 = vor.u32 %v13253_v30, %v10098_v5  ;;  %v13597_v19 = vld [vmem:[%s14684_s22 + $0xc64] sm:$0xf0]  ;;  %v10866_v54 = vld [vmem:[%s14684_s22 + $0x7e8] sm:$0xf0] }
 0x419   : > { %8130 = vmatpush.bf16.msra.mxu1 %v11697_v21  ;;  %v7812_v41 = vadd.f32 %v15846_v49, %v7799_v29  ;;  %v10165_v49 = vor.u32 %v13269_v46, %v10162_v7  ;;  %v13237_v21 = vld [vmem:[%s14684_s22 + $0x12c] sm:$0xf]  ;;  %v10869_v12 = vor.u32 %v13445_v28, %v10866_v54  ;;  %v13437_v29 = vld [vmem:[%s14684_s22 + $0x764] sm:$0xf0] }
 0x41a   : > { %8120 = vmatpush.bf16.msra.mxu0 %v10993_v45  ;;  %v11568_v45 = vld [vmem:[%s14684_s22 + $0xd28] sm:$0xf]  ;;  %v13221_v33 = vld [vmem:[%s14684_s22 + $0xac] sm:$0xf] }
 0x41b   : > { %v11569_v26 = vor.u32 %v13629_v31, %v11568_v45  ;;  %v16013_v58 = vadd.f32 %v15899_v1, %v7812_v41  ;;  %v13821_v45 = vld [vmem:[%s14684_s22 + $0x1364] sm:$0xf0]  ;;  %v13429_v31 = vld [vmem:[%s14684_s22 + $0x72c] sm:$0xf]  ;;  %v9973_v7 = vor.u32 %v13221_v33, %v9970_v35 }
 0x41c   : > { %8053 = vmatpush.bf16.msra.mxu3 %v11629_v38  ;;  %8092 = vmatpush.bf16.msrb.mxu2 %v10097_v32  ;;  %v11441_v38 = vor.u32 %v13597_v19, %v11440_v14  ;;  %v10037_v32 = vor.u32 %v13237_v21, %v10034_v22  ;;  %v10802_v46 = vld [vmem:[%s14684_s22 + $0x768] sm:$0xf0]  ;;  %v13421_v20 = vld [vmem:[%s14684_s22 + $0x6e4] sm:$0xf0] }
 0x41d   : > { %8131 = vmatpush.bf16.msra.mxu1 %v11633_v34  ;;  %v10865_v34 = vor.u32 %v13453_v25, %v10864_v52  ;;  %v10738_v60 = vld [vmem:[%s14684_s22 + $0x6e8] sm:$0xf0]  ;;  %v12208_v59 = vld [vmem:[%s14684_s22 + $0x1228] sm:$0xf] }
 0x41e   : > { %8121 = vmatpush.bf16.msra.mxu0 %v10929_v4  ;;  %v16007_v16 = vpop.f32.mrf.mxu0  ;;  %v13229_v4 = vld [vmem:[%s14684_s22 + $0xe4] sm:$0xf0]  ;;  %v13829_v53 = vld [vmem:[%s14684_s22 + $0x13ac] sm:$0xf] }
 0x41f   : > { %v9969_v1 = vor.u32 %v13229_v4, %v9968_v47  ;;  %v12272_v47 = vld [vmem:[%s14684_s22 + $0x12a8] sm:$0xf]  ;;  %v13413_v4 = vld [vmem:[%s14684_s22 + $0x6ac] sm:$0xf] }
 0x420   : > { %8054 = vmatpush.bf16.msra.mxu3 %v11565_v43  ;;  %8093 = vmatpush.bf16.msrb.mxu2 %v10033_v51  ;;  %v9906_v43 = vld [vmem:[%s14684_s22 + $0x68] sm:$0xf0]  ;;  %v12337_v51 = vor.u32 %v13821_v45, %v12336_v3  ;;  %v13789_v50 = vld [vmem:[%s14684_s22 + $0x1264] sm:$0xf0] }
 0x421   : > { %8122 = vmatmul.bf16.vlgmr.msra.gmra.mxu0 %v14893_v10  ;;  %8132 = vmatpush.bf16.msra.mxu1 %v11569_v26  ;;  %v10805_v26 = vor.u32 %v13429_v31, %v10802_v46  ;;  %v12402_v30 = vld [vmem:[%s14684_s22 + $0x13e8] sm:$0xf0]  ;;  %v9909_v5 = vor.u32 %v13205_v24, %v9906_v43  ;;  %v12209_v52 = vor.u32 %v13789_v50, %v12208_v59  ;;  %v13773_v28 = vld [vmem:[%s14684_s22 + $0x11e4] sm:$0xf0] }
 0x422   : > { %8166 = vmatpush.bf16.msrb.mxu0 %v10357_v63  ;;  %v11434_v63 = vld [vmem:[%s14684_s22 + $0xc60] sm:$0xf0]  ;;  %v12405_v8 = vor.u32 %v13829_v53, %v12402_v30  ;;  %v13397_v9 = vld [vmem:[%s14684_s22 + $0x62c] sm:$0xf]  ;;  %v12080_v3 = vld [vmem:[%s14684_s22 + $0x1128] sm:$0xf] }
 0x423   : > { %v11437_v39 = vor.u32 %v13588_v18, %v11434_v63  ;;  %v10741_v63 = vor.u32 %v13413_v4, %v10738_v60  ;;  %v10674_v14 = vld [vmem:[%s14684_s22 + $0x668] sm:$0xf0]  ;;  %v13757_v31 = vld [vmem:[%s14684_s22 + $0x1164] sm:$0xf0] }
 0x424   : > { %8055 = vmatpush.bf16.msra.mxu3 %v11501_v11  ;;  %8094 = vmatpush.bf16.msrb.mxu2 %v9969_v1  ;;  %v10737_v11 = vor.u32 %v13421_v20, %v10736_v55  ;;  %v10672_v1 = vld [vmem:[%s14684_s22 + $0x628] sm:$0xf]  ;;  %v12338_v19 = vld [vmem:[%s14684_s22 + $0x1368] sm:$0xf0]  ;;  %v10677_v25 = vor.u32 %v13397_v9, %v10674_v14  ;;  %v12081_v55 = vor.u32 %v13757_v31, %v12080_v3 }
 0x425   : > { %8133 = vmatpush.bf16.msra.mxu1 %v11505_v6  ;;  %v13405_v6 = vld [vmem:[%s14684_s22 + $0x664] sm:$0xf0]  ;;  %v13381_v54 = vld [vmem:[%s14684_s22 + $0x5ac] sm:$0xf] }
 0x426   : > { %8167 = vmatpush.bf16.msrb.mxu0 %v10293_v61  ;;  %v12400_v61 = vld [vmem:[%s14684_s22 + $0x13a8] sm:$0xf]  ;;  %v7917_v57 = vpop.f32.mrf.mxu0  ;;  %v10673_v22 = vor.u32 %v13405_v6, %v10672_v1  ;;  %v13365_v46 = vld [vmem:[%s14684_s22 + $0x52c] sm:$0xf] }
 0x427   : > { %v12401_v37 = vor.u32 %v13837_v27, %v12400_v61  ;;  %v10608_v61 = vld [vmem:[%s14684_s22 + $0x5a8] sm:$0xf]  ;;  %v12210_v24 = vld [vmem:[%s14684_s22 + $0x1268] sm:$0xf0] }
 0x428   : > { %8056 = vmatpush.bf16.msra.mxu3 %v11437_v39  ;;  %8095 = vmatpush.bf16.msrb.mxu2 %v9905_v0  ;;  %v13389_v57 = vld [vmem:[%s14684_s22 + $0x5e4] sm:$0xf0]  ;;  %v10610_v0 = vld [vmem:[%s14684_s22 + $0x5e8] sm:$0xf0] }
 0x429   : > { %8134 = vmatpush.bf16.msra.mxu1 %v11441_v38  ;;  %v12144_v39 = vld [vmem:[%s14684_s22 + $0x11a8] sm:$0xf]  ;;  %v13797_v38 = vld [vmem:[%s14684_s22 + $0x12ac] sm:$0xf]  ;;  %v10613_v35 = vor.u32 %v13381_v54, %v10610_v0 }
 0x42a   : > { %8168 = vmatpush.bf16.msrb.mxu0 %v10229_v42  ;;  %v10800_v42 = vld [vmem:[%s14684_s22 + $0x728] sm:$0xf]  ;;  %v12145_v33 = vor.u32 %v13773_v28, %v12144_v39  ;;  %v13349_v30 = vld [vmem:[%s14684_s22 + $0x4ac] sm:$0xf] }
 0x42b   : > { %v10801_v41 = vor.u32 %v13437_v29, %v10800_v42  ;;  %8057 = vmatmul.bf16.vlgmr.msra.gmra.mxu3 %v14946_v40  ;;  %8096 = vmatmul.bf16.vlgmr.msrb.gmra.mxu2 %v14825_v23  ;;  %v16063_v21 = vpop.f32.mrf.mxu1  ;;  %v10544_v42 = vld [vmem:[%s14684_s22 + $0x528] sm:$0xf]  ;;  %v11378_v0 = vld [vmem:[%s14684_s22 + $0xbe8] sm:$0xf0] }
 0x42c   : > { %8101 = vmatpush.bf16.msrb.mxu3 %v10865_v34  ;;  %8140 = vmatpush.bf16.msra.mxu2 %v12401_v37  ;;  %v10609_v34 = vor.u32 %v13389_v57, %v10608_v61  ;;  %v13373_v29 = vld [vmem:[%s14684_s22 + $0x564] sm:$0xf0]  ;;  %v12082_v61 = vld [vmem:[%s14684_s22 + $0x1168] sm:$0xf0] }
 0x42d   : > { %8179 = vmatpush.bf16.msrb.mxu1 %v10869_v12  ;;  %v12016_v4 = vld [vmem:[%s14684_s22 + $0x10a8] sm:$0xf]  ;;  %v12018_v3 = vld [vmem:[%s14684_s22 + $0x10e8] sm:$0xf0] }
 0x42e   : > { %8169 = vmatpush.bf16.msrb.mxu0 %v10165_v49  ;;  %v13805_v49 = vld [vmem:[%s14684_s22 + $0x12e4] sm:$0xf0]  ;;  %8135 = vmatmul.bf16.vlgmr.msra.gmra.mxu1 %v14946_v40  ;;  %v16074_v37 = vpop.f32.mrf.mxu3  ;;  %v16076_v12 = vpop.f32.mrf.mxu2 }
 0x42f   : > { %v12273_v18 = vor.u32 %v13805_v49, %v12272_v47  ;;  %v10480_v47 = vld [vmem:[%s14684_s22 + $0x4a8] sm:$0xf] }
 0x430   : > { %8102 = vmatpush.bf16.msrb.mxu3 %v10801_v41  ;;  %8141 = vmatpush.bf16.msra.mxu2 %v12337_v51  ;;  %v13781_v41 = vld [vmem:[%s14684_s22 + $0x122c] sm:$0xf]  ;;  %v13357_v49 = vld [vmem:[%s14684_s22 + $0x4e4] sm:$0xf0] }
 0x431   : > { %8180 = vmatpush.bf16.msrb.mxu1 %v10805_v26  ;;  %v10545_v26 = vor.u32 %v13373_v29, %v10544_v42  ;;  %v12213_v60 = vor.u32 %v13781_v41, %v12210_v24  ;;  %v13741_v53 = vld [vmem:[%s14684_s22 + $0x10e4] sm:$0xf0]  ;;  %v13733_v29 = vld [vmem:[%s14684_s22 + $0x10ac] sm:$0xf] }
 0x432   : > { %8170 = vmatpush.bf16.msrb.mxu0 %v10101_v2  ;;  %v13813_v2 = vld [vmem:[%s14684_s22 + $0x132c] sm:$0xf]  ;;  %v10416_v1 = vld [vmem:[%s14684_s22 + $0x428] sm:$0xf]  ;;  %v12017_v59 = vor.u32 %v13741_v53, %v12016_v4 }
 0x433   : > { %v12341_v27 = vor.u32 %v13813_v2, %v12338_v19  ;;  %v7930_v43 = vpop.f32.mrf.mxu1  ;;  %v13341_v6 = vld [vmem:[%s14684_s22 + $0x464] sm:$0xf0]  ;;  %v13333_v19 = vld [vmem:[%s14684_s22 + $0x42c] sm:$0xf] }
 0x434   : > { %8103 = vmatpush.bf16.msrb.mxu3 %v10737_v11  ;;  %8142 = vmatpush.bf16.msra.mxu2 %v12273_v18  ;;  %v13765_v11 = vld [vmem:[%s14684_s22 + $0x11ac] sm:$0xf]  ;;  %v11952_v14 = vld [vmem:[%s14684_s22 + $0x1028] sm:$0xf]  ;;  %v10417_v54 = vor.u32 %v13341_v6, %v10416_v1  ;;  %v11384_v1 = vld [vmem:[%s14684_s22 + $0xbb0] sm:$0xf] }
 0x435   : > { %8181 = vmatpush.bf16.msrb.mxu1 %v10741_v63  ;;  %v12146_v18 = vld [vmem:[%s14684_s22 + $0x11e8] sm:$0xf0]  ;;  %v10481_v63 = vor.u32 %v13357_v49, %v10480_v47  ;;  %v13725_v2 = vld [vmem:[%s14684_s22 + $0x1064] sm:$0xf0]  ;;  %v13582_v6 = vld [vmem:[%s14684_s22 + $0xbec] sm:$0xf0] }
 0x436   : > { %8171 = vmatpush.bf16.msrb.mxu0 %v10037_v32  ;;  %v12274_v32 = vld [vmem:[%s14684_s22 + $0x12e8] sm:$0xf0]  ;;  %v7852_v50 = vpop.f32.mrf.mxu3  ;;  %v7891_v9 = vpop.f32.mrf.mxu2  ;;  %v12912_v57 = vld [vmem:[%s14684_s22 + $0x17a8] sm:$0xf] }
 0x437   : > { %v12277_v45 = vor.u32 %v13797_v38, %v12274_v32  ;;  %v13965_v39 = vld [vmem:[%s14684_s22 + $0x17e4] sm:$0xf0]  ;;  %v13957_v38 = vld [vmem:[%s14684_s22 + $0x17ac] sm:$0xf] }
 0x438   : > { %8104 = vmatpush.bf16.msrb.mxu3 %v10673_v22  ;;  %8143 = vmatpush.bf16.msra.mxu2 %v12209_v52  ;;  %v12149_v22 = vor.u32 %v13765_v11, %v12146_v18  ;;  %v10418_v52 = vld [vmem:[%s14684_s22 + $0x468] sm:$0xf0]  ;;  %v12913_v42 = vor.u32 %v13965_v39, %v12912_v57  ;;  %v12784_v53 = vld [vmem:[%s14684_s22 + $0x16a8] sm:$0xf]  ;;  %v11320_v57 = vld [vmem:[%s14684_s22 + $0xb30] sm:$0xf] }
 0x439   : > { %8182 = vmatpush.bf16.msrb.mxu1 %v10677_v25  ;;  %v13749_v25 = vld [vmem:[%s14684_s22 + $0x112c] sm:$0xf]  ;;  %v13566_v39 = vld [vmem:[%s14684_s22 + $0xb6c] sm:$0xf0] }
 0x43a   : > { %8172 = vmatpush.bf16.msrb.mxu0 %v9973_v7  ;;  %v10546_v7 = vld [vmem:[%s14684_s22 + $0x568] sm:$0xf0] }
 0x43b   : > { %v10549_v20 = vor.u32 %v13365_v46, %v10546_v7  ;;  %v12914_v32 = vld [vmem:[%s14684_s22 + $0x17e8] sm:$0xf0]  ;;  %v12848_v46 = vld [vmem:[%s14684_s22 + $0x1728] sm:$0xf] }
 0x43c   : > { %8105 = vmatpush.bf16.msrb.mxu3 %v10609_v34  ;;  %8144 = vmatpush.bf16.msra.mxu2 %v12145_v33  ;;  %v11953_v34 = vor.u32 %v13725_v2, %v11952_v14  ;;  %v10421_v33 = vor.u32 %v13333_v19, %v10418_v52  ;;  %v12917_v31 = vor.u32 %v13957_v38, %v12914_v32  ;;  %v13949_v7 = vld [vmem:[%s14684_s22 + $0x1764] sm:$0xf0]  ;;  %v13557_v41 = vld [vmem:[%s14684_s22 + $0xb2c] sm:$0xf] }
 0x43d   : > { %8183 = vmatpush.bf16.msrb.mxu1 %v10613_v35  ;;  %v12085_v35 = vor.u32 %v13749_v25, %v12082_v61  ;;  %v11314_v24 = vld [vmem:[%s14684_s22 + $0xb68] sm:$0xf0]  ;;  %v12720_v2 = vld [vmem:[%s14684_s22 + $0x1628] sm:$0xf]  ;;  %v11385_v52 = vor.u32 %v13582_v6, %v11384_v1 }
 0x43e   : > { %8173 = vmatpush.bf16.msrb.mxu0 %v9909_v5  ;;  %v16086_v51 = vpop.f32.mrf.mxu0  ;;  %v10482_v5 = vld [vmem:[%s14684_s22 + $0x4e8] sm:$0xf0]  ;;  %v11317_v4 = vor.u32 %v13557_v41, %v11314_v24  ;;  %v13917_v19 = vld [vmem:[%s14684_s22 + $0x1664] sm:$0xf0] }
 0x43f   : > { %v13941_v43 = vld [vmem:[%s14684_s22 + $0x172c] sm:$0xf]  ;;  %v12656_v32 = vld [vmem:[%s14684_s22 + $0x15a8] sm:$0xf] }
 0x440   : > { %8106 = vmatpush.bf16.msrb.mxu3 %v10545_v26  ;;  %8145 = vmatpush.bf16.msra.mxu2 %v12081_v55  ;;  %v12850_v26 = vld [vmem:[%s14684_s22 + $0x1768] sm:$0xf0]  ;;  %v12021_v55 = vor.u32 %v13733_v29, %v12018_v3 }
 0x441   : > { %8174 = vmatmul.bf16.vlgmr.msrb.gmra.mxu0 %v14825_v23  ;;  %8184 = vmatpush.bf16.msrb.mxu1 %v10549_v20  ;;  %v12849_v20 = vor.u32 %v13949_v7, %v12848_v46  ;;  %v13717_v47 = vld [vmem:[%s14684_s22 + $0x102c] sm:$0xf] }
 0x442   : > { %8218 = vmatpush.bf16.msra.mxu0 %v12405_v8  ;;  %v10485_v8 = vor.u32 %v13349_v30, %v10482_v5  ;;  %v11954_v49 = vld [vmem:[%s14684_s22 + $0x1068] sm:$0xf0]  ;;  %v13933_v30 = vld [vmem:[%s14684_s22 + $0x16e4] sm:$0xf0] }
 0x443   : > { %v13541_v5 = vld [vmem:[%s14684_s22 + $0xaac] sm:$0xf]  ;;  %v12785_v50 = vor.u32 %v13933_v30, %v12784_v53  ;;  %v11192_v30 = vld [vmem:[%s14684_s22 + $0xa30] sm:$0xf] }
 0x444   : > { %8107 = vmatpush.bf16.msrb.mxu3 %v10481_v63  ;;  %8146 = vmatpush.bf16.msra.mxu2 %v12017_v59  ;;  %v11250_v11 = vld [vmem:[%s14684_s22 + $0xae8] sm:$0xf0]  ;;  %v3443_v59 = vperm.slane %v15981_v56, 7 }
 0x445   : > { %8185 = vmatpush.bf16.msrb.mxu1 %v10485_v8  ;;  %v13925_v18 = vld [vmem:[%s14684_s22 + $0x16ac] sm:$0xf]  ;;  %v11957_v8 = vor.u32 %v13717_v47, %v11954_v49  ;;  %v11253_v9 = vor.u32 %v13541_v5, %v11250_v11  ;;  %v13534_v5 = vld [vmem:[%s14684_s22 + $0xa6c] sm:$0xf0] }
 0x446   : > { %8219 = vmatpush.bf16.msra.mxu0 %v12341_v27  ;;  %v13573_v27 = vld [vmem:[%s14684_s22 + $0xbac] sm:$0xf]  ;;  %v7969_v28 = vpop.f32.mrf.mxu0 }
 0x447   : > { %v12786_v63 = vld [vmem:[%s14684_s22 + $0x16e8] sm:$0xf0] }
 0x448   : > { %8108 = vmatpush.bf16.msrb.mxu3 %v10417_v54  ;;  %8147 = vmatpush.bf16.msra.mxu2 %v11953_v34  ;;  %v12789_v14 = vor.u32 %v13925_v18, %v12786_v63  ;;  %v11186_v25 = vld [vmem:[%s14684_s22 + $0xa68] sm:$0xf0]  ;;  %v12721_v54 = vor.u32 %v13917_v19, %v12720_v2  ;;  %v13901_v34 = vld [vmem:[%s14684_s22 + $0x15e4] sm:$0xf0]  ;;  %v11128_v19 = vld [vmem:[%s14684_s22 + $0x9b0] sm:$0xf] }
 0x449   : > { %8186 = vmatpush.bf16.msrb.mxu1 %v10421_v33  ;;  %v13909_v61 = vld [vmem:[%s14684_s22 + $0x162c] sm:$0xf]  ;;  %v12657_v7 = vor.u32 %v13901_v34, %v12656_v32 }
 0x44a   : > { %8220 = vmatpush.bf16.msra.mxu0 %v12277_v45  ;;  %v11381_v45 = vor.u32 %v13573_v27, %v11378_v0  ;;  %v12722_v56 = vld [vmem:[%s14684_s22 + $0x1668] sm:$0xf0]  ;;  %v7864_v27 = vadd.f32 %v15922_v48, %v3443_v59  ;;  %v11321_v48 = vor.u32 %v13566_v39, %v11320_v57  ;;  %v12528_v59 = vld [vmem:[%s14684_s22 + $0x14a8] sm:$0xf] }
 0x44b   : > { %8109 = vmatmul.bf16.vlgmr.msrb.gmra.mxu3 %v14859_v17  ;;  %8148 = vmatmul.bf16.vlgmr.msra.gmra.mxu2 %v15002_v13  ;;  %v16141_v28 = vpop.f32.mrf.mxu1  ;;  %v12725_v38 = vor.u32 %v13909_v61, %v12722_v56  ;;  %v13509_v33 = vld [vmem:[%s14684_s22 + $0x9ac] sm:$0xf]  ;;  %v13853_v57 = vld [vmem:[%s14684_s22 + $0x1464] sm:$0xf0] }
 0x44c   : > { %8153 = vmatpush.bf16.msra.mxu3 %v12913_v42  ;;  %8192 = vmatpush.bf16.msrb.mxu2 %v11381_v45  ;;  %v11122_v42 = vld [vmem:[%s14684_s22 + $0x9e8] sm:$0xf0]  ;;  %v11256_v45 = vld [vmem:[%s14684_s22 + $0xab0] sm:$0xf] }
 0x44d   : > { %8231 = vmatpush.bf16.msra.mxu1 %v12917_v31  ;;  %v13893_v29 = vld [vmem:[%s14684_s22 + $0x15ac] sm:$0xf]  ;;  %v13550_v31 = vld [vmem:[%s14684_s22 + $0xaec] sm:$0xf0] }
 0x44e   : > { %8221 = vmatpush.bf16.msra.mxu0 %v12213_v60  ;;  %v12853_v60 = vor.u32 %v13941_v43, %v12850_v26  ;;  %8187 = vmatmul.bf16.vlgmr.msrb.gmra.mxu1 %v14859_v17  ;;  %v12658_v3 = vld [vmem:[%s14684_s22 + $0x15e8] sm:$0xf0]  ;;  %v7902_v24 = vpop.f32.mrf.mxu3  ;;  %v16154_v43 = vpop.f32.mrf.mxu2  ;;  %v12592_v26 = vld [vmem:[%s14684_s22 + $0x1528] sm:$0xf]  ;;  %v11257_v47 = vor.u32 %v13550_v31, %v11256_v45  ;;  %v10360_v31 = vld [vmem:[%s14684_s22 + $0x3b0] sm:$0xf] }
 0x44f   : > { %v12661_v41 = vor.u32 %v13893_v29, %v12658_v3  ;;  %v12594_v53 = vld [vmem:[%s14684_s22 + $0x1568] sm:$0xf0] }
 0x450   : > { %8154 = vmatpush.bf16.msra.mxu3 %v12849_v20  ;;  %8193 = vmatpush.bf16.msrb.mxu2 %v11317_v4  ;;  %v13493_v20 = vld [vmem:[%s14684_s22 + $0x92c] sm:$0xf] }
 0x451   : > { %8232 = vmatpush.bf16.msra.mxu1 %v12853_v60  ;;  %v11058_v4 = vld [vmem:[%s14684_s22 + $0x968] sm:$0xf0] }
 0x452   : > { %8222 = vmatpush.bf16.msra.mxu0 %v12149_v22  ;;  %v13525_v22 = vld [vmem:[%s14684_s22 + $0xa2c] sm:$0xf]  ;;  %v11061_v1 = vor.u32 %v13493_v20, %v11058_v4 }
 0x453   : > { %v11189_v0 = vor.u32 %v13525_v22, %v11186_v25  ;;  %v13877_v60 = vld [vmem:[%s14684_s22 + $0x152c] sm:$0xf]  ;;  %v13518_v22 = vld [vmem:[%s14684_s22 + $0x9ec] sm:$0xf0] }
 0x454   : > { %8155 = vmatpush.bf16.msra.mxu3 %v12785_v50  ;;  %8194 = vmatpush.bf16.msrb.mxu2 %v11253_v9  ;;  %v12597_v6 = vor.u32 %v13877_v60, %v12594_v53  ;;  %v11193_v50 = vor.u32 %v13534_v5, %v11192_v30  ;;  %v10994_v9 = vld [vmem:[%s14684_s22 + $0x8e8] sm:$0xf0]  ;;  %v10296_v30 = vld [vmem:[%s14684_s22 + $0x330] sm:$0xf] }
 0x455   : > { %8233 = vmatpush.bf16.msra.mxu1 %v12789_v14  ;;  %v13861_v14 = vld [vmem:[%s14684_s22 + $0x14ac] sm:$0xf]  ;;  %v13310_v5 = vld [vmem:[%s14684_s22 + $0x36c] sm:$0xf0] }
 0x456   : > { %8223 = vmatpush.bf16.msra.mxu0 %v12085_v35  ;;  %v7877_v35 = vadd.f32 %v15984_v15, %v7864_v27  ;;  %v11125_v15 = vor.u32 %v13509_v33, %v11122_v42  ;;  %v12530_v2 = vld [vmem:[%s14684_s22 + $0x14e8] sm:$0xf0]  ;;  %v13502_v42 = vld [vmem:[%s14684_s22 + $0x96c] sm:$0xf0] }
 0x457   : > { %v13461_v39 = vld [vmem:[%s14684_s22 + $0x82c] sm:$0xf]  ;;  %v12533_v27 = vor.u32 %v13861_v14, %v12530_v2  ;;  %v13294_v14 = vld [vmem:[%s14684_s22 + $0x2ec] sm:$0xf0] }
 0x458   : > { %v7890_v46 = vadd.f32 %v16076_v12, %v7877_v35  ;;  %8156 = vmatpush.bf16.msra.mxu3 %v12721_v54  ;;  %8195 = vmatpush.bf16.msrb.mxu2 %v11189_v0  ;;  %v7838_v12 = vadd.f32 %v15996_v36, %v16013_v58  ;;  %v7982_v36 = vpop.f32.mrf.mxu1  ;;  %v7904_v54 = vpop.f32.mrf.mxu3  ;;  %v13845_v32 = vld [vmem:[%s14684_s22 + $0x142c] sm:$0xf]  ;;  %v11129_v35 = vor.u32 %v13518_v22, %v11128_v19  ;;  %v11768_v2 = vld [vmem:[%s14684_s22 + $0xeb0] sm:$0xf] }
 0x459   : > { %8234 = vmatpush.bf16.msra.mxu1 %v12725_v38  ;;  %v7943_v0 = vpop.f32.mrf.mxu2  ;;  %v10930_v38 = vld [vmem:[%s14684_s22 + $0x868] sm:$0xf0]  ;;  %v13678_v19 = vld [vmem:[%s14684_s22 + $0xeec] sm:$0xf0] }
 0x45a   : > { %8224 = vmatpush.bf16.msra.mxu0 %v12021_v55  ;;  %v13885_v55 = vld [vmem:[%s14684_s22 + $0x1564] sm:$0xf0]  ;;  %v7903_v49 = vadd.f32 %v7902_v24, %v7890_v46  ;;  %v7851_v11 = vadd.f32 %v16074_v37, %v7838_v12  ;;  %v12466_v34 = vld [vmem:[%s14684_s22 + $0x1468] sm:$0xf0]  ;;  %v13326_v46 = vld [vmem:[%s14684_s22 + $0x3ec] sm:$0xf0] }
 0x45b   : > { %v12593_v63 = vor.u32 %v13885_v55, %v12592_v26  ;;  %v13869_v37 = vld [vmem:[%s14684_s22 + $0x14e4] sm:$0xf0]  ;;  %v13701_v29 = vld [vmem:[%s14684_s22 + $0xfac] sm:$0xf]  ;;  %v13710_v24 = vld [vmem:[%s14684_s22 + $0xfec] sm:$0xf0]  ;;  %v12469_v26 = vor.u32 %v13845_v32, %v12466_v34 }
 0x45c   : > { %8157 = vmatpush.bf16.msra.mxu3 %v12657_v7  ;;  %v7916_v18 = vadd.f32 %v16007_v16, %v7903_v49  ;;  %8196 = vmatpush.bf16.msrb.mxu2 %v11125_v15  ;;  %v8576_v25 = vrot.slane %v7851_v11, 4  ;;  %v12529_v56 = vor.u32 %v13869_v37, %v12528_v59  ;;  %v11890_v45 = vld [vmem:[%s14684_s22 + $0xfe8] sm:$0xf0]  ;;  %v11000_v12 = vld [vmem:[%s14684_s22 + $0x8b0] sm:$0xf]  ;;  %v10361_v49 = vor.u32 %v13326_v46, %v10360_v31 }
 0x45d   : > { %8235 = vmatpush.bf16.msra.mxu1 %v12661_v41  ;;  %v11896_v41 = vld [vmem:[%s14684_s22 + $0xfb0] sm:$0xf]  ;;  %v11893_v20 = vor.u32 %v13701_v29, %v11890_v45  ;;  %v13685_v60 = vld [vmem:[%s14684_s22 + $0xf2c] sm:$0xf]  ;;  %v10297_v37 = vor.u32 %v13310_v5, %v10296_v30 }
 0x45e   : > { %8225 = vmatpush.bf16.msra.mxu0 %v11957_v8  ;;  %v16168_v58 = vpop.f32.mrf.mxu0  ;;  %v13477_v8 = vld [vmem:[%s14684_s22 + $0x8ac] sm:$0xf]  ;;  %v7929_v16 = vadd.f32 %v16063_v21, %v7916_v18  ;;  %v11897_v4 = vor.u32 %v13710_v24, %v11896_v41  ;;  %v11832_v11 = vld [vmem:[%s14684_s22 + $0xf30] sm:$0xf] }
 0x45f   : > { %v10997_v21 = vor.u32 %v13477_v8, %v10994_v9  ;;  %v11826_v53 = vld [vmem:[%s14684_s22 + $0xf68] sm:$0xf0]  ;;  %v13694_v18 = vld [vmem:[%s14684_s22 + $0xf6c] sm:$0xf0] }
 0x460   : > { %v8577_v61 = vrot.slane %v7929_v16, 2  ;;  %8158 = vmatpush.bf16.msra.mxu3 %v12593_v63  ;;  %8197 = vmatpush.bf16.msrb.mxu2 %v11061_v1  ;;  %v16206_v36 = vld [vmem:[%s14690_s29 + $0x8] sm:$0xff]  ;;  %v11829_v1 = vor.u32 %v13685_v60, %v11826_v53  ;;  %v13470_v59 = vld [vmem:[%s14684_s22 + $0x86c] sm:$0xf0]  ;;  %v11833_v8 = vor.u32 %v13694_v18, %v11832_v11 }
 0x461   : > { %8226 = vmatmul.bf16.vlgmr.msra.gmra.mxu0 %v15002_v13  ;;  %8236 = vmatpush.bf16.msra.mxu1 %v12597_v6  ;;  %v10936_v6 = vld [vmem:[%s14684_s22 + $0x830] sm:$0xf]  ;;  %v13669_v16 = vld [vmem:[%s14684_s22 + $0xeac] sm:$0xf]  ;;  %v3445_v22 = vperm.slane %v16206_v36, 1 }
 0x462   : > { %8270 = vmatpush.bf16.msrb.mxu0 %v11385_v52  ;;  %v12464_v52 = vld [vmem:[%s14684_s22 + $0x1428] sm:$0xf]  ;;  %v8591_v33 = vsel %vm8586_vm15, %v8576_v25, %v8577_v61  ;;  %v10232_v9 = vld [vmem:[%s14684_s22 + $0x2b0] sm:$0xf]  ;;  %v10362_v25 = vld [vmem:[%s14684_s22 + $0x3f0] sm:$0xf0]  ;;  %v10937_v61 = vor.u32 %v13470_v59, %v10936_v6 }
 0x463   : > { %v8592_v3 = vsel %vm8588_vm0, %v15940_v62, %v8591_v33  ;;  %v12465_v15 = vor.u32 %v13853_v57, %v12464_v52  ;;  %v10933_v62 = vor.u32 %v13461_v39, %v10930_v38  ;;  %v13318_v52 = vld [vmem:[%s14684_s22 + $0x3b4] sm:$0xf]  ;;  %v10233_v57 = vor.u32 %v13294_v14, %v10232_v9  ;;  %v10168_v54 = vld [vmem:[%s14684_s22 + $0x230] sm:$0xf]  ;;  %v13621_v30 = vld [vmem:[%s14684_s22 + $0xd2c] sm:$0xf] }
 0x464   : > { %8604 = vst [vmem:[%s15694_s13 + $0x8] sm:$0xff] %v8592_v3  ;;  %8159 = vmatpush.bf16.msra.mxu3 %v12529_v56  ;;  %8198 = vmatpush.bf16.msrb.mxu2 %v10997_v21  ;;  %v11769_v39 = vor.u32 %v13678_v19, %v11768_v2  ;;  %v13653_v21 = vld [vmem:[%s14684_s22 + $0xe2c] sm:$0xf]  ;;  %v10365_v0 = vor.u32 %v13318_v52, %v10362_v25  ;;  %v13278_v38 = vld [vmem:[%s14684_s22 + $0x26c] sm:$0xf0] }
 0x465   : > { %8237 = vmatpush.bf16.msra.mxu1 %v12533_v27  ;;  %v11698_v27 = vld [vmem:[%s14684_s22 + $0xe68] sm:$0xf0]  ;;  %v11704_v32 = vld [vmem:[%s14684_s22 + $0xe30] sm:$0xf]  ;;  %v8020_v33 = vadd.f32 %v16168_v58, %v3445_v22  ;;  %v10169_v31 = vor.u32 %v13278_v38, %v10168_v54  ;;  %v13270_v59 = vld [vmem:[%s14684_s22 + $0x234] sm:$0xf] }
 0x466   : > { %8271 = vmatpush.bf16.msrb.mxu0 %v11321_v48  ;;  %v11064_v48 = vld [vmem:[%s14684_s22 + $0x930] sm:$0xf]  ;;  %v8021_v7 = vpop.f32.mrf.mxu0  ;;  %v11701_v3 = vor.u32 %v13653_v21, %v11698_v27  ;;  %v13637_v58 = vld [vmem:[%s14684_s22 + $0xdac] sm:$0xf]  ;;  %v10106_v21 = vld [vmem:[%s14684_s22 + $0x1f0] sm:$0xf0] }
 0x467   : > { %v11065_v55 = vor.u32 %v13502_v42, %v11064_v48  ;;  %v13662_v34 = vld [vmem:[%s14684_s22 + $0xe6c] sm:$0xf0]  ;;  %v10298_v48 = vld [vmem:[%s14684_s22 + $0x370] sm:$0xf0]  ;;  %v3444_v42 = vperm.slane %v16206_v36, 0 }
 0x468   : > { %8160 = vmatpush.bf16.msra.mxu3 %v12465_v15  ;;  %8199 = vmatpush.bf16.msrb.mxu2 %v10933_v62  ;;  %v11705_v46 = vor.u32 %v13662_v34, %v11704_v32  ;;  %v11634_v7 = vld [vmem:[%s14684_s22 + $0xde8] sm:$0xf0]  ;;  %v10104_v15 = vld [vmem:[%s14684_s22 + $0x1b0] sm:$0xf] }
 0x469   : > { %8238 = vmatpush.bf16.msra.mxu1 %v12469_v26  ;;  %v13262_v24 = vld [vmem:[%s14684_s22 + $0x1ec] sm:$0xf0]  ;;  %v11570_v5 = vld [vmem:[%s14684_s22 + $0xd68] sm:$0xf0] }
 0x46a   : > { %8272 = vmatpush.bf16.msrb.mxu0 %v11257_v47  ;;  %v13486_v47 = vld [vmem:[%s14684_s22 + $0x8ec] sm:$0xf0]  ;;  %v11573_v9 = vor.u32 %v13621_v30, %v11570_v5  ;;  %v13605_v19 = vld [vmem:[%s14684_s22 + $0xcac] sm:$0xf] }
 0x46b   : > { %v11001_v63 = vor.u32 %v13486_v47, %v11000_v12  ;;  %8161 = vmatmul.bf16.vlgmr.msra.gmra.mxu3 %v15057_v44  ;;  %8200 = vmatmul.bf16.vlgmr.msrb.gmra.mxu2 %v14893_v10  ;;  %v8032_v29 = vpop.f32.mrf.mxu1  ;;  %v11640_v62 = vld [vmem:[%s14684_s22 + $0xdb0] sm:$0xf]  ;;  %v7942_v12 = vadd.f32 %v16154_v43, %v3444_v42  ;;  %v11637_v47 = vor.u32 %v13637_v58, %v11634_v7  ;;  %v11506_v22 = vld [vmem:[%s14684_s22 + $0xce8] sm:$0xf0] }
 0x46c   : > { %8205 = vmatpush.bf16.msrb.mxu3 %v11893_v20  ;;  %8244 = vmatpush.bf16.msra.mxu2 %v10361_v49  ;;  %v16232_v45 = vadd.f32 %v8032_v29, %v8020_v33  ;;  %v13646_v26 = vld [vmem:[%s14684_s22 + $0xdec] sm:$0xf0]  ;;  %v10234_v20 = vld [vmem:[%s14684_s22 + $0x2f0] sm:$0xf0]  ;;  %v10105_v49 = vor.u32 %v13262_v24, %v10104_v15  ;;  %v11509_v54 = vor.u32 %v13605_v19, %v11506_v22  ;;  %v11442_v38 = vld [vmem:[%s14684_s22 + $0xc68] sm:$0xf0] }
 0x46d   : > { %8283 = vmatpush.bf16.msrb.mxu1 %v11897_v4  ;;  %v11641_v4 = vor.u32 %v13646_v26, %v11640_v62  ;;  %v10040_v11 = vld [vmem:[%s14684_s22 + $0x130] sm:$0xf]  ;;  %v13446_v26 = vld [vmem:[%s14684_s22 + $0x7b4] sm:$0xf] }
 0x46e   : > { %8273 = vmatpush.bf16.msrb.mxu0 %v11193_v50  ;;  %v11762_v50 = vld [vmem:[%s14684_s22 + $0xee8] sm:$0xf0]  ;;  %8239 = vmatmul.bf16.vlgmr.msra.gmra.mxu1 %v15057_v44  ;;  %v7954_v60 = vpop.f32.mrf.mxu3  ;;  %v7993_v53 = vpop.f32.mrf.mxu2  ;;  %v13246_v43 = vld [vmem:[%s14684_s22 + $0x16c] sm:$0xf0] }
 0x46f   : > { %v11765_v56 = vor.u32 %v13669_v16, %v11762_v50  ;;  %v13630_v6 = vld [vmem:[%s14684_s22 + $0xd6c] sm:$0xf0]  ;;  %v10041_v14 = vor.u32 %v13246_v43, %v10040_v11  ;;  %v13430_v43 = vld [vmem:[%s14684_s22 + $0x734] sm:$0xf] }
 0x470   : > { %8206 = vmatpush.bf16.msrb.mxu3 %v11829_v1  ;;  %8245 = vmatpush.bf16.msra.mxu2 %v10297_v37  ;;  %v11576_v1 = vld [vmem:[%s14684_s22 + $0xd30] sm:$0xf]  ;;  %v10170_v37 = vld [vmem:[%s14684_s22 + $0x270] sm:$0xf0] }
 0x471   : > { %8284 = vmatpush.bf16.msrb.mxu1 %v11833_v8  ;;  %v11577_v2 = vor.u32 %v13630_v6, %v11576_v1  ;;  %v9976_v52 = vld [vmem:[%s14684_s22 + $0xb0] sm:$0xf]  ;;  %v10810_v1 = vld [vmem:[%s14684_s22 + $0x770] sm:$0xf0] }
 0x472   : > { %8274 = vmatpush.bf16.msrb.mxu0 %v11129_v35  ;;  %v13302_v35 = vld [vmem:[%s14684_s22 + $0x334] sm:$0xf]  ;;  %v11448_v42 = vld [vmem:[%s14684_s22 + $0xc30] sm:$0xf] }
 0x473   : > { %v10301_v41 = vor.u32 %v13302_v35, %v10298_v48  ;;  %v8034_v16 = vpop.f32.mrf.mxu1  ;;  %v9912_v35 = vld [vmem:[%s14684_s22 + $0x30] sm:$0xf] }
 0x474   : > { %8207 = vmatpush.bf16.msrb.mxu3 %v11765_v56  ;;  %8246 = vmatpush.bf16.msra.mxu2 %v10233_v57  ;;  %v11512_v56 = vld [vmem:[%s14684_s22 + $0xcb0] sm:$0xf] }
 0x475   : > { %8285 = vmatpush.bf16.msrb.mxu1 %v11769_v39  ;;  %v13614_v57 = vld [vmem:[%s14684_s22 + $0xcec] sm:$0xf0]  ;;  %v13254_v39 = vld [vmem:[%s14684_s22 + $0x1b4] sm:$0xf] }
 0x476   : > { %8275 = vmatpush.bf16.msrb.mxu0 %v11065_v55  ;;  %v13286_v55 = vld [vmem:[%s14684_s22 + $0x2b4] sm:$0xf]  ;;  %v11513_v32 = vor.u32 %v13614_v57, %v11512_v56  ;;  %v7956_v34 = vpop.f32.mrf.mxu3  ;;  %v7995_v33 = vpop.f32.mrf.mxu2  ;;  %v13214_v48 = vld [vmem:[%s14684_s22 + $0x6c] sm:$0xf0]  ;;  %v10109_v29 = vor.u32 %v13254_v39, %v10106_v21 }
 0x477   : > { %v10237_v18 = vor.u32 %v13286_v55, %v10234_v20  ;;  %v10872_v58 = vld [vmem:[%s14684_s22 + $0x7b0] sm:$0xf]  ;;  %v10874_v55 = vld [vmem:[%s14684_s22 + $0x7f0] sm:$0xf0]  ;;  %v9913_v20 = vor.u32 %v13214_v48, %v9912_v35 }
 0x478   : > { %8208 = vmatpush.bf16.msrb.mxu3 %v11701_v3  ;;  %8247 = vmatpush.bf16.msra.mxu2 %v10169_v31  ;;  %v13598_v3 = vld [vmem:[%s14684_s22 + $0xc6c] sm:$0xf0]  ;;  %v13238_v31 = vld [vmem:[%s14684_s22 + $0x134] sm:$0xf]  ;;  %v10877_v30 = vor.u32 %v13446_v26, %v10874_v55 }
 0x479   : > { %8286 = vmatpush.bf16.msrb.mxu1 %v11705_v46  ;;  %v10042_v46 = vld [vmem:[%s14684_s22 + $0x170] sm:$0xf0]  ;;  %v13454_v7 = vld [vmem:[%s14684_s22 + $0x7ec] sm:$0xf0] }
 0x47a   : > { %8276 = vmatpush.bf16.msrb.mxu0 %v11001_v63  ;;  %v7955_v63 = vadd.f32 %v7954_v60, %v7942_v12  ;;  %v12408_v15 = vld [vmem:[%s14684_s22 + $0x13b0] sm:$0xf]  ;;  %v11449_v12 = vor.u32 %v13598_v3, %v11448_v42  ;;  %v9978_v60 = vld [vmem:[%s14684_s22 + $0xf0] sm:$0xf0] }
 0x47b   : > { %v13838_v62 = vld [vmem:[%s14684_s22 + $0x13ec] sm:$0xf0]  ;;  %v13398_v34 = vld [vmem:[%s14684_s22 + $0x634] sm:$0xf] }
 0x47c   : > { %8209 = vmatpush.bf16.msrb.mxu3 %v11637_v47  ;;  %v7968_v8 = vadd.f32 %v16086_v51, %v7955_v63  ;;  %8248 = vmatpush.bf16.msra.mxu2 %v10105_v49  ;;  %v10173_v51 = vor.u32 %v13270_v59, %v10170_v37  ;;  %v10045_v47 = vor.u32 %v13238_v31, %v10042_v46  ;;  %v10808_v5 = vld [vmem:[%s14684_s22 + $0x730] sm:$0xf]  ;;  %v13206_v37 = vld [vmem:[%s14684_s22 + $0x34] sm:$0xf] }
 0x47d   : > { %8287 = vmatpush.bf16.msrb.mxu1 %v11641_v4  ;;  %v10873_v49 = vor.u32 %v13454_v7, %v10872_v58  ;;  %v13222_v4 = vld [vmem:[%s14684_s22 + $0xb4] sm:$0xf]  ;;  %v13438_v11 = vld [vmem:[%s14684_s22 + $0x76c] sm:$0xf0] }
 0x47e   : > { %8277 = vmatpush.bf16.msrb.mxu0 %v10937_v61  ;;  %v16253_v50 = vpop.f32.mrf.mxu0  ;;  %v7981_v25 = vadd.f32 %v16141_v28, %v7968_v8  ;;  %v13230_v61 = vld [vmem:[%s14684_s22 + $0xec] sm:$0xf0]  ;;  %v9981_v6 = vor.u32 %v13222_v4, %v9978_v60  ;;  %v10809_v59 = vor.u32 %v13438_v11, %v10808_v5  ;;  %v9914_v8 = vld [vmem:[%s14684_s22 + $0x70] sm:$0xf0] }
 0x47f   : > { %v9977_v28 = vor.u32 %v13230_v61, %v9976_v52  ;;  %v13822_v63 = vld [vmem:[%s14684_s22 + $0x136c] sm:$0xf0]  ;;  %v13414_v52 = vld [vmem:[%s14684_s22 + $0x6b4] sm:$0xf]  ;;  %v9917_v56 = vor.u32 %v13206_v37, %v9914_v8 }
 0x480   : > { %v16264_v27 = vadd.f32 %v7993_v53, %v7981_v25  ;;  %8210 = vmatpush.bf16.msrb.mxu3 %v11573_v9  ;;  %8249 = vmatpush.bf16.msra.mxu2 %v10041_v14  ;;  %v12409_v53 = vor.u32 %v13838_v62, %v12408_v15  ;;  %v10813_v9 = vor.u32 %v13430_v43, %v10810_v1  ;;  %v10744_v14 = vld [vmem:[%s14684_s22 + $0x6b0] sm:$0xf]  ;;  %v10746_v25 = vld [vmem:[%s14684_s22 + $0x6f0] sm:$0xf0] }
 0x481   : > { %8278 = vmatmul.bf16.vlgmr.msrb.gmra.mxu0 %v14893_v10  ;;  %8288 = vmatpush.bf16.msrb.mxu1 %v11577_v2  ;;  %v13422_v2 = vld [vmem:[%s14684_s22 + $0x6ec] sm:$0xf0]  ;;  %v12410_v61 = vld [vmem:[%s14684_s22 + $0x13f0] sm:$0xf0]  ;;  %v10749_v21 = vor.u32 %v13414_v52, %v10746_v25 }
 0x482   : > { %8322 = vmatpush.bf16.msra.mxu0 %v10365_v0  ;;  %v13589_v0 = vld [vmem:[%s14684_s22 + $0xc2c] sm:$0xf]  ;;  %v12280_v19 = vld [vmem:[%s14684_s22 + $0x12b0] sm:$0xf]  ;;  %v10745_v57 = vor.u32 %v13422_v2, %v10744_v14  ;;  %v10682_v33 = vld [vmem:[%s14684_s22 + $0x670] sm:$0xf0] }
 0x483   : > { %v11445_v24 = vor.u32 %v13589_v0, %v11442_v38  ;;  %v13806_v22 = vld [vmem:[%s14684_s22 + $0x12ec] sm:$0xf0]  ;;  %v13814_v35 = vld [vmem:[%s14684_s22 + $0x1334] sm:$0xf]  ;;  %v10685_v31 = vor.u32 %v13398_v34, %v10682_v33 }
 0x484   : > { %8211 = vmatpush.bf16.msrb.mxu3 %v11509_v54  ;;  %8250 = vmatpush.bf16.msra.mxu2 %v9977_v28  ;;  %v12281_v39 = vor.u32 %v13806_v22, %v12280_v19  ;;  %v10680_v54 = vld [vmem:[%s14684_s22 + $0x630] sm:$0xf]  ;;  %v12346_v48 = vld [vmem:[%s14684_s22 + $0x1370] sm:$0xf0] }
 0x485   : > { %8289 = vmatpush.bf16.msrb.mxu1 %v11513_v32  ;;  %v13406_v0 = vld [vmem:[%s14684_s22 + $0x66c] sm:$0xf0]  ;;  %v12349_v15 = vor.u32 %v13814_v35, %v12346_v48  ;;  %v10618_v62 = vld [vmem:[%s14684_s22 + $0x5f0] sm:$0xf0] }
 0x486   : > { %8323 = vmatpush.bf16.msra.mxu0 %v10301_v41  ;;  %v8073_v41 = vpop.f32.mrf.mxu0  ;;  %v12216_v38 = vld [vmem:[%s14684_s22 + $0x1230] sm:$0xf]  ;;  %v13798_v26 = vld [vmem:[%s14684_s22 + $0x12b4] sm:$0xf] }
 0x487   : > { %v13790_v32 = vld [vmem:[%s14684_s22 + $0x126c] sm:$0xf0]  ;;  %v12282_v55 = vld [vmem:[%s14684_s22 + $0x12f0] sm:$0xf0] }
 0x488   : > { %8212 = vmatpush.bf16.msrb.mxu3 %v11445_v24  ;;  %8251 = vmatpush.bf16.msra.mxu2 %v9913_v20  ;;  %v12217_v3 = vor.u32 %v13790_v32, %v12216_v38  ;;  %v10616_v46 = vld [vmem:[%s14684_s22 + $0x5b0] sm:$0xf]  ;;  %v13382_v24 = vld [vmem:[%s14684_s22 + $0x5b4] sm:$0xf]  ;;  %v12285_v5 = vor.u32 %v13798_v26, %v12282_v55 }
 0x489   : > { %8290 = vmatpush.bf16.msrb.mxu1 %v11449_v12  ;;  %v13390_v58 = vld [vmem:[%s14684_s22 + $0x5ec] sm:$0xf0]  ;;  %v13366_v43 = vld [vmem:[%s14684_s22 + $0x534] sm:$0xf] }
 0x48a   : > { %8324 = vmatpush.bf16.msra.mxu0 %v10237_v18  ;;  %v12344_v18 = vld [vmem:[%s14684_s22 + $0x1330] sm:$0xf]  ;;  %v10617_v20 = vor.u32 %v13390_v58, %v10616_v46  ;;  %v10554_v1 = vld [vmem:[%s14684_s22 + $0x570] sm:$0xf0] }
 0x48b   : > { %v12345_v16 = vor.u32 %v13822_v63, %v12344_v18  ;;  %8213 = vmatmul.bf16.vlgmr.msrb.gmra.mxu3 %v14946_v40  ;;  %8252 = vmatmul.bf16.vlgmr.msra.gmra.mxu2 %v14825_v23  ;;  %v16309_v42 = vpop.f32.mrf.mxu1  ;;  %v12152_v7 = vld [vmem:[%s14684_s22 + $0x11b0] sm:$0xf]  ;;  %v13350_v52 = vld [vmem:[%s14684_s22 + $0x4b4] sm:$0xf] }
 0x48c   : > { %8257 = vmatpush.bf16.msra.mxu3 %v10873_v49  ;;  %8296 = vmatpush.bf16.msrb.mxu2 %v12409_v53  ;;  %v13774_v41 = vld [vmem:[%s14684_s22 + $0x11ec] sm:$0xf0]  ;;  %v10490_v25 = vld [vmem:[%s14684_s22 + $0x4f0] sm:$0xf0] }
 0x48d   : > { %8335 = vmatpush.bf16.msra.mxu1 %v10877_v30  ;;  %v12153_v12 = vor.u32 %v13774_v41, %v12152_v7  ;;  %v10552_v60 = vld [vmem:[%s14684_s22 + $0x530] sm:$0xf]  ;;  %v13334_v34 = vld [vmem:[%s14684_s22 + $0x434] sm:$0xf] }
 0x48e   : > { %8325 = vmatpush.bf16.msra.mxu0 %v10173_v51  ;;  %8291 = vmatmul.bf16.vlgmr.msrb.gmra.mxu1 %v14946_v40  ;;  %v13830_v51 = vld [vmem:[%s14684_s22 + $0x13b4] sm:$0xf]  ;;  %v8006_v49 = vpop.f32.mrf.mxu3  ;;  %v8045_v4 = vpop.f32.mrf.mxu2  ;;  %v13374_v53 = vld [vmem:[%s14684_s22 + $0x56c] sm:$0xf0] }
 0x48f   : > { %v12413_v28 = vor.u32 %v13830_v51, %v12410_v61  ;;  %v12088_v30 = vld [vmem:[%s14684_s22 + $0x1130] sm:$0xf]  ;;  %v16324_v11 = vadd.f32 %v8006_v49, %v16264_v27  ;;  %v16327_v18 = vadd.f32 %v8045_v4, %v16232_v45  ;;  %v10553_v27 = vor.u32 %v13374_v53, %v10552_v60  ;;  %v13766_v51 = vld [vmem:[%s14684_s22 + $0x11b4] sm:$0xf] }
 0x490   : > { %8258 = vmatpush.bf16.msra.mxu3 %v10809_v59  ;;  %8297 = vmatpush.bf16.msrb.mxu2 %v12345_v16  ;;  %v13758_v63 = vld [vmem:[%s14684_s22 + $0x116c] sm:$0xf0]  ;;  %v12218_v59 = vld [vmem:[%s14684_s22 + $0x1270] sm:$0xf0]  ;;  %v10557_v16 = vor.u32 %v13366_v43, %v10554_v1 }
 0x491   : > { %8336 = vmatpush.bf16.msra.mxu1 %v10813_v9  ;;  %v12089_v45 = vor.u32 %v13758_v63, %v12088_v30  ;;  %v10488_v9 = vld [vmem:[%s14684_s22 + $0x4b0] sm:$0xf]  ;;  %v12154_v61 = vld [vmem:[%s14684_s22 + $0x11f0] sm:$0xf0] }
 0x492   : > { %8326 = vmatpush.bf16.msra.mxu0 %v10109_v29  ;;  %v10681_v29 = vor.u32 %v13406_v0, %v10680_v54  ;;  %v13358_v14 = vld [vmem:[%s14684_s22 + $0x4ec] sm:$0xf0]  ;;  %v10493_v54 = vor.u32 %v13350_v52, %v10490_v25  ;;  %v12157_v33 = vor.u32 %v13766_v51, %v12154_v61  ;;  %v10426_v35 = vld [vmem:[%s14684_s22 + $0x470] sm:$0xf0]  ;;  %v11392_v52 = vld [vmem:[%s14684_s22 + $0xbb8] sm:$0xf] }
 0x493   : > { %v8086_v37 = vpop.f32.mrf.mxu1  ;;  %v12024_v2 = vld [vmem:[%s14684_s22 + $0x10b0] sm:$0xf]  ;;  %v13750_v48 = vld [vmem:[%s14684_s22 + $0x1134] sm:$0xf]  ;;  %v10429_v26 = vor.u32 %v13334_v34, %v10426_v35  ;;  %v13583_v25 = vld [vmem:[%s14684_s22 + $0xbf4] sm:$0xf0] }
 0x494   : > { %8259 = vmatpush.bf16.msra.mxu3 %v10745_v57  ;;  %8298 = vmatpush.bf16.msrb.mxu2 %v12281_v39  ;;  %v13742_v22 = vld [vmem:[%s14684_s22 + $0x10ec] sm:$0xf0]  ;;  %v13574_v46 = vld [vmem:[%s14684_s22 + $0xbb4] sm:$0xf]  ;;  %v11328_v34 = vld [vmem:[%s14684_s22 + $0xb38] sm:$0xf] }
 0x495   : > { %8337 = vmatpush.bf16.msra.mxu1 %v10749_v21  ;;  %v10424_v57 = vld [vmem:[%s14684_s22 + $0x430] sm:$0xf]  ;;  %v12025_v21 = vor.u32 %v13742_v22, %v12024_v2  ;;  %v13958_v41 = vld [vmem:[%s14684_s22 + $0x17b4] sm:$0xf] }
 0x496   : > { %8327 = vmatpush.bf16.msra.mxu0 %v10045_v47  ;;  %v10621_v47 = vor.u32 %v13382_v24, %v10618_v62  ;;  %v13342_v39 = vld [vmem:[%s14684_s22 + $0x46c] sm:$0xf0]  ;;  %v8008_v0 = vpop.f32.mrf.mxu3  ;;  %v8047_v38 = vpop.f32.mrf.mxu2  ;;  %v12922_v24 = vld [vmem:[%s14684_s22 + $0x17f0] sm:$0xf0] }
 0x497   : > { %v13726_v32 = vld [vmem:[%s14684_s22 + $0x106c] sm:$0xf0]  ;;  %v10425_v7 = vor.u32 %v13342_v39, %v10424_v57  ;;  %v12925_v4 = vor.u32 %v13958_v41, %v12922_v24  ;;  %v13558_v30 = vld [vmem:[%s14684_s22 + $0xb34] sm:$0xf]  ;;  %v11393_v0 = vor.u32 %v13583_v25, %v11392_v52 }
 0x498   : > { %8260 = vmatpush.bf16.msra.mxu3 %v10681_v29  ;;  %8299 = vmatpush.bf16.msrb.mxu2 %v12217_v3  ;;  %v12090_v29 = vld [vmem:[%s14684_s22 + $0x1170] sm:$0xf0]  ;;  %v12920_v3 = vld [vmem:[%s14684_s22 + $0x17b0] sm:$0xf] }
 0x499   : > { %8338 = vmatpush.bf16.msra.mxu1 %v10685_v31  ;;  %v13966_v31 = vld [vmem:[%s14684_s22 + $0x17ec] sm:$0xf0]  ;;  %v12093_v55 = vor.u32 %v13750_v48, %v12090_v29  ;;  %v13942_v63 = vld [vmem:[%s14684_s22 + $0x1734] sm:$0xf] }
 0x49a   : > { %8328 = vmatpush.bf16.msra.mxu0 %v9981_v6  ;;  %v13782_v6 = vld [vmem:[%s14684_s22 + $0x1234] sm:$0xf]  ;;  %v12856_v60 = vld [vmem:[%s14684_s22 + $0x1730] sm:$0xf] }
 0x49b   : > { %v12221_v19 = vor.u32 %v13782_v6, %v12218_v59  ;;  %v13950_v53 = vld [vmem:[%s14684_s22 + $0x176c] sm:$0xf0]  ;;  %v12858_v43 = vld [vmem:[%s14684_s22 + $0x1770] sm:$0xf0] }
 0x49c   : > { %8261 = vmatpush.bf16.msra.mxu3 %v10617_v20  ;;  %8300 = vmatpush.bf16.msrb.mxu2 %v12153_v12  ;;  %v12921_v20 = vor.u32 %v13966_v31, %v12920_v3  ;;  %v13734_v12 = vld [vmem:[%s14684_s22 + $0x10b4] sm:$0xf]  ;;  %v12857_v6 = vor.u32 %v13950_v53, %v12856_v60  ;;  %v12728_v39 = vld [vmem:[%s14684_s22 + $0x1630] sm:$0xf] }
 0x49d   : > { %8339 = vmatpush.bf16.msra.mxu1 %v10621_v47  ;;  %v12026_v47 = vld [vmem:[%s14684_s22 + $0x10f0] sm:$0xf0]  ;;  %v12664_v31 = vld [vmem:[%s14684_s22 + $0x15b0] sm:$0xf] }
 0x49e   : > { %8329 = vmatpush.bf16.msra.mxu0 %v9917_v56  ;;  %v16334_v8 = vpop.f32.mrf.mxu0  ;;  %v10489_v56 = vor.u32 %v13358_v14, %v10488_v9  ;;  %v12029_v1 = vor.u32 %v13734_v12, %v12026_v47  ;;  %v13718_v59 = vld [vmem:[%s14684_s22 + $0x1034] sm:$0xf]  ;;  %v13934_v9 = vld [vmem:[%s14684_s22 + $0x16ec] sm:$0xf0] }
 0x49f   : > { %v11962_v37 = vld [vmem:[%s14684_s22 + $0x1070] sm:$0xf0]  ;;  %v13886_v60 = vld [vmem:[%s14684_s22 + $0x156c] sm:$0xf0] }
 0x4a0   : > { %8262 = vmatpush.bf16.msra.mxu3 %v10553_v27  ;;  %8301 = vmatpush.bf16.msrb.mxu2 %v12089_v45  ;;  %v12861_v45 = vor.u32 %v13942_v63, %v12858_v43  ;;  %v13542_v14 = vld [vmem:[%s14684_s22 + $0xab4] sm:$0xf]  ;;  %v11965_v51 = vor.u32 %v13718_v59, %v11962_v37  ;;  %v13535_v59 = vld [vmem:[%s14684_s22 + $0xa74] sm:$0xf0] }
 0x4a1   : > { %8330 = vmatmul.bf16.vlgmr.msra.gmra.mxu0 %v14825_v23  ;;  %8340 = vmatpush.bf16.msra.mxu1 %v10557_v16  ;;  %v12792_v16 = vld [vmem:[%s14684_s22 + $0x16b0] sm:$0xf]  ;;  %v11258_v2 = vld [vmem:[%s14684_s22 + $0xaf0] sm:$0xf0] }
 0x4a2   : > { %8374 = vmatpush.bf16.msrb.mxu0 %v12413_v28  ;;  %v11960_v28 = vld [vmem:[%s14684_s22 + $0x1030] sm:$0xf]  ;;  %v12794_v22 = vld [vmem:[%s14684_s22 + $0x16f0] sm:$0xf0]  ;;  %v12793_v61 = vor.u32 %v13934_v9, %v12792_v16 }
 0x4a3   : > { %v11961_v62 = vor.u32 %v13726_v32, %v11960_v28  ;;  %v11194_v38 = vld [vmem:[%s14684_s22 + $0xa70] sm:$0xf0] }
 0x4a4   : > { %8263 = vmatpush.bf16.msra.mxu3 %v10489_v56  ;;  %8302 = vmatpush.bf16.msrb.mxu2 %v12025_v21  ;;  %v11261_v56 = vor.u32 %v13542_v14, %v11258_v2  ;;  %v13918_v21 = vld [vmem:[%s14684_s22 + $0x166c] sm:$0xf0]  ;;  %v13910_v28 = vld [vmem:[%s14684_s22 + $0x1634] sm:$0xf] }
 0x4a5   : > { %8341 = vmatpush.bf16.msra.mxu1 %v10493_v54  ;;  %v13526_v54 = vld [vmem:[%s14684_s22 + $0xa34] sm:$0xf]  ;;  %v12729_v48 = vor.u32 %v13918_v21, %v12728_v39  ;;  %v12536_v14 = vld [vmem:[%s14684_s22 + $0x14b0] sm:$0xf] }
 0x4a6   : > { %8375 = vmatpush.bf16.msrb.mxu0 %v12349_v15  ;;  %v8125_v58 = vpop.f32.mrf.mxu0  ;;  %v11386_v15 = vld [vmem:[%s14684_s22 + $0xbf0] sm:$0xf0]  ;;  %v11197_v29 = vor.u32 %v13526_v54, %v11194_v38  ;;  %v13870_v2 = vld [vmem:[%s14684_s22 + $0x14ec] sm:$0xf0] }
 0x4a7   : > { %v11389_v49 = vor.u32 %v13574_v46, %v11386_v15  ;;  %v12730_v32 = vld [vmem:[%s14684_s22 + $0x1670] sm:$0xf0]  ;;  %v13902_v46 = vld [vmem:[%s14684_s22 + $0x15ec] sm:$0xf0]  ;;  %v12537_v39 = vor.u32 %v13870_v2, %v12536_v14 }
 0x4a8   : > { %8264 = vmatpush.bf16.msra.mxu3 %v10425_v7  ;;  %8303 = vmatpush.bf16.msrb.mxu2 %v11961_v62  ;;  %v12733_v3 = vor.u32 %v13910_v28, %v12730_v32  ;;  %v13510_v58 = vld [vmem:[%s14684_s22 + $0x9b4] sm:$0xf]  ;;  %v11264_v62 = vld [vmem:[%s14684_s22 + $0xab8] sm:$0xf]  ;;  %v12472_v21 = vld [vmem:[%s14684_s22 + $0x1430] sm:$0xf] }
 0x4a9   : > { %8342 = vmatpush.bf16.msra.mxu1 %v10429_v26  ;;  %v11130_v15 = vld [vmem:[%s14684_s22 + $0x9f0] sm:$0xf0]  ;;  %v13551_v26 = vld [vmem:[%s14684_s22 + $0xaf4] sm:$0xf0]  ;;  %v13854_v54 = vld [vmem:[%s14684_s22 + $0x146c] sm:$0xf0] }
 0x4aa   : > { %8376 = vmatpush.bf16.msrb.mxu0 %v12285_v5  ;;  %v11322_v5 = vld [vmem:[%s14684_s22 + $0xb70] sm:$0xf0] }
 0x4ab   : > { %v11325_v27 = vor.u32 %v13558_v30, %v11322_v5  ;;  %8265 = vmatmul.bf16.vlgmr.msra.gmra.mxu3 %v14859_v17  ;;  %8304 = vmatmul.bf16.vlgmr.msrb.gmra.mxu2 %v15002_v13  ;;  %v16387_v35 = vpop.f32.mrf.mxu1  ;;  %v13894_v41 = vld [vmem:[%s14684_s22 + $0x15b4] sm:$0xf]  ;;  %v11265_v30 = vor.u32 %v13551_v26, %v11264_v62  ;;  %v13327_v62 = vld [vmem:[%s14684_s22 + $0x3f4] sm:$0xf0] }
 0x4ac   : > { %8309 = vmatpush.bf16.msrb.mxu3 %v12921_v20  ;;  %8348 = vmatpush.bf16.msra.mxu2 %v11389_v49  ;;  %v12666_v24 = vld [vmem:[%s14684_s22 + $0x15f0] sm:$0xf0]  ;;  %v11133_v20 = vor.u32 %v13510_v58, %v11130_v15  ;;  %v10368_v15 = vld [vmem:[%s14684_s22 + $0x3b8] sm:$0xf] }
 0x4ad   : > { %8387 = vmatpush.bf16.msrb.mxu1 %v12925_v4  ;;  %v12669_v12 = vor.u32 %v13894_v41, %v12666_v24  ;;  %v12600_v4 = vld [vmem:[%s14684_s22 + $0x1530] sm:$0xf]  ;;  %v13494_v53 = vld [vmem:[%s14684_s22 + $0x934] sm:$0xf]  ;;  %v12473_v24 = vor.u32 %v13854_v54, %v12472_v21  ;;  %v11904_v26 = vld [vmem:[%s14684_s22 + $0xfb8] sm:$0xf] }
 0x4ae   : > { %8377 = vmatpush.bf16.msrb.mxu0 %v12221_v19  ;;  %v13926_v19 = vld [vmem:[%s14684_s22 + $0x16b4] sm:$0xf]  ;;  %8343 = vmatmul.bf16.vlgmr.msra.gmra.mxu1 %v14859_v17  ;;  %v8058_v47 = vpop.f32.mrf.mxu3  ;;  %v16398_v49 = vpop.f32.mrf.mxu2  ;;  %v12601_v16 = vor.u32 %v13886_v60, %v12600_v4  ;;  %v11008_v4 = vld [vmem:[%s14684_s22 + $0x8b8] sm:$0xf] }
 0x4af   : > { %v12797_v57 = vor.u32 %v13926_v19, %v12794_v22  ;;  %v8059_v5 = vadd.f32 %v8058_v47, %v16327_v18  ;;  %v11066_v63 = vld [vmem:[%s14684_s22 + $0x970] sm:$0xf0]  ;;  %v13487_v60 = vld [vmem:[%s14684_s22 + $0x8f4] sm:$0xf0] }
 0x4b0   : > { %8310 = vmatpush.bf16.msrb.mxu3 %v12857_v6  ;;  %8349 = vmatpush.bf16.msra.mxu2 %v11325_v27  ;;  %v13878_v43 = vld [vmem:[%s14684_s22 + $0x1534] sm:$0xf]  ;;  %v11200_v6 = vld [vmem:[%s14684_s22 + $0xa38] sm:$0xf]  ;;  %v11069_v18 = vor.u32 %v13494_v53, %v11066_v63  ;;  %v10369_v53 = vor.u32 %v13327_v62, %v10368_v15 }
 0x4b1   : > { %8388 = vmatpush.bf16.msrb.mxu1 %v12861_v45  ;;  %v8072_v37 = vadd.f32 %v16253_v50, %v8059_v5  ;;  %v13478_v19 = vld [vmem:[%s14684_s22 + $0x8b4] sm:$0xf]  ;;  %v11201_v50 = vor.u32 %v13535_v59, %v11200_v6  ;;  %v11840_v6 = vld [vmem:[%s14684_s22 + $0xf38] sm:$0xf] }
 0x4b2   : > { %8378 = vmatpush.bf16.msrb.mxu0 %v12157_v33  ;;  %v13567_v33 = vld [vmem:[%s14684_s22 + $0xb74] sm:$0xf0]  ;;  %v11002_v52 = vld [vmem:[%s14684_s22 + $0x8f0] sm:$0xf0] }
 0x4b3   : > { %v11329_v7 = vor.u32 %v13567_v33, %v11328_v34  ;;  %v8138_v27 = vpop.f32.mrf.mxu1  ;;  %v8085_v22 = vadd.f32 %v16309_v42, %v8072_v37  ;;  %v13862_v25 = vld [vmem:[%s14684_s22 + $0x14b4] sm:$0xf]  ;;  %v11005_v42 = vor.u32 %v13478_v19, %v11002_v52  ;;  %v13695_v59 = vld [vmem:[%s14684_s22 + $0xf74] sm:$0xf0]  ;;  %v11009_v37 = vor.u32 %v13487_v60, %v11008_v4 }
 0x4b4   : > { %8311 = vmatpush.bf16.msrb.mxu3 %v12793_v61  ;;  %8350 = vmatpush.bf16.msra.mxu2 %v11261_v56  ;;  %v11136_v61 = vld [vmem:[%s14684_s22 + $0x9b8] sm:$0xf]  ;;  %v13462_v32 = vld [vmem:[%s14684_s22 + $0x834] sm:$0xf]  ;;  %v11841_v14 = vor.u32 %v13695_v59, %v11840_v6 }
 0x4b5   : > { %8389 = vmatpush.bf16.msrb.mxu1 %v12797_v57  ;;  %v13519_v56 = vld [vmem:[%s14684_s22 + $0x9f4] sm:$0xf0]  ;;  %v8578_v57 = vrot.slane %v8085_v22, 6  ;;  %v10938_v34 = vld [vmem:[%s14684_s22 + $0x870] sm:$0xf0] }
 0x4b6   : > { %8379 = vmatpush.bf16.msrb.mxu0 %v12093_v55  ;;  %v12665_v55 = vor.u32 %v13902_v46, %v12664_v31  ;;  %v8060_v38 = vpop.f32.mrf.mxu3  ;;  %v8099_v28 = vpop.f32.mrf.mxu2  ;;  %v13846_v33 = vld [vmem:[%s14684_s22 + $0x1434] sm:$0xf]  ;;  %v11072_v31 = vld [vmem:[%s14684_s22 + $0x938] sm:$0xf] }
 0x4b7   : > { %v13503_v46 = vld [vmem:[%s14684_s22 + $0x974] sm:$0xf0]  ;;  %v13702_v58 = vld [vmem:[%s14684_s22 + $0xfb4] sm:$0xf] }
 0x4b8   : > { %8312 = vmatpush.bf16.msrb.mxu3 %v12729_v48  ;;  %8351 = vmatpush.bf16.msra.mxu2 %v11197_v29  ;;  %v16428_v48 = vsel %vm8584_vm14, %v16324_v11, %v8578_v57  ;;  %v11137_v29 = vor.u32 %v13519_v56, %v11136_v61  ;;  %v13711_v11 = vld [vmem:[%s14684_s22 + $0xff4] sm:$0xf0]  ;;  %v13686_v5 = vld [vmem:[%s14684_s22 + $0xf34] sm:$0xf]  ;;  %v10370_v61 = vld [vmem:[%s14684_s22 + $0x3f8] sm:$0xf0] }
 0x4b9   : > { %8390 = vmatpush.bf16.msrb.mxu1 %v12733_v3  ;;  %v12474_v3 = vld [vmem:[%s14684_s22 + $0x1470] sm:$0xf0]  ;;  %v10240_v22 = vld [vmem:[%s14684_s22 + $0x2b8] sm:$0xf] }
 0x4ba   : > { %8380 = vmatpush.bf16.msrb.mxu0 %v12029_v1  ;;  %v12602_v1 = vld [vmem:[%s14684_s22 + $0x1570] sm:$0xf0]  ;;  %v11776_v52 = vld [vmem:[%s14684_s22 + $0xeb8] sm:$0xf] }
 0x4bb   : > { %v12605_v9 = vor.u32 %v13878_v43, %v12602_v1  ;;  %v11834_v63 = vld [vmem:[%s14684_s22 + $0xf70] sm:$0xf0]  ;;  %v10304_v43 = vld [vmem:[%s14684_s22 + $0x338] sm:$0xf] }
 0x4bc   : > { %8313 = vmatpush.bf16.msrb.mxu3 %v12665_v55  ;;  %8352 = vmatpush.bf16.msra.mxu2 %v11133_v20  ;;  %v10941_v55 = vor.u32 %v13462_v32, %v10938_v34  ;;  %v12477_v20 = vor.u32 %v13846_v33, %v12474_v3  ;;  %v13311_v1 = vld [vmem:[%s14684_s22 + $0x374] sm:$0xf0]  ;;  %v11837_v27 = vor.u32 %v13686_v5, %v11834_v63  ;;  %v13670_v2 = vld [vmem:[%s14684_s22 + $0xeb4] sm:$0xf]  ;;  %v13303_v33 = vld [vmem:[%s14684_s22 + $0x33c] sm:$0xf] }
 0x4bd   : > { %8391 = vmatpush.bf16.msrb.mxu1 %v12669_v12  ;;  %v11073_v12 = vor.u32 %v13503_v46, %v11072_v31  ;;  %v11770_v19 = vld [vmem:[%s14684_s22 + $0xef0] sm:$0xf0]  ;;  %v13279_v28 = vld [vmem:[%s14684_s22 + $0x274] sm:$0xf0]  ;;  %v3446_v3 = vperm.slane %v16206_v36, 2 }
 0x4be   : > { %8381 = vmatpush.bf16.msrb.mxu0 %v11965_v51  ;;  %v16410_v45 = vpop.f32.mrf.mxu0  ;;  %v12538_v51 = vld [vmem:[%s14684_s22 + $0x14f0] sm:$0xf0]  ;;  %v11773_v57 = vor.u32 %v13670_v2, %v11770_v19  ;;  %v11712_v32 = vld [vmem:[%s14684_s22 + $0xe38] sm:$0xf] }
 0x4bf   : > { %v13654_v54 = vld [vmem:[%s14684_s22 + $0xe34] sm:$0xf]  ;;  %v13663_v34 = vld [vmem:[%s14684_s22 + $0xe74] sm:$0xf0] }
 0x4c0   : > { %8314 = vmatpush.bf16.msrb.mxu3 %v12601_v16  ;;  %8353 = vmatpush.bf16.msra.mxu2 %v11069_v18  ;;  %v10944_v16 = vld [vmem:[%s14684_s22 + $0x838] sm:$0xf]  ;;  %v13638_v15 = vld [vmem:[%s14684_s22 + $0xdb4] sm:$0xf] }
 0x4c1   : > { %8382 = vmatmul.bf16.vlgmr.msrb.gmra.mxu0 %v15002_v13  ;;  %8392 = vmatpush.bf16.msrb.mxu1 %v12605_v9  ;;  %v13471_v18 = vld [vmem:[%s14684_s22 + $0x874] sm:$0xf0]  ;;  %v10305_v9 = vor.u32 %v13311_v1, %v10304_v43  ;;  %v13622_v5 = vld [vmem:[%s14684_s22 + $0xd34] sm:$0xf] }
 0x4c2   : > { %8426 = vmatpush.bf16.msra.mxu0 %v11393_v0  ;;  %v12541_v0 = vor.u32 %v13862_v25, %v12538_v51  ;;  %v13679_v25 = vld [vmem:[%s14684_s22 + $0xef4] sm:$0xf0]  ;;  %v13319_v51 = vld [vmem:[%s14684_s22 + $0x3bc] sm:$0xf]  ;;  %v10945_v56 = vor.u32 %v13471_v18, %v10944_v16  ;;  %v11578_v63 = vld [vmem:[%s14684_s22 + $0xd70] sm:$0xf0] }
 0x4c3   : > { %v11777_v21 = vor.u32 %v13679_v25, %v11776_v52  ;;  %v10373_v38 = vor.u32 %v13319_v51, %v10370_v61  ;;  %v11648_v36 = vld [vmem:[%s14684_s22 + $0xdb8] sm:$0xf]  ;;  %v10178_v16 = vld [vmem:[%s14684_s22 + $0x278] sm:$0xf0]  ;;  %v11581_v2 = vor.u32 %v13622_v5, %v11578_v63  ;;  %v11514_v52 = vld [vmem:[%s14684_s22 + $0xcf0] sm:$0xf0] }
 0x4c4   : > { %8315 = vmatpush.bf16.msrb.mxu3 %v12537_v39  ;;  %8354 = vmatpush.bf16.msra.mxu2 %v11005_v42  ;;  %v11706_v42 = vld [vmem:[%s14684_s22 + $0xe70] sm:$0xf0]  ;;  %v10048_v43 = vld [vmem:[%s14684_s22 + $0x138] sm:$0xf] }
 0x4c5   : > { %8393 = vmatpush.bf16.msrb.mxu1 %v12541_v0  ;;  %v10176_v0 = vld [vmem:[%s14684_s22 + $0x238] sm:$0xf]  ;;  %v11709_v46 = vor.u32 %v13654_v54, %v11706_v42  ;;  %v13590_v42 = vld [vmem:[%s14684_s22 + $0xc34] sm:$0xf] }
 0x4c6   : > { %8427 = vmatpush.bf16.msra.mxu0 %v11329_v7  ;;  %v11898_v7 = vld [vmem:[%s14684_s22 + $0xff0] sm:$0xf0]  ;;  %v8177_v41 = vpop.f32.mrf.mxu0  ;;  %v13247_v6 = vld [vmem:[%s14684_s22 + $0x174] sm:$0xf0] }
 0x4c7   : > { %v11901_v47 = vor.u32 %v13702_v58, %v11898_v7  ;;  %v10177_v58 = vor.u32 %v13279_v28, %v10176_v0  ;;  %v11713_v7 = vor.u32 %v13663_v34, %v11712_v32  ;;  %v11642_v41 = vld [vmem:[%s14684_s22 + $0xdf0] sm:$0xf0]  ;;  %v11584_v59 = vld [vmem:[%s14684_s22 + $0xd38] sm:$0xf]  ;;  %v10049_v19 = vor.u32 %v13247_v6, %v10048_v43 }
 0x4c8   : > { %8316 = vmatpush.bf16.msrb.mxu3 %v12473_v24  ;;  %8355 = vmatpush.bf16.msra.mxu2 %v10941_v55  ;;  %v10112_v24 = vld [vmem:[%s14684_s22 + $0x1b8] sm:$0xf]  ;;  %v13287_v55 = vld [vmem:[%s14684_s22 + $0x2bc] sm:$0xf]  ;;  %v11450_v0 = vld [vmem:[%s14684_s22 + $0xc70] sm:$0xf0] }
 0x4c9   : > { %8394 = vmatpush.bf16.msrb.mxu1 %v12477_v20  ;;  %v10242_v20 = vld [vmem:[%s14684_s22 + $0x2f8] sm:$0xf0]  ;;  %v9984_v25 = vld [vmem:[%s14684_s22 + $0xb8] sm:$0xf] }
 0x4ca   : > { %8428 = vmatpush.bf16.msra.mxu0 %v11265_v30  ;;  %v11905_v30 = vor.u32 %v13711_v11, %v11904_v26  ;;  %v13263_v26 = vld [vmem:[%s14684_s22 + $0x1f4] sm:$0xf0]  ;;  %v10245_v1 = vor.u32 %v13287_v55, %v10242_v20  ;;  %v10882_v55 = vld [vmem:[%s14684_s22 + $0x7f8] sm:$0xf0] }
 0x4cb   : > { %8317 = vmatmul.bf16.vlgmr.msrb.gmra.mxu3 %v15057_v44  ;;  %8356 = vmatmul.bf16.vlgmr.msra.gmra.mxu2 %v14893_v10  ;;  %v16469_v31 = vpop.f32.mrf.mxu1  ;;  %v13647_v11 = vld [vmem:[%s14684_s22 + $0xdf4] sm:$0xf0]  ;;  %v10113_v4 = vor.u32 %v13263_v26, %v10112_v24  ;;  %v11453_v26 = vor.u32 %v13590_v42, %v11450_v0 }
 0x4cc   : > { %8361 = vmatpush.bf16.msra.mxu3 %v11901_v47  ;;  %8400 = vmatpush.bf16.msrb.mxu2 %v10369_v53  ;;  %v11645_v47 = vor.u32 %v13638_v15, %v11642_v41  ;;  %v11649_v60 = vor.u32 %v13647_v11, %v11648_v36  ;;  %v13231_v61 = vld [vmem:[%s14684_s22 + $0xf4] sm:$0xf0]  ;;  %v13447_v11 = vld [vmem:[%s14684_s22 + $0x7bc] sm:$0xf] }
 0x4cd   : > { %8439 = vmatpush.bf16.msra.mxu1 %v11905_v30  ;;  %v9920_v34 = vld [vmem:[%s14684_s22 + $0x38] sm:$0xf]  ;;  %v10885_v63 = vor.u32 %v13447_v11, %v10882_v55  ;;  %v13383_v11 = vld [vmem:[%s14684_s22 + $0x5bc] sm:$0xf] }
 0x4ce   : > { %8429 = vmatpush.bf16.msra.mxu0 %v11201_v50  ;;  %v13295_v50 = vld [vmem:[%s14684_s22 + $0x2f4] sm:$0xf0]  ;;  %8395 = vmatmul.bf16.vlgmr.msrb.gmra.mxu1 %v15057_v44  ;;  %v8110_v53 = vpop.f32.mrf.mxu3  ;;  %v16481_v30 = vpop.f32.mrf.mxu2  ;;  %v10626_v55 = vld [vmem:[%s14684_s22 + $0x5f8] sm:$0xf0] }
 0x4cf   : > { %v10241_v39 = vor.u32 %v13295_v50, %v10240_v22  ;;  %v13606_v50 = vld [vmem:[%s14684_s22 + $0xcb4] sm:$0xf]  ;;  %v10880_v15 = vld [vmem:[%s14684_s22 + $0x7b8] sm:$0xf] }
 0x4d0   : > { %8362 = vmatpush.bf16.msra.mxu3 %v11837_v27  ;;  %8401 = vmatpush.bf16.msrb.mxu2 %v10305_v9  ;;  %v13271_v27 = vld [vmem:[%s14684_s22 + $0x23c] sm:$0xf]  ;;  %v11517_v54 = vor.u32 %v13606_v50, %v11514_v52  ;;  %v13455_v41 = vld [vmem:[%s14684_s22 + $0x7f4] sm:$0xf0] }
 0x4d1   : > { %8440 = vmatpush.bf16.msra.mxu1 %v11841_v14  ;;  %v12416_v24 = vld [vmem:[%s14684_s22 + $0x13b8] sm:$0xf] }
 0x4d2   : > { %8430 = vmatpush.bf16.msra.mxu0 %v11137_v29  ;;  %v10306_v29 = vld [vmem:[%s14684_s22 + $0x378] sm:$0xf0]  ;;  %v13839_v36 = vld [vmem:[%s14684_s22 + $0x13f4] sm:$0xf0] }
 0x4d3   : > { %v10309_v62 = vor.u32 %v13303_v33, %v10306_v29  ;;  %v8190_v9 = vpop.f32.mrf.mxu1  ;;  %v13215_v33 = vld [vmem:[%s14684_s22 + $0x74] sm:$0xf0]  ;;  %v12417_v5 = vor.u32 %v13839_v36, %v12416_v24 }
 0x4d4   : > { %8363 = vmatpush.bf16.msra.mxu3 %v11773_v57  ;;  %8402 = vmatpush.bf16.msrb.mxu2 %v10241_v39  ;;  %v13615_v57 = vld [vmem:[%s14684_s22 + $0xcf4] sm:$0xf0]  ;;  %v13255_v39 = vld [vmem:[%s14684_s22 + $0x1bc] sm:$0xf]  ;;  %v9921_v20 = vor.u32 %v13215_v33, %v9920_v34 }
 0x4d5   : > { %8441 = vmatpush.bf16.msra.mxu1 %v11777_v21  ;;  %v10114_v21 = vld [vmem:[%s14684_s22 + $0x1f8] sm:$0xf0]  ;;  %v11456_v29 = vld [vmem:[%s14684_s22 + $0xc38] sm:$0xf] }
 0x4d6   : > { %8431 = vmatpush.bf16.msra.mxu0 %v11073_v12  ;;  %v8098_v12 = vadd.f32 %v16398_v49, %v3446_v3  ;;  %v8112_v28 = vpop.f32.mrf.mxu3  ;;  %v8151_v32 = vpop.f32.mrf.mxu2  ;;  %v10117_v3 = vor.u32 %v13255_v39, %v10114_v21  ;;  %v10816_v43 = vld [vmem:[%s14684_s22 + $0x738] sm:$0xf]  ;;  %v9922_v9 = vld [vmem:[%s14684_s22 + $0x78] sm:$0xf0] }
 0x4d7   : > { %v13823_v6 = vld [vmem:[%s14684_s22 + $0x1374] sm:$0xf0]  ;;  %v13399_v34 = vld [vmem:[%s14684_s22 + $0x63c] sm:$0xf] }
 0x4d8   : > { %8364 = vmatpush.bf16.msra.mxu3 %v11709_v46  ;;  %8403 = vmatpush.bf16.msrb.mxu2 %v10177_v58  ;;  %v8111_v49 = vadd.f32 %v8110_v53, %v8098_v12  ;;  %v13599_v46 = vld [vmem:[%s14684_s22 + $0xc74] sm:$0xf0]  ;;  %v13239_v58 = vld [vmem:[%s14684_s22 + $0x13c] sm:$0xf] }
 0x4d9   : > { %8442 = vmatpush.bf16.msra.mxu1 %v11713_v7  ;;  %v10050_v7 = vld [vmem:[%s14684_s22 + $0x178] sm:$0xf0]  ;;  %v11457_v12 = vor.u32 %v13599_v46, %v11456_v29  ;;  %v13423_v50 = vld [vmem:[%s14684_s22 + $0x6f4] sm:$0xf0] }
 0x4da   : > { %8432 = vmatpush.bf16.msra.mxu0 %v11009_v37  ;;  %v13631_v37 = vld [vmem:[%s14684_s22 + $0xd74] sm:$0xf0]  ;;  %v8124_v18 = vadd.f32 %v16334_v8, %v8111_v49  ;;  %v10181_v8 = vor.u32 %v13271_v27, %v10178_v16  ;;  %v9986_v53 = vld [vmem:[%s14684_s22 + $0xf8] sm:$0xf0] }
 0x4db   : > { %v11585_v22 = vor.u32 %v13631_v37, %v11584_v59  ;;  %v12352_v49 = vld [vmem:[%s14684_s22 + $0x1338] sm:$0xf]  ;;  %v13431_v59 = vld [vmem:[%s14684_s22 + $0x73c] sm:$0xf] }
 0x4dc   : > { %8365 = vmatpush.bf16.msra.mxu3 %v11645_v47  ;;  %8404 = vmatpush.bf16.msrb.mxu2 %v10113_v4  ;;  %v16498_v51 = vadd.f32 %v16387_v35, %v8124_v18  ;;  %v9985_v35 = vor.u32 %v13231_v61, %v9984_v25  ;;  %v10053_v47 = vor.u32 %v13239_v58, %v10050_v7  ;;  %v10818_v37 = vld [vmem:[%s14684_s22 + $0x778] sm:$0xf0]  ;;  %v12288_v52 = vld [vmem:[%s14684_s22 + $0x12b8] sm:$0xf] }
 0x4dd   : > { %8443 = vmatpush.bf16.msra.mxu1 %v11649_v60  ;;  %v10881_v4 = vor.u32 %v13455_v41, %v10880_v15  ;;  %v13223_v60 = vld [vmem:[%s14684_s22 + $0xbc] sm:$0xf]  ;;  %v13807_v25 = vld [vmem:[%s14684_s22 + $0x12f4] sm:$0xf0] }
 0x4de   : > { %8433 = vmatpush.bf16.msra.mxu0 %v10945_v56  ;;  %v16492_v14 = vpop.f32.mrf.mxu0  ;;  %v11520_v56 = vld [vmem:[%s14684_s22 + $0xcb8] sm:$0xf]  ;;  %v9989_v27 = vor.u32 %v13223_v60, %v9986_v53  ;;  %v13207_v18 = vld [vmem:[%s14684_s22 + $0x3c] sm:$0xf]  ;;  %v10629_v60 = vor.u32 %v13383_v11, %v10626_v55 }
 0x4df   : > { %v10754_v61 = vld [vmem:[%s14684_s22 + $0x6f8] sm:$0xf0]  ;;  %v9925_v39 = vor.u32 %v13207_v18, %v9922_v9  ;;  %v10688_v0 = vld [vmem:[%s14684_s22 + $0x638] sm:$0xf] }
 0x4e0   : > { %8366 = vmatpush.bf16.msra.mxu3 %v11581_v2  ;;  %8405 = vmatpush.bf16.msrb.mxu2 %v10049_v19  ;;  %v12353_v2 = vor.u32 %v13823_v6, %v12352_v49  ;;  %v10821_v19 = vor.u32 %v13431_v59, %v10818_v37  ;;  %v13791_v32 = vld [vmem:[%s14684_s22 + $0x1274] sm:$0xf0]  ;;  %v10690_v33 = vld [vmem:[%s14684_s22 + $0x678] sm:$0xf0] }
 0x4e1   : > { %8434 = vmatmul.bf16.vlgmr.msra.gmra.mxu0 %v14893_v10  ;;  %8444 = vmatpush.bf16.msra.mxu1 %v11585_v22  ;;  %v10752_v22 = vld [vmem:[%s14684_s22 + $0x6b8] sm:$0xf]  ;;  %v13815_v29 = vld [vmem:[%s14684_s22 + $0x133c] sm:$0xf]  ;;  %v10693_v15 = vor.u32 %v13399_v34, %v10690_v33 }
 0x4e2   : > { %8478 = vmatpush.bf16.msrb.mxu0 %v10373_v38  ;;  %v11521_v38 = vor.u32 %v13615_v57, %v11520_v56  ;;  %v13831_v56 = vld [vmem:[%s14684_s22 + $0x13bc] sm:$0xf]  ;;  %v10753_v21 = vor.u32 %v13423_v50, %v10752_v22  ;;  %v10624_v41 = vld [vmem:[%s14684_s22 + $0x5b8] sm:$0xf] }
 0x4e3   : > { %v12418_v57 = vld [vmem:[%s14684_s22 + $0x13f8] sm:$0xf0]  ;;  %v13391_v24 = vld [vmem:[%s14684_s22 + $0x5f4] sm:$0xf0] }
 0x4e4   : > { %8367 = vmatpush.bf16.msra.mxu3 %v11517_v54  ;;  %8406 = vmatpush.bf16.msrb.mxu2 %v9985_v35  ;;  %v12289_v54 = vor.u32 %v13807_v25, %v12288_v52  ;;  %v13407_v35 = vld [vmem:[%s14684_s22 + $0x674] sm:$0xf0]  ;;  %v12421_v28 = vor.u32 %v13831_v56, %v12418_v57  ;;  %v13367_v6 = vld [vmem:[%s14684_s22 + $0x53c] sm:$0xf] }
 0x4e5   : > { %8445 = vmatpush.bf16.msra.mxu1 %v11521_v38  ;;  %v12224_v38 = vld [vmem:[%s14684_s22 + $0x1238] sm:$0xf]  ;;  %v10689_v58 = vor.u32 %v13407_v35, %v10688_v0  ;;  %v10562_v59 = vld [vmem:[%s14684_s22 + $0x578] sm:$0xf0] }
 0x4e6   : > { %8479 = vmatpush.bf16.msrb.mxu0 %v10309_v62  ;;  %v8229_v62 = vpop.f32.mrf.mxu0  ;;  %v12225_v7 = vor.u32 %v13791_v32, %v12224_v38  ;;  %v13775_v36 = vld [vmem:[%s14684_s22 + $0x11f4] sm:$0xf0]  ;;  %v13783_v37 = vld [vmem:[%s14684_s22 + $0x123c] sm:$0xf] }
 0x4e7   : > { %v12160_v62 = vld [vmem:[%s14684_s22 + $0x11b8] sm:$0xf]  ;;  %v10498_v56 = vld [vmem:[%s14684_s22 + $0x4f8] sm:$0xf0] }
 0x4e8   : > { %8368 = vmatpush.bf16.msra.mxu3 %v11453_v26  ;;  %8407 = vmatpush.bf16.msrb.mxu2 %v9921_v20  ;;  %v13799_v20 = vld [vmem:[%s14684_s22 + $0x12bc] sm:$0xf]  ;;  %v13759_v49 = vld [vmem:[%s14684_s22 + $0x1174] sm:$0xf0] }
 0x4e9   : > { %8446 = vmatpush.bf16.msra.mxu1 %v11457_v12  ;;  %v12290_v12 = vld [vmem:[%s14684_s22 + $0x12f8] sm:$0xf0]  ;;  %v10496_v22 = vld [vmem:[%s14684_s22 + $0x4b8] sm:$0xf] }
 0x4ea   : > { %8480 = vmatpush.bf16.msrb.mxu0 %v10245_v1  ;;  %v13439_v1 = vld [vmem:[%s14684_s22 + $0x774] sm:$0xf0]  ;;  %v13767_v57 = vld [vmem:[%s14684_s22 + $0x11bc] sm:$0xf] }
 0x4eb   : > { %v10817_v16 = vor.u32 %v13439_v1, %v10816_v43  ;;  %8369 = vmatmul.bf16.vlgmr.msra.gmra.mxu3 %v14946_v40  ;;  %8408 = vmatmul.bf16.vlgmr.msrb.gmra.mxu2 %v14825_v23  ;;  %v16548_v46 = vpop.f32.mrf.mxu1  ;;  %v13375_v43 = vld [vmem:[%s14684_s22 + $0x574] sm:$0xf0]  ;;  %v12293_v1 = vor.u32 %v13799_v20, %v12290_v12  ;;  %v13335_v33 = vld [vmem:[%s14684_s22 + $0x43c] sm:$0xf] }
 0x4ec   : > { %8413 = vmatpush.bf16.msrb.mxu3 %v10881_v4  ;;  %8452 = vmatpush.bf16.msra.mxu2 %v12417_v5  ;;  %v12161_v4 = vor.u32 %v13775_v36, %v12160_v62  ;;  %v13359_v50 = vld [vmem:[%s14684_s22 + $0x4f4] sm:$0xf0]  ;;  %v11394_v36 = vld [vmem:[%s14684_s22 + $0xbf8] sm:$0xf0] }
 0x4ed   : > { %8491 = vmatpush.bf16.msrb.mxu1 %v10885_v63  ;;  %v10560_v63 = vld [vmem:[%s14684_s22 + $0x538] sm:$0xf]  ;;  %v13959_v11 = vld [vmem:[%s14684_s22 + $0x17bc] sm:$0xf] }
 0x4ee   : > { %8481 = vmatpush.bf16.msrb.mxu0 %v10181_v8  ;;  %v13415_v8 = vld [vmem:[%s14684_s22 + $0x6bc] sm:$0xf]  ;;  %8447 = vmatmul.bf16.vlgmr.msra.gmra.mxu1 %v14946_v40  ;;  %v16559_v53 = vpop.f32.mrf.mxu3  ;;  %v16561_v5 = vpop.f32.mrf.mxu2  ;;  %v10561_v9 = vor.u32 %v13375_v43, %v10560_v63  ;;  %v12032_v52 = vld [vmem:[%s14684_s22 + $0x10b8] sm:$0xf] }
 0x4ef   : > { %v10757_v42 = vor.u32 %v13415_v8, %v10754_v61  ;;  %v13743_v8 = vld [vmem:[%s14684_s22 + $0x10f4] sm:$0xf0]  ;;  %v13351_v61 = vld [vmem:[%s14684_s22 + $0x4bc] sm:$0xf] }
 0x4f0   : > { %8414 = vmatpush.bf16.msrb.mxu3 %v10817_v16  ;;  %8453 = vmatpush.bf16.msra.mxu2 %v12353_v2  ;;  %v12033_v0 = vor.u32 %v13743_v8, %v12032_v52  ;;  %v10501_v35 = vor.u32 %v13351_v61, %v10498_v56  ;;  %v11968_v32 = vld [vmem:[%s14684_s22 + $0x1038] sm:$0xf]  ;;  %v12930_v55 = vld [vmem:[%s14684_s22 + $0x17f8] sm:$0xf0] }
 0x4f1   : > { %8492 = vmatpush.bf16.msrb.mxu1 %v10821_v19  ;;  %v10565_v19 = vor.u32 %v13367_v6, %v10562_v59  ;;  %v13727_v34 = vld [vmem:[%s14684_s22 + $0x1074] sm:$0xf0]  ;;  %v12034_v63 = vld [vmem:[%s14684_s22 + $0x10f8] sm:$0xf0] }
 0x4f2   : > { %8482 = vmatpush.bf16.msrb.mxu0 %v10117_v3  ;;  %v12354_v3 = vld [vmem:[%s14684_s22 + $0x1378] sm:$0xf0]  ;;  %v11969_v20 = vor.u32 %v13727_v34, %v11968_v32  ;;  %v12800_v52 = vld [vmem:[%s14684_s22 + $0x16b8] sm:$0xf] }
 0x4f3   : > { %v12357_v26 = vor.u32 %v13815_v29, %v12354_v3  ;;  %v8242_v16 = vpop.f32.mrf.mxu1  ;;  %v10434_v3 = vld [vmem:[%s14684_s22 + $0x478] sm:$0xf0] }
 0x4f4   : > { %8415 = vmatpush.bf16.msrb.mxu3 %v10753_v21  ;;  %8454 = vmatpush.bf16.msra.mxu2 %v12289_v54  ;;  %v10497_v21 = vor.u32 %v13359_v50, %v10496_v22  ;;  %v10432_v54 = vld [vmem:[%s14684_s22 + $0x438] sm:$0xf]  ;;  %v10437_v12 = vor.u32 %v13335_v33, %v10434_v3  ;;  %v13559_v6 = vld [vmem:[%s14684_s22 + $0xb3c] sm:$0xf] }
 0x4f5   : > { %8493 = vmatpush.bf16.msrb.mxu1 %v10757_v42  ;;  %v13343_v42 = vld [vmem:[%s14684_s22 + $0x474] sm:$0xf0]  ;;  %v11330_v59 = vld [vmem:[%s14684_s22 + $0xb78] sm:$0xf0] }
 0x4f6   : > { %8483 = vmatpush.bf16.msrb.mxu0 %v10053_v47  ;;  %v10625_v47 = vor.u32 %v13391_v24, %v10624_v41  ;;  %v8164_v38 = vpop.f32.mrf.mxu3  ;;  %v13967_v41 = vld [vmem:[%s14684_s22 + $0x17f4] sm:$0xf0]  ;;  %v13575_v24 = vld [vmem:[%s14684_s22 + $0xbbc] sm:$0xf]  ;;  %v11333_v22 = vor.u32 %v13559_v6, %v11330_v59 }
 0x4f7   : > { %v11397_v43 = vor.u32 %v13575_v24, %v11394_v36  ;;  %v13543_v8 = vld [vmem:[%s14684_s22 + $0xabc] sm:$0xf]  ;;  %v12736_v38 = vld [vmem:[%s14684_s22 + $0x1638] sm:$0xf] }
 0x4f8   : > { %8416 = vmatpush.bf16.msrb.mxu3 %v10689_v58  ;;  %8455 = vmatpush.bf16.msra.mxu2 %v12225_v7  ;;  %v13751_v58 = vld [vmem:[%s14684_s22 + $0x113c] sm:$0xf]  ;;  %v13903_v24 = vld [vmem:[%s14684_s22 + $0x15f4] sm:$0xf0] }
 0x4f9   : > { %8494 = vmatpush.bf16.msrb.mxu1 %v10693_v15  ;;  %v12098_v7 = vld [vmem:[%s14684_s22 + $0x1178] sm:$0xf0]  ;;  %v12928_v15 = vld [vmem:[%s14684_s22 + $0x17b8] sm:$0xf] }
 0x4fa   : > { %8484 = vmatpush.bf16.msrb.mxu0 %v9989_v27  ;;  %v12226_v27 = vld [vmem:[%s14684_s22 + $0x1278] sm:$0xf0] }
 0x4fb   : > { %v12229_v25 = vor.u32 %v13783_v37, %v12226_v27  ;;  %v13943_v37 = vld [vmem:[%s14684_s22 + $0x173c] sm:$0xf] }
 0x4fc   : > { %8417 = vmatpush.bf16.msrb.mxu3 %v10625_v47  ;;  %8456 = vmatpush.bf16.msra.mxu2 %v12161_v4  ;;  %v12101_v47 = vor.u32 %v13751_v58, %v12098_v7  ;;  %v12929_v4 = vor.u32 %v13967_v41, %v12928_v15  ;;  %v12866_v27 = vld [vmem:[%s14684_s22 + $0x1778] sm:$0xf0]  ;;  %v12672_v41 = vld [vmem:[%s14684_s22 + $0x15b8] sm:$0xf] }
 0x4fd   : > { %8495 = vmatpush.bf16.msrb.mxu1 %v10629_v60  ;;  %v13735_v60 = vld [vmem:[%s14684_s22 + $0x10bc] sm:$0xf]  ;;  %v12869_v50 = vor.u32 %v13943_v37, %v12866_v27 }
 0x4fe   : > { %8485 = vmatpush.bf16.msrb.mxu0 %v9925_v39  ;;  %v16571_v18 = vpop.f32.mrf.mxu0  ;;  %v12162_v39 = vld [vmem:[%s14684_s22 + $0x11f8] sm:$0xf0]  ;;  %v12037_v16 = vor.u32 %v13735_v60, %v12034_v63  ;;  %v13887_v63 = vld [vmem:[%s14684_s22 + $0x1574] sm:$0xf0] }
 0x4ff   : > { %v12165_v29 = vor.u32 %v13767_v57, %v12162_v39  ;;  %v11266_v61 = vld [vmem:[%s14684_s22 + $0xaf8] sm:$0xf0] }
 0x500   : > { %8418 = vmatpush.bf16.msrb.mxu3 %v10561_v9  ;;  %v13927_v56 = vld [vmem:[%s14684_s22 + $0x16bc] sm:$0xf] }
 0x501   : > { %8486 = vmatmul.bf16.vlgmr.msrb.gmra.mxu0 %v14825_v23  ;;  %v12096_v23 = vld [vmem:[%s14684_s22 + $0x1138] sm:$0xf]  ;;  %8496 = vmatpush.bf16.msrb.mxu1 %v10565_v19  ;;  %v11970_v19 = vld [vmem:[%s14684_s22 + $0x1078] sm:$0xf0] }
 0x502   : > { %8530 = vmatpush.bf16.msra.mxu0 %v12421_v28  ;;  %v12097_v2 = vor.u32 %v13759_v49, %v12096_v23  ;;  %v8203_v28 = vpop.f32.mrf.mxu2  ;;  %v12933_v23 = vor.u32 %v13959_v11, %v12930_v55  ;;  %v13951_v49 = vld [vmem:[%s14684_s22 + $0x1774] sm:$0xf0]  ;;  %v12802_v57 = vld [vmem:[%s14684_s22 + $0x16f8] sm:$0xf0] }
 0x503   : > { %v16615_v39 = vld [vmem:[%s14690_s29 + $0x8] sm:$0xff] }
 0x504   : > { %8457 = vmatpush.bf16.msra.mxu2 %v12097_v2  ;;  %8419 = vmatpush.bf16.msrb.mxu3 %v10497_v21  ;;  %v13719_v2 = vld [vmem:[%s14684_s22 + $0x103c] sm:$0xf]  ;;  %v3447_v21 = vperm.slane %v16615_v39, 3  ;;  %v13919_v28 = vld [vmem:[%s14684_s22 + $0x1674] sm:$0xf0] }
 0x505   : > { %8497 = vmatpush.bf16.msrb.mxu1 %v10501_v35  ;;  %v12805_v35 = vor.u32 %v13927_v56, %v12802_v57  ;;  %v13527_v32 = vld [vmem:[%s14684_s22 + $0xa3c] sm:$0xf]  ;;  %v12737_v58 = vor.u32 %v13919_v28, %v12736_v38 }
 0x506   : > { %8531 = vmatpush.bf16.msra.mxu0 %v12357_v26  ;;  %v8281_v62 = vpop.f32.mrf.mxu0  ;;  %v10433_v26 = vor.u32 %v13343_v42, %v10432_v54  ;;  %v11973_v54 = vor.u32 %v13719_v2, %v11970_v19  ;;  %v13911_v34 = vld [vmem:[%s14684_s22 + $0x163c] sm:$0xf]  ;;  %v13871_v2 = vld [vmem:[%s14684_s22 + $0x14f4] sm:$0xf0] }
 0x507   : > { %v12738_v33 = vld [vmem:[%s14684_s22 + $0x1678] sm:$0xf0] }
 0x508   : > { %8458 = vmatpush.bf16.msra.mxu2 %v12033_v0  ;;  %8420 = vmatpush.bf16.msrb.mxu3 %v10433_v26  ;;  %v11269_v0 = vor.u32 %v13543_v8, %v11266_v61  ;;  %v12741_v15 = vor.u32 %v13911_v34, %v12738_v33  ;;  %v13511_v62 = vld [vmem:[%s14684_s22 + $0x9bc] sm:$0xf] }
 0x509   : > { %8498 = vmatpush.bf16.msrb.mxu1 %v10437_v12  ;;  %v11138_v36 = vld [vmem:[%s14684_s22 + $0x9f8] sm:$0xf0] }
 0x50a   : > { %8532 = vmatpush.bf16.msra.mxu0 %v12293_v1  ;;  %v12864_v1 = vld [vmem:[%s14684_s22 + $0x1738] sm:$0xf]  ;;  %v13895_v11 = vld [vmem:[%s14684_s22 + $0x15bc] sm:$0xf]  ;;  %v11141_v12 = vor.u32 %v13511_v62, %v11138_v36  ;;  %v3449_v36 = vperm.slane %v16615_v39, 5 }
 0x50b   : > { %v12865_v9 = vor.u32 %v13951_v49, %v12864_v1  ;;  %8421 = vmatmul.bf16.vlgmr.msrb.gmra.mxu3 %v14859_v17  ;;  %v16625_v3 = vpop.f32.mrf.mxu1  ;;  %v13879_v1 = vld [vmem:[%s14684_s22 + $0x153c] sm:$0xf] }
 0x50c   : > { %8459 = vmatpush.bf16.msra.mxu2 %v11969_v20  ;;  %8465 = vmatpush.bf16.msra.mxu3 %v12929_v4  ;;  %v12673_v20 = vor.u32 %v13903_v24, %v12672_v41  ;;  %v12610_v49 = vld [vmem:[%s14684_s22 + $0x1578] sm:$0xf0] }
 0x50d   : > { %8543 = vmatpush.bf16.msra.mxu1 %v12933_v23  ;;  %v13479_v19 = vld [vmem:[%s14684_s22 + $0x8bc] sm:$0xf] }
 0x50e   : > { %8533 = vmatpush.bf16.msra.mxu0 %v12229_v25  ;;  %v13935_v25 = vld [vmem:[%s14684_s22 + $0x16f4] sm:$0xf0]  ;;  %8499 = vmatmul.bf16.vlgmr.msrb.gmra.mxu1 %v14859_v17  ;;  %v11202_v17 = vld [vmem:[%s14684_s22 + $0xa78] sm:$0xf0]  ;;  %v8214_v4 = vpop.f32.mrf.mxu3  ;;  %v16636_v60 = vpop.f32.mrf.mxu2 }
 0x50f   : > { %8460 = vmatmul.bf16.vlgmr.msra.gmra.mxu2 %v15002_v13  ;;  %v12801_v42 = vor.u32 %v13935_v25, %v12800_v52  ;;  %v11205_v7 = vor.u32 %v13527_v32, %v11202_v17  ;;  %v12546_v52 = vld [vmem:[%s14684_s22 + $0x14f8] sm:$0xf0] }
 0x510   : > { %8504 = vmatpush.bf16.msrb.mxu2 %v11397_v43  ;;  %8466 = vmatpush.bf16.msra.mxu3 %v12865_v9  ;;  %v13495_v43 = vld [vmem:[%s14684_s22 + $0x93c] sm:$0xf]  ;;  %v12544_v9 = vld [vmem:[%s14684_s22 + $0x14b8] sm:$0xf] }
 0x511   : > { %8544 = vmatpush.bf16.msra.mxu1 %v12869_v50  ;;  %v13863_v50 = vld [vmem:[%s14684_s22 + $0x14bc] sm:$0xf]  ;;  %v12545_v8 = vor.u32 %v13871_v2, %v12544_v9 }
 0x512   : > { %8534 = vmatpush.bf16.msra.mxu0 %v12165_v29  ;;  %v8176_v29 = vadd.f32 %v16410_v45, %v3447_v21  ;;  %v12674_v45 = vld [vmem:[%s14684_s22 + $0x15f8] sm:$0xf0]  ;;  %v12549_v56 = vor.u32 %v13863_v50, %v12546_v52  ;;  %v12480_v21 = vld [vmem:[%s14684_s22 + $0x1438] sm:$0xf] }
 0x513   : > { %v8294_v37 = vpop.f32.mrf.mxu1  ;;  %v13847_v38 = vld [vmem:[%s14684_s22 + $0x143c] sm:$0xf] }
 0x514   : > { %8505 = vmatpush.bf16.msrb.mxu2 %v11333_v22  ;;  %8467 = vmatpush.bf16.msra.mxu3 %v12801_v42  ;;  %v8189_v26 = vadd.f32 %v16469_v31, %v8176_v29  ;;  %v12608_v31 = vld [vmem:[%s14684_s22 + $0x1538] sm:$0xf]  ;;  %v13463_v42 = vld [vmem:[%s14684_s22 + $0x83c] sm:$0xf] }
 0x515   : > { %8545 = vmatpush.bf16.msra.mxu1 %v12805_v35  ;;  %v10946_v35 = vld [vmem:[%s14684_s22 + $0x878] sm:$0xf0] }
 0x516   : > { %8535 = vmatpush.bf16.msra.mxu0 %v12101_v47  ;;  %v8202_v55 = vadd.f32 %v16561_v5, %v8189_v26  ;;  %v12677_v47 = vor.u32 %v13895_v11, %v12674_v45  ;;  %v11074_v5 = vld [vmem:[%s14684_s22 + $0x978] sm:$0xf0]  ;;  %v8216_v57 = vpop.f32.mrf.mxu3 }
 0x517   : > { %v12482_v28 = vld [vmem:[%s14684_s22 + $0x1478] sm:$0xf0] }
 0x518   : > { %8506 = vmatpush.bf16.msrb.mxu2 %v11269_v0  ;;  %8468 = vmatpush.bf16.msra.mxu3 %v12737_v58  ;;  %v8215_v23 = vadd.f32 %v8214_v4, %v8202_v55  ;;  %v13703_v17 = vld [vmem:[%s14684_s22 + $0xfbc] sm:$0xf]  ;;  %v10949_v58 = vor.u32 %v13463_v42, %v10946_v35 }
 0x519   : > { %8546 = vmatpush.bf16.msra.mxu1 %v12741_v15  ;;  %v11906_v34 = vld [vmem:[%s14684_s22 + $0xff8] sm:$0xf0] }
 0x51a   : > { %8536 = vmatpush.bf16.msra.mxu0 %v12037_v16  ;;  %v8228_v59 = vadd.f32 %v16492_v14, %v8215_v23  ;;  %v12609_v16 = vor.u32 %v13887_v63, %v12608_v31  ;;  %v11909_v15 = vor.u32 %v13703_v17, %v11906_v34  ;;  %v13687_v41 = vld [vmem:[%s14684_s22 + $0xf3c] sm:$0xf] }
 0x51b   : > { %v11842_v24 = vld [vmem:[%s14684_s22 + $0xf78] sm:$0xf0] }
 0x51c   : > { %8507 = vmatpush.bf16.msrb.mxu2 %v11205_v7  ;;  %8469 = vmatpush.bf16.msra.mxu3 %v12673_v20  ;;  %v8241_v22 = vadd.f32 %v16548_v46, %v8228_v59  ;;  %v8255_v46 = vpop.f32.mrf.mxu2  ;;  %v12485_v7 = vor.u32 %v13847_v38, %v12482_v28  ;;  %v13671_v62 = vld [vmem:[%s14684_s22 + $0xebc] sm:$0xf] }
 0x51d   : > { %8547 = vmatpush.bf16.msra.mxu1 %v12677_v47  ;;  %v11778_v26 = vld [vmem:[%s14684_s22 + $0xef8] sm:$0xf0] }
 0x51e   : > { %8537 = vmatpush.bf16.msra.mxu0 %v11973_v54  ;;  %v8331_v27 = vpop.f32.mrf.mxu0  ;;  %v8580_v25 = vrot.slane %v8241_v22, 2  ;;  %v13855_v54 = vld [vmem:[%s14684_s22 + $0x1474] sm:$0xf0]  ;;  %v11781_v11 = vor.u32 %v13671_v62, %v11778_v26  ;;  %v13655_v45 = vld [vmem:[%s14684_s22 + $0xe3c] sm:$0xf] }
 0x51f   : > { %v12481_v29 = vor.u32 %v13855_v54, %v12480_v21  ;;  %v11714_v55 = vld [vmem:[%s14684_s22 + $0xe78] sm:$0xf0]  ;;  %v8332_v20 = vadd.f32 %v8331_v27, %v3449_v36 }
 0x520   : > { %8508 = vmatpush.bf16.msrb.mxu2 %v11141_v12  ;;  %8470 = vmatpush.bf16.msra.mxu3 %v12609_v16  ;;  %v3448_v12 = vperm.slane %v16615_v39, 4  ;;  %v11717_v4 = vor.u32 %v13655_v45, %v11714_v55  ;;  %v13639_v63 = vld [vmem:[%s14684_s22 + $0xdbc] sm:$0xf] }
 0x521   : > { %8538 = vmatmul.bf16.vlgmr.msra.gmra.mxu0 %v15002_v13  ;;  %v8150_v13 = vadd.f32 %v16481_v30, %v16498_v51  ;;  %v11077_v30 = vor.u32 %v13495_v43, %v11074_v5  ;;  %v12613_v51 = vor.u32 %v13879_v1, %v12610_v49  ;;  %v13623_v5 = vld [vmem:[%s14684_s22 + $0xd3c] sm:$0xf] }
 0x522   : > { %v11586_v1 = vld [vmem:[%s14684_s22 + $0xd78] sm:$0xf0] }
 0x523   : > { %v8163_v6 = vadd.f32 %v16559_v53, %v8150_v13  ;;  %v11010_v53 = vld [vmem:[%s14684_s22 + $0x8f8] sm:$0xf0]  ;;  %8548 = vmatpush.bf16.msra.mxu1 %v12613_v51  ;;  %v11589_v27 = vor.u32 %v13623_v5, %v11586_v1 }
 0x524   : > { %8509 = vmatpush.bf16.msrb.mxu2 %v11077_v30  ;;  %v11013_v61 = vor.u32 %v13479_v19, %v11010_v53  ;;  %8471 = vmatpush.bf16.msra.mxu3 %v12545_v8  ;;  %v13607_v16 = vld [vmem:[%s14684_s22 + $0xcbc] sm:$0xf] }
 0x525   : > { %v8579_v14 = vrot.slane %v8163_v6, 4  ;;  %v11522_v30 = vld [vmem:[%s14684_s22 + $0xcf8] sm:$0xf0] }
 0x526   : > { %v8333_v33 = vpop.f32.mrf.mxu0  ;;  %v11525_v9 = vor.u32 %v13607_v16, %v11522_v30  ;;  %v13591_v22 = vld [vmem:[%s14684_s22 + $0xc3c] sm:$0xf] }
 0x527   : > { %v8594_v0 = vsel %vm8586_vm15, %v8579_v14, %v8580_v25  ;;  %8549 = vmatpush.bf16.msra.mxu1 %v12549_v56  ;;  %v11458_v53 = vld [vmem:[%s14684_s22 + $0xc78] sm:$0xf0] }
 0x528   : > { %v8595_v32 = vsel %vm8588_vm0, %v16428_v48, %v8594_v0  ;;  %8510 = vmatpush.bf16.msrb.mxu2 %v11013_v61  ;;  %8472 = vmatpush.bf16.msra.mxu3 %v12481_v29  ;;  %v11845_v48 = vor.u32 %v13687_v41, %v11842_v24  ;;  %v11461_v52 = vor.u32 %v13591_v22, %v11458_v53 }
 0x529   : > { %8605 = vst [vmem:[%s15694_s13 + $0x10] sm:$0xff] %v8595_v32 }
 0x52b   : > { %8550 = vmatpush.bf16.msra.mxu1 %v12485_v7  ;;  %8473 = vmatmul.bf16.vlgmr.msra.gmra.mxu3 %v15057_v44  ;;  %v8344_v47 = vpop.f32.mrf.mxu1  ;;  %v3450_v7 = vperm.slane %v16615_v39, 6 }
 0x52c   : > { %8511 = vmatpush.bf16.msrb.mxu2 %v10949_v58  ;;  %8517 = vmatpush.bf16.msrb.mxu3 %v11909_v15  ;;  %v8345_v31 = vadd.f32 %v8344_v47, %v8332_v20 }
 0x52e   : > { %8551 = vmatmul.bf16.vlgmr.msra.gmra.mxu1 %v15057_v44  ;;  %v8254_v44 = vadd.f32 %v16636_v60, %v3448_v12  ;;  %v8266_v13 = vpop.f32.mrf.mxu3  ;;  %v8305_v23 = vpop.f32.mrf.mxu2 }
 0x52f   : > { %8512 = vmatmul.bf16.vlgmr.msrb.gmra.mxu2 %v14893_v10  ;;  %v11650_v10 = vld [vmem:[%s14684_s22 + $0xdf8] sm:$0xf0] }
 0x530   : > { %8518 = vmatpush.bf16.msrb.mxu3 %v11845_v48  ;;  %v11653_v43 = vor.u32 %v13639_v63, %v11650_v10  ;;  %v8267_v49 = vadd.f32 %v8266_v13, %v8254_v44 }
 0x532   : > { %v8280_v6 = vadd.f32 %v16571_v18, %v8267_v49 }
 0x533   : > { %v8346_v59 = vpop.f32.mrf.mxu1 }
 0x534   : > { %8519 = vmatpush.bf16.msrb.mxu3 %v11781_v11  ;;  %v8293_v51 = vadd.f32 %v16625_v3, %v8280_v6 }
 0x536   : > { %v8306_v60 = vadd.f32 %v8305_v23, %v8293_v51  ;;  %v8268_v2 = vpop.f32.mrf.mxu3  ;;  %v8307_v19 = vpop.f32.mrf.mxu2 }
 0x538   : > { %8520 = vmatpush.bf16.msrb.mxu3 %v11717_v4 }
 0x53c   : > { %8521 = vmatpush.bf16.msrb.mxu3 %v11653_v43  ;;  %v3451_v43 = vperm.slane %v16615_v39, 7 }
 0x53e   : > { %v8383_v37 = vpop.f32.mrf.mxu0 }
 0x540   : > { %8522 = vmatpush.bf16.msrb.mxu3 %v11589_v27 }
 0x544   : > { %8523 = vmatpush.bf16.msrb.mxu3 %v11525_v9 }
 0x546   : > { %v8385_v50 = vpop.f32.mrf.mxu0 }
 0x548   : > { %8524 = vmatpush.bf16.msrb.mxu3 %v11461_v52 }
 0x54b   : > { %8525 = vmatmul.bf16.vlgmr.msrb.gmra.mxu3 %v14946_v40  ;;  %v8396_v18 = vpop.f32.mrf.mxu1 }
 0x54e   : > { %v8318_v14 = vpop.f32.mrf.mxu3  ;;  %v8357_v25 = vpop.f32.mrf.mxu2 }
 0x54f   : > { %v8319_v8 = vadd.f32 %v8318_v14, %v8306_v60  ;;  %v8358_v61 = vadd.f32 %v8357_v25, %v8345_v31 }
 0x553   : > { %v8398_v56 = vpop.f32.mrf.mxu1 }
 0x556   : > { %v8320_v57 = vpop.f32.mrf.mxu3  ;;  %v8359_v46 = vpop.f32.mrf.mxu2 }
 0x55e   : > { %v8435_v3 = vpop.f32.mrf.mxu0 }
 0x566   : > { %v8437_v21 = vpop.f32.mrf.mxu0 }
 0x56b   : > { %v8448_v54 = vpop.f32.mrf.mxu1 }
 0x56e   : > { %v8370_v42 = vpop.f32.mrf.mxu3  ;;  %v8409_v0 = vpop.f32.mrf.mxu2 }
 0x56f   : > { %v8371_v35 = vadd.f32 %v8370_v42, %v8358_v61  ;;  %v8410_v41 = vadd.f32 %v8409_v0, %v3450_v7 }
 0x571   : > { %v8384_v38 = vadd.f32 %v8383_v37, %v8371_v35 }
 0x573   : > { %v8450_v28 = vpop.f32.mrf.mxu1  ;;  %v8397_v17 = vadd.f32 %v8396_v18, %v8384_v38 }
 0x575   : > { %v8581_v34 = vrot.slane %v8397_v17, 6 }
 0x576   : > { %v8372_v40 = vpop.f32.mrf.mxu3  ;;  %v8411_v33 = vpop.f32.mrf.mxu2 }
 0x577   : > { %v8596_v29 = vsel %vm8584_vm14, %v8319_v8, %v8581_v34 }
 0x57e   : > { %v8487_v32 = vpop.f32.mrf.mxu0 }
 0x57f   : > { %v8488_v13 = vadd.f32 %v8487_v32, %v3451_v43 }
 0x586   : > { %v8489_v58 = vpop.f32.mrf.mxu0 }
 0x58b   : > { %v8500_v15 = vpop.f32.mrf.mxu1 }
 0x58c   : > { %v8501_v23 = vadd.f32 %v8500_v15, %v8488_v13 }
 0x58e   : > { %v8422_v24 = vpop.f32.mrf.mxu3 }
 0x58f   : > { %v8423_v62 = vadd.f32 %v8422_v24, %v8410_v41 }
 0x591   : > { %v8436_v26 = vadd.f32 %v8435_v3, %v8423_v62 }
 0x592   : > { %v8461_v48 = vpop.f32.mrf.mxu2 }
 0x593   : > { %v8502_v36 = vpop.f32.mrf.mxu1  ;;  %v8449_v45 = vadd.f32 %v8448_v54, %v8436_v26 }
 0x595   : > { %v8462_v49 = vadd.f32 %v8461_v48, %v8449_v45 }
 0x596   : > { %v8424_v55 = vpop.f32.mrf.mxu3 }
 0x59a   : > { %v8463_v20 = vpop.f32.mrf.mxu2 }
 0x59e   : > { %v8539_v11 = vpop.f32.mrf.mxu0 }
 0x5a6   : > { %v8541_v12 = vpop.f32.mrf.mxu0 }
 0x5ab   : > { %v8552_v47 = vpop.f32.mrf.mxu1 }
 0x5ae   : > { %v8474_v4 = vpop.f32.mrf.mxu3 }
 0x5af   : > { %v8475_v59 = vadd.f32 %v8474_v4, %v8462_v49 }
 0x5b1   : > { %v8582_v16 = vrot.slane %v8475_v59, 4 }
 0x5b2   : > { %v8513_v31 = vpop.f32.mrf.mxu2 }
 0x5b3   : > { %v8554_v63 = vpop.f32.mrf.mxu1  ;;  %v8514_v5 = vadd.f32 %v8513_v31, %v8501_v23 }
 0x5b6   : > { %v8476_v10 = vpop.f32.mrf.mxu3 }
 0x5ba   : > { %v8515_v44 = vpop.f32.mrf.mxu2 }
 0x5ce   : > { %v8526_v1 = vpop.f32.mrf.mxu3 }
 0x5cf   : > { %v8527_v6 = vadd.f32 %v8526_v1, %v8514_v5 }
 0x5d1   : > { %v8540_v37 = vadd.f32 %v8539_v11, %v8527_v6 }
 0x5d3   : > { %v8553_v27 = vadd.f32 %v8552_v47, %v8540_v37 }
 0x5d5   : > { %v8583_v30 = vrot.slane %v8553_v27, 2 }
 0x5d6   : > { %v8528_v51 = vpop.f32.mrf.mxu3 }
 0x5d7   : > { %v8597_v60 = vsel %vm8586_vm15, %v8582_v16, %v8583_v30 }
 0x5d8   : > { %v8598_v9 = vsel %vm8588_vm0, %v8596_v29, %v8597_v60 }
 0x5d9   : > { %8606 = vst [vmem:[%s15694_s13 + $0x18] sm:$0xff] %v8598_v9 }
 0x5da PF: > { %s16739_s16 = sld [smem:[#allocation24_spill]]  ;;  %s16741_s13 = smov %s14438_s14 }
 0x5db   : > { %s16740_s3 = sld [smem:[#allocation25_spill]]  ;;  %s16742_s14 = smov %s14442_s15 }
 0x5e0   : > { %p25_p3 = scmp.ge.s32.totalorder %s16739_s16, 5  }
 0x5e1   : > { %s16743_s15 = smov %s16740_s3 }
 0x5e2   :  { %27 = sbr.rel (!%p25_p3) target bundleno = 13 (0xd), region = 145 }
 0x5e7   :  { %8629 = vsyncpa [#allocation3], 1 }
 0x5e8   :  { %8631 = vsyncpa [#allocation3 + $0x1], 1 }
 0x5e9   :  { %8632 = vsyncpa [#allocation6], 1 }
 0x5ea   :  { %8633 = vsyncpa [#allocation9], 1 }
 0x5eb   :  { %8634 = vsyncpa [#allocation12], 1 }
 0x5ec   :  { %8635 = vsyncpa [#allocation15], 1 }
 0x5ed   :  { %8637 = vsyncpa [#allocation15 + $0x1], 1 }
 0x5ee   :  { %8638 = vsyncpa [#allocation4], 1 }
 0x5ef   :  { %8640 = vsyncpa [#allocation4 + $0x1], 1 }

</bundles_post_ra>
